<compile_context>
chip_gen: v6e
topology: v6e:2x2x1
jax: 0.10.0
libtpu: 0.0.40
codegen_flags: <defaults>
</compile_context>

<pallas_src>
import functools

import jax
import jax.numpy as jnp
import numpy as np
from jax.experimental import pallas as pl
from jax.experimental.pallas import tpu as pltpu

_VMEM_LIMIT = 32 * 1024 * 1024  # comfortable on v5e/v6e (128 MiB) and v7x (64 MiB)


def _pick_bm(M, max_bm=2048):
    """Largest power-of-two row tile <= max_bm that divides M and leaves >= 2
    grid steps (keeps both v7x TensorCores busy); fall back to one step."""
    for cand in (2048, 1024, 512, 256, 128, 64, 32, 16, 8):
        if cand <= max_bm and M % cand == 0 and M // cand >= 2:
            return cand
    return M


# ----------------------------------------------------------------------------
# Pallas kernel: out = (a @ b + bias), optional ReLU.  a/b are bf16, the
# accumulation is f32 on the MXU, output is stored bf16 (lane width = true N).
# ----------------------------------------------------------------------------
def _matmul_bias_kernel(a_ref, b_ref, bias_ref, o_ref, *, apply_relu):
    acc = jnp.dot(a_ref[...], b_ref[...], preferred_element_type=jnp.float32)
    acc = acc + bias_ref[...]                       # (1, N) broadcasts over rows
    if apply_relu:
        acc = jnp.maximum(acc, 0.0)
    o_ref[...] = acc.astype(o_ref.dtype)


def pallas_matmul_bias(a, b, bias, *, apply_relu, out_dtype=jnp.bfloat16):
    """relu(a @ b + bias) (relu optional) on the MXU via a Pallas kernel.

    a: (M, K) bf16, b: (K, N) bf16, bias: (N,) f32 -> (M, N) out_dtype.
    No operand padding: K and N are full-extent block dims; the grid only
    tiles M (weights/bias have constant index_maps -> DMA'd once, resident).
    """
    M, K = a.shape
    K2, N = b.shape
    assert K == K2 and bias.shape == (N,)
    assert M % 8 == 0, f"M={M} must be a multiple of 8"
    bm = _pick_bm(M)
    bias2d = bias.reshape(1, N).astype(jnp.float32)

    return pl.pallas_call(
        functools.partial(_matmul_bias_kernel, apply_relu=apply_relu),
        out_shape=jax.ShapeDtypeStruct((M, N), out_dtype),
        grid_spec=pltpu.PrefetchScalarGridSpec(
            num_scalar_prefetch=0,
            grid=(M // bm,),
            in_specs=[
                pl.BlockSpec((bm, K), lambda i: (i, 0)),
                pl.BlockSpec((K, N), lambda i: (0, 0)),
                pl.BlockSpec((1, N), lambda i: (0, 0)),
            ],
            out_specs=pl.BlockSpec((bm, N), lambda i: (i, 0)),
        ),
        compiler_params=pltpu.CompilerParams(
            dimension_semantics=("parallel",),
            vmem_limit_bytes=_VMEM_LIMIT,
        ),
    )(a, b, bias2d)


# ----------------------------------------------------------------------------
# Fused kernel for the last Conv2dBlock + trailing 1x1 conv head:
#   y = relu(patches @ W4 + b4)          (bm, 64)   -- MXU, f32 acc
#   z = y @ w_last + b_last              (bm, 1)    -- lane reduce (VPU/XLU)
# Only z is written back (the (M,64) conv4 output never touches HBM).
# ----------------------------------------------------------------------------
def _conv4_head_kernel(a_ref, w4_ref, b4_ref, wl_ref, bl_ref, o_ref):
    y = jnp.dot(a_ref[...], w4_ref[...], preferred_element_type=jnp.float32)
    y = jnp.maximum(y + b4_ref[...], 0.0)
    z = jnp.sum(y * wl_ref[...], axis=1, keepdims=True)   # (bm, 1)
    o_ref[...] = z + bl_ref[...]


def pallas_conv4_and_head(a, w4, b4, w_last, b_last):
    M, K = a.shape
    K2, N4 = w4.shape
    assert K == K2 and b4.shape == (N4,)
    bm = _pick_bm(M)
    b4_2d = b4.reshape(1, N4).astype(jnp.float32)
    wl = w_last.reshape(1, N4).astype(jnp.float32)      # (1, 64): per-channel weights
    bl = b_last.reshape(1, 1).astype(jnp.float32)

    return pl.pallas_call(
        _conv4_head_kernel,
        out_shape=jax.ShapeDtypeStruct((M, 1), jnp.float32),
        grid_spec=pltpu.PrefetchScalarGridSpec(
            num_scalar_prefetch=0,
            grid=(M // bm,),
            in_specs=[
                pl.BlockSpec((bm, K), lambda i: (i, 0)),
                pl.BlockSpec((K, N4), lambda i: (0, 0)),
                pl.BlockSpec((1, N4), lambda i: (0, 0)),
                pl.BlockSpec((1, N4), lambda i: (0, 0)),
                pl.BlockSpec((1, 1), lambda i: (0, 0)),
            ],
            out_specs=pl.BlockSpec((bm, 1), lambda i: (i, 0)),
        ),
        compiler_params=pltpu.CompilerParams(
            dimension_semantics=("parallel",),
            vmem_limit_bytes=_VMEM_LIMIT,
        ),
    )(a, w4, b4_2d, wl, bl)


# ----------------------------------------------------------------------------
# im2col (layout glue, runs inside the jitted forward; hot matmuls are Pallas)
# ----------------------------------------------------------------------------
# TODO(synk): fuse im2col into the conv kernel via memory_space=pl.ANY + manual
# DMA so the patches tensor never round-trips HBM (review item; kept as plain
# JAX glue here for lowering safety).
def im2col(x_nhwc, KH, KW, stride, pad):
    N, H, W, C = x_nhwc.shape
    if pad > 0:
        xp = jnp.pad(x_nhwc, ((0, 0), (pad, pad), (pad, pad), (0, 0)),
                     mode="reflect")
    else:
        xp = x_nhwc
    OH = (H + 2 * pad - KH) // stride + 1
    OW = (W + 2 * pad - KW) // stride + 1
    cols = []
    for i in range(KH):
        for j in range(KW):
            cols.append(xp[:, i:i + stride * OH:stride,
                            j:j + stride * OW:stride, :])
    patches = jnp.concatenate(cols, axis=-1).reshape(N * OH * OW, KH * KW * C)
    return patches, OH, OW


def _w_mat(w_oihw):
    # PyTorch (OC, IC, KH, KW) -> (KH, KW, IC, OC) -> (KH*KW*IC, OC), bf16.
    oc = w_oihw.shape[0]
    return jnp.transpose(w_oihw, (2, 3, 1, 0)).reshape(-1, oc).astype(jnp.bfloat16)


# ----------------------------------------------------------------------------
# Net: parameters + forward
# ----------------------------------------------------------------------------
def init_params(key, input_dim, dim):
    convs = []
    specs = [(input_dim, dim)]
    d = dim
    for _ in range(3):
        specs.append((d, d * 2))
        d *= 2
    for ic, oc in specs:
        key, k1, k2 = jax.random.split(key, 3)
        w = jax.random.normal(k1, (oc, ic, 4, 4), jnp.float32) * 0.05
        b = jax.random.normal(k2, (oc,), jnp.float32) * 0.05
        convs.append((w, b))
    key, k1, k2 = jax.random.split(key, 3)
    w_last = jax.random.normal(k1, (1, d, 1, 1), jnp.float32) * 0.05
    b_last = jax.random.normal(k2, (1,), jnp.float32) * 0.05
    key, k1, k2 = jax.random.split(key, 3)
    w_fc = jax.random.normal(k1, (3, 16 * 16), jnp.float32) * 0.05
    b_fc = jax.random.normal(k2, (3,), jnp.float32) * 0.05
    return convs, (w_last, b_last), (w_fc, b_fc)


def net_forward(x_nchw, convs, last_conv, fc):
    # NCHW -> NHWC, bf16 for the conv stack (f32 accumulation in-kernel).
    x = jnp.transpose(x_nchw, (0, 2, 3, 1)).astype(jnp.bfloat16)
    n = x.shape[0]

    # First 3 Conv2dBlocks (k=4, s=2, p=1, reflect, relu): im2col + Pallas matmul.
    for w, b in convs[:3]:
        oc = w.shape[0]
        patches, OH, OW = im2col(x, 4, 4, 2, 1)
        y = pallas_matmul_bias(patches, _w_mat(w), b, apply_relu=True)
        x = y.reshape(n, OH, OW, oc)

    # 4th Conv2dBlock fused with the trailing 1x1 conv (no activation) head.
    w4, b4 = convs[3]
    patches, OH, OW = im2col(x, 4, 4, 2, 1)
    w_last, b_last = last_conv
    z = pallas_conv4_and_head(patches, _w_mat(w4), b4, w_last, b_last)

    # (n*16*16, 1) -> (n, 256); identical to PyTorch view(-1, 256) since C==1.
    z = z.reshape(n, OH * OW)
    w_fc, b_fc = fc
    # Final 256x3 Linear: a few kFLOPs -> done inline per perf review (a
    # dedicated pallas_call is pure launch/padding overhead at this size).
    return z @ w_fc.T + b_fc


net_forward_jit = jax.jit(net_forward)


# Pure-JAX f32 reference (XLA convs) used for a correctness sanity check.
def ref_forward(x_nchw, convs, last_conv, fc):
    x = jnp.transpose(x_nchw, (0, 2, 3, 1))
    for w, b in convs:
        xp = jnp.pad(x, ((0, 0), (1, 1), (1, 1), (0, 0)), mode="reflect")
        whwio = jnp.transpose(w, (2, 3, 1, 0))
        x = jax.lax.conv_general_dilated(
            xp, whwio, (2, 2), "VALID",
            dimension_numbers=("NHWC", "HWIO", "NHWC")) + b
        x = jnp.maximum(x, 0.0)
    w_last, b_last = last_conv
    whwio = jnp.transpose(w_last, (2, 3, 1, 0))
    x = jax.lax.conv_general_dilated(
        x, whwio, (1, 1), "VALID",
        dimension_numbers=("NHWC", "HWIO", "NHWC")) + b_last
    x = x.reshape(x.shape[0], -1)
    w_fc, b_fc = fc
    return x @ w_fc.T + b_fc


if __name__ == "__main__":
    INPUT_DIM = 3   # input channels
    DIM = 8         # first conv width (doubles 3x -> 64 before the 1x1 conv)
    BATCH = 2
    H = W = 256     # required so that x.view(-1, 16*16) is shape-consistent

    key = jax.random.PRNGKey(0)
    key, xkey = jax.random.split(key)
    x = jax.random.normal(xkey, (BATCH, INPUT_DIM, H, W), jnp.float32)

    convs, last_conv, fc = init_params(key, INPUT_DIM, DIM)

    out = net_forward_jit(x, convs, last_conv, fc)
    out = jax.block_until_ready(out)
    assert out.shape == (BATCH, 3), out.shape

    ref = jax.block_until_ready(ref_forward(x, convs, last_conv, fc))
    np.testing.assert_allclose(np.asarray(out), np.asarray(ref),
                               rtol=2e-2, atol=2e-2)

    print("KERNEL_OK")
</pallas_src>

<mosaic_0001>
module attributes {stable_mosaic.version = 11 : i64} {
  func.func @_matmul_bias_kernel(%arg0: i32, %arg1: memref<2048x48xbf16, #tpu.memory_space<vmem>>, %arg2: memref<48x8xbf16, #tpu.memory_space<vmem>>, %arg3: memref<1x8xf32, #tpu.memory_space<vmem>>, %arg4: memref<2048x8xbf16, #tpu.memory_space<vmem>>) attributes {dimension_semantics = [#tpu.dimension_semantics<parallel>], iteration_bounds = array<i64: 16>, scalar_prefetch = 0 : i64, scratch_operands = 0 : i64, tpu.core_type = #tpu.core_type<tc>, window_params = [{transform_indices = @transform_0, window_bounds = array<i64: 2048, 48>}, {pipeline_mode = #tpu.pipeline_mode<synchronous>, transform_indices = @transform_1, window_bounds = array<i64: 48, 8>}, {pipeline_mode = #tpu.pipeline_mode<synchronous>, transform_indices = @transform_2, window_bounds = array<i64: 1, 8>}, {transform_indices = @transform_3, window_bounds = array<i64: 2048, 8>}]} {
    %c0 = arith.constant 0 : index
    %c0_0 = arith.constant 0 : index
    %0 = vector.load %arg1[%c0, %c0_0] : memref<2048x48xbf16, #tpu.memory_space<vmem>>, vector<2048x48xbf16>
    %c0_1 = arith.constant 0 : index
    %c0_2 = arith.constant 0 : index
    %1 = vector.load %arg2[%c0_1, %c0_2] : memref<48x8xbf16, #tpu.memory_space<vmem>>, vector<48x8xbf16>
    %cst = arith.constant dense<0.000000e+00> : vector<2048x8xf32>
    %2 = tpu.matmul %0, %1, %cst {dimension_numbers = #tpu.dot_dimension_numbers<[1], [0], [0], [1], [0, 0, 1, 1], [], []>} : vector<2048x48xbf16>, vector<48x8xbf16>, vector<2048x8xf32> -> vector<2048x8xf32>
    %c0_3 = arith.constant 0 : index
    %c0_4 = arith.constant 0 : index
    %3 = vector.load %arg3[%c0_3, %c0_4] : memref<1x8xf32, #tpu.memory_space<vmem>>, vector<1x8xf32>
    %4 = vector.broadcast %3 : vector<1x8xf32> to vector<2048x8xf32>
    %5 = arith.addf %2, %4 : vector<2048x8xf32>
    %cst_5 = arith.constant 0.000000e+00 : f32
    %6 = vector.broadcast %cst_5 : f32 to vector<2048x8xf32>
    %7 = arith.maximumf %5, %6 : vector<2048x8xf32>
    %8 = arith.truncf %7 : vector<2048x8xf32> to vector<2048x8xbf16>
    %c0_6 = arith.constant 0 : index
    %c0_7 = arith.constant 0 : index
    %9 = vector.load %arg4[%c0_6, %c0_7] : memref<2048x8xbf16, #tpu.memory_space<vmem>>, vector<2048x8xbf16>
    tpu.vector_store %arg4[%c0_6, %c0_7], %8 {strides = array<i32>} : memref<2048x8xbf16, #tpu.memory_space<vmem>>, vector<2048x8xbf16>,
    return
  }
  func.func @transform_0(%arg0: i32) -> (i32, i32) {
    %c0_i32 = arith.constant 0 : i32
    %c0_i32_0 = arith.constant 0 : i32
    return %arg0, %c0_i32 : i32, i32
  }
  func.func @transform_1(%arg0: i32) -> (i32, i32) {
    %c0_i32 = arith.constant 0 : i32
    %c0_i32_0 = arith.constant 0 : i32
    %c0_i32_1 = arith.constant 0 : i32
    return %c0_i32, %c0_i32_0 : i32, i32
  }
  func.func @transform_2(%arg0: i32) -> (i32, i32) {
    %c0_i32 = arith.constant 0 : i32
    %c0_i32_0 = arith.constant 0 : i32
    %c0_i32_1 = arith.constant 0 : i32
    return %c0_i32, %c0_i32_0 : i32, i32
  }
  func.func @transform_3(%arg0: i32) -> (i32, i32) {
    %c0_i32 = arith.constant 0 : i32
    %c0_i32_0 = arith.constant 0 : i32
    return %arg0, %c0_i32 : i32, i32
  }
}

module attributes {stable_mosaic.version = 11 : i64} {
  func.func @_matmul_bias_kernel(%arg0: i32, %arg1: memref<2048x128xbf16, #tpu.memory_space<vmem>>, %arg2: memref<128x16xbf16, #tpu.memory_space<vmem>>, %arg3: memref<1x16xf32, #tpu.memory_space<vmem>>, %arg4: memref<2048x16xbf16, #tpu.memory_space<vmem>>) attributes {dimension_semantics = [#tpu.dimension_semantics<parallel>], iteration_bounds = array<i64: 4>, scalar_prefetch = 0 : i64, scratch_operands = 0 : i64, tpu.core_type = #tpu.core_type<tc>, window_params = [{transform_indices = @transform_0, window_bounds = array<i64: 2048, 128>}, {pipeline_mode = #tpu.pipeline_mode<synchronous>, transform_indices = @transform_1, window_bounds = array<i64: 128, 16>}, {pipeline_mode = #tpu.pipeline_mode<synchronous>, transform_indices = @transform_2, window_bounds = array<i64: 1, 16>}, {transform_indices = @transform_3, window_bounds = array<i64: 2048, 16>}]} {
    %c0 = arith.constant 0 : index
    %c0_0 = arith.constant 0 : index
    %0 = vector.load %arg1[%c0, %c0_0] : memref<2048x128xbf16, #tpu.memory_space<vmem>>, vector<2048x128xbf16>
    %c0_1 = arith.constant 0 : index
    %c0_2 = arith.constant 0 : index
    %1 = vector.load %arg2[%c0_1, %c0_2] : memref<128x16xbf16, #tpu.memory_space<vmem>>, vector<128x16xbf16>
    %cst = arith.constant dense<0.000000e+00> : vector<2048x16xf32>
    %2 = tpu.matmul %0, %1, %cst {dimension_numbers = #tpu.dot_dimension_numbers<[1], [0], [0], [1], [0, 0, 1, 1], [], []>} : vector<2048x128xbf16>, vector<128x16xbf16>, vector<2048x16xf32> -> vector<2048x16xf32>
    %c0_3 = arith.constant 0 : index
    %c0_4 = arith.constant 0 : index
    %3 = vector.load %arg3[%c0_3, %c0_4] : memref<1x16xf32, #tpu.memory_space<vmem>>, vector<1x16xf32>
    %4 = vector.broadcast %3 : vector<1x16xf32> to vector<2048x16xf32>
    %5 = arith.addf %2, %4 : vector<2048x16xf32>
    %cst_5 = arith.constant 0.000000e+00 : f32
    %6 = vector.broadcast %cst_5 : f32 to vector<2048x16xf32>
    %7 = arith.maximumf %5, %6 : vector<2048x16xf32>
    %8 = arith.truncf %7 : vector<2048x16xf32> to vector<2048x16xbf16>
    %c0_6 = arith.constant 0 : index
    %c0_7 = arith.constant 0 : index
    %9 = vector.load %arg4[%c0_6, %c0_7] : memref<2048x16xbf16, #tpu.memory_space<vmem>>, vector<2048x16xbf16>
    tpu.vector_store %arg4[%c0_6, %c0_7], %8 {strides = array<i32>} : memref<2048x16xbf16, #tpu.memory_space<vmem>>, vector<2048x16xbf16>,
    return
  }
  func.func @transform_0(%arg0: i32) -> (i32, i32) {
    %c0_i32 = arith.constant 0 : i32
    %c0_i32_0 = arith.constant 0 : i32
    return %arg0, %c0_i32 : i32, i32
  }
  func.func @transform_1(%arg0: i32) -> (i32, i32) {
    %c0_i32 = arith.constant 0 : i32
    %c0_i32_0 = arith.constant 0 : i32
    %c0_i32_1 = arith.constant 0 : i32
    return %c0_i32, %c0_i32_0 : i32, i32
  }
  func.func @transform_2(%arg0: i32) -> (i32, i32) {
    %c0_i32 = arith.constant 0 : i32
    %c0_i32_0 = arith.constant 0 : i32
    %c0_i32_1 = arith.constant 0 : i32
    return %c0_i32, %c0_i32_0 : i32, i32
  }
  func.func @transform_3(%arg0: i32) -> (i32, i32) {
    %c0_i32 = arith.constant 0 : i32
    %c0_i32_0 = arith.constant 0 : i32
    return %arg0, %c0_i32 : i32, i32
  }
}

module attributes {stable_mosaic.version = 11 : i64} {
  func.func @_matmul_bias_kernel(%arg0: i32, %arg1: memref<1024x256xbf16, #tpu.memory_space<vmem>>, %arg2: memref<256x32xbf16, #tpu.memory_space<vmem>>, %arg3: memref<1x32xf32, #tpu.memory_space<vmem>>, %arg4: memref<1024x32xbf16, #tpu.memory_space<vmem>>) attributes {dimension_semantics = [#tpu.dimension_semantics<parallel>], iteration_bounds = array<i64: 2>, scalar_prefetch = 0 : i64, scratch_operands = 0 : i64, tpu.core_type = #tpu.core_type<tc>, window_params = [{transform_indices = @transform_0, window_bounds = array<i64: 1024, 256>}, {pipeline_mode = #tpu.pipeline_mode<synchronous>, transform_indices = @transform_1, window_bounds = array<i64: 256, 32>}, {pipeline_mode = #tpu.pipeline_mode<synchronous>, transform_indices = @transform_2, window_bounds = array<i64: 1, 32>}, {transform_indices = @transform_3, window_bounds = array<i64: 1024, 32>}]} {
    %c0 = arith.constant 0 : index
    %c0_0 = arith.constant 0 : index
    %0 = vector.load %arg1[%c0, %c0_0] : memref<1024x256xbf16, #tpu.memory_space<vmem>>, vector<1024x256xbf16>
    %c0_1 = arith.constant 0 : index
    %c0_2 = arith.constant 0 : index
    %1 = vector.load %arg2[%c0_1, %c0_2] : memref<256x32xbf16, #tpu.memory_space<vmem>>, vector<256x32xbf16>
    %cst = arith.constant dense<0.000000e+00> : vector<1024x32xf32>
    %2 = tpu.matmul %0, %1, %cst {dimension_numbers = #tpu.dot_dimension_numbers<[1], [0], [0], [1], [0, 0, 1, 1], [], []>} : vector<1024x256xbf16>, vector<256x32xbf16>, vector<1024x32xf32> -> vector<1024x32xf32>
    %c0_3 = arith.constant 0 : index
    %c0_4 = arith.constant 0 : index
    %3 = vector.load %arg3[%c0_3, %c0_4] : memref<1x32xf32, #tpu.memory_space<vmem>>, vector<1x32xf32>
    %4 = vector.broadcast %3 : vector<1x32xf32> to vector<1024x32xf32>
    %5 = arith.addf %2, %4 : vector<1024x32xf32>
    %cst_5 = arith.constant 0.000000e+00 : f32
    %6 = vector.broadcast %cst_5 : f32 to vector<1024x32xf32>
    %7 = arith.maximumf %5, %6 : vector<1024x32xf32>
    %8 = arith.truncf %7 : vector<1024x32xf32> to vector<1024x32xbf16>
    %c0_6 = arith.constant 0 : index
    %c0_7 = arith.constant 0 : index
    %9 = vector.load %arg4[%c0_6, %c0_7] : memref<1024x32xbf16, #tpu.memory_space<vmem>>, vector<1024x32xbf16>
    tpu.vector_store %arg4[%c0_6, %c0_7], %8 {strides = array<i32>} : memref<1024x32xbf16, #tpu.memory_space<vmem>>, vector<1024x32xbf16>,
    return
  }
  func.func @transform_0(%arg0: i32) -> (i32, i32) {
    %c0_i32 = arith.constant 0 : i32
    %c0_i32_0 = arith.constant 0 : i32
    return %arg0, %c0_i32 : i32, i32
  }
  func.func @transform_1(%arg0: i32) -> (i32, i32) {
    %c0_i32 = arith.constant 0 : i32
    %c0_i32_0 = arith.constant 0 : i32
    %c0_i32_1 = arith.constant 0 : i32
    return %c0_i32, %c0_i32_0 : i32, i32
  }
  func.func @transform_2(%arg0: i32) -> (i32, i32) {
    %c0_i32 = arith.constant 0 : i32
    %c0_i32_0 = arith.constant 0 : i32
    %c0_i32_1 = arith.constant 0 : i32
    return %c0_i32, %c0_i32_0 : i32, i32
  }
  func.func @transform_3(%arg0: i32) -> (i32, i32) {
    %c0_i32 = arith.constant 0 : i32
    %c0_i32_0 = arith.constant 0 : i32
    return %arg0, %c0_i32 : i32, i32
  }
}

module attributes {stable_mosaic.version = 11 : i64} {
  func.func @_conv4_head_kernel(%arg0: i32, %arg1: memref<256x512xbf16, #tpu.memory_space<vmem>>, %arg2: memref<512x64xbf16, #tpu.memory_space<vmem>>, %arg3: memref<1x64xf32, #tpu.memory_space<vmem>>, %arg4: memref<1x64xf32, #tpu.memory_space<vmem>>, %arg5: memref<1x1xf32, #tpu.memory_space<vmem>>, %arg6: memref<256x1xf32, #tpu.memory_space<vmem>>) attributes {dimension_semantics = [#tpu.dimension_semantics<parallel>], iteration_bounds = array<i64: 2>, scalar_prefetch = 0 : i64, scratch_operands = 0 : i64, tpu.core_type = #tpu.core_type<tc>, window_params = [{transform_indices = @transform_0, window_bounds = array<i64: 256, 512>}, {pipeline_mode = #tpu.pipeline_mode<synchronous>, transform_indices = @transform_1, window_bounds = array<i64: 512, 64>}, {pipeline_mode = #tpu.pipeline_mode<synchronous>, transform_indices = @transform_2, window_bounds = array<i64: 1, 64>}, {pipeline_mode = #tpu.pipeline_mode<synchronous>, transform_indices = @transform_3, window_bounds = array<i64: 1, 64>}, {pipeline_mode = #tpu.pipeline_mode<synchronous>, transform_indices = @transform_4, window_bounds = array<i64: 1, 1>}, {transform_indices = @transform_5, window_bounds = array<i64: 256, 1>}]} {
    %c0 = arith.constant 0 : index
    %c0_0 = arith.constant 0 : index
    %0 = vector.load %arg1[%c0, %c0_0] : memref<256x512xbf16, #tpu.memory_space<vmem>>, vector<256x512xbf16>
    %c0_1 = arith.constant 0 : index
    %c0_2 = arith.constant 0 : index
    %1 = vector.load %arg2[%c0_1, %c0_2] : memref<512x64xbf16, #tpu.memory_space<vmem>>, vector<512x64xbf16>
    %cst = arith.constant dense<0.000000e+00> : vector<256x64xf32>
    %2 = tpu.matmul %0, %1, %cst {dimension_numbers = #tpu.dot_dimension_numbers<[1], [0], [0], [1], [0, 0, 1, 1], [], []>} : vector<256x512xbf16>, vector<512x64xbf16>, vector<256x64xf32> -> vector<256x64xf32>
    %c0_3 = arith.constant 0 : index
    %c0_4 = arith.constant 0 : index
    %3 = vector.load %arg3[%c0_3, %c0_4] : memref<1x64xf32, #tpu.memory_space<vmem>>, vector<1x64xf32>
    %4 = vector.broadcast %3 : vector<1x64xf32> to vector<256x64xf32>
    %5 = arith.addf %2, %4 : vector<256x64xf32>
    %cst_5 = arith.constant 0.000000e+00 : f32
    %6 = vector.broadcast %cst_5 : f32 to vector<256x64xf32>
    %7 = arith.maximumf %5, %6 : vector<256x64xf32>
    %c0_6 = arith.constant 0 : index
    %c0_7 = arith.constant 0 : index
    %8 = vector.load %arg4[%c0_6, %c0_7] : memref<1x64xf32, #tpu.memory_space<vmem>>, vector<1x64xf32>
    %9 = vector.broadcast %8 : vector<1x64xf32> to vector<256x64xf32>
    %10 = arith.mulf %7, %9 : vector<256x64xf32>
    %cst_8 = arith.constant dense<0.000000e+00> : vector<256xf32>
    %11 = vector.multi_reduction <add>, %10, %cst_8 [1] : vector<256x64xf32> to vector<256xf32>
    %12 = vector.shape_cast %11 : vector<256xf32> to vector<256x1xf32>
    %c0_9 = arith.constant 0 : index
    %c0_10 = arith.constant 0 : index
    %13 = vector.load %arg5[%c0_9, %c0_10] : memref<1x1xf32, #tpu.memory_space<vmem>>, vector<1x1xf32>
    %14 = vector.broadcast %13 : vector<1x1xf32> to vector<256x1xf32>
    %15 = arith.addf %12, %14 : vector<256x1xf32>
    %c0_11 = arith.constant 0 : index
    %c0_12 = arith.constant 0 : index
    %16 = vector.load %arg6[%c0_11, %c0_12] : memref<256x1xf32, #tpu.memory_space<vmem>>, vector<256x1xf32>
    tpu.vector_store %arg6[%c0_11, %c0_12], %15 {strides = array<i32>} : memref<256x1xf32, #tpu.memory_space<vmem>>, vector<256x1xf32>,
    return
  }
  func.func @transform_0(%arg0: i32) -> (i32, i32) {
    %c0_i32 = arith.constant 0 : i32
    %c0_i32_0 = arith.constant 0 : i32
    return %arg0, %c0_i32 : i32, i32
  }
  func.func @transform_1(%arg0: i32) -> (i32, i32) {
    %c0_i32 = arith.constant 0 : i32
    %c0_i32_0 = arith.constant 0 : i32
    %c0_i32_1 = arith.constant 0 : i32
    return %c0_i32, %c0_i32_0 : i32, i32
  }
  func.func @transform_2(%arg0: i32) -> (i32, i32) {
    %c0_i32 = arith.constant 0 : i32
    %c0_i32_0 = arith.constant 0 : i32
    %c0_i32_1 = arith.constant 0 : i32
    return %c0_i32, %c0_i32_0 : i32, i32
  }
  func.func @transform_3(%arg0: i32) -> (i32, i32) {
    %c0_i32 = arith.constant 0 : i32
    %c0_i32_0 = arith.constant 0 : i32
    %c0_i32_1 = arith.constant 0 : i32
    return %c0_i32, %c0_i32_0 : i32, i32
  }
  func.func @transform_4(%arg0: i32) -> (i32, i32) {
    %c0_i32 = arith.constant 0 : i32
    %c0_i32_0 = arith.constant 0 : i32
    %c0_i32_1 = arith.constant 0 : i32
    return %c0_i32, %c0_i32_0 : i32, i32
  }
  func.func @transform_5(%arg0: i32) -> (i32, i32) {
    %c0_i32 = arith.constant 0 : i32
    %c0_i32_0 = arith.constant 0 : i32
    return %arg0, %c0_i32 : i32, i32
  }
}

</mosaic_0001>

<bundles_post_ra>
// kernel: net_forward.4
= control target key start
LH: loop header
LB: loop body
LE: loop exit
PB: predicated region body
PF: predicated region fallthrough
CT: control target
= control target key end

     0   :  { %s5488_s12 = smov 0   ;;  %s6564_s0 = inlined_call_operand.vmem [shape: bf16[32768,48], index: 0, kind: input, shape index: {}]   ;;  %s6565_s1 = inlined_call_operand.vmem [shape: bf16[48,8], index: 1, kind: input, shape index: {}]   ;;  %s6566_s2 = inlined_call_operand.vmem [shape: f32[1,8], index: 2, kind: input, shape index: {}]   ;;  %s6567_s3 = inlined_call_operand.vmem [shape: bf16[32768,8], index: 3, kind: output, shape index: {}]  }
   0x1 LB: > { %s4137_s13 = sadd.s32 4294967295, %s5466_s12   ;;  %p4141_p0 = scmp.ge.s32.totalorder %s5466_s12, 1  ;;  %s5466_s12 = sphi %s5488_s12, %s13_s12  }
   0x2   : > { %p138_p1 = scmp.lt.s32.totalorder %s5466_s12, 17 }
   0x4   : > { %p139_p2 = pnand %p4141_p0, %p138_p1 }
   0x5   : > { %s4142_s16 = sshll.u32 (!%p139_p2), %s4137_s13, 8 }
   0x6   : > { %142 = sbr.rel (%p139_p2) target bundleno = 478 (0x1de), region = 32  ;;  %p163_p3 = scmp.lt.s32.totalorder (!%p139_p2), %s4142_s16, 4095 }
   0xb   : > { %v5327_v0 = vld [vmem:[%s6565_s1 + $0x10] sm:$0xff]   ;;  %v5328_v1 = vld [vmem:[%s6565_s1 + $0x8] sm:$0xff]   ;;  %s6569_s16 = smov (!%p163_p3, %s4142_s16), 4095  ;;  %v5329_v2 = vld [vmem:[%s6565_s1] sm:$0xff]   ;;  %vm1102_vm0 = vcmask 392192   ;;  %vm3824_vm1 = vcmask 60416  }
   0xc   : > { %5051 = vmatprep.subr.bf16.mxu0 %v5327_v0  ;;  %5313 = vmatprep.subr.bf16.mxu1 %v5327_v0  ;;  %s4143_s21 = sshll.u32 %s6569_s16, 2 }
   0xd   : > { %5052 = vmatpush3.bf16.msra.mxu0 %v5327_v0  ;;  %5316 = vmatpush3.bf16.msra.mxu1 %v5327_v0  ;;  %s5513_s24 = scalar_lea.vmem %s6564_s0, %s4143_s21  ;;  %s5733_s29 = scalar_lea.vmem %s6567_s3, %s4143_s21 }
   0xe   : > { %5053 = vmatprep.subr.bf16.mxu0 %v5328_v1  ;;  %5314 = vmatprep.subr.bf16.mxu1 %v5328_v1  ;;  %v5330_v3 = vld [vmem:[%s5513_s24] sm:$0xff]   ;;  %v5332_v5 = vld [vmem:[%s5513_s24 + $0x8] sm:$0xff]   ;;  %v5334_v7 = vld [vmem:[%s5513_s24 + $0x10] sm:$0xff]  }
   0xf   : > { %v5331_v4 = vld [vmem:[%s5513_s24 + $0x200] sm:$0xff]   ;;  %5057 = vmatprep.mubr.msk.bf16.mxu0 %vm1102_vm0, %v5330_v3  ;;  %v5333_v6 = vld [vmem:[%s5513_s24 + $0x208] sm:$0xff]   ;;  %v5335_v8 = vld [vmem:[%s5513_s24 + $0x210] sm:$0xff]  }
  0x10   : > { %5185 = vmatprep.mubr.msk.bf16.mxu1 %vm1102_vm0, %v5331_v4  ;;  %v5336_v9 = vld [vmem:[%s5513_s24 + $0x18] sm:$0xff]   ;;  %v5338_v11 = vld [vmem:[%s5513_s24 + $0x20] sm:$0xff]   ;;  %v5340_v13 = vld [vmem:[%s5513_s24 + $0x28] sm:$0xff]  }
  0x11   : > { %5054 = vmatpush3.bf16.msra.mxu0 %v5328_v1  ;;  %5317 = vmatpush3.bf16.msra.mxu1 %v5328_v1  ;;  %v5337_v10 = vld [vmem:[%s5513_s24 + $0x218] sm:$0xff]   ;;  %v5339_v12 = vld [vmem:[%s5513_s24 + $0x220] sm:$0xff]   ;;  %v5341_v14 = vld [vmem:[%s5513_s24 + $0x228] sm:$0xff]  }
  0x12   : > { %5055 = vmatprep.subr.bf16.mxu0 %v5329_v2  ;;  %5315 = vmatprep.subr.bf16.mxu1 %v5329_v2  ;;  %v5342_v15 = vld [vmem:[%s5513_s24 + $0x30] sm:$0xff]   ;;  %v5344_v17 = vld [vmem:[%s5513_s24 + $0x38] sm:$0xff]   ;;  %v5346_v19 = vld [vmem:[%s5513_s24 + $0x40] sm:$0xff]  }
  0x13   : > { %v5343_v16 = vld [vmem:[%s5513_s24 + $0x230] sm:$0xff]   ;;  %v5345_v18 = vld [vmem:[%s5513_s24 + $0x238] sm:$0xff]   ;;  %v5347_v20 = vld [vmem:[%s5513_s24 + $0x240] sm:$0xff]  }
  0x14   : > { %v5348_v21 = vld [vmem:[%s5513_s24 + $0x48] sm:$0xff]   ;;  %v5350_v23 = vld [vmem:[%s5513_s24 + $0x50] sm:$0xff]   ;;  %v5352_v25 = vld [vmem:[%s5513_s24 + $0x58] sm:$0xff]  }
  0x15   : > { %5056 = vmatpush3.bf16.msra.mxu0 %v5329_v2  ;;  %5318 = vmatpush3.bf16.msra.mxu1 %v5329_v2  ;;  %v5349_v22 = vld [vmem:[%s5513_s24 + $0x248] sm:$0xff]   ;;  %v5351_v24 = vld [vmem:[%s5513_s24 + $0x250] sm:$0xff]   ;;  %v5353_v26 = vld [vmem:[%s5513_s24 + $0x258] sm:$0xff]  }
  0x16   : > { %v5354_v27 = vld [vmem:[%s5513_s24 + $0x60] sm:$0xff]   ;;  %v5356_v29 = vld [vmem:[%s5513_s24 + $0x68] sm:$0xff]   ;;  %v5358_v31 = vld [vmem:[%s5513_s24 + $0x70] sm:$0xff]  }
  0x17   : > { %v5355_v28 = vld [vmem:[%s5513_s24 + $0x260] sm:$0xff]   ;;  %v5357_v30 = vld [vmem:[%s5513_s24 + $0x268] sm:$0xff]   ;;  %v5359_v32 = vld [vmem:[%s5513_s24 + $0x270] sm:$0xff]  }
  0x18   : > { %5058 = vmatmul.mubr.msk.bf16.vlgmr.msra.gmra.mxu0 %vm1102_vm0, %v5332_v5  ;;  %5186 = vmatmul.mubr.msk.bf16.vlgmr.msra.gmra.mxu1 %vm1102_vm0, %v5333_v6  ;;  %v5360_v33 = vld [vmem:[%s5513_s24 + $0x78] sm:$0xff]   ;;  %v5362_v35 = vld [vmem:[%s5513_s24 + $0x80] sm:$0xff]   ;;  %v5364_v37 = vld [vmem:[%s5513_s24 + $0x88] sm:$0xff]  }
  0x19   : > { %5061 = vmatprep.mubr.msk.bf16.mxu0 %vm1102_vm0, %v5334_v7  ;;  %5189 = vmatprep.mubr.msk.bf16.mxu1 %vm1102_vm0, %v5335_v8  ;;  %v5361_v34 = vld [vmem:[%s5513_s24 + $0x278] sm:$0xff]   ;;  %v5363_v36 = vld [vmem:[%s5513_s24 + $0x280] sm:$0xff]   ;;  %v5365_v38 = vld [vmem:[%s5513_s24 + $0x288] sm:$0xff]  }
  0x1a   : > { %v5366_v39 = vld [vmem:[%s5513_s24 + $0x90] sm:$0xff]   ;;  %v5368_v41 = vld [vmem:[%s5513_s24 + $0x98] sm:$0xff]   ;;  %v5370_v43 = vld [vmem:[%s5513_s24 + $0xa0] sm:$0xff]  }
  0x1b   : > { %v5367_v40 = vld [vmem:[%s5513_s24 + $0x290] sm:$0xff]   ;;  %v5369_v42 = vld [vmem:[%s5513_s24 + $0x298] sm:$0xff]   ;;  %v5371_v44 = vld [vmem:[%s5513_s24 + $0x2a0] sm:$0xff]  }
  0x1c   : > { %v5372_v45 = vld [vmem:[%s5513_s24 + $0xa8] sm:$0xff]   ;;  %v5374_v47 = vld [vmem:[%s5513_s24 + $0xb0] sm:$0xff]   ;;  %v5376_v49 = vld [vmem:[%s5513_s24 + $0xb8] sm:$0xff]  }
  0x1d   : > { %v5373_v46 = vld [vmem:[%s5513_s24 + $0x2a8] sm:$0xff]   ;;  %v5375_v48 = vld [vmem:[%s5513_s24 + $0x2b0] sm:$0xff]   ;;  %v5377_v50 = vld [vmem:[%s5513_s24 + $0x2b8] sm:$0xff]  }
  0x1e   : > { %v5378_v51 = vld [vmem:[%s5513_s24 + $0xc0] sm:$0xff]   ;;  %v5380_v53 = vld [vmem:[%s5513_s24 + $0xc8] sm:$0xff]   ;;  %v5382_v55 = vld [vmem:[%s5513_s24 + $0xd0] sm:$0xff]  }
  0x1f   : > { %v5379_v52 = vld [vmem:[%s5513_s24 + $0x2c0] sm:$0xff]   ;;  %v5381_v54 = vld [vmem:[%s5513_s24 + $0x2c8] sm:$0xff]   ;;  %v5383_v56 = vld [vmem:[%s5513_s24 + $0x2d0] sm:$0xff]  }
  0x20   : > { %5062 = vmatmul.mubr.msk.bf16.gmra.mxu0 %vm1102_vm0, %v5336_v9  ;;  %5190 = vmatmul.mubr.msk.bf16.gmra.mxu1 %vm1102_vm0, %v5337_v10  ;;  %v5384_v57 = vld [vmem:[%s5513_s24 + $0xd8] sm:$0xff]   ;;  %v5386_v59 = vld [vmem:[%s5513_s24 + $0xe0] sm:$0xff]   ;;  %v5388_v61 = vld [vmem:[%s5513_s24 + $0xe8] sm:$0xff]  }
  0x21   : > { %5065 = vmatprep.mubr.msk.bf16.mxu0 %vm1102_vm0, %v5338_v11  ;;  %5193 = vmatprep.mubr.msk.bf16.mxu1 %vm1102_vm0, %v5339_v12  ;;  %v5385_v58 = vld [vmem:[%s5513_s24 + $0x2d8] sm:$0xff]   ;;  %v5387_v60 = vld [vmem:[%s5513_s24 + $0x2e0] sm:$0xff]   ;;  %v5389_v62 = vld [vmem:[%s5513_s24 + $0x2e8] sm:$0xff]  }
  0x22   : > { %v5390_v63 = vld [vmem:[%s5513_s24 + $0xf0] sm:$0xff]   ;;  %v5392_v1 = vld [vmem:[%s5513_s24 + $0xf8] sm:$0xff]   ;;  %v5394_v3 = vld [vmem:[%s5513_s24 + $0x100] sm:$0xff]  }
  0x23   : > { %v5391_v0 = vld [vmem:[%s5513_s24 + $0x2f0] sm:$0xff]   ;;  %v5393_v2 = vld [vmem:[%s5513_s24 + $0x2f8] sm:$0xff]   ;;  %v5395_v4 = vld [vmem:[%s5513_s24 + $0x300] sm:$0xff]  }
  0x24   : > { %v5396_v5 = vld [vmem:[%s5513_s24 + $0x108] sm:$0xff]   ;;  %v5398_v7 = vld [vmem:[%s5513_s24 + $0x110] sm:$0xff]   ;;  %v5400_v9 = vld [vmem:[%s5513_s24 + $0x118] sm:$0xff]  }
  0x25   : > { %v5397_v6 = vld [vmem:[%s5513_s24 + $0x308] sm:$0xff]   ;;  %v5399_v8 = vld [vmem:[%s5513_s24 + $0x310] sm:$0xff]   ;;  %v5401_v10 = vld [vmem:[%s5513_s24 + $0x318] sm:$0xff]  }
  0x26   : > { %v5402_v11 = vld [vmem:[%s5513_s24 + $0x120] sm:$0xff]  }
  0x27   : > { %v5403_v12 = vld [vmem:[%s5513_s24 + $0x320] sm:$0xff]  }
  0x28   : > { %5066 = vmatmul.mubr.msk.bf16.gmra.mxu0 %vm1102_vm0, %v5340_v13  ;;  %5194 = vmatmul.mubr.msk.bf16.gmra.mxu1 %vm1102_vm0, %v5341_v14  ;;  %v5404_v13 = vld [vmem:[%s5513_s24 + $0x128] sm:$0xff]  }
  0x29   : > { %5069 = vmatprep.mubr.msk.bf16.mxu0 %vm1102_vm0, %v5342_v15  ;;  %5197 = vmatprep.mubr.msk.bf16.mxu1 %vm1102_vm0, %v5343_v16  ;;  %v5405_v14 = vld [vmem:[%s5513_s24 + $0x328] sm:$0xff]   ;;  %v5406_v15 = vld [vmem:[%s5513_s24 + $0x130] sm:$0xff]  }
  0x2a   : > { %v5407_v16 = vld [vmem:[%s5513_s24 + $0x330] sm:$0xff]  }
  0x30   : > { %5070 = vmatmul.mubr.msk.bf16.gmra.mxu0 %vm1102_vm0, %v5344_v17  ;;  %5198 = vmatmul.mubr.msk.bf16.gmra.mxu1 %vm1102_vm0, %v5345_v18  ;;  %v5408_v17 = vld [vmem:[%s5513_s24 + $0x138] sm:$0xff]  }
  0x31   : > { %5073 = vmatprep.mubr.msk.bf16.mxu0 %vm1102_vm0, %v5346_v19  ;;  %5201 = vmatprep.mubr.msk.bf16.mxu1 %vm1102_vm0, %v5347_v20  ;;  %v5409_v18 = vld [vmem:[%s5513_s24 + $0x338] sm:$0xff]   ;;  %v5410_v19 = vld [vmem:[%s5513_s24 + $0x140] sm:$0xff]  }
  0x32   : > { %v5411_v20 = vld [vmem:[%s5513_s24 + $0x340] sm:$0xff]  }
  0x38   : > { %5074 = vmatmul.mubr.msk.bf16.gmra.mxu0 %vm1102_vm0, %v5348_v21  ;;  %5202 = vmatmul.mubr.msk.bf16.gmra.mxu1 %vm1102_vm0, %v5349_v22  ;;  %v5412_v21 = vld [vmem:[%s5513_s24 + $0x148] sm:$0xff]  }
  0x39   : > { %5077 = vmatprep.mubr.msk.bf16.mxu0 %vm1102_vm0, %v5350_v23  ;;  %5205 = vmatprep.mubr.msk.bf16.mxu1 %vm1102_vm0, %v5351_v24  ;;  %v5413_v22 = vld [vmem:[%s5513_s24 + $0x348] sm:$0xff]   ;;  %v5414_v23 = vld [vmem:[%s5513_s24 + $0x150] sm:$0xff]  }
  0x3a   : > { %v5415_v24 = vld [vmem:[%s5513_s24 + $0x350] sm:$0xff]  }
  0x40   : > { %5078 = vmatmul.mubr.msk.bf16.gmra.mxu0 %vm1102_vm0, %v5352_v25  ;;  %5206 = vmatmul.mubr.msk.bf16.gmra.mxu1 %vm1102_vm0, %v5353_v26  ;;  %v5416_v25 = vld [vmem:[%s5513_s24 + $0x158] sm:$0xff]  }
  0x41   : > { %5081 = vmatprep.mubr.msk.bf16.mxu0 %vm1102_vm0, %v5354_v27  ;;  %5209 = vmatprep.mubr.msk.bf16.mxu1 %vm1102_vm0, %v5355_v28  ;;  %v5417_v26 = vld [vmem:[%s5513_s24 + $0x358] sm:$0xff]   ;;  %v5418_v27 = vld [vmem:[%s5513_s24 + $0x160] sm:$0xff]  }
  0x42   : > { %v5419_v28 = vld [vmem:[%s5513_s24 + $0x360] sm:$0xff]  }
  0x48   : > { %5082 = vmatmul.mubr.msk.bf16.gmra.mxu0 %vm1102_vm0, %v5356_v29  ;;  %5210 = vmatmul.mubr.msk.bf16.gmra.mxu1 %vm1102_vm0, %v5357_v30  ;;  %v5420_v29 = vld [vmem:[%s5513_s24 + $0x168] sm:$0xff]  }
  0x49   : > { %5085 = vmatprep.mubr.msk.bf16.mxu0 %vm1102_vm0, %v5358_v31  ;;  %5213 = vmatprep.mubr.msk.bf16.mxu1 %vm1102_vm0, %v5359_v32  ;;  %v5421_v30 = vld [vmem:[%s5513_s24 + $0x368] sm:$0xff]   ;;  %v5422_v31 = vld [vmem:[%s5513_s24 + $0x170] sm:$0xff]  }
  0x4a   : > { %v5423_v32 = vld [vmem:[%s5513_s24 + $0x370] sm:$0xff]  }
  0x50   : > { %5086 = vmatmul.mubr.msk.bf16.gmra.mxu0 %vm1102_vm0, %v5360_v33  ;;  %5214 = vmatmul.mubr.msk.bf16.gmra.mxu1 %vm1102_vm0, %v5361_v34  ;;  %v5424_v33 = vld [vmem:[%s5513_s24 + $0x178] sm:$0xff]  }
  0x51   : > { %5089 = vmatprep.mubr.msk.bf16.mxu0 %vm1102_vm0, %v5362_v35  ;;  %5217 = vmatprep.mubr.msk.bf16.mxu1 %vm1102_vm0, %v5363_v36  ;;  %v5425_v34 = vld [vmem:[%s5513_s24 + $0x378] sm:$0xff]   ;;  %v5426_v35 = vld [vmem:[%s5513_s24 + $0x180] sm:$0xff]  }
  0x52   : > { %v5427_v36 = vld [vmem:[%s5513_s24 + $0x380] sm:$0xff]  }
  0x58   : > { %5090 = vmatmul.mubr.msk.bf16.gmra.mxu0 %vm1102_vm0, %v5364_v37  ;;  %5218 = vmatmul.mubr.msk.bf16.gmra.mxu1 %vm1102_vm0, %v5365_v38  ;;  %v5428_v37 = vld [vmem:[%s5513_s24 + $0x188] sm:$0xff]  }
  0x59   : > { %5093 = vmatprep.mubr.msk.bf16.mxu0 %vm1102_vm0, %v5366_v39  ;;  %5221 = vmatprep.mubr.msk.bf16.mxu1 %vm1102_vm0, %v5367_v40  ;;  %v5429_v38 = vld [vmem:[%s5513_s24 + $0x388] sm:$0xff]   ;;  %v5430_v39 = vld [vmem:[%s5513_s24 + $0x190] sm:$0xff]  }
  0x5a   : > { %v5431_v40 = vld [vmem:[%s5513_s24 + $0x390] sm:$0xff]  }
  0x60   : > { %5094 = vmatmul.mubr.msk.bf16.gmra.mxu0 %vm1102_vm0, %v5368_v41  ;;  %5222 = vmatmul.mubr.msk.bf16.gmra.mxu1 %vm1102_vm0, %v5369_v42  ;;  %v5718_v41 = vld [vmem:[%s6566_s2] ss:$0 sm:$0xff] }
  0x61   : > { %5097 = vmatprep.mubr.msk.bf16.mxu0 %vm1102_vm0, %v5370_v43  ;;  %5225 = vmatprep.mubr.msk.bf16.mxu1 %vm1102_vm0, %v5371_v44 }
  0x68   : > { %5098 = vmatmul.mubr.msk.bf16.gmra.mxu0 %vm1102_vm0, %v5372_v45  ;;  %5226 = vmatmul.mubr.msk.bf16.gmra.mxu1 %vm1102_vm0, %v5373_v46 }
  0x69   : > { %5101 = vmatprep.mubr.msk.bf16.mxu0 %vm1102_vm0, %v5374_v47  ;;  %5229 = vmatprep.mubr.msk.bf16.mxu1 %vm1102_vm0, %v5375_v48 }
  0x70   : > { %5102 = vmatmul.mubr.msk.bf16.gmra.mxu0 %vm1102_vm0, %v5376_v49  ;;  %5230 = vmatmul.mubr.msk.bf16.gmra.mxu1 %vm1102_vm0, %v5377_v50 }
  0x71   : > { %5105 = vmatprep.mubr.msk.bf16.mxu0 %vm1102_vm0, %v5378_v51  ;;  %5233 = vmatprep.mubr.msk.bf16.mxu1 %vm1102_vm0, %v5379_v52 }
  0x78   : > { %5106 = vmatmul.mubr.msk.bf16.gmra.mxu0 %vm1102_vm0, %v5380_v53  ;;  %5234 = vmatmul.mubr.msk.bf16.gmra.mxu1 %vm1102_vm0, %v5381_v54  ;;  %v5432_v54 = vld [vmem:[%s5513_s24 + $0x198] sm:$0xff]  }
  0x79   : > { %5109 = vmatprep.mubr.msk.bf16.mxu0 %vm1102_vm0, %v5382_v55  ;;  %5237 = vmatprep.mubr.msk.bf16.mxu1 %vm1102_vm0, %v5383_v56  ;;  %v5433_v55 = vld [vmem:[%s5513_s24 + $0x398] sm:$0xff]  }
  0x80   : > { %5110 = vmatmul.mubr.msk.bf16.gmra.mxu0 %vm1102_vm0, %v5384_v57  ;;  %5238 = vmatmul.mubr.msk.bf16.gmra.mxu1 %vm1102_vm0, %v5385_v58 }
  0x81   : > { %5113 = vmatprep.mubr.msk.bf16.mxu0 %vm1102_vm0, %v5386_v59  ;;  %5241 = vmatprep.mubr.msk.bf16.mxu1 %vm1102_vm0, %v5387_v60  ;;  %v5434_v60 = vld [vmem:[%s5513_s24 + $0x1a0] sm:$0xff]  }
  0x88   : > { %5114 = vmatmul.mubr.msk.bf16.gmra.mxu0 %vm1102_vm0, %v5388_v61  ;;  %5242 = vmatmul.mubr.msk.bf16.gmra.mxu1 %vm1102_vm0, %v5389_v62  ;;  %v5435_v61 = vld [vmem:[%s5513_s24 + $0x3a0] sm:$0xff]  }
  0x89   : > { %5117 = vmatprep.mubr.msk.bf16.mxu0 %vm1102_vm0, %v5390_v63  ;;  %5245 = vmatprep.mubr.msk.bf16.mxu1 %vm1102_vm0, %v5391_v0 }
  0x90   : > { %5118 = vmatmul.mubr.msk.bf16.gmra.mxu0 %vm1102_vm0, %v5392_v1  ;;  %5246 = vmatmul.mubr.msk.bf16.gmra.mxu1 %vm1102_vm0, %v5393_v2 }
  0x91   : > { %5121 = vmatprep.mubr.msk.bf16.mxu0 %vm1102_vm0, %v5394_v3  ;;  %5249 = vmatprep.mubr.msk.bf16.mxu1 %vm1102_vm0, %v5395_v4 }
  0x98   : > { %5122 = vmatmul.mubr.msk.bf16.gmra.mxu0 %vm1102_vm0, %v5396_v5  ;;  %5250 = vmatmul.mubr.msk.bf16.gmra.mxu1 %vm1102_vm0, %v5397_v6 }
  0x99   : > { %5125 = vmatprep.mubr.msk.bf16.mxu0 %vm1102_vm0, %v5398_v7  ;;  %5253 = vmatprep.mubr.msk.bf16.mxu1 %vm1102_vm0, %v5399_v8 }
  0xa0   : > { %5126 = vmatmul.mubr.msk.bf16.gmra.mxu0 %vm1102_vm0, %v5400_v9  ;;  %5254 = vmatmul.mubr.msk.bf16.gmra.mxu1 %vm1102_vm0, %v5401_v10 }
  0xa1   : > { %5129 = vmatprep.mubr.msk.bf16.mxu0 %vm1102_vm0, %v5402_v11  ;;  %5257 = vmatprep.mubr.msk.bf16.mxu1 %vm1102_vm0, %v5403_v12 }
  0xa8   : > { %5130 = vmatmul.mubr.msk.bf16.gmra.mxu0 %vm1102_vm0, %v5404_v13  ;;  %5258 = vmatmul.mubr.msk.bf16.gmra.mxu1 %vm1102_vm0, %v5405_v14 }
  0xa9   : > { %5133 = vmatprep.mubr.msk.bf16.mxu0 %vm1102_vm0, %v5406_v15  ;;  %5261 = vmatprep.mubr.msk.bf16.mxu1 %vm1102_vm0, %v5407_v16 }
  0xb0   : > { %5134 = vmatmul.mubr.msk.bf16.gmra.mxu0 %vm1102_vm0, %v5408_v17  ;;  %5262 = vmatmul.mubr.msk.bf16.gmra.mxu1 %vm1102_vm0, %v5409_v18 }
  0xb1   : > { %5137 = vmatprep.mubr.msk.bf16.mxu0 %vm1102_vm0, %v5410_v19  ;;  %5265 = vmatprep.mubr.msk.bf16.mxu1 %vm1102_vm0, %v5411_v20 }
  0xb8   : > { %5138 = vmatmul.mubr.msk.bf16.gmra.mxu0 %vm1102_vm0, %v5412_v21  ;;  %5266 = vmatmul.mubr.msk.bf16.gmra.mxu1 %vm1102_vm0, %v5413_v22 }
  0xb9   : > { %5141 = vmatprep.mubr.msk.bf16.mxu0 %vm1102_vm0, %v5414_v23  ;;  %5269 = vmatprep.mubr.msk.bf16.mxu1 %vm1102_vm0, %v5415_v24 }
  0xc0   : > { %5142 = vmatmul.mubr.msk.bf16.gmra.mxu0 %vm1102_vm0, %v5416_v25  ;;  %5270 = vmatmul.mubr.msk.bf16.gmra.mxu1 %vm1102_vm0, %v5417_v26  ;;  %v5436_v26 = vld [vmem:[%s5513_s24 + $0x1a8] sm:$0xff]  }
  0xc1   : > { %5145 = vmatprep.mubr.msk.bf16.mxu0 %vm1102_vm0, %v5418_v27  ;;  %5273 = vmatprep.mubr.msk.bf16.mxu1 %vm1102_vm0, %v5419_v28  ;;  %v5437_v27 = vld [vmem:[%s5513_s24 + $0x3a8] sm:$0xff]  }
  0xc8   : > { %5146 = vmatmul.mubr.msk.bf16.gmra.mxu0 %vm1102_vm0, %v5420_v29  ;;  %5274 = vmatmul.mubr.msk.bf16.gmra.mxu1 %vm1102_vm0, %v5421_v30 }
  0xc9   : > { %5149 = vmatprep.mubr.msk.bf16.mxu0 %vm1102_vm0, %v5422_v31  ;;  %5277 = vmatprep.mubr.msk.bf16.mxu1 %vm1102_vm0, %v5423_v32  ;;  %v5438_v32 = vld [vmem:[%s5513_s24 + $0x1b0] sm:$0xff]  }
  0xd0   : > { %5150 = vmatmul.mubr.msk.bf16.gmra.mxu0 %vm1102_vm0, %v5424_v33  ;;  %5278 = vmatmul.mubr.msk.bf16.gmra.mxu1 %vm1102_vm0, %v5425_v34  ;;  %v5439_v33 = vld [vmem:[%s5513_s24 + $0x3b0] sm:$0xff]  }
  0xd1   : > { %5153 = vmatprep.mubr.msk.bf16.mxu0 %vm1102_vm0, %v5426_v35  ;;  %5281 = vmatprep.mubr.msk.bf16.mxu1 %vm1102_vm0, %v5427_v36 }
  0xd8   : > { %v5059_v42 = vpop.f32.mrf.mxu0  ;;  %5154 = vmatmul.mubr.msk.bf16.gmra.mxu0 %vm1102_vm0, %v5428_v37  ;;  %v5187_v43 = vpop.f32.mrf.mxu1  ;;  %5282 = vmatmul.mubr.msk.bf16.gmra.mxu1 %vm1102_vm0, %v5429_v38 }
  0xd9   : > { %v1530_v44 = vadd.f32 %v5059_v42, %v5718_v41  ;;  %v2042_v45 = vadd.f32 %v5187_v43, %v5718_v41  ;;  %5157 = vmatprep.mubr.msk.bf16.mxu0 %vm1102_vm0, %v5430_v39  ;;  %5285 = vmatprep.mubr.msk.bf16.mxu1 %vm1102_vm0, %v5431_v40 }
  0xda   : > { %v1521_v46 = vpop.f32.mrf.mxu0  ;;  %v2033_v47 = vpop.f32.mrf.mxu1 }
  0xdb   : > { %v2546_v48 = vmax.f32 %v1530_v44, 0.0  ;;  %v2674_v49 = vmax.f32 %v2042_v45, 0.0  ;;  %v1522_v50 = vadd.f32 %v5718_v41, %v1521_v46  ;;  %v2034_v51 = vadd.f32 %v5718_v41, %v2033_v47 }
  0xdc   : > { %v5060_v52 = vpop.f32.mrf.mxu0  ;;  %v5188_v53 = vpop.f32.mrf.mxu1 }
  0xdd   : > { %v4666_v56 = vpack.c.bf16 %v2546_v48, %v2546_v48  ;;  %v4794_v57 = vpack.c.bf16 %v2674_v49, %v2674_v49  ;;  %v2544_v58 = vmax.f32 %v1522_v50, 0.0  ;;  %v2672_v59 = vmax.f32 %v2034_v51, 0.0 }
  0xde   : > { %v1533_v62 = vadd.f32 %v5060_v52, %v5718_v41  ;;  %v2045_v63 = vadd.f32 %v5188_v53, %v5718_v41  ;;  %v1524_v0 = vpop.f32.mrf.mxu0  ;;  %v2036_v1 = vpop.f32.mrf.mxu1 }
  0xdf   : > { %3827 = vst.msk [vmem:[%s5733_s29 + $0x8] sm:$0xf] %vm3824_vm1, %v4666_v56  ;;  %3955 = vst.msk [vmem:[%s5733_s29 + $0x208] sm:$0xf] %vm3824_vm1, %v4794_v57  ;;  %v4664_v2 = vpack.c.bf16 %v2544_v58, %v2544_v58  ;;  %v4792_v3 = vpack.c.bf16 %v2672_v59, %v2672_v59  ;;  %v1525_v4 = vadd.f32 %v5718_v41, %v1524_v0  ;;  %v5441_v0 = vld [vmem:[%s5513_s24 + $0x3b8] sm:$0xff]  }
  0xe0   : > { %v2037_v5 = vadd.f32 %v5718_v41, %v2036_v1  ;;  %v2547_v6 = vmax.f32 %v1533_v62, 0.0  ;;  %v2675_v7 = vmax.f32 %v2045_v63, 0.0  ;;  %v5063_v8 = vpop.f32.mrf.mxu0  ;;  %5158 = vmatmul.mubr.msk.bf16.gmra.mxu0 %vm1102_vm0, %v5432_v54  ;;  %v5191_v9 = vpop.f32.mrf.mxu1  ;;  %5286 = vmatmul.mubr.msk.bf16.gmra.mxu1 %vm1102_vm0, %v5433_v55  ;;  %v5440_v63 = vld [vmem:[%s5513_s24 + $0x1b8] sm:$0xff]  }
  0xe1   : > { %3825 = vst.msk [vmem:[%s5733_s29] sm:$0xf] %vm3824_vm1, %v4664_v2  ;;  %3953 = vst.msk [vmem:[%s5733_s29 + $0x200] sm:$0xf] %vm3824_vm1, %v4792_v3  ;;  %v2545_v10 = vmax.f32 %v1525_v4, 0.0  ;;  %v1546_v12 = vadd.f32 %v5063_v8, %v5718_v41  ;;  %v2058_v13 = vadd.f32 %v5191_v9, %v5718_v41  ;;  %5161 = vmatprep.mubr.msk.bf16.mxu0 %vm1102_vm0, %v5434_v60  ;;  %5289 = vmatprep.mubr.msk.bf16.mxu1 %vm1102_vm0, %v5435_v61 }
  0xe2   : > { %v2673_v11 = vmax.f32 %v2037_v5, 0.0  ;;  %v4667_v14 = vpack.c.bf16 %v2547_v6, %v2547_v6  ;;  %v4795_v15 = vpack.c.bf16 %v2675_v7, %v2675_v7  ;;  %v1537_v16 = vpop.f32.mrf.mxu0  ;;  %v2049_v17 = vpop.f32.mrf.mxu1  ;;  %v5442_v5 = vld [vmem:[%s5513_s24 + $0x1c0] sm:$0xff]  }
  0xe3   : > { %v4665_v18 = vpack.c.bf16 %v2545_v10, %v2545_v10  ;;  %v2550_v20 = vmax.f32 %v1546_v12, 0.0  ;;  %v2678_v21 = vmax.f32 %v2058_v13, 0.0  ;;  %v1538_v22 = vadd.f32 %v5718_v41, %v1537_v16  ;;  %v5443_v10 = vld [vmem:[%s5513_s24 + $0x3c0] sm:$0xff]  }
  0xe4   : > { %v4793_v19 = vpack.c.bf16 %v2673_v11, %v2673_v11  ;;  %3828 = vst.msk [vmem:[%s5733_s29 + $0xc] sm:$0xf] %vm3824_vm1, %v4667_v14  ;;  %3956 = vst.msk [vmem:[%s5733_s29 + $0x20c] sm:$0xf] %vm3824_vm1, %v4795_v15  ;;  %v2050_v23 = vadd.f32 %v5718_v41, %v2049_v17  ;;  %v5064_v24 = vpop.f32.mrf.mxu0  ;;  %v5192_v25 = vpop.f32.mrf.mxu1 }
  0xe5   : > { %3826 = vst.msk [vmem:[%s5733_s29 + $0x4] sm:$0xf] %vm3824_vm1, %v4665_v18  ;;  %v4670_v28 = vpack.c.bf16 %v2550_v20, %v2550_v20  ;;  %v4798_v29 = vpack.c.bf16 %v2678_v21, %v2678_v21  ;;  %v1549_v30 = vadd.f32 %v5064_v24, %v5718_v41  ;;  %v2061_v31 = vadd.f32 %v5192_v25, %v5718_v41 }
  0xe6   : > { %3954 = vst.msk [vmem:[%s5733_s29 + $0x204] sm:$0xf] %vm3824_vm1, %v4793_v19  ;;  %v2548_v34 = vmax.f32 %v1538_v22, 0.0  ;;  %v2676_v35 = vmax.f32 %v2050_v23, 0.0  ;;  %v1540_v36 = vpop.f32.mrf.mxu0  ;;  %v2052_v37 = vpop.f32.mrf.mxu1 }
  0xe7   : > { %3831 = vst.msk [vmem:[%s5733_s29 + $0x18] sm:$0xf] %vm3824_vm1, %v4670_v28  ;;  %3959 = vst.msk [vmem:[%s5733_s29 + $0x218] sm:$0xf] %vm3824_vm1, %v4798_v29  ;;  %v2551_v38 = vmax.f32 %v1549_v30, 0.0  ;;  %v2679_v39 = vmax.f32 %v2061_v31, 0.0  ;;  %v1541_v40 = vadd.f32 %v5718_v41, %v1540_v36  ;;  %v2053_v42 = vadd.f32 %v5718_v41, %v2052_v37 }
  0xe8   : > { %v4668_v43 = vpack.c.bf16 %v2548_v34, %v2548_v34  ;;  %v4796_v44 = vpack.c.bf16 %v2676_v35, %v2676_v35  ;;  %v5067_v45 = vpop.f32.mrf.mxu0  ;;  %5162 = vmatmul.mubr.msk.bf16.gmra.mxu0 %vm1102_vm0, %v5436_v26  ;;  %v5195_v46 = vpop.f32.mrf.mxu1  ;;  %5290 = vmatmul.mubr.msk.bf16.gmra.mxu1 %vm1102_vm0, %v5437_v27  ;;  %v5444_v35 = vld [vmem:[%s5513_s24 + $0x1c8] sm:$0xff]  }
  0xe9   : > { %v4671_v47 = vpack.c.bf16 %v2551_v38, %v2551_v38  ;;  %v4799_v48 = vpack.c.bf16 %v2679_v39, %v2679_v39  ;;  %v2549_v49 = vmax.f32 %v1541_v40, 0.0  ;;  %v2677_v50 = vmax.f32 %v2053_v42, 0.0  ;;  %5165 = vmatprep.mubr.msk.bf16.mxu0 %vm1102_vm0, %v5438_v32  ;;  %5293 = vmatprep.mubr.msk.bf16.mxu1 %vm1102_vm0, %v5439_v33  ;;  %v5445_v36 = vld [vmem:[%s5513_s24 + $0x3c8] sm:$0xff]   ;;  %v5446_v42 = vld [vmem:[%s5513_s24 + $0x1d0] sm:$0xff]  }
  0xea   : > { %3829 = vst.msk [vmem:[%s5733_s29 + $0x10] sm:$0xf] %vm3824_vm1, %v4668_v43  ;;  %3957 = vst.msk [vmem:[%s5733_s29 + $0x210] sm:$0xf] %vm3824_vm1, %v4796_v44  ;;  %v1562_v51 = vadd.f32 %v5067_v45, %v5718_v41  ;;  %v2074_v52 = vadd.f32 %v5195_v46, %v5718_v41  ;;  %v1553_v53 = vpop.f32.mrf.mxu0  ;;  %v2065_v54 = vpop.f32.mrf.mxu1  ;;  %v5447_v43 = vld [vmem:[%s5513_s24 + $0x3d0] sm:$0xff]  }
  0xeb   : > { %3832 = vst.msk [vmem:[%s5733_s29 + $0x1c] sm:$0xf] %vm3824_vm1, %v4671_v47  ;;  %3960 = vst.msk [vmem:[%s5733_s29 + $0x21c] sm:$0xf] %vm3824_vm1, %v4799_v48  ;;  %v4669_v55 = vpack.c.bf16 %v2549_v49, %v2549_v49  ;;  %v4797_v56 = vpack.c.bf16 %v2677_v50, %v2677_v50  ;;  %v1554_v57 = vadd.f32 %v5718_v41, %v1553_v53 }
  0xec   : > { %v2066_v58 = vadd.f32 %v5718_v41, %v2065_v54  ;;  %v2554_v59 = vmax.f32 %v1562_v51, 0.0  ;;  %v2682_v60 = vmax.f32 %v2074_v52, 0.0  ;;  %v5068_v61 = vpop.f32.mrf.mxu0  ;;  %v5196_v62 = vpop.f32.mrf.mxu1 }
  0xed   : > { %3830 = vst.msk [vmem:[%s5733_s29 + $0x14] sm:$0xf] %vm3824_vm1, %v4669_v55  ;;  %3958 = vst.msk [vmem:[%s5733_s29 + $0x214] sm:$0xf] %vm3824_vm1, %v4797_v56  ;;  %v2552_v1 = vmax.f32 %v1554_v57, 0.0  ;;  %v1565_v3 = vadd.f32 %v5068_v61, %v5718_v41  ;;  %v2077_v4 = vadd.f32 %v5196_v62, %v5718_v41 }
  0xee   : > { %v2680_v2 = vmax.f32 %v2066_v58, 0.0  ;;  %v4674_v6 = vpack.c.bf16 %v2554_v59, %v2554_v59  ;;  %v4802_v7 = vpack.c.bf16 %v2682_v60, %v2682_v60  ;;  %v1556_v8 = vpop.f32.mrf.mxu0  ;;  %v2068_v9 = vpop.f32.mrf.mxu1 }
  0xef   : > { %v4672_v11 = vpack.c.bf16 %v2552_v1, %v2552_v1  ;;  %v2555_v13 = vmax.f32 %v1565_v3, 0.0  ;;  %v2683_v14 = vmax.f32 %v2077_v4, 0.0  ;;  %v1557_v15 = vadd.f32 %v5718_v41, %v1556_v8  ;;  %v5448_v8 = vld [vmem:[%s5513_s24 + $0x1d8] sm:$0xff]  }
  0xf0   : > { %v4800_v12 = vpack.c.bf16 %v2680_v2, %v2680_v2  ;;  %3835 = vst.msk [vmem:[%s5733_s29 + $0x28] sm:$0xf] %vm3824_vm1, %v4674_v6  ;;  %3963 = vst.msk [vmem:[%s5733_s29 + $0x228] sm:$0xf] %vm3824_vm1, %v4802_v7  ;;  %v2069_v16 = vadd.f32 %v5718_v41, %v2068_v9  ;;  %v5071_v17 = vpop.f32.mrf.mxu0  ;;  %5166 = vmatmul.mubr.msk.bf16.gmra.mxu0 %vm1102_vm0, %v5440_v63  ;;  %v5199_v18 = vpop.f32.mrf.mxu1  ;;  %5294 = vmatmul.mubr.msk.bf16.gmra.mxu1 %vm1102_vm0, %v5441_v0  ;;  %v5449_v9 = vld [vmem:[%s5513_s24 + $0x3d8] sm:$0xff]  }
  0xf1   : > { %3833 = vst.msk [vmem:[%s5733_s29 + $0x20] sm:$0xf] %vm3824_vm1, %v4672_v11  ;;  %v4675_v19 = vpack.c.bf16 %v2555_v13, %v2555_v13  ;;  %v4803_v20 = vpack.c.bf16 %v2683_v14, %v2683_v14  ;;  %v1578_v21 = vadd.f32 %v5071_v17, %v5718_v41  ;;  %v2090_v22 = vadd.f32 %v5199_v18, %v5718_v41  ;;  %v5450_v14 = vld [vmem:[%s5513_s24 + $0x1e0] sm:$0xff]  }
  0xf2   : > { %3961 = vst.msk [vmem:[%s5733_s29 + $0x220] sm:$0xf] %vm3824_vm1, %v4800_v12  ;;  %5169 = vmatprep.mubr.msk.bf16.mxu0 %vm1102_vm0, %v5442_v5  ;;  %v2553_v23 = vmax.f32 %v1557_v15, 0.0  ;;  %v2681_v24 = vmax.f32 %v2069_v16, 0.0  ;;  %v1569_v25 = vpop.f32.mrf.mxu0  ;;  %v2081_v26 = vpop.f32.mrf.mxu1  ;;  %5297 = vmatprep.mubr.msk.bf16.mxu1 %vm1102_vm0, %v5443_v10  ;;  %v5451_v15 = vld [vmem:[%s5513_s24 + $0x3e0] sm:$0xff]  }
  0xf3   : > { %3836 = vst.msk [vmem:[%s5733_s29 + $0x2c] sm:$0xf] %vm3824_vm1, %v4675_v19  ;;  %3964 = vst.msk [vmem:[%s5733_s29 + $0x22c] sm:$0xf] %vm3824_vm1, %v4803_v20  ;;  %v2558_v27 = vmax.f32 %v1578_v21, 0.0  ;;  %v2686_v28 = vmax.f32 %v2090_v22, 0.0  ;;  %v1570_v29 = vadd.f32 %v5718_v41, %v1569_v25  ;;  %v2082_v30 = vadd.f32 %v5718_v41, %v2081_v26 }
  0xf4   : > { %v4673_v31 = vpack.c.bf16 %v2553_v23, %v2553_v23  ;;  %v4801_v32 = vpack.c.bf16 %v2681_v24, %v2681_v24  ;;  %v5072_v33 = vpop.f32.mrf.mxu0  ;;  %v5200_v34 = vpop.f32.mrf.mxu1 }
  0xf5   : > { %v4678_v37 = vpack.c.bf16 %v2558_v27, %v2558_v27  ;;  %v4806_v38 = vpack.c.bf16 %v2686_v28, %v2686_v28  ;;  %v2556_v39 = vmax.f32 %v1570_v29, 0.0  ;;  %v2684_v40 = vmax.f32 %v2082_v30, 0.0 }
  0xf6   : > { %3834 = vst.msk [vmem:[%s5733_s29 + $0x24] sm:$0xf] %vm3824_vm1, %v4673_v31  ;;  %3962 = vst.msk [vmem:[%s5733_s29 + $0x224] sm:$0xf] %vm3824_vm1, %v4801_v32  ;;  %v1581_v44 = vadd.f32 %v5072_v33, %v5718_v41  ;;  %v2093_v45 = vadd.f32 %v5200_v34, %v5718_v41  ;;  %v1572_v46 = vpop.f32.mrf.mxu0  ;;  %v2084_v47 = vpop.f32.mrf.mxu1 }
  0xf7   : > { %3839 = vst.msk [vmem:[%s5733_s29 + $0x38] sm:$0xf] %vm3824_vm1, %v4678_v37  ;;  %3967 = vst.msk [vmem:[%s5733_s29 + $0x238] sm:$0xf] %vm3824_vm1, %v4806_v38  ;;  %v4676_v48 = vpack.c.bf16 %v2556_v39, %v2556_v39  ;;  %v4804_v49 = vpack.c.bf16 %v2684_v40, %v2684_v40  ;;  %v1573_v50 = vadd.f32 %v5718_v41, %v1572_v46  ;;  %v5453_v46 = vld [vmem:[%s5513_s24 + $0x3e8] sm:$0xff]  }
  0xf8   : > { %v2085_v51 = vadd.f32 %v5718_v41, %v2084_v47  ;;  %v2559_v52 = vmax.f32 %v1581_v44, 0.0  ;;  %v2687_v53 = vmax.f32 %v2093_v45, 0.0  ;;  %v5075_v54 = vpop.f32.mrf.mxu0  ;;  %5170 = vmatmul.mubr.msk.bf16.gmra.mxu0 %vm1102_vm0, %v5444_v35  ;;  %v5203_v55 = vpop.f32.mrf.mxu1  ;;  %5298 = vmatmul.mubr.msk.bf16.gmra.mxu1 %vm1102_vm0, %v5445_v36  ;;  %v5452_v45 = vld [vmem:[%s5513_s24 + $0x1e8] sm:$0xff]  }
  0xf9   : > { %3837 = vst.msk [vmem:[%s5733_s29 + $0x30] sm:$0xf] %vm3824_vm1, %v4676_v48  ;;  %3965 = vst.msk [vmem:[%s5733_s29 + $0x230] sm:$0xf] %vm3824_vm1, %v4804_v49  ;;  %v2557_v56 = vmax.f32 %v1573_v50, 0.0  ;;  %v1594_v58 = vadd.f32 %v5075_v54, %v5718_v41  ;;  %v2106_v59 = vadd.f32 %v5203_v55, %v5718_v41  ;;  %5173 = vmatprep.mubr.msk.bf16.mxu0 %vm1102_vm0, %v5446_v42  ;;  %5301 = vmatprep.mubr.msk.bf16.mxu1 %vm1102_vm0, %v5447_v43 }
  0xfa   : > { %v2685_v57 = vmax.f32 %v2085_v51, 0.0  ;;  %v4679_v60 = vpack.c.bf16 %v2559_v52, %v2559_v52  ;;  %v4807_v61 = vpack.c.bf16 %v2687_v53, %v2687_v53  ;;  %v1585_v62 = vpop.f32.mrf.mxu0  ;;  %v2097_v63 = vpop.f32.mrf.mxu1  ;;  %v5454_v51 = vld [vmem:[%s5513_s24 + $0x1f0] sm:$0xff]  }
  0xfb   : > { %v4677_v0 = vpack.c.bf16 %v2557_v56, %v2557_v56  ;;  %v2562_v2 = vmax.f32 %v1594_v58, 0.0  ;;  %v2690_v3 = vmax.f32 %v2106_v59, 0.0  ;;  %v1586_v4 = vadd.f32 %v5718_v41, %v1585_v62  ;;  %v5455_v56 = vld [vmem:[%s5513_s24 + $0x3f0] sm:$0xff]  }
  0xfc   : > { %v4805_v1 = vpack.c.bf16 %v2685_v57, %v2685_v57  ;;  %3840 = vst.msk [vmem:[%s5733_s29 + $0x3c] sm:$0xf] %vm3824_vm1, %v4679_v60  ;;  %3968 = vst.msk [vmem:[%s5733_s29 + $0x23c] sm:$0xf] %vm3824_vm1, %v4807_v61  ;;  %v2098_v5 = vadd.f32 %v5718_v41, %v2097_v63  ;;  %v5076_v6 = vpop.f32.mrf.mxu0  ;;  %v5204_v7 = vpop.f32.mrf.mxu1 }
  0xfd   : > { %3838 = vst.msk [vmem:[%s5733_s29 + $0x34] sm:$0xf] %vm3824_vm1, %v4677_v0  ;;  %v4682_v10 = vpack.c.bf16 %v2562_v2, %v2562_v2  ;;  %v4810_v11 = vpack.c.bf16 %v2690_v3, %v2690_v3  ;;  %v1597_v12 = vadd.f32 %v5076_v6, %v5718_v41  ;;  %v2109_v13 = vadd.f32 %v5204_v7, %v5718_v41 }
  0xfe   : > { %3966 = vst.msk [vmem:[%s5733_s29 + $0x234] sm:$0xf] %vm3824_vm1, %v4805_v1  ;;  %v2560_v16 = vmax.f32 %v1586_v4, 0.0  ;;  %v2688_v17 = vmax.f32 %v2098_v5, 0.0  ;;  %v1588_v18 = vpop.f32.mrf.mxu0  ;;  %v2100_v19 = vpop.f32.mrf.mxu1 }
  0xff   : > { %3843 = vst.msk [vmem:[%s5733_s29 + $0x48] sm:$0xf] %vm3824_vm1, %v4682_v10  ;;  %3971 = vst.msk [vmem:[%s5733_s29 + $0x248] sm:$0xf] %vm3824_vm1, %v4810_v11  ;;  %v2563_v20 = vmax.f32 %v1597_v12, 0.0  ;;  %v2691_v21 = vmax.f32 %v2109_v13, 0.0  ;;  %v1589_v22 = vadd.f32 %v5718_v41, %v1588_v18  ;;  %v2101_v23 = vadd.f32 %v5718_v41, %v2100_v19 }
 0x100   : > { %v4680_v24 = vpack.c.bf16 %v2560_v16, %v2560_v16  ;;  %v4808_v25 = vpack.c.bf16 %v2688_v17, %v2688_v17  ;;  %v5079_v26 = vpop.f32.mrf.mxu0  ;;  %5174 = vmatmul.mubr.msk.bf16.gmra.mxu0 %vm1102_vm0, %v5448_v8  ;;  %v5207_v27 = vpop.f32.mrf.mxu1  ;;  %5302 = vmatmul.mubr.msk.bf16.gmra.mxu1 %vm1102_vm0, %v5449_v9  ;;  %v5456_v17 = vld [vmem:[%s5513_s24 + $0x1f8] sm:$0xff]  }
 0x101   : > { %v4683_v28 = vpack.c.bf16 %v2563_v20, %v2563_v20  ;;  %v4811_v29 = vpack.c.bf16 %v2691_v21, %v2691_v21  ;;  %v2561_v30 = vmax.f32 %v1589_v22, 0.0  ;;  %v2689_v31 = vmax.f32 %v2101_v23, 0.0  ;;  %5177 = vmatprep.mubr.msk.bf16.mxu0 %vm1102_vm0, %v5450_v14  ;;  %5305 = vmatprep.mubr.msk.bf16.mxu1 %vm1102_vm0, %v5451_v15  ;;  %v5457_v18 = vld [vmem:[%s5513_s24 + $0x3f8] sm:$0xff]  }
 0x102   : > { %3841 = vst.msk [vmem:[%s5733_s29 + $0x40] sm:$0xf] %vm3824_vm1, %v4680_v24  ;;  %3969 = vst.msk [vmem:[%s5733_s29 + $0x240] sm:$0xf] %vm3824_vm1, %v4808_v25  ;;  %v1610_v32 = vadd.f32 %v5079_v26, %v5718_v41  ;;  %v2122_v33 = vadd.f32 %v5207_v27, %v5718_v41  ;;  %v1601_v34 = vpop.f32.mrf.mxu0  ;;  %v2113_v35 = vpop.f32.mrf.mxu1 }
 0x103   : > { %3844 = vst.msk [vmem:[%s5733_s29 + $0x4c] sm:$0xf] %vm3824_vm1, %v4683_v28  ;;  %3972 = vst.msk [vmem:[%s5733_s29 + $0x24c] sm:$0xf] %vm3824_vm1, %v4811_v29  ;;  %v4681_v36 = vpack.c.bf16 %v2561_v30, %v2561_v30  ;;  %v4809_v37 = vpack.c.bf16 %v2689_v31, %v2689_v31  ;;  %v1602_v38 = vadd.f32 %v5718_v41, %v1601_v34 }
 0x104   : > { %v2114_v39 = vadd.f32 %v5718_v41, %v2113_v35  ;;  %v2566_v40 = vmax.f32 %v1610_v32, 0.0  ;;  %v2694_v42 = vmax.f32 %v2122_v33, 0.0  ;;  %v5080_v43 = vpop.f32.mrf.mxu0  ;;  %v5208_v44 = vpop.f32.mrf.mxu1 }
 0x105   : > { %3842 = vst.msk [vmem:[%s5733_s29 + $0x44] sm:$0xf] %vm3824_vm1, %v4681_v36  ;;  %3970 = vst.msk [vmem:[%s5733_s29 + $0x244] sm:$0xf] %vm3824_vm1, %v4809_v37  ;;  %v2564_v47 = vmax.f32 %v1602_v38, 0.0  ;;  %v1613_v49 = vadd.f32 %v5080_v43, %v5718_v41  ;;  %v2125_v50 = vadd.f32 %v5208_v44, %v5718_v41 }
 0x106   : > { %v2692_v48 = vmax.f32 %v2114_v39, 0.0  ;;  %v4686_v52 = vpack.c.bf16 %v2566_v40, %v2566_v40  ;;  %v4814_v53 = vpack.c.bf16 %v2694_v42, %v2694_v42  ;;  %v1604_v54 = vpop.f32.mrf.mxu0  ;;  %v2116_v55 = vpop.f32.mrf.mxu1 }
 0x107   : > { %v4684_v57 = vpack.c.bf16 %v2564_v47, %v2564_v47  ;;  %v2567_v59 = vmax.f32 %v1613_v49, 0.0  ;;  %v2695_v60 = vmax.f32 %v2125_v50, 0.0  ;;  %v1605_v61 = vadd.f32 %v5718_v41, %v1604_v54 }
 0x108   : > { %v4812_v58 = vpack.c.bf16 %v2692_v48, %v2692_v48  ;;  %3847 = vst.msk [vmem:[%s5733_s29 + $0x58] sm:$0xf] %vm3824_vm1, %v4686_v52  ;;  %3975 = vst.msk [vmem:[%s5733_s29 + $0x258] sm:$0xf] %vm3824_vm1, %v4814_v53  ;;  %v2117_v62 = vadd.f32 %v5718_v41, %v2116_v55  ;;  %v5083_v63 = vpop.f32.mrf.mxu0  ;;  %5178 = vmatmul.mubr.msk.bf16.gmra.mxu0 %vm1102_vm0, %v5452_v45  ;;  %v5211_v0 = vpop.f32.mrf.mxu1  ;;  %5306 = vmatmul.mubr.msk.bf16.gmra.mxu1 %vm1102_vm0, %v5453_v46 }
 0x109   : > { %3845 = vst.msk [vmem:[%s5733_s29 + $0x50] sm:$0xf] %vm3824_vm1, %v4684_v57  ;;  %v4687_v1 = vpack.c.bf16 %v2567_v59, %v2567_v59  ;;  %v4815_v2 = vpack.c.bf16 %v2695_v60, %v2695_v60  ;;  %v1626_v3 = vadd.f32 %v5083_v63, %v5718_v41  ;;  %v2138_v4 = vadd.f32 %v5211_v0, %v5718_v41 }
 0x10a   : > { %3973 = vst.msk [vmem:[%s5733_s29 + $0x250] sm:$0xf] %vm3824_vm1, %v4812_v58  ;;  %5181 = vmatprep.mubr.msk.bf16.mxu0 %vm1102_vm0, %v5454_v51  ;;  %v2565_v5 = vmax.f32 %v1605_v61, 0.0  ;;  %v2693_v6 = vmax.f32 %v2117_v62, 0.0  ;;  %v1617_v7 = vpop.f32.mrf.mxu0  ;;  %v2129_v8 = vpop.f32.mrf.mxu1  ;;  %5309 = vmatprep.mubr.msk.bf16.mxu1 %vm1102_vm0, %v5455_v56 }
 0x10b   : > { %3848 = vst.msk [vmem:[%s5733_s29 + $0x5c] sm:$0xf] %vm3824_vm1, %v4687_v1  ;;  %3976 = vst.msk [vmem:[%s5733_s29 + $0x25c] sm:$0xf] %vm3824_vm1, %v4815_v2  ;;  %v2570_v9 = vmax.f32 %v1626_v3, 0.0  ;;  %v2698_v10 = vmax.f32 %v2138_v4, 0.0  ;;  %v1618_v11 = vadd.f32 %v5718_v41, %v1617_v7  ;;  %v2130_v12 = vadd.f32 %v5718_v41, %v2129_v8 }
 0x10c   : > { %v4685_v13 = vpack.c.bf16 %v2565_v5, %v2565_v5  ;;  %v4813_v14 = vpack.c.bf16 %v2693_v6, %v2693_v6  ;;  %v5084_v15 = vpop.f32.mrf.mxu0  ;;  %v5212_v16 = vpop.f32.mrf.mxu1 }
 0x10d   : > { %v4690_v19 = vpack.c.bf16 %v2570_v9, %v2570_v9  ;;  %v4818_v20 = vpack.c.bf16 %v2698_v10, %v2698_v10  ;;  %v2568_v21 = vmax.f32 %v1618_v11, 0.0  ;;  %v2696_v22 = vmax.f32 %v2130_v12, 0.0 }
 0x10e   : > { %3846 = vst.msk [vmem:[%s5733_s29 + $0x54] sm:$0xf] %vm3824_vm1, %v4685_v13  ;;  %3974 = vst.msk [vmem:[%s5733_s29 + $0x254] sm:$0xf] %vm3824_vm1, %v4813_v14  ;;  %v1629_v23 = vadd.f32 %v5084_v15, %v5718_v41  ;;  %v2141_v24 = vadd.f32 %v5212_v16, %v5718_v41  ;;  %v1620_v25 = vpop.f32.mrf.mxu0  ;;  %v2132_v26 = vpop.f32.mrf.mxu1 }
 0x10f   : > { %3851 = vst.msk [vmem:[%s5733_s29 + $0x68] sm:$0xf] %vm3824_vm1, %v4690_v19  ;;  %3979 = vst.msk [vmem:[%s5733_s29 + $0x268] sm:$0xf] %vm3824_vm1, %v4818_v20  ;;  %v4688_v27 = vpack.c.bf16 %v2568_v21, %v2568_v21  ;;  %v4816_v28 = vpack.c.bf16 %v2696_v22, %v2696_v22  ;;  %v1621_v29 = vadd.f32 %v5718_v41, %v1620_v25 }
 0x110   : > { %v2133_v30 = vadd.f32 %v5718_v41, %v2132_v26  ;;  %v2571_v31 = vmax.f32 %v1629_v23, 0.0  ;;  %v2699_v32 = vmax.f32 %v2141_v24, 0.0  ;;  %v5087_v33 = vpop.f32.mrf.mxu0  ;;  %5182 = vmatmul.mubr.msk.bf16.gmra.mxu0 %vm1102_vm0, %v5456_v17  ;;  %v5215_v34 = vpop.f32.mrf.mxu1  ;;  %5310 = vmatmul.mubr.msk.bf16.gmra.mxu1 %vm1102_vm0, %v5457_v18 }
 0x111   : > { %3849 = vst.msk [vmem:[%s5733_s29 + $0x60] sm:$0xf] %vm3824_vm1, %v4688_v27  ;;  %3977 = vst.msk [vmem:[%s5733_s29 + $0x260] sm:$0xf] %vm3824_vm1, %v4816_v28  ;;  %v2569_v35 = vmax.f32 %v1621_v29, 0.0  ;;  %v1642_v37 = vadd.f32 %v5087_v33, %v5718_v41  ;;  %v2154_v38 = vadd.f32 %v5215_v34, %v5718_v41 }
 0x112   : > { %v2697_v36 = vmax.f32 %v2133_v30, 0.0  ;;  %v4691_v39 = vpack.c.bf16 %v2571_v31, %v2571_v31  ;;  %v4819_v40 = vpack.c.bf16 %v2699_v32, %v2699_v32  ;;  %v1633_v42 = vpop.f32.mrf.mxu0  ;;  %v2145_v43 = vpop.f32.mrf.mxu1 }
 0x113   : > { %v4689_v44 = vpack.c.bf16 %v2569_v35, %v2569_v35  ;;  %v2574_v46 = vmax.f32 %v1642_v37, 0.0  ;;  %v2702_v47 = vmax.f32 %v2154_v38, 0.0  ;;  %v1634_v48 = vadd.f32 %v5718_v41, %v1633_v42 }
 0x114   : > { %v4817_v45 = vpack.c.bf16 %v2697_v36, %v2697_v36  ;;  %3852 = vst.msk [vmem:[%s5733_s29 + $0x6c] sm:$0xf] %vm3824_vm1, %v4691_v39  ;;  %3980 = vst.msk [vmem:[%s5733_s29 + $0x26c] sm:$0xf] %vm3824_vm1, %v4819_v40  ;;  %v2146_v49 = vadd.f32 %v5718_v41, %v2145_v43  ;;  %v5088_v50 = vpop.f32.mrf.mxu0  ;;  %v5216_v51 = vpop.f32.mrf.mxu1 }
 0x115   : > { %3850 = vst.msk [vmem:[%s5733_s29 + $0x64] sm:$0xf] %vm3824_vm1, %v4689_v44  ;;  %v4694_v52 = vpack.c.bf16 %v2574_v46, %v2574_v46  ;;  %v4822_v53 = vpack.c.bf16 %v2702_v47, %v2702_v47  ;;  %v1645_v54 = vadd.f32 %v5088_v50, %v5718_v41  ;;  %v2157_v55 = vadd.f32 %v5216_v51, %v5718_v41 }
 0x116   : > { %3978 = vst.msk [vmem:[%s5733_s29 + $0x264] sm:$0xf] %vm3824_vm1, %v4817_v45  ;;  %v2572_v56 = vmax.f32 %v1634_v48, 0.0  ;;  %v2700_v57 = vmax.f32 %v2146_v49, 0.0  ;;  %v1636_v58 = vpop.f32.mrf.mxu0  ;;  %v2148_v59 = vpop.f32.mrf.mxu1 }
 0x117   : > { %3855 = vst.msk [vmem:[%s5733_s29 + $0x78] sm:$0xf] %vm3824_vm1, %v4694_v52  ;;  %3983 = vst.msk [vmem:[%s5733_s29 + $0x278] sm:$0xf] %vm3824_vm1, %v4822_v53  ;;  %v2575_v60 = vmax.f32 %v1645_v54, 0.0  ;;  %v2703_v61 = vmax.f32 %v2157_v55, 0.0  ;;  %v1637_v62 = vadd.f32 %v5718_v41, %v1636_v58  ;;  %v2149_v63 = vadd.f32 %v5718_v41, %v2148_v59 }
 0x118   : > { %v4692_v0 = vpack.c.bf16 %v2572_v56, %v2572_v56  ;;  %v4820_v1 = vpack.c.bf16 %v2700_v57, %v2700_v57  ;;  %v5091_v2 = vpop.f32.mrf.mxu0  ;;  %v5219_v3 = vpop.f32.mrf.mxu1 }
 0x119   : > { %v4695_v4 = vpack.c.bf16 %v2575_v60, %v2575_v60  ;;  %v4823_v5 = vpack.c.bf16 %v2703_v61, %v2703_v61  ;;  %v2573_v6 = vmax.f32 %v1637_v62, 0.0  ;;  %v2701_v7 = vmax.f32 %v2149_v63, 0.0 }
 0x11a   : > { %3853 = vst.msk [vmem:[%s5733_s29 + $0x70] sm:$0xf] %vm3824_vm1, %v4692_v0  ;;  %3981 = vst.msk [vmem:[%s5733_s29 + $0x270] sm:$0xf] %vm3824_vm1, %v4820_v1  ;;  %v1658_v8 = vadd.f32 %v5091_v2, %v5718_v41  ;;  %v2170_v9 = vadd.f32 %v5219_v3, %v5718_v41  ;;  %v1649_v10 = vpop.f32.mrf.mxu0  ;;  %v2161_v11 = vpop.f32.mrf.mxu1 }
 0x11b   : > { %3856 = vst.msk [vmem:[%s5733_s29 + $0x7c] sm:$0xf] %vm3824_vm1, %v4695_v4  ;;  %3984 = vst.msk [vmem:[%s5733_s29 + $0x27c] sm:$0xf] %vm3824_vm1, %v4823_v5  ;;  %v4693_v12 = vpack.c.bf16 %v2573_v6, %v2573_v6  ;;  %v4821_v13 = vpack.c.bf16 %v2701_v7, %v2701_v7  ;;  %v1650_v14 = vadd.f32 %v5718_v41, %v1649_v10 }
 0x11c   : > { %v2162_v15 = vadd.f32 %v5718_v41, %v2161_v11  ;;  %v2578_v16 = vmax.f32 %v1658_v8, 0.0  ;;  %v2706_v17 = vmax.f32 %v2170_v9, 0.0  ;;  %v5092_v18 = vpop.f32.mrf.mxu0  ;;  %v5220_v19 = vpop.f32.mrf.mxu1 }
 0x11d   : > { %3854 = vst.msk [vmem:[%s5733_s29 + $0x74] sm:$0xf] %vm3824_vm1, %v4693_v12  ;;  %3982 = vst.msk [vmem:[%s5733_s29 + $0x274] sm:$0xf] %vm3824_vm1, %v4821_v13  ;;  %v2576_v20 = vmax.f32 %v1650_v14, 0.0  ;;  %v1661_v22 = vadd.f32 %v5092_v18, %v5718_v41  ;;  %v2173_v23 = vadd.f32 %v5220_v19, %v5718_v41 }
 0x11e   : > { %v2704_v21 = vmax.f32 %v2162_v15, 0.0  ;;  %v4698_v24 = vpack.c.bf16 %v2578_v16, %v2578_v16  ;;  %v4826_v25 = vpack.c.bf16 %v2706_v17, %v2706_v17  ;;  %v1652_v26 = vpop.f32.mrf.mxu0  ;;  %v2164_v27 = vpop.f32.mrf.mxu1 }
 0x11f   : > { %v4696_v28 = vpack.c.bf16 %v2576_v20, %v2576_v20  ;;  %v2579_v30 = vmax.f32 %v1661_v22, 0.0  ;;  %v2707_v31 = vmax.f32 %v2173_v23, 0.0  ;;  %v1653_v32 = vadd.f32 %v5718_v41, %v1652_v26 }
 0x120   : > { %v4824_v29 = vpack.c.bf16 %v2704_v21, %v2704_v21  ;;  %3859 = vst.msk [vmem:[%s5733_s29 + $0x88] sm:$0xf] %vm3824_vm1, %v4698_v24  ;;  %3987 = vst.msk [vmem:[%s5733_s29 + $0x288] sm:$0xf] %vm3824_vm1, %v4826_v25  ;;  %v2165_v33 = vadd.f32 %v5718_v41, %v2164_v27  ;;  %v5095_v34 = vpop.f32.mrf.mxu0  ;;  %v5223_v35 = vpop.f32.mrf.mxu1 }
 0x121   : > { %3857 = vst.msk [vmem:[%s5733_s29 + $0x80] sm:$0xf] %vm3824_vm1, %v4696_v28  ;;  %v4699_v36 = vpack.c.bf16 %v2579_v30, %v2579_v30  ;;  %v4827_v37 = vpack.c.bf16 %v2707_v31, %v2707_v31  ;;  %v1674_v38 = vadd.f32 %v5095_v34, %v5718_v41  ;;  %v2186_v39 = vadd.f32 %v5223_v35, %v5718_v41 }
 0x122   : > { %3985 = vst.msk [vmem:[%s5733_s29 + $0x280] sm:$0xf] %vm3824_vm1, %v4824_v29  ;;  %v2577_v40 = vmax.f32 %v1653_v32, 0.0  ;;  %v2705_v42 = vmax.f32 %v2165_v33, 0.0  ;;  %v1665_v43 = vpop.f32.mrf.mxu0  ;;  %v2177_v44 = vpop.f32.mrf.mxu1 }
 0x123   : > { %3860 = vst.msk [vmem:[%s5733_s29 + $0x8c] sm:$0xf] %vm3824_vm1, %v4699_v36  ;;  %3988 = vst.msk [vmem:[%s5733_s29 + $0x28c] sm:$0xf] %vm3824_vm1, %v4827_v37  ;;  %v2582_v45 = vmax.f32 %v1674_v38, 0.0  ;;  %v2710_v46 = vmax.f32 %v2186_v39, 0.0  ;;  %v1666_v47 = vadd.f32 %v5718_v41, %v1665_v43  ;;  %v2178_v48 = vadd.f32 %v5718_v41, %v2177_v44 }
 0x124   : > { %v4697_v49 = vpack.c.bf16 %v2577_v40, %v2577_v40  ;;  %v4825_v50 = vpack.c.bf16 %v2705_v42, %v2705_v42  ;;  %v5096_v51 = vpop.f32.mrf.mxu0  ;;  %v5224_v52 = vpop.f32.mrf.mxu1 }
 0x125   : > { %v4702_v53 = vpack.c.bf16 %v2582_v45, %v2582_v45  ;;  %v4830_v54 = vpack.c.bf16 %v2710_v46, %v2710_v46  ;;  %v2580_v55 = vmax.f32 %v1666_v47, 0.0  ;;  %v2708_v56 = vmax.f32 %v2178_v48, 0.0 }
 0x126   : > { %3858 = vst.msk [vmem:[%s5733_s29 + $0x84] sm:$0xf] %vm3824_vm1, %v4697_v49  ;;  %3986 = vst.msk [vmem:[%s5733_s29 + $0x284] sm:$0xf] %vm3824_vm1, %v4825_v50  ;;  %v1677_v57 = vadd.f32 %v5096_v51, %v5718_v41  ;;  %v2189_v58 = vadd.f32 %v5224_v52, %v5718_v41  ;;  %v1668_v59 = vpop.f32.mrf.mxu0  ;;  %v2180_v60 = vpop.f32.mrf.mxu1 }
 0x127   : > { %3863 = vst.msk [vmem:[%s5733_s29 + $0x98] sm:$0xf] %vm3824_vm1, %v4702_v53  ;;  %3991 = vst.msk [vmem:[%s5733_s29 + $0x298] sm:$0xf] %vm3824_vm1, %v4830_v54  ;;  %v4700_v61 = vpack.c.bf16 %v2580_v55, %v2580_v55  ;;  %v4828_v62 = vpack.c.bf16 %v2708_v56, %v2708_v56  ;;  %v1669_v63 = vadd.f32 %v5718_v41, %v1668_v59  ;;  %v6054_v56 = vld [vmem:[%s6566_s2] ss:$0 sm:$0xff] }
 0x128   : > { %v2181_v0 = vadd.f32 %v5718_v41, %v2180_v60  ;;  %v2583_v1 = vmax.f32 %v1677_v57, 0.0  ;;  %v2711_v2 = vmax.f32 %v2189_v58, 0.0  ;;  %v5099_v3 = vpop.f32.mrf.mxu0  ;;  %v5227_v4 = vpop.f32.mrf.mxu1 }
 0x129   : > { %3861 = vst.msk [vmem:[%s5733_s29 + $0x90] sm:$0xf] %vm3824_vm1, %v4700_v61  ;;  %3989 = vst.msk [vmem:[%s5733_s29 + $0x290] sm:$0xf] %vm3824_vm1, %v4828_v62  ;;  %v2581_v5 = vmax.f32 %v1669_v63, 0.0  ;;  %v1690_v7 = vadd.f32 %v5099_v3, %v5718_v41  ;;  %v2202_v8 = vadd.f32 %v5227_v4, %v5718_v41 }
 0x12a   : > { %v2709_v6 = vmax.f32 %v2181_v0, 0.0  ;;  %v4703_v9 = vpack.c.bf16 %v2583_v1, %v2583_v1  ;;  %v4831_v10 = vpack.c.bf16 %v2711_v2, %v2711_v2  ;;  %v1681_v11 = vpop.f32.mrf.mxu0  ;;  %v2193_v12 = vpop.f32.mrf.mxu1 }
 0x12b   : > { %v4701_v13 = vpack.c.bf16 %v2581_v5, %v2581_v5  ;;  %v2586_v15 = vmax.f32 %v1690_v7, 0.0  ;;  %v2714_v16 = vmax.f32 %v2202_v8, 0.0  ;;  %v1682_v17 = vadd.f32 %v5718_v41, %v1681_v11 }
 0x12c   : > { %v4829_v14 = vpack.c.bf16 %v2709_v6, %v2709_v6  ;;  %3864 = vst.msk [vmem:[%s5733_s29 + $0x9c] sm:$0xf] %vm3824_vm1, %v4703_v9  ;;  %3992 = vst.msk [vmem:[%s5733_s29 + $0x29c] sm:$0xf] %vm3824_vm1, %v4831_v10  ;;  %v2194_v18 = vadd.f32 %v5718_v41, %v2193_v12  ;;  %v5100_v19 = vpop.f32.mrf.mxu0  ;;  %v5228_v20 = vpop.f32.mrf.mxu1 }
 0x12d   : > { %3862 = vst.msk [vmem:[%s5733_s29 + $0x94] sm:$0xf] %vm3824_vm1, %v4701_v13  ;;  %v4706_v21 = vpack.c.bf16 %v2586_v15, %v2586_v15  ;;  %v4834_v22 = vpack.c.bf16 %v2714_v16, %v2714_v16  ;;  %v1693_v23 = vadd.f32 %v5100_v19, %v5718_v41  ;;  %v2205_v24 = vadd.f32 %v5228_v20, %v5718_v41 }
 0x12e   : > { %3990 = vst.msk [vmem:[%s5733_s29 + $0x294] sm:$0xf] %vm3824_vm1, %v4829_v14  ;;  %v2584_v25 = vmax.f32 %v1682_v17, 0.0  ;;  %v2712_v26 = vmax.f32 %v2194_v18, 0.0  ;;  %v1684_v27 = vpop.f32.mrf.mxu0  ;;  %v2196_v28 = vpop.f32.mrf.mxu1 }
 0x12f   : > { %3867 = vst.msk [vmem:[%s5733_s29 + $0xa8] sm:$0xf] %vm3824_vm1, %v4706_v21  ;;  %3995 = vst.msk [vmem:[%s5733_s29 + $0x2a8] sm:$0xf] %vm3824_vm1, %v4834_v22  ;;  %v2587_v29 = vmax.f32 %v1693_v23, 0.0  ;;  %v2715_v30 = vmax.f32 %v2205_v24, 0.0  ;;  %v1685_v31 = vadd.f32 %v5718_v41, %v1684_v27  ;;  %v2197_v32 = vadd.f32 %v5718_v41, %v2196_v28 }
 0x130   : > { %v4704_v33 = vpack.c.bf16 %v2584_v25, %v2584_v25  ;;  %v4832_v34 = vpack.c.bf16 %v2712_v26, %v2712_v26  ;;  %v5103_v35 = vpop.f32.mrf.mxu0  ;;  %v5231_v36 = vpop.f32.mrf.mxu1 }
 0x131   : > { %v4707_v37 = vpack.c.bf16 %v2587_v29, %v2587_v29  ;;  %v4835_v38 = vpack.c.bf16 %v2715_v30, %v2715_v30  ;;  %v2585_v39 = vmax.f32 %v1685_v31, 0.0  ;;  %v2713_v40 = vmax.f32 %v2197_v32, 0.0 }
 0x132   : > { %3865 = vst.msk [vmem:[%s5733_s29 + $0xa0] sm:$0xf] %vm3824_vm1, %v4704_v33  ;;  %3993 = vst.msk [vmem:[%s5733_s29 + $0x2a0] sm:$0xf] %vm3824_vm1, %v4832_v34  ;;  %v1706_v42 = vadd.f32 %v5103_v35, %v5718_v41  ;;  %v2218_v43 = vadd.f32 %v5231_v36, %v5718_v41  ;;  %v1697_v44 = vpop.f32.mrf.mxu0  ;;  %v2209_v45 = vpop.f32.mrf.mxu1 }
 0x133   : > { %3868 = vst.msk [vmem:[%s5733_s29 + $0xac] sm:$0xf] %vm3824_vm1, %v4707_v37  ;;  %3996 = vst.msk [vmem:[%s5733_s29 + $0x2ac] sm:$0xf] %vm3824_vm1, %v4835_v38  ;;  %v4705_v46 = vpack.c.bf16 %v2585_v39, %v2585_v39  ;;  %v4833_v47 = vpack.c.bf16 %v2713_v40, %v2713_v40  ;;  %v1698_v48 = vadd.f32 %v5718_v41, %v1697_v44 }
 0x134   : > { %v2210_v49 = vadd.f32 %v5718_v41, %v2209_v45  ;;  %v2590_v50 = vmax.f32 %v1706_v42, 0.0  ;;  %v2718_v51 = vmax.f32 %v2218_v43, 0.0  ;;  %v5104_v52 = vpop.f32.mrf.mxu0  ;;  %v5232_v53 = vpop.f32.mrf.mxu1 }
 0x135   : > { %3866 = vst.msk [vmem:[%s5733_s29 + $0xa4] sm:$0xf] %vm3824_vm1, %v4705_v46  ;;  %3994 = vst.msk [vmem:[%s5733_s29 + $0x2a4] sm:$0xf] %vm3824_vm1, %v4833_v47  ;;  %v2588_v54 = vmax.f32 %v1698_v48, 0.0  ;;  %v1709_v57 = vadd.f32 %v6054_v56, %v5104_v52  ;;  %v2221_v41 = vadd.f32 %v6054_v56, %v5232_v53 }
 0x136   : > { %v2716_v55 = vmax.f32 %v2210_v49, 0.0  ;;  %v4710_v58 = vpack.c.bf16 %v2590_v50, %v2590_v50  ;;  %v4838_v59 = vpack.c.bf16 %v2718_v51, %v2718_v51  ;;  %v1700_v60 = vpop.f32.mrf.mxu0  ;;  %v2212_v61 = vpop.f32.mrf.mxu1 }
 0x137   : > { %v4708_v62 = vpack.c.bf16 %v2588_v54, %v2588_v54  ;;  %v2591_v0 = vmax.f32 %v1709_v57, 0.0  ;;  %v2719_v1 = vmax.f32 %v2221_v41, 0.0  ;;  %v1701_v2 = vadd.f32 %v6054_v56, %v1700_v60 }
 0x138   : > { %v4836_v63 = vpack.c.bf16 %v2716_v55, %v2716_v55  ;;  %3871 = vst.msk [vmem:[%s5733_s29 + $0xb8] sm:$0xf] %vm3824_vm1, %v4710_v58  ;;  %3999 = vst.msk [vmem:[%s5733_s29 + $0x2b8] sm:$0xf] %vm3824_vm1, %v4838_v59  ;;  %v2213_v3 = vadd.f32 %v6054_v56, %v2212_v61  ;;  %v5107_v4 = vpop.f32.mrf.mxu0  ;;  %v5235_v5 = vpop.f32.mrf.mxu1 }
 0x139   : > { %3869 = vst.msk [vmem:[%s5733_s29 + $0xb0] sm:$0xf] %vm3824_vm1, %v4708_v62  ;;  %v4711_v6 = vpack.c.bf16 %v2591_v0, %v2591_v0  ;;  %v4839_v7 = vpack.c.bf16 %v2719_v1, %v2719_v1  ;;  %v1722_v8 = vadd.f32 %v6054_v56, %v5107_v4  ;;  %v2234_v9 = vadd.f32 %v6054_v56, %v5235_v5 }
 0x13a   : > { %3997 = vst.msk [vmem:[%s5733_s29 + $0x2b0] sm:$0xf] %vm3824_vm1, %v4836_v63  ;;  %v2589_v10 = vmax.f32 %v1701_v2, 0.0  ;;  %v2717_v11 = vmax.f32 %v2213_v3, 0.0  ;;  %v1713_v12 = vpop.f32.mrf.mxu0  ;;  %v2225_v13 = vpop.f32.mrf.mxu1 }
 0x13b   : > { %3872 = vst.msk [vmem:[%s5733_s29 + $0xbc] sm:$0xf] %vm3824_vm1, %v4711_v6  ;;  %4000 = vst.msk [vmem:[%s5733_s29 + $0x2bc] sm:$0xf] %vm3824_vm1, %v4839_v7  ;;  %v2594_v14 = vmax.f32 %v1722_v8, 0.0  ;;  %v2722_v15 = vmax.f32 %v2234_v9, 0.0  ;;  %v1714_v16 = vadd.f32 %v6054_v56, %v1713_v12  ;;  %v2226_v17 = vadd.f32 %v6054_v56, %v2225_v13 }
 0x13c   : > { %v4709_v18 = vpack.c.bf16 %v2589_v10, %v2589_v10  ;;  %v4837_v19 = vpack.c.bf16 %v2717_v11, %v2717_v11  ;;  %v5108_v20 = vpop.f32.mrf.mxu0  ;;  %v5236_v21 = vpop.f32.mrf.mxu1 }
 0x13d   : > { %v4714_v22 = vpack.c.bf16 %v2594_v14, %v2594_v14  ;;  %v4842_v23 = vpack.c.bf16 %v2722_v15, %v2722_v15  ;;  %v2592_v24 = vmax.f32 %v1714_v16, 0.0  ;;  %v2720_v25 = vmax.f32 %v2226_v17, 0.0 }
 0x13e   : > { %3870 = vst.msk [vmem:[%s5733_s29 + $0xb4] sm:$0xf] %vm3824_vm1, %v4709_v18  ;;  %3998 = vst.msk [vmem:[%s5733_s29 + $0x2b4] sm:$0xf] %vm3824_vm1, %v4837_v19  ;;  %v1725_v26 = vadd.f32 %v6054_v56, %v5108_v20  ;;  %v2237_v27 = vadd.f32 %v6054_v56, %v5236_v21  ;;  %v1716_v28 = vpop.f32.mrf.mxu0  ;;  %v2228_v29 = vpop.f32.mrf.mxu1 }
 0x13f   : > { %3875 = vst.msk [vmem:[%s5733_s29 + $0xc8] sm:$0xf] %vm3824_vm1, %v4714_v22  ;;  %4003 = vst.msk [vmem:[%s5733_s29 + $0x2c8] sm:$0xf] %vm3824_vm1, %v4842_v23  ;;  %v4712_v30 = vpack.c.bf16 %v2592_v24, %v2592_v24  ;;  %v4840_v31 = vpack.c.bf16 %v2720_v25, %v2720_v25  ;;  %v1717_v32 = vadd.f32 %v6054_v56, %v1716_v28 }
 0x140   : > { %v2229_v33 = vadd.f32 %v6054_v56, %v2228_v29  ;;  %v2595_v34 = vmax.f32 %v1725_v26, 0.0  ;;  %v2723_v35 = vmax.f32 %v2237_v27, 0.0  ;;  %v5111_v36 = vpop.f32.mrf.mxu0  ;;  %v5239_v37 = vpop.f32.mrf.mxu1 }
 0x141   : > { %3873 = vst.msk [vmem:[%s5733_s29 + $0xc0] sm:$0xf] %vm3824_vm1, %v4712_v30  ;;  %4001 = vst.msk [vmem:[%s5733_s29 + $0x2c0] sm:$0xf] %vm3824_vm1, %v4840_v31  ;;  %v2593_v38 = vmax.f32 %v1717_v32, 0.0  ;;  %v1738_v40 = vadd.f32 %v6054_v56, %v5111_v36  ;;  %v2250_v42 = vadd.f32 %v6054_v56, %v5239_v37 }
 0x142   : > { %v2721_v39 = vmax.f32 %v2229_v33, 0.0  ;;  %v4715_v43 = vpack.c.bf16 %v2595_v34, %v2595_v34  ;;  %v4843_v44 = vpack.c.bf16 %v2723_v35, %v2723_v35  ;;  %v1729_v45 = vpop.f32.mrf.mxu0  ;;  %v2241_v46 = vpop.f32.mrf.mxu1 }
 0x143   : > { %v4713_v47 = vpack.c.bf16 %v2593_v38, %v2593_v38  ;;  %v2598_v49 = vmax.f32 %v1738_v40, 0.0  ;;  %v2726_v50 = vmax.f32 %v2250_v42, 0.0  ;;  %v1730_v51 = vadd.f32 %v6054_v56, %v1729_v45 }
 0x144   : > { %v4841_v48 = vpack.c.bf16 %v2721_v39, %v2721_v39  ;;  %3876 = vst.msk [vmem:[%s5733_s29 + $0xcc] sm:$0xf] %vm3824_vm1, %v4715_v43  ;;  %4004 = vst.msk [vmem:[%s5733_s29 + $0x2cc] sm:$0xf] %vm3824_vm1, %v4843_v44  ;;  %v2242_v52 = vadd.f32 %v6054_v56, %v2241_v46  ;;  %v5112_v53 = vpop.f32.mrf.mxu0  ;;  %v5240_v54 = vpop.f32.mrf.mxu1 }
 0x145   : > { %3874 = vst.msk [vmem:[%s5733_s29 + $0xc4] sm:$0xf] %vm3824_vm1, %v4713_v47  ;;  %v4718_v55 = vpack.c.bf16 %v2598_v49, %v2598_v49  ;;  %v4846_v57 = vpack.c.bf16 %v2726_v50, %v2726_v50  ;;  %v1741_v41 = vadd.f32 %v6054_v56, %v5112_v53  ;;  %v2253_v58 = vadd.f32 %v6054_v56, %v5240_v54 }
 0x146   : > { %4002 = vst.msk [vmem:[%s5733_s29 + $0x2c4] sm:$0xf] %vm3824_vm1, %v4841_v48  ;;  %v2596_v59 = vmax.f32 %v1730_v51, 0.0  ;;  %v2724_v60 = vmax.f32 %v2242_v52, 0.0  ;;  %v1732_v61 = vpop.f32.mrf.mxu0  ;;  %v2244_v62 = vpop.f32.mrf.mxu1 }
 0x147   : > { %3879 = vst.msk [vmem:[%s5733_s29 + $0xd8] sm:$0xf] %vm3824_vm1, %v4718_v55  ;;  %4007 = vst.msk [vmem:[%s5733_s29 + $0x2d8] sm:$0xf] %vm3824_vm1, %v4846_v57  ;;  %v2599_v63 = vmax.f32 %v1741_v41, 0.0  ;;  %v2727_v0 = vmax.f32 %v2253_v58, 0.0  ;;  %v1733_v1 = vadd.f32 %v6054_v56, %v1732_v61  ;;  %v2245_v2 = vadd.f32 %v6054_v56, %v2244_v62 }
 0x148   : > { %v4716_v3 = vpack.c.bf16 %v2596_v59, %v2596_v59  ;;  %v4844_v4 = vpack.c.bf16 %v2724_v60, %v2724_v60  ;;  %v5115_v5 = vpop.f32.mrf.mxu0  ;;  %v5243_v6 = vpop.f32.mrf.mxu1 }
 0x149   : > { %v4719_v7 = vpack.c.bf16 %v2599_v63, %v2599_v63  ;;  %v4847_v8 = vpack.c.bf16 %v2727_v0, %v2727_v0  ;;  %v2597_v9 = vmax.f32 %v1733_v1, 0.0  ;;  %v2725_v10 = vmax.f32 %v2245_v2, 0.0 }
 0x14a   : > { %3877 = vst.msk [vmem:[%s5733_s29 + $0xd0] sm:$0xf] %vm3824_vm1, %v4716_v3  ;;  %4005 = vst.msk [vmem:[%s5733_s29 + $0x2d0] sm:$0xf] %vm3824_vm1, %v4844_v4  ;;  %v1754_v11 = vadd.f32 %v6054_v56, %v5115_v5  ;;  %v2266_v12 = vadd.f32 %v6054_v56, %v5243_v6  ;;  %v1745_v13 = vpop.f32.mrf.mxu0  ;;  %v2257_v14 = vpop.f32.mrf.mxu1 }
 0x14b   : > { %3880 = vst.msk [vmem:[%s5733_s29 + $0xdc] sm:$0xf] %vm3824_vm1, %v4719_v7  ;;  %4008 = vst.msk [vmem:[%s5733_s29 + $0x2dc] sm:$0xf] %vm3824_vm1, %v4847_v8  ;;  %v4717_v15 = vpack.c.bf16 %v2597_v9, %v2597_v9  ;;  %v4845_v16 = vpack.c.bf16 %v2725_v10, %v2725_v10  ;;  %v1746_v17 = vadd.f32 %v6054_v56, %v1745_v13 }
 0x14c   : > { %v2258_v18 = vadd.f32 %v6054_v56, %v2257_v14  ;;  %v2602_v19 = vmax.f32 %v1754_v11, 0.0  ;;  %v2730_v20 = vmax.f32 %v2266_v12, 0.0  ;;  %v5116_v21 = vpop.f32.mrf.mxu0  ;;  %v5244_v22 = vpop.f32.mrf.mxu1 }
 0x14d   : > { %3878 = vst.msk [vmem:[%s5733_s29 + $0xd4] sm:$0xf] %vm3824_vm1, %v4717_v15  ;;  %4006 = vst.msk [vmem:[%s5733_s29 + $0x2d4] sm:$0xf] %vm3824_vm1, %v4845_v16  ;;  %v2600_v23 = vmax.f32 %v1746_v17, 0.0  ;;  %v1757_v25 = vadd.f32 %v6054_v56, %v5116_v21  ;;  %v2269_v26 = vadd.f32 %v6054_v56, %v5244_v22 }
 0x14e   : > { %v2728_v24 = vmax.f32 %v2258_v18, 0.0  ;;  %v4722_v27 = vpack.c.bf16 %v2602_v19, %v2602_v19  ;;  %v4850_v28 = vpack.c.bf16 %v2730_v20, %v2730_v20  ;;  %v1748_v29 = vpop.f32.mrf.mxu0  ;;  %v2260_v30 = vpop.f32.mrf.mxu1 }
 0x14f   : > { %v4720_v31 = vpack.c.bf16 %v2600_v23, %v2600_v23  ;;  %v2603_v33 = vmax.f32 %v1757_v25, 0.0  ;;  %v2731_v34 = vmax.f32 %v2269_v26, 0.0  ;;  %v1749_v35 = vadd.f32 %v6054_v56, %v1748_v29 }
 0x150   : > { %v4848_v32 = vpack.c.bf16 %v2728_v24, %v2728_v24  ;;  %3883 = vst.msk [vmem:[%s5733_s29 + $0xe8] sm:$0xf] %vm3824_vm1, %v4722_v27  ;;  %4011 = vst.msk [vmem:[%s5733_s29 + $0x2e8] sm:$0xf] %vm3824_vm1, %v4850_v28  ;;  %v2261_v36 = vadd.f32 %v6054_v56, %v2260_v30  ;;  %v5119_v37 = vpop.f32.mrf.mxu0  ;;  %v5247_v38 = vpop.f32.mrf.mxu1 }
 0x151   : > { %3881 = vst.msk [vmem:[%s5733_s29 + $0xe0] sm:$0xf] %vm3824_vm1, %v4720_v31  ;;  %v4723_v39 = vpack.c.bf16 %v2603_v33, %v2603_v33  ;;  %v4851_v40 = vpack.c.bf16 %v2731_v34, %v2731_v34  ;;  %v1770_v42 = vadd.f32 %v6054_v56, %v5119_v37  ;;  %v2282_v43 = vadd.f32 %v6054_v56, %v5247_v38 }
 0x152   : > { %4009 = vst.msk [vmem:[%s5733_s29 + $0x2e0] sm:$0xf] %vm3824_vm1, %v4848_v32  ;;  %v2601_v44 = vmax.f32 %v1749_v35, 0.0  ;;  %v2729_v45 = vmax.f32 %v2261_v36, 0.0  ;;  %v1761_v46 = vpop.f32.mrf.mxu0  ;;  %v2273_v47 = vpop.f32.mrf.mxu1 }
 0x153   : > { %3884 = vst.msk [vmem:[%s5733_s29 + $0xec] sm:$0xf] %vm3824_vm1, %v4723_v39  ;;  %4012 = vst.msk [vmem:[%s5733_s29 + $0x2ec] sm:$0xf] %vm3824_vm1, %v4851_v40  ;;  %v2606_v48 = vmax.f32 %v1770_v42, 0.0  ;;  %v2734_v49 = vmax.f32 %v2282_v43, 0.0  ;;  %v1762_v50 = vadd.f32 %v6054_v56, %v1761_v46  ;;  %v2274_v51 = vadd.f32 %v6054_v56, %v2273_v47 }
 0x154   : > { %v4721_v52 = vpack.c.bf16 %v2601_v44, %v2601_v44  ;;  %v4849_v53 = vpack.c.bf16 %v2729_v45, %v2729_v45  ;;  %v5120_v54 = vpop.f32.mrf.mxu0  ;;  %v5248_v55 = vpop.f32.mrf.mxu1 }
 0x155   : > { %v4726_v57 = vpack.c.bf16 %v2606_v48, %v2606_v48  ;;  %v4854_v41 = vpack.c.bf16 %v2734_v49, %v2734_v49  ;;  %v2604_v58 = vmax.f32 %v1762_v50, 0.0  ;;  %v2732_v59 = vmax.f32 %v2274_v51, 0.0 }
 0x156   : > { %3882 = vst.msk [vmem:[%s5733_s29 + $0xe4] sm:$0xf] %vm3824_vm1, %v4721_v52  ;;  %4010 = vst.msk [vmem:[%s5733_s29 + $0x2e4] sm:$0xf] %vm3824_vm1, %v4849_v53  ;;  %v1773_v60 = vadd.f32 %v6054_v56, %v5120_v54  ;;  %v2285_v61 = vadd.f32 %v6054_v56, %v5248_v55  ;;  %v1764_v62 = vpop.f32.mrf.mxu0  ;;  %v2276_v63 = vpop.f32.mrf.mxu1 }
 0x157   : > { %3887 = vst.msk [vmem:[%s5733_s29 + $0xf8] sm:$0xf] %vm3824_vm1, %v4726_v57  ;;  %4015 = vst.msk [vmem:[%s5733_s29 + $0x2f8] sm:$0xf] %vm3824_vm1, %v4854_v41  ;;  %v4724_v0 = vpack.c.bf16 %v2604_v58, %v2604_v58  ;;  %v4852_v1 = vpack.c.bf16 %v2732_v59, %v2732_v59  ;;  %v1765_v2 = vadd.f32 %v6054_v56, %v1764_v62 }
 0x158   : > { %v2277_v3 = vadd.f32 %v6054_v56, %v2276_v63  ;;  %v2607_v4 = vmax.f32 %v1773_v60, 0.0  ;;  %v2735_v5 = vmax.f32 %v2285_v61, 0.0  ;;  %v5123_v6 = vpop.f32.mrf.mxu0  ;;  %v5251_v7 = vpop.f32.mrf.mxu1 }
 0x159   : > { %3885 = vst.msk [vmem:[%s5733_s29 + $0xf0] sm:$0xf] %vm3824_vm1, %v4724_v0  ;;  %4013 = vst.msk [vmem:[%s5733_s29 + $0x2f0] sm:$0xf] %vm3824_vm1, %v4852_v1  ;;  %v2605_v8 = vmax.f32 %v1765_v2, 0.0  ;;  %v1786_v10 = vadd.f32 %v6054_v56, %v5123_v6  ;;  %v2298_v11 = vadd.f32 %v6054_v56, %v5251_v7 }
 0x15a   : > { %v2733_v9 = vmax.f32 %v2277_v3, 0.0  ;;  %v4727_v12 = vpack.c.bf16 %v2607_v4, %v2607_v4  ;;  %v4855_v13 = vpack.c.bf16 %v2735_v5, %v2735_v5  ;;  %v1777_v14 = vpop.f32.mrf.mxu0  ;;  %v2289_v15 = vpop.f32.mrf.mxu1 }
 0x15b   : > { %v4725_v16 = vpack.c.bf16 %v2605_v8, %v2605_v8  ;;  %v2610_v18 = vmax.f32 %v1786_v10, 0.0  ;;  %v2738_v19 = vmax.f32 %v2298_v11, 0.0  ;;  %v1778_v20 = vadd.f32 %v6054_v56, %v1777_v14 }
 0x15c   : > { %v4853_v17 = vpack.c.bf16 %v2733_v9, %v2733_v9  ;;  %3888 = vst.msk [vmem:[%s5733_s29 + $0xfc] sm:$0xf] %vm3824_vm1, %v4727_v12  ;;  %4016 = vst.msk [vmem:[%s5733_s29 + $0x2fc] sm:$0xf] %vm3824_vm1, %v4855_v13  ;;  %v2290_v21 = vadd.f32 %v6054_v56, %v2289_v15  ;;  %v5124_v22 = vpop.f32.mrf.mxu0  ;;  %v5252_v23 = vpop.f32.mrf.mxu1 }
 0x15d   : > { %3886 = vst.msk [vmem:[%s5733_s29 + $0xf4] sm:$0xf] %vm3824_vm1, %v4725_v16  ;;  %v4730_v24 = vpack.c.bf16 %v2610_v18, %v2610_v18  ;;  %v4858_v25 = vpack.c.bf16 %v2738_v19, %v2738_v19  ;;  %v1789_v26 = vadd.f32 %v6054_v56, %v5124_v22  ;;  %v2301_v27 = vadd.f32 %v6054_v56, %v5252_v23 }
 0x15e   : > { %4014 = vst.msk [vmem:[%s5733_s29 + $0x2f4] sm:$0xf] %vm3824_vm1, %v4853_v17  ;;  %v2608_v28 = vmax.f32 %v1778_v20, 0.0  ;;  %v2736_v29 = vmax.f32 %v2290_v21, 0.0  ;;  %v1780_v30 = vpop.f32.mrf.mxu0  ;;  %v2292_v31 = vpop.f32.mrf.mxu1 }
 0x15f   : > { %3891 = vst.msk [vmem:[%s5733_s29 + $0x108] sm:$0xf] %vm3824_vm1, %v4730_v24  ;;  %4019 = vst.msk [vmem:[%s5733_s29 + $0x308] sm:$0xf] %vm3824_vm1, %v4858_v25  ;;  %v2611_v32 = vmax.f32 %v1789_v26, 0.0  ;;  %v2739_v33 = vmax.f32 %v2301_v27, 0.0  ;;  %v1781_v34 = vadd.f32 %v6054_v56, %v1780_v30  ;;  %v2293_v35 = vadd.f32 %v6054_v56, %v2292_v31 }
 0x160   : > { %v4728_v36 = vpack.c.bf16 %v2608_v28, %v2608_v28  ;;  %v4856_v37 = vpack.c.bf16 %v2736_v29, %v2736_v29  ;;  %v5127_v38 = vpop.f32.mrf.mxu0  ;;  %v5255_v39 = vpop.f32.mrf.mxu1 }
 0x161   : > { %v4731_v40 = vpack.c.bf16 %v2611_v32, %v2611_v32  ;;  %v4859_v42 = vpack.c.bf16 %v2739_v33, %v2739_v33  ;;  %v2609_v43 = vmax.f32 %v1781_v34, 0.0  ;;  %v2737_v44 = vmax.f32 %v2293_v35, 0.0 }
 0x162   : > { %3889 = vst.msk [vmem:[%s5733_s29 + $0x100] sm:$0xf] %vm3824_vm1, %v4728_v36  ;;  %4017 = vst.msk [vmem:[%s5733_s29 + $0x300] sm:$0xf] %vm3824_vm1, %v4856_v37  ;;  %v1802_v45 = vadd.f32 %v6054_v56, %v5127_v38  ;;  %v2314_v46 = vadd.f32 %v6054_v56, %v5255_v39  ;;  %v1793_v47 = vpop.f32.mrf.mxu0  ;;  %v2305_v48 = vpop.f32.mrf.mxu1 }
 0x163   : > { %3892 = vst.msk [vmem:[%s5733_s29 + $0x10c] sm:$0xf] %vm3824_vm1, %v4731_v40  ;;  %4020 = vst.msk [vmem:[%s5733_s29 + $0x30c] sm:$0xf] %vm3824_vm1, %v4859_v42  ;;  %v4729_v49 = vpack.c.bf16 %v2609_v43, %v2609_v43  ;;  %v4857_v50 = vpack.c.bf16 %v2737_v44, %v2737_v44  ;;  %v1794_v51 = vadd.f32 %v6054_v56, %v1793_v47 }
 0x164   : > { %v2306_v52 = vadd.f32 %v6054_v56, %v2305_v48  ;;  %v2614_v53 = vmax.f32 %v1802_v45, 0.0  ;;  %v2742_v54 = vmax.f32 %v2314_v46, 0.0  ;;  %v5128_v55 = vpop.f32.mrf.mxu0  ;;  %v5256_v57 = vpop.f32.mrf.mxu1 }
 0x165   : > { %3890 = vst.msk [vmem:[%s5733_s29 + $0x104] sm:$0xf] %vm3824_vm1, %v4729_v49  ;;  %4018 = vst.msk [vmem:[%s5733_s29 + $0x304] sm:$0xf] %vm3824_vm1, %v4857_v50  ;;  %v2612_v41 = vmax.f32 %v1794_v51, 0.0  ;;  %v1805_v59 = vadd.f32 %v6054_v56, %v5128_v55  ;;  %v2317_v60 = vadd.f32 %v6054_v56, %v5256_v57 }
 0x166   : > { %v2740_v58 = vmax.f32 %v2306_v52, 0.0  ;;  %v4734_v61 = vpack.c.bf16 %v2614_v53, %v2614_v53  ;;  %v4862_v62 = vpack.c.bf16 %v2742_v54, %v2742_v54  ;;  %v1796_v63 = vpop.f32.mrf.mxu0  ;;  %v2308_v0 = vpop.f32.mrf.mxu1 }
 0x167   : > { %v4732_v1 = vpack.c.bf16 %v2612_v41, %v2612_v41  ;;  %v2615_v3 = vmax.f32 %v1805_v59, 0.0  ;;  %v2743_v4 = vmax.f32 %v2317_v60, 0.0  ;;  %v1797_v5 = vadd.f32 %v6054_v56, %v1796_v63 }
 0x168   : > { %v4860_v2 = vpack.c.bf16 %v2740_v58, %v2740_v58  ;;  %3895 = vst.msk [vmem:[%s5733_s29 + $0x118] sm:$0xf] %vm3824_vm1, %v4734_v61  ;;  %4023 = vst.msk [vmem:[%s5733_s29 + $0x318] sm:$0xf] %vm3824_vm1, %v4862_v62  ;;  %v2309_v6 = vadd.f32 %v6054_v56, %v2308_v0  ;;  %v5131_v7 = vpop.f32.mrf.mxu0  ;;  %v5259_v8 = vpop.f32.mrf.mxu1 }
 0x169   : > { %3893 = vst.msk [vmem:[%s5733_s29 + $0x110] sm:$0xf] %vm3824_vm1, %v4732_v1  ;;  %v4735_v9 = vpack.c.bf16 %v2615_v3, %v2615_v3  ;;  %v4863_v10 = vpack.c.bf16 %v2743_v4, %v2743_v4  ;;  %v1818_v11 = vadd.f32 %v6054_v56, %v5131_v7  ;;  %v2330_v12 = vadd.f32 %v6054_v56, %v5259_v8 }
 0x16a   : > { %4021 = vst.msk [vmem:[%s5733_s29 + $0x310] sm:$0xf] %vm3824_vm1, %v4860_v2  ;;  %v2613_v13 = vmax.f32 %v1797_v5, 0.0  ;;  %v2741_v14 = vmax.f32 %v2309_v6, 0.0  ;;  %v1809_v15 = vpop.f32.mrf.mxu0  ;;  %v2321_v16 = vpop.f32.mrf.mxu1 }
 0x16b   : > { %3896 = vst.msk [vmem:[%s5733_s29 + $0x11c] sm:$0xf] %vm3824_vm1, %v4735_v9  ;;  %4024 = vst.msk [vmem:[%s5733_s29 + $0x31c] sm:$0xf] %vm3824_vm1, %v4863_v10  ;;  %v2618_v17 = vmax.f32 %v1818_v11, 0.0  ;;  %v2746_v18 = vmax.f32 %v2330_v12, 0.0  ;;  %v1810_v19 = vadd.f32 %v6054_v56, %v1809_v15  ;;  %v2322_v20 = vadd.f32 %v6054_v56, %v2321_v16 }
 0x16c   : > { %v4733_v21 = vpack.c.bf16 %v2613_v13, %v2613_v13  ;;  %v4861_v22 = vpack.c.bf16 %v2741_v14, %v2741_v14  ;;  %v5132_v23 = vpop.f32.mrf.mxu0  ;;  %v5260_v24 = vpop.f32.mrf.mxu1 }
 0x16d   : > { %v4738_v25 = vpack.c.bf16 %v2618_v17, %v2618_v17  ;;  %v4866_v26 = vpack.c.bf16 %v2746_v18, %v2746_v18  ;;  %v2616_v27 = vmax.f32 %v1810_v19, 0.0  ;;  %v2744_v28 = vmax.f32 %v2322_v20, 0.0 }
 0x16e   : > { %3894 = vst.msk [vmem:[%s5733_s29 + $0x114] sm:$0xf] %vm3824_vm1, %v4733_v21  ;;  %4022 = vst.msk [vmem:[%s5733_s29 + $0x314] sm:$0xf] %vm3824_vm1, %v4861_v22  ;;  %v1821_v29 = vadd.f32 %v6054_v56, %v5132_v23  ;;  %v2333_v30 = vadd.f32 %v6054_v56, %v5260_v24  ;;  %v1812_v31 = vpop.f32.mrf.mxu0  ;;  %v2324_v32 = vpop.f32.mrf.mxu1 }
 0x16f   : > { %3899 = vst.msk [vmem:[%s5733_s29 + $0x128] sm:$0xf] %vm3824_vm1, %v4738_v25  ;;  %4027 = vst.msk [vmem:[%s5733_s29 + $0x328] sm:$0xf] %vm3824_vm1, %v4866_v26  ;;  %v4736_v33 = vpack.c.bf16 %v2616_v27, %v2616_v27  ;;  %v4864_v34 = vpack.c.bf16 %v2744_v28, %v2744_v28  ;;  %v1813_v35 = vadd.f32 %v6054_v56, %v1812_v31 }
 0x170   : > { %v2325_v36 = vadd.f32 %v6054_v56, %v2324_v32  ;;  %v2619_v37 = vmax.f32 %v1821_v29, 0.0  ;;  %v2747_v38 = vmax.f32 %v2333_v30, 0.0  ;;  %v5135_v39 = vpop.f32.mrf.mxu0  ;;  %v5263_v40 = vpop.f32.mrf.mxu1 }
 0x171   : > { %3897 = vst.msk [vmem:[%s5733_s29 + $0x120] sm:$0xf] %vm3824_vm1, %v4736_v33  ;;  %4025 = vst.msk [vmem:[%s5733_s29 + $0x320] sm:$0xf] %vm3824_vm1, %v4864_v34  ;;  %v2617_v42 = vmax.f32 %v1813_v35, 0.0  ;;  %v1834_v44 = vadd.f32 %v6054_v56, %v5135_v39  ;;  %v2346_v45 = vadd.f32 %v6054_v56, %v5263_v40 }
 0x172   : > { %v2745_v43 = vmax.f32 %v2325_v36, 0.0  ;;  %v4739_v46 = vpack.c.bf16 %v2619_v37, %v2619_v37  ;;  %v4867_v47 = vpack.c.bf16 %v2747_v38, %v2747_v38  ;;  %v1825_v48 = vpop.f32.mrf.mxu0  ;;  %v2337_v49 = vpop.f32.mrf.mxu1 }
 0x173   : > { %v4737_v50 = vpack.c.bf16 %v2617_v42, %v2617_v42  ;;  %v2622_v52 = vmax.f32 %v1834_v44, 0.0  ;;  %v2750_v53 = vmax.f32 %v2346_v45, 0.0  ;;  %v1826_v54 = vadd.f32 %v6054_v56, %v1825_v48 }
 0x174   : > { %v4865_v51 = vpack.c.bf16 %v2745_v43, %v2745_v43  ;;  %3900 = vst.msk [vmem:[%s5733_s29 + $0x12c] sm:$0xf] %vm3824_vm1, %v4739_v46  ;;  %4028 = vst.msk [vmem:[%s5733_s29 + $0x32c] sm:$0xf] %vm3824_vm1, %v4867_v47  ;;  %v2338_v55 = vadd.f32 %v6054_v56, %v2337_v49  ;;  %v5136_v57 = vpop.f32.mrf.mxu0  ;;  %v5264_v41 = vpop.f32.mrf.mxu1 }
 0x175   : > { %3898 = vst.msk [vmem:[%s5733_s29 + $0x124] sm:$0xf] %vm3824_vm1, %v4737_v50  ;;  %v4742_v58 = vpack.c.bf16 %v2622_v52, %v2622_v52  ;;  %v4870_v59 = vpack.c.bf16 %v2750_v53, %v2750_v53  ;;  %v1837_v60 = vadd.f32 %v6054_v56, %v5136_v57  ;;  %v2349_v61 = vadd.f32 %v6054_v56, %v5264_v41 }
 0x176   : > { %4026 = vst.msk [vmem:[%s5733_s29 + $0x324] sm:$0xf] %vm3824_vm1, %v4865_v51  ;;  %v2620_v62 = vmax.f32 %v1826_v54, 0.0  ;;  %v2748_v63 = vmax.f32 %v2338_v55, 0.0  ;;  %v1828_v0 = vpop.f32.mrf.mxu0  ;;  %v2340_v1 = vpop.f32.mrf.mxu1 }
 0x177   : > { %3903 = vst.msk [vmem:[%s5733_s29 + $0x138] sm:$0xf] %vm3824_vm1, %v4742_v58  ;;  %4031 = vst.msk [vmem:[%s5733_s29 + $0x338] sm:$0xf] %vm3824_vm1, %v4870_v59  ;;  %v2623_v2 = vmax.f32 %v1837_v60, 0.0  ;;  %v2751_v3 = vmax.f32 %v2349_v61, 0.0  ;;  %v1829_v4 = vadd.f32 %v6054_v56, %v1828_v0  ;;  %v2341_v5 = vadd.f32 %v6054_v56, %v2340_v1 }
 0x178   : > { %v4740_v6 = vpack.c.bf16 %v2620_v62, %v2620_v62  ;;  %v4868_v7 = vpack.c.bf16 %v2748_v63, %v2748_v63  ;;  %v5139_v8 = vpop.f32.mrf.mxu0  ;;  %v5267_v9 = vpop.f32.mrf.mxu1 }
 0x179   : > { %v4743_v10 = vpack.c.bf16 %v2623_v2, %v2623_v2  ;;  %v4871_v11 = vpack.c.bf16 %v2751_v3, %v2751_v3  ;;  %v2621_v12 = vmax.f32 %v1829_v4, 0.0  ;;  %v2749_v13 = vmax.f32 %v2341_v5, 0.0 }
 0x17a   : > { %3901 = vst.msk [vmem:[%s5733_s29 + $0x130] sm:$0xf] %vm3824_vm1, %v4740_v6  ;;  %4029 = vst.msk [vmem:[%s5733_s29 + $0x330] sm:$0xf] %vm3824_vm1, %v4868_v7  ;;  %v1850_v14 = vadd.f32 %v6054_v56, %v5139_v8  ;;  %v2362_v15 = vadd.f32 %v6054_v56, %v5267_v9  ;;  %v1841_v16 = vpop.f32.mrf.mxu0  ;;  %v2353_v17 = vpop.f32.mrf.mxu1 }
 0x17b   : > { %3904 = vst.msk [vmem:[%s5733_s29 + $0x13c] sm:$0xf] %vm3824_vm1, %v4743_v10  ;;  %4032 = vst.msk [vmem:[%s5733_s29 + $0x33c] sm:$0xf] %vm3824_vm1, %v4871_v11  ;;  %v4741_v18 = vpack.c.bf16 %v2621_v12, %v2621_v12  ;;  %v4869_v19 = vpack.c.bf16 %v2749_v13, %v2749_v13  ;;  %v1842_v20 = vadd.f32 %v6054_v56, %v1841_v16 }
 0x17c   : > { %v2354_v21 = vadd.f32 %v6054_v56, %v2353_v17  ;;  %v2626_v22 = vmax.f32 %v1850_v14, 0.0  ;;  %v2754_v23 = vmax.f32 %v2362_v15, 0.0  ;;  %v5140_v24 = vpop.f32.mrf.mxu0  ;;  %v5268_v25 = vpop.f32.mrf.mxu1 }
 0x17d   : > { %3902 = vst.msk [vmem:[%s5733_s29 + $0x134] sm:$0xf] %vm3824_vm1, %v4741_v18  ;;  %4030 = vst.msk [vmem:[%s5733_s29 + $0x334] sm:$0xf] %vm3824_vm1, %v4869_v19  ;;  %v2624_v26 = vmax.f32 %v1842_v20, 0.0  ;;  %v1853_v28 = vadd.f32 %v6054_v56, %v5140_v24  ;;  %v2365_v29 = vadd.f32 %v6054_v56, %v5268_v25 }
 0x17e   : > { %v2752_v27 = vmax.f32 %v2354_v21, 0.0  ;;  %v4746_v30 = vpack.c.bf16 %v2626_v22, %v2626_v22  ;;  %v4874_v31 = vpack.c.bf16 %v2754_v23, %v2754_v23  ;;  %v1844_v32 = vpop.f32.mrf.mxu0  ;;  %v2356_v33 = vpop.f32.mrf.mxu1 }
 0x17f   : > { %v4744_v34 = vpack.c.bf16 %v2624_v26, %v2624_v26  ;;  %v2627_v36 = vmax.f32 %v1853_v28, 0.0  ;;  %v2755_v37 = vmax.f32 %v2365_v29, 0.0  ;;  %v1845_v38 = vadd.f32 %v6054_v56, %v1844_v32 }
 0x180   : > { %v4872_v35 = vpack.c.bf16 %v2752_v27, %v2752_v27  ;;  %3907 = vst.msk [vmem:[%s5733_s29 + $0x148] sm:$0xf] %vm3824_vm1, %v4746_v30  ;;  %4035 = vst.msk [vmem:[%s5733_s29 + $0x348] sm:$0xf] %vm3824_vm1, %v4874_v31  ;;  %v2357_v39 = vadd.f32 %v6054_v56, %v2356_v33  ;;  %v5143_v40 = vpop.f32.mrf.mxu0  ;;  %v5271_v42 = vpop.f32.mrf.mxu1 }
 0x181   : > { %3905 = vst.msk [vmem:[%s5733_s29 + $0x140] sm:$0xf] %vm3824_vm1, %v4744_v34  ;;  %v4747_v43 = vpack.c.bf16 %v2627_v36, %v2627_v36  ;;  %v4875_v44 = vpack.c.bf16 %v2755_v37, %v2755_v37  ;;  %v1866_v45 = vadd.f32 %v6054_v56, %v5143_v40  ;;  %v2378_v46 = vadd.f32 %v6054_v56, %v5271_v42 }
 0x182   : > { %4033 = vst.msk [vmem:[%s5733_s29 + $0x340] sm:$0xf] %vm3824_vm1, %v4872_v35  ;;  %v2625_v47 = vmax.f32 %v1845_v38, 0.0  ;;  %v2753_v48 = vmax.f32 %v2357_v39, 0.0  ;;  %v1857_v49 = vpop.f32.mrf.mxu0  ;;  %v2369_v50 = vpop.f32.mrf.mxu1 }
 0x183   : > { %3908 = vst.msk [vmem:[%s5733_s29 + $0x14c] sm:$0xf] %vm3824_vm1, %v4747_v43  ;;  %4036 = vst.msk [vmem:[%s5733_s29 + $0x34c] sm:$0xf] %vm3824_vm1, %v4875_v44  ;;  %v2630_v51 = vmax.f32 %v1866_v45, 0.0  ;;  %v2758_v52 = vmax.f32 %v2378_v46, 0.0  ;;  %v1858_v53 = vadd.f32 %v6054_v56, %v1857_v49  ;;  %v2370_v54 = vadd.f32 %v6054_v56, %v2369_v50 }
 0x184   : > { %v4745_v55 = vpack.c.bf16 %v2625_v47, %v2625_v47  ;;  %v4873_v57 = vpack.c.bf16 %v2753_v48, %v2753_v48  ;;  %v5144_v41 = vpop.f32.mrf.mxu0  ;;  %v5272_v58 = vpop.f32.mrf.mxu1 }
 0x185   : > { %v4750_v59 = vpack.c.bf16 %v2630_v51, %v2630_v51  ;;  %v4878_v60 = vpack.c.bf16 %v2758_v52, %v2758_v52  ;;  %v2628_v61 = vmax.f32 %v1858_v53, 0.0  ;;  %v2756_v62 = vmax.f32 %v2370_v54, 0.0 }
 0x186   : > { %3906 = vst.msk [vmem:[%s5733_s29 + $0x144] sm:$0xf] %vm3824_vm1, %v4745_v55  ;;  %4034 = vst.msk [vmem:[%s5733_s29 + $0x344] sm:$0xf] %vm3824_vm1, %v4873_v57  ;;  %v1869_v63 = vadd.f32 %v6054_v56, %v5144_v41  ;;  %v2381_v0 = vadd.f32 %v6054_v56, %v5272_v58  ;;  %v1860_v1 = vpop.f32.mrf.mxu0  ;;  %v2372_v2 = vpop.f32.mrf.mxu1 }
 0x187   : > { %3911 = vst.msk [vmem:[%s5733_s29 + $0x158] sm:$0xf] %vm3824_vm1, %v4750_v59  ;;  %4039 = vst.msk [vmem:[%s5733_s29 + $0x358] sm:$0xf] %vm3824_vm1, %v4878_v60  ;;  %v4748_v3 = vpack.c.bf16 %v2628_v61, %v2628_v61  ;;  %v4876_v4 = vpack.c.bf16 %v2756_v62, %v2756_v62  ;;  %v1861_v5 = vadd.f32 %v6054_v56, %v1860_v1 }
 0x188   : > { %v2373_v6 = vadd.f32 %v6054_v56, %v2372_v2  ;;  %v2631_v7 = vmax.f32 %v1869_v63, 0.0  ;;  %v2759_v8 = vmax.f32 %v2381_v0, 0.0  ;;  %v5147_v9 = vpop.f32.mrf.mxu0  ;;  %v5275_v10 = vpop.f32.mrf.mxu1 }
 0x189   : > { %3909 = vst.msk [vmem:[%s5733_s29 + $0x150] sm:$0xf] %vm3824_vm1, %v4748_v3  ;;  %4037 = vst.msk [vmem:[%s5733_s29 + $0x350] sm:$0xf] %vm3824_vm1, %v4876_v4  ;;  %v2629_v11 = vmax.f32 %v1861_v5, 0.0  ;;  %v1882_v13 = vadd.f32 %v6054_v56, %v5147_v9  ;;  %v2394_v14 = vadd.f32 %v6054_v56, %v5275_v10 }
 0x18a   : > { %v2757_v12 = vmax.f32 %v2373_v6, 0.0  ;;  %v4751_v15 = vpack.c.bf16 %v2631_v7, %v2631_v7  ;;  %v4879_v16 = vpack.c.bf16 %v2759_v8, %v2759_v8  ;;  %v1873_v17 = vpop.f32.mrf.mxu0  ;;  %v2385_v18 = vpop.f32.mrf.mxu1 }
 0x18b   : > { %v4749_v19 = vpack.c.bf16 %v2629_v11, %v2629_v11  ;;  %v2634_v21 = vmax.f32 %v1882_v13, 0.0  ;;  %v2762_v22 = vmax.f32 %v2394_v14, 0.0  ;;  %v1874_v23 = vadd.f32 %v6054_v56, %v1873_v17 }
 0x18c   : > { %v4877_v20 = vpack.c.bf16 %v2757_v12, %v2757_v12  ;;  %3912 = vst.msk [vmem:[%s5733_s29 + $0x15c] sm:$0xf] %vm3824_vm1, %v4751_v15  ;;  %4040 = vst.msk [vmem:[%s5733_s29 + $0x35c] sm:$0xf] %vm3824_vm1, %v4879_v16  ;;  %v2386_v24 = vadd.f32 %v6054_v56, %v2385_v18  ;;  %v5148_v25 = vpop.f32.mrf.mxu0  ;;  %v5276_v26 = vpop.f32.mrf.mxu1 }
 0x18d   : > { %3910 = vst.msk [vmem:[%s5733_s29 + $0x154] sm:$0xf] %vm3824_vm1, %v4749_v19  ;;  %v4754_v27 = vpack.c.bf16 %v2634_v21, %v2634_v21  ;;  %v4882_v28 = vpack.c.bf16 %v2762_v22, %v2762_v22  ;;  %v1885_v29 = vadd.f32 %v6054_v56, %v5148_v25  ;;  %v2397_v30 = vadd.f32 %v6054_v56, %v5276_v26 }
 0x18e   : > { %4038 = vst.msk [vmem:[%s5733_s29 + $0x354] sm:$0xf] %vm3824_vm1, %v4877_v20  ;;  %v2632_v31 = vmax.f32 %v1874_v23, 0.0  ;;  %v2760_v32 = vmax.f32 %v2386_v24, 0.0  ;;  %v1876_v33 = vpop.f32.mrf.mxu0  ;;  %v2388_v34 = vpop.f32.mrf.mxu1 }
 0x18f   : > { %3915 = vst.msk [vmem:[%s5733_s29 + $0x168] sm:$0xf] %vm3824_vm1, %v4754_v27  ;;  %4043 = vst.msk [vmem:[%s5733_s29 + $0x368] sm:$0xf] %vm3824_vm1, %v4882_v28  ;;  %v2635_v35 = vmax.f32 %v1885_v29, 0.0  ;;  %v2763_v36 = vmax.f32 %v2397_v30, 0.0  ;;  %v1877_v37 = vadd.f32 %v6054_v56, %v1876_v33  ;;  %v2389_v38 = vadd.f32 %v6054_v56, %v2388_v34 }
 0x190   : > { %v4752_v39 = vpack.c.bf16 %v2632_v31, %v2632_v31  ;;  %v4880_v40 = vpack.c.bf16 %v2760_v32, %v2760_v32  ;;  %v5151_v42 = vpop.f32.mrf.mxu0  ;;  %v5279_v43 = vpop.f32.mrf.mxu1  ;;  %v6371_v32 = vld [vmem:[%s6566_s2] ss:$0 sm:$0xff] }
 0x191   : > { %v4755_v44 = vpack.c.bf16 %v2635_v35, %v2635_v35  ;;  %v4883_v45 = vpack.c.bf16 %v2763_v36, %v2763_v36  ;;  %v2633_v46 = vmax.f32 %v1877_v37, 0.0  ;;  %v2761_v47 = vmax.f32 %v2389_v38, 0.0 }
 0x192   : > { %3913 = vst.msk [vmem:[%s5733_s29 + $0x160] sm:$0xf] %vm3824_vm1, %v4752_v39  ;;  %4041 = vst.msk [vmem:[%s5733_s29 + $0x360] sm:$0xf] %vm3824_vm1, %v4880_v40  ;;  %v1898_v48 = vadd.f32 %v6054_v56, %v5151_v42  ;;  %v2410_v49 = vadd.f32 %v6054_v56, %v5279_v43  ;;  %v1889_v50 = vpop.f32.mrf.mxu0  ;;  %v2401_v51 = vpop.f32.mrf.mxu1 }
 0x193   : > { %3916 = vst.msk [vmem:[%s5733_s29 + $0x16c] sm:$0xf] %vm3824_vm1, %v4755_v44  ;;  %4044 = vst.msk [vmem:[%s5733_s29 + $0x36c] sm:$0xf] %vm3824_vm1, %v4883_v45  ;;  %v4753_v52 = vpack.c.bf16 %v2633_v46, %v2633_v46  ;;  %v4881_v53 = vpack.c.bf16 %v2761_v47, %v2761_v47  ;;  %v1890_v54 = vadd.f32 %v6054_v56, %v1889_v50 }
 0x194   : > { %v2402_v55 = vadd.f32 %v6054_v56, %v2401_v51  ;;  %v2638_v57 = vmax.f32 %v1898_v48, 0.0  ;;  %v2766_v41 = vmax.f32 %v2410_v49, 0.0  ;;  %v5152_v58 = vpop.f32.mrf.mxu0  ;;  %v5280_v59 = vpop.f32.mrf.mxu1 }
 0x195   : > { %3914 = vst.msk [vmem:[%s5733_s29 + $0x164] sm:$0xf] %vm3824_vm1, %v4753_v52  ;;  %4042 = vst.msk [vmem:[%s5733_s29 + $0x364] sm:$0xf] %vm3824_vm1, %v4881_v53  ;;  %v2636_v60 = vmax.f32 %v1890_v54, 0.0  ;;  %v1901_v62 = vadd.f32 %v6054_v56, %v5152_v58  ;;  %v2413_v63 = vadd.f32 %v6054_v56, %v5280_v59 }
 0x196   : > { %v2764_v61 = vmax.f32 %v2402_v55, 0.0  ;;  %v4758_v0 = vpack.c.bf16 %v2638_v57, %v2638_v57  ;;  %v4886_v1 = vpack.c.bf16 %v2766_v41, %v2766_v41  ;;  %v1892_v2 = vpop.f32.mrf.mxu0  ;;  %v2404_v3 = vpop.f32.mrf.mxu1 }
 0x197   : > { %v4756_v4 = vpack.c.bf16 %v2636_v60, %v2636_v60  ;;  %v2639_v6 = vmax.f32 %v1901_v62, 0.0  ;;  %v2767_v7 = vmax.f32 %v2413_v63, 0.0  ;;  %v1893_v8 = vadd.f32 %v6054_v56, %v1892_v2 }
 0x198   : > { %v4884_v5 = vpack.c.bf16 %v2764_v61, %v2764_v61  ;;  %3919 = vst.msk [vmem:[%s5733_s29 + $0x178] sm:$0xf] %vm3824_vm1, %v4758_v0  ;;  %4047 = vst.msk [vmem:[%s5733_s29 + $0x378] sm:$0xf] %vm3824_vm1, %v4886_v1  ;;  %v2405_v9 = vadd.f32 %v6054_v56, %v2404_v3  ;;  %v5155_v10 = vpop.f32.mrf.mxu0  ;;  %v5283_v11 = vpop.f32.mrf.mxu1 }
 0x199   : > { %3917 = vst.msk [vmem:[%s5733_s29 + $0x170] sm:$0xf] %vm3824_vm1, %v4756_v4  ;;  %v4759_v12 = vpack.c.bf16 %v2639_v6, %v2639_v6  ;;  %v4887_v13 = vpack.c.bf16 %v2767_v7, %v2767_v7  ;;  %v1914_v14 = vadd.f32 %v6054_v56, %v5155_v10  ;;  %v2426_v15 = vadd.f32 %v6054_v56, %v5283_v11 }
 0x19a   : > { %4045 = vst.msk [vmem:[%s5733_s29 + $0x370] sm:$0xf] %vm3824_vm1, %v4884_v5  ;;  %v2637_v16 = vmax.f32 %v1893_v8, 0.0  ;;  %v2765_v17 = vmax.f32 %v2405_v9, 0.0  ;;  %v1905_v18 = vpop.f32.mrf.mxu0  ;;  %v2417_v19 = vpop.f32.mrf.mxu1 }
 0x19b   : > { %3920 = vst.msk [vmem:[%s5733_s29 + $0x17c] sm:$0xf] %vm3824_vm1, %v4759_v12  ;;  %4048 = vst.msk [vmem:[%s5733_s29 + $0x37c] sm:$0xf] %vm3824_vm1, %v4887_v13  ;;  %v2642_v20 = vmax.f32 %v1914_v14, 0.0  ;;  %v2770_v21 = vmax.f32 %v2426_v15, 0.0  ;;  %v1906_v22 = vadd.f32 %v6054_v56, %v1905_v18  ;;  %v2418_v23 = vadd.f32 %v6054_v56, %v2417_v19 }
 0x19c   : > { %v4757_v24 = vpack.c.bf16 %v2637_v16, %v2637_v16  ;;  %v4885_v25 = vpack.c.bf16 %v2765_v17, %v2765_v17  ;;  %v5156_v26 = vpop.f32.mrf.mxu0  ;;  %v5284_v27 = vpop.f32.mrf.mxu1 }
 0x19d   : > { %v4762_v28 = vpack.c.bf16 %v2642_v20, %v2642_v20  ;;  %v4890_v29 = vpack.c.bf16 %v2770_v21, %v2770_v21  ;;  %v2640_v30 = vmax.f32 %v1906_v22, 0.0  ;;  %v2768_v31 = vmax.f32 %v2418_v23, 0.0 }
 0x19e   : > { %3918 = vst.msk [vmem:[%s5733_s29 + $0x174] sm:$0xf] %vm3824_vm1, %v4757_v24  ;;  %4046 = vst.msk [vmem:[%s5733_s29 + $0x374] sm:$0xf] %vm3824_vm1, %v4885_v25  ;;  %v1917_v56 = vadd.f32 %v6371_v32, %v5156_v26  ;;  %v2429_v33 = vadd.f32 %v6371_v32, %v5284_v27  ;;  %v1908_v34 = vpop.f32.mrf.mxu0  ;;  %v2420_v35 = vpop.f32.mrf.mxu1 }
 0x19f   : > { %3923 = vst.msk [vmem:[%s5733_s29 + $0x188] sm:$0xf] %vm3824_vm1, %v4762_v28  ;;  %4051 = vst.msk [vmem:[%s5733_s29 + $0x388] sm:$0xf] %vm3824_vm1, %v4890_v29  ;;  %v4760_v36 = vpack.c.bf16 %v2640_v30, %v2640_v30  ;;  %v4888_v37 = vpack.c.bf16 %v2768_v31, %v2768_v31  ;;  %v1909_v38 = vadd.f32 %v6371_v32, %v1908_v34 }
 0x1a0   : > { %v2421_v39 = vadd.f32 %v6371_v32, %v2420_v35  ;;  %v2643_v40 = vmax.f32 %v1917_v56, 0.0  ;;  %v2771_v42 = vmax.f32 %v2429_v33, 0.0  ;;  %v5159_v43 = vpop.f32.mrf.mxu0  ;;  %v5287_v44 = vpop.f32.mrf.mxu1 }
 0x1a1   : > { %3921 = vst.msk [vmem:[%s5733_s29 + $0x180] sm:$0xf] %vm3824_vm1, %v4760_v36  ;;  %4049 = vst.msk [vmem:[%s5733_s29 + $0x380] sm:$0xf] %vm3824_vm1, %v4888_v37  ;;  %v2641_v45 = vmax.f32 %v1909_v38, 0.0  ;;  %v1930_v47 = vadd.f32 %v6371_v32, %v5159_v43  ;;  %v2442_v48 = vadd.f32 %v6371_v32, %v5287_v44 }
 0x1a2   : > { %v2769_v46 = vmax.f32 %v2421_v39, 0.0  ;;  %v4763_v49 = vpack.c.bf16 %v2643_v40, %v2643_v40  ;;  %v4891_v50 = vpack.c.bf16 %v2771_v42, %v2771_v42  ;;  %v1921_v51 = vpop.f32.mrf.mxu0  ;;  %v2433_v52 = vpop.f32.mrf.mxu1 }
 0x1a3   : > { %v4761_v53 = vpack.c.bf16 %v2641_v45, %v2641_v45  ;;  %v2646_v55 = vmax.f32 %v1930_v47, 0.0  ;;  %v2774_v57 = vmax.f32 %v2442_v48, 0.0  ;;  %v1922_v41 = vadd.f32 %v6371_v32, %v1921_v51 }
 0x1a4   : > { %v4889_v54 = vpack.c.bf16 %v2769_v46, %v2769_v46  ;;  %3924 = vst.msk [vmem:[%s5733_s29 + $0x18c] sm:$0xf] %vm3824_vm1, %v4763_v49  ;;  %4052 = vst.msk [vmem:[%s5733_s29 + $0x38c] sm:$0xf] %vm3824_vm1, %v4891_v50  ;;  %v2434_v58 = vadd.f32 %v6371_v32, %v2433_v52  ;;  %v5160_v59 = vpop.f32.mrf.mxu0  ;;  %v5288_v60 = vpop.f32.mrf.mxu1 }
 0x1a5   : > { %3922 = vst.msk [vmem:[%s5733_s29 + $0x184] sm:$0xf] %vm3824_vm1, %v4761_v53  ;;  %v4766_v61 = vpack.c.bf16 %v2646_v55, %v2646_v55  ;;  %v4894_v62 = vpack.c.bf16 %v2774_v57, %v2774_v57  ;;  %v1933_v63 = vadd.f32 %v6371_v32, %v5160_v59  ;;  %v2445_v0 = vadd.f32 %v6371_v32, %v5288_v60 }
 0x1a6   : > { %4050 = vst.msk [vmem:[%s5733_s29 + $0x384] sm:$0xf] %vm3824_vm1, %v4889_v54  ;;  %v2644_v1 = vmax.f32 %v1922_v41, 0.0  ;;  %v2772_v2 = vmax.f32 %v2434_v58, 0.0  ;;  %v1924_v3 = vpop.f32.mrf.mxu0  ;;  %v2436_v4 = vpop.f32.mrf.mxu1 }
 0x1a7   : > { %3927 = vst.msk [vmem:[%s5733_s29 + $0x198] sm:$0xf] %vm3824_vm1, %v4766_v61  ;;  %4055 = vst.msk [vmem:[%s5733_s29 + $0x398] sm:$0xf] %vm3824_vm1, %v4894_v62  ;;  %v2647_v5 = vmax.f32 %v1933_v63, 0.0  ;;  %v2775_v6 = vmax.f32 %v2445_v0, 0.0  ;;  %v1925_v7 = vadd.f32 %v6371_v32, %v1924_v3  ;;  %v2437_v8 = vadd.f32 %v6371_v32, %v2436_v4 }
 0x1a8   : > { %v4764_v9 = vpack.c.bf16 %v2644_v1, %v2644_v1  ;;  %v4892_v10 = vpack.c.bf16 %v2772_v2, %v2772_v2  ;;  %v5163_v11 = vpop.f32.mrf.mxu0  ;;  %v5291_v12 = vpop.f32.mrf.mxu1 }
 0x1a9   : > { %v4767_v13 = vpack.c.bf16 %v2647_v5, %v2647_v5  ;;  %v4895_v14 = vpack.c.bf16 %v2775_v6, %v2775_v6  ;;  %v2645_v15 = vmax.f32 %v1925_v7, 0.0  ;;  %v2773_v16 = vmax.f32 %v2437_v8, 0.0 }
 0x1aa   : > { %3925 = vst.msk [vmem:[%s5733_s29 + $0x190] sm:$0xf] %vm3824_vm1, %v4764_v9  ;;  %4053 = vst.msk [vmem:[%s5733_s29 + $0x390] sm:$0xf] %vm3824_vm1, %v4892_v10  ;;  %v1946_v17 = vadd.f32 %v6371_v32, %v5163_v11  ;;  %v2458_v18 = vadd.f32 %v6371_v32, %v5291_v12  ;;  %v1937_v19 = vpop.f32.mrf.mxu0  ;;  %v2449_v20 = vpop.f32.mrf.mxu1 }
 0x1ab   : > { %3928 = vst.msk [vmem:[%s5733_s29 + $0x19c] sm:$0xf] %vm3824_vm1, %v4767_v13  ;;  %4056 = vst.msk [vmem:[%s5733_s29 + $0x39c] sm:$0xf] %vm3824_vm1, %v4895_v14  ;;  %v4765_v21 = vpack.c.bf16 %v2645_v15, %v2645_v15  ;;  %v4893_v22 = vpack.c.bf16 %v2773_v16, %v2773_v16  ;;  %v1938_v23 = vadd.f32 %v6371_v32, %v1937_v19 }
 0x1ac   : > { %v2450_v24 = vadd.f32 %v6371_v32, %v2449_v20  ;;  %v2650_v25 = vmax.f32 %v1946_v17, 0.0  ;;  %v2778_v26 = vmax.f32 %v2458_v18, 0.0  ;;  %v5164_v27 = vpop.f32.mrf.mxu0  ;;  %v5292_v28 = vpop.f32.mrf.mxu1 }
 0x1ad   : > { %3926 = vst.msk [vmem:[%s5733_s29 + $0x194] sm:$0xf] %vm3824_vm1, %v4765_v21  ;;  %4054 = vst.msk [vmem:[%s5733_s29 + $0x394] sm:$0xf] %vm3824_vm1, %v4893_v22  ;;  %v2648_v29 = vmax.f32 %v1938_v23, 0.0  ;;  %v1949_v31 = vadd.f32 %v6371_v32, %v5164_v27  ;;  %v2461_v56 = vadd.f32 %v6371_v32, %v5292_v28 }
 0x1ae   : > { %v2776_v30 = vmax.f32 %v2450_v24, 0.0  ;;  %v4770_v33 = vpack.c.bf16 %v2650_v25, %v2650_v25  ;;  %v4898_v34 = vpack.c.bf16 %v2778_v26, %v2778_v26  ;;  %v1940_v35 = vpop.f32.mrf.mxu0  ;;  %v2452_v36 = vpop.f32.mrf.mxu1 }
 0x1af   : > { %v4768_v37 = vpack.c.bf16 %v2648_v29, %v2648_v29  ;;  %v2651_v39 = vmax.f32 %v1949_v31, 0.0  ;;  %v2779_v40 = vmax.f32 %v2461_v56, 0.0  ;;  %v1941_v42 = vadd.f32 %v6371_v32, %v1940_v35 }
 0x1b0   : > { %v4896_v38 = vpack.c.bf16 %v2776_v30, %v2776_v30  ;;  %3931 = vst.msk [vmem:[%s5733_s29 + $0x1a8] sm:$0xf] %vm3824_vm1, %v4770_v33  ;;  %4059 = vst.msk [vmem:[%s5733_s29 + $0x3a8] sm:$0xf] %vm3824_vm1, %v4898_v34  ;;  %v2453_v43 = vadd.f32 %v6371_v32, %v2452_v36  ;;  %v5167_v44 = vpop.f32.mrf.mxu0  ;;  %v5295_v45 = vpop.f32.mrf.mxu1 }
 0x1b1   : > { %3929 = vst.msk [vmem:[%s5733_s29 + $0x1a0] sm:$0xf] %vm3824_vm1, %v4768_v37  ;;  %v4771_v46 = vpack.c.bf16 %v2651_v39, %v2651_v39  ;;  %v4899_v47 = vpack.c.bf16 %v2779_v40, %v2779_v40  ;;  %v1962_v48 = vadd.f32 %v6371_v32, %v5167_v44  ;;  %v2474_v49 = vadd.f32 %v6371_v32, %v5295_v45 }
 0x1b2   : > { %4057 = vst.msk [vmem:[%s5733_s29 + $0x3a0] sm:$0xf] %vm3824_vm1, %v4896_v38  ;;  %v2649_v50 = vmax.f32 %v1941_v42, 0.0  ;;  %v2777_v51 = vmax.f32 %v2453_v43, 0.0  ;;  %v1953_v52 = vpop.f32.mrf.mxu0  ;;  %v2465_v53 = vpop.f32.mrf.mxu1 }
 0x1b3   : > { %3932 = vst.msk [vmem:[%s5733_s29 + $0x1ac] sm:$0xf] %vm3824_vm1, %v4771_v46  ;;  %4060 = vst.msk [vmem:[%s5733_s29 + $0x3ac] sm:$0xf] %vm3824_vm1, %v4899_v47  ;;  %v2654_v54 = vmax.f32 %v1962_v48, 0.0  ;;  %v2782_v55 = vmax.f32 %v2474_v49, 0.0  ;;  %v1954_v57 = vadd.f32 %v6371_v32, %v1953_v52  ;;  %v2466_v41 = vadd.f32 %v6371_v32, %v2465_v53 }
 0x1b4   : > { %v4769_v58 = vpack.c.bf16 %v2649_v50, %v2649_v50  ;;  %v4897_v59 = vpack.c.bf16 %v2777_v51, %v2777_v51  ;;  %v5168_v60 = vpop.f32.mrf.mxu0  ;;  %v5296_v61 = vpop.f32.mrf.mxu1 }
 0x1b5   : > { %v4774_v62 = vpack.c.bf16 %v2654_v54, %v2654_v54  ;;  %v4902_v63 = vpack.c.bf16 %v2782_v55, %v2782_v55  ;;  %v2652_v0 = vmax.f32 %v1954_v57, 0.0  ;;  %v2780_v1 = vmax.f32 %v2466_v41, 0.0 }
 0x1b6   : > { %3930 = vst.msk [vmem:[%s5733_s29 + $0x1a4] sm:$0xf] %vm3824_vm1, %v4769_v58  ;;  %4058 = vst.msk [vmem:[%s5733_s29 + $0x3a4] sm:$0xf] %vm3824_vm1, %v4897_v59  ;;  %v1965_v2 = vadd.f32 %v6371_v32, %v5168_v60  ;;  %v2477_v3 = vadd.f32 %v6371_v32, %v5296_v61  ;;  %v1956_v4 = vpop.f32.mrf.mxu0  ;;  %v2468_v5 = vpop.f32.mrf.mxu1 }
 0x1b7   : > { %3935 = vst.msk [vmem:[%s5733_s29 + $0x1b8] sm:$0xf] %vm3824_vm1, %v4774_v62  ;;  %4063 = vst.msk [vmem:[%s5733_s29 + $0x3b8] sm:$0xf] %vm3824_vm1, %v4902_v63  ;;  %v4772_v6 = vpack.c.bf16 %v2652_v0, %v2652_v0  ;;  %v4900_v7 = vpack.c.bf16 %v2780_v1, %v2780_v1  ;;  %v1957_v8 = vadd.f32 %v6371_v32, %v1956_v4 }
 0x1b8   : > { %v2469_v9 = vadd.f32 %v6371_v32, %v2468_v5  ;;  %v2655_v10 = vmax.f32 %v1965_v2, 0.0  ;;  %v2783_v11 = vmax.f32 %v2477_v3, 0.0  ;;  %v5171_v12 = vpop.f32.mrf.mxu0  ;;  %v5299_v13 = vpop.f32.mrf.mxu1 }
 0x1b9   : > { %3933 = vst.msk [vmem:[%s5733_s29 + $0x1b0] sm:$0xf] %vm3824_vm1, %v4772_v6  ;;  %4061 = vst.msk [vmem:[%s5733_s29 + $0x3b0] sm:$0xf] %vm3824_vm1, %v4900_v7  ;;  %v2653_v14 = vmax.f32 %v1957_v8, 0.0  ;;  %v1978_v16 = vadd.f32 %v6371_v32, %v5171_v12  ;;  %v2490_v17 = vadd.f32 %v6371_v32, %v5299_v13 }
 0x1ba   : > { %v2781_v15 = vmax.f32 %v2469_v9, 0.0  ;;  %v4775_v18 = vpack.c.bf16 %v2655_v10, %v2655_v10  ;;  %v4903_v19 = vpack.c.bf16 %v2783_v11, %v2783_v11  ;;  %v1969_v20 = vpop.f32.mrf.mxu0  ;;  %v2481_v21 = vpop.f32.mrf.mxu1 }
 0x1bb   : > { %v4773_v22 = vpack.c.bf16 %v2653_v14, %v2653_v14  ;;  %v2658_v24 = vmax.f32 %v1978_v16, 0.0  ;;  %v2786_v25 = vmax.f32 %v2490_v17, 0.0  ;;  %v1970_v26 = vadd.f32 %v6371_v32, %v1969_v20 }
 0x1bc   : > { %v4901_v23 = vpack.c.bf16 %v2781_v15, %v2781_v15  ;;  %3936 = vst.msk [vmem:[%s5733_s29 + $0x1bc] sm:$0xf] %vm3824_vm1, %v4775_v18  ;;  %4064 = vst.msk [vmem:[%s5733_s29 + $0x3bc] sm:$0xf] %vm3824_vm1, %v4903_v19  ;;  %v2482_v27 = vadd.f32 %v6371_v32, %v2481_v21  ;;  %v5172_v28 = vpop.f32.mrf.mxu0  ;;  %v5300_v29 = vpop.f32.mrf.mxu1 }
 0x1bd   : > { %3934 = vst.msk [vmem:[%s5733_s29 + $0x1b4] sm:$0xf] %vm3824_vm1, %v4773_v22  ;;  %v4778_v30 = vpack.c.bf16 %v2658_v24, %v2658_v24  ;;  %v4906_v31 = vpack.c.bf16 %v2786_v25, %v2786_v25  ;;  %v1981_v56 = vadd.f32 %v6371_v32, %v5172_v28  ;;  %v2493_v33 = vadd.f32 %v6371_v32, %v5300_v29 }
 0x1be   : > { %4062 = vst.msk [vmem:[%s5733_s29 + $0x3b4] sm:$0xf] %vm3824_vm1, %v4901_v23  ;;  %v2656_v34 = vmax.f32 %v1970_v26, 0.0  ;;  %v2784_v35 = vmax.f32 %v2482_v27, 0.0  ;;  %v1972_v36 = vpop.f32.mrf.mxu0  ;;  %v2484_v37 = vpop.f32.mrf.mxu1 }
 0x1bf   : > { %3939 = vst.msk [vmem:[%s5733_s29 + $0x1c8] sm:$0xf] %vm3824_vm1, %v4778_v30  ;;  %4067 = vst.msk [vmem:[%s5733_s29 + $0x3c8] sm:$0xf] %vm3824_vm1, %v4906_v31  ;;  %v2659_v38 = vmax.f32 %v1981_v56, 0.0  ;;  %v2787_v39 = vmax.f32 %v2493_v33, 0.0  ;;  %v1973_v40 = vadd.f32 %v6371_v32, %v1972_v36  ;;  %v2485_v42 = vadd.f32 %v6371_v32, %v2484_v37 }
 0x1c0   : > { %v4776_v43 = vpack.c.bf16 %v2656_v34, %v2656_v34  ;;  %v4904_v44 = vpack.c.bf16 %v2784_v35, %v2784_v35  ;;  %v5175_v45 = vpop.f32.mrf.mxu0  ;;  %v5303_v46 = vpop.f32.mrf.mxu1 }
 0x1c1   : > { %v4779_v47 = vpack.c.bf16 %v2659_v38, %v2659_v38  ;;  %v4907_v48 = vpack.c.bf16 %v2787_v39, %v2787_v39  ;;  %v2657_v49 = vmax.f32 %v1973_v40, 0.0  ;;  %v2785_v50 = vmax.f32 %v2485_v42, 0.0 }
 0x1c2   : > { %3937 = vst.msk [vmem:[%s5733_s29 + $0x1c0] sm:$0xf] %vm3824_vm1, %v4776_v43  ;;  %4065 = vst.msk [vmem:[%s5733_s29 + $0x3c0] sm:$0xf] %vm3824_vm1, %v4904_v44  ;;  %v1994_v51 = vadd.f32 %v6371_v32, %v5175_v45  ;;  %v2506_v52 = vadd.f32 %v6371_v32, %v5303_v46  ;;  %v1985_v53 = vpop.f32.mrf.mxu0  ;;  %v2497_v54 = vpop.f32.mrf.mxu1 }
 0x1c3   : > { %3940 = vst.msk [vmem:[%s5733_s29 + $0x1cc] sm:$0xf] %vm3824_vm1, %v4779_v47  ;;  %4068 = vst.msk [vmem:[%s5733_s29 + $0x3cc] sm:$0xf] %vm3824_vm1, %v4907_v48  ;;  %v4777_v55 = vpack.c.bf16 %v2657_v49, %v2657_v49  ;;  %v4905_v57 = vpack.c.bf16 %v2785_v50, %v2785_v50  ;;  %v1986_v41 = vadd.f32 %v6371_v32, %v1985_v53 }
 0x1c4   : > { %v2498_v58 = vadd.f32 %v6371_v32, %v2497_v54  ;;  %v2662_v59 = vmax.f32 %v1994_v51, 0.0  ;;  %v2790_v60 = vmax.f32 %v2506_v52, 0.0  ;;  %v5176_v61 = vpop.f32.mrf.mxu0  ;;  %v5304_v62 = vpop.f32.mrf.mxu1 }
 0x1c5   : > { %3938 = vst.msk [vmem:[%s5733_s29 + $0x1c4] sm:$0xf] %vm3824_vm1, %v4777_v55  ;;  %4066 = vst.msk [vmem:[%s5733_s29 + $0x3c4] sm:$0xf] %vm3824_vm1, %v4905_v57  ;;  %v2660_v63 = vmax.f32 %v1986_v41, 0.0  ;;  %v1997_v1 = vadd.f32 %v6371_v32, %v5176_v61  ;;  %v2509_v2 = vadd.f32 %v6371_v32, %v5304_v62 }
 0x1c6   : > { %v2788_v0 = vmax.f32 %v2498_v58, 0.0  ;;  %v4782_v3 = vpack.c.bf16 %v2662_v59, %v2662_v59  ;;  %v4910_v4 = vpack.c.bf16 %v2790_v60, %v2790_v60  ;;  %v1988_v5 = vpop.f32.mrf.mxu0  ;;  %v2500_v6 = vpop.f32.mrf.mxu1 }
 0x1c7   : > { %v4780_v7 = vpack.c.bf16 %v2660_v63, %v2660_v63  ;;  %v2663_v9 = vmax.f32 %v1997_v1, 0.0  ;;  %v2791_v10 = vmax.f32 %v2509_v2, 0.0  ;;  %v1989_v11 = vadd.f32 %v6371_v32, %v1988_v5 }
 0x1c8   : > { %v4908_v8 = vpack.c.bf16 %v2788_v0, %v2788_v0  ;;  %3943 = vst.msk [vmem:[%s5733_s29 + $0x1d8] sm:$0xf] %vm3824_vm1, %v4782_v3  ;;  %4071 = vst.msk [vmem:[%s5733_s29 + $0x3d8] sm:$0xf] %vm3824_vm1, %v4910_v4  ;;  %v2501_v12 = vadd.f32 %v6371_v32, %v2500_v6  ;;  %v5179_v13 = vpop.f32.mrf.mxu0  ;;  %v5307_v14 = vpop.f32.mrf.mxu1 }
 0x1c9   : > { %3941 = vst.msk [vmem:[%s5733_s29 + $0x1d0] sm:$0xf] %vm3824_vm1, %v4780_v7  ;;  %v4783_v15 = vpack.c.bf16 %v2663_v9, %v2663_v9  ;;  %v4911_v16 = vpack.c.bf16 %v2791_v10, %v2791_v10  ;;  %v2010_v17 = vadd.f32 %v6371_v32, %v5179_v13  ;;  %v2522_v18 = vadd.f32 %v6371_v32, %v5307_v14 }
 0x1ca   : > { %4069 = vst.msk [vmem:[%s5733_s29 + $0x3d0] sm:$0xf] %vm3824_vm1, %v4908_v8  ;;  %v2661_v19 = vmax.f32 %v1989_v11, 0.0  ;;  %v2789_v20 = vmax.f32 %v2501_v12, 0.0  ;;  %v2001_v21 = vpop.f32.mrf.mxu0  ;;  %v2513_v22 = vpop.f32.mrf.mxu1 }
 0x1cb   : > { %3944 = vst.msk [vmem:[%s5733_s29 + $0x1dc] sm:$0xf] %vm3824_vm1, %v4783_v15  ;;  %4072 = vst.msk [vmem:[%s5733_s29 + $0x3dc] sm:$0xf] %vm3824_vm1, %v4911_v16  ;;  %v2666_v23 = vmax.f32 %v2010_v17, 0.0  ;;  %v2794_v24 = vmax.f32 %v2522_v18, 0.0  ;;  %v2002_v25 = vadd.f32 %v6371_v32, %v2001_v21  ;;  %v2514_v26 = vadd.f32 %v6371_v32, %v2513_v22 }
 0x1cc   : > { %v4781_v27 = vpack.c.bf16 %v2661_v19, %v2661_v19  ;;  %v4909_v28 = vpack.c.bf16 %v2789_v20, %v2789_v20  ;;  %v5180_v29 = vpop.f32.mrf.mxu0  ;;  %v5308_v30 = vpop.f32.mrf.mxu1 }
 0x1cd   : > { %v4786_v31 = vpack.c.bf16 %v2666_v23, %v2666_v23  ;;  %v4914_v56 = vpack.c.bf16 %v2794_v24, %v2794_v24  ;;  %v2664_v33 = vmax.f32 %v2002_v25, 0.0  ;;  %v2792_v34 = vmax.f32 %v2514_v26, 0.0 }
 0x1ce   : > { %3942 = vst.msk [vmem:[%s5733_s29 + $0x1d4] sm:$0xf] %vm3824_vm1, %v4781_v27  ;;  %4070 = vst.msk [vmem:[%s5733_s29 + $0x3d4] sm:$0xf] %vm3824_vm1, %v4909_v28  ;;  %v2013_v35 = vadd.f32 %v6371_v32, %v5180_v29  ;;  %v2525_v36 = vadd.f32 %v6371_v32, %v5308_v30  ;;  %v2004_v37 = vpop.f32.mrf.mxu0  ;;  %v2516_v38 = vpop.f32.mrf.mxu1 }
 0x1cf   : > { %3947 = vst.msk [vmem:[%s5733_s29 + $0x1e8] sm:$0xf] %vm3824_vm1, %v4786_v31  ;;  %4075 = vst.msk [vmem:[%s5733_s29 + $0x3e8] sm:$0xf] %vm3824_vm1, %v4914_v56  ;;  %v4784_v39 = vpack.c.bf16 %v2664_v33, %v2664_v33  ;;  %v4912_v40 = vpack.c.bf16 %v2792_v34, %v2792_v34  ;;  %v2005_v42 = vadd.f32 %v6371_v32, %v2004_v37 }
 0x1d0   : > { %v2517_v43 = vadd.f32 %v6371_v32, %v2516_v38  ;;  %v2667_v44 = vmax.f32 %v2013_v35, 0.0  ;;  %v2795_v45 = vmax.f32 %v2525_v36, 0.0  ;;  %v5183_v46 = vpop.f32.mrf.mxu0  ;;  %v5311_v47 = vpop.f32.mrf.mxu1 }
 0x1d1   : > { %3945 = vst.msk [vmem:[%s5733_s29 + $0x1e0] sm:$0xf] %vm3824_vm1, %v4784_v39  ;;  %4073 = vst.msk [vmem:[%s5733_s29 + $0x3e0] sm:$0xf] %vm3824_vm1, %v4912_v40  ;;  %v2665_v48 = vmax.f32 %v2005_v42, 0.0  ;;  %v2026_v50 = vadd.f32 %v6371_v32, %v5183_v46  ;;  %v2538_v51 = vadd.f32 %v6371_v32, %v5311_v47 }
 0x1d2   : > { %v2793_v49 = vmax.f32 %v2517_v43, 0.0  ;;  %v4787_v52 = vpack.c.bf16 %v2667_v44, %v2667_v44  ;;  %v4915_v53 = vpack.c.bf16 %v2795_v45, %v2795_v45  ;;  %v2017_v54 = vpop.f32.mrf.mxu0  ;;  %v2529_v55 = vpop.f32.mrf.mxu1 }
 0x1d3   : > { %v4785_v57 = vpack.c.bf16 %v2665_v48, %v2665_v48  ;;  %v2670_v58 = vmax.f32 %v2026_v50, 0.0  ;;  %v2798_v59 = vmax.f32 %v2538_v51, 0.0  ;;  %v2018_v60 = vadd.f32 %v6371_v32, %v2017_v54 }
 0x1d4   : > { %v4913_v41 = vpack.c.bf16 %v2793_v49, %v2793_v49  ;;  %3948 = vst.msk [vmem:[%s5733_s29 + $0x1ec] sm:$0xf] %vm3824_vm1, %v4787_v52  ;;  %4076 = vst.msk [vmem:[%s5733_s29 + $0x3ec] sm:$0xf] %vm3824_vm1, %v4915_v53  ;;  %v2530_v61 = vadd.f32 %v6371_v32, %v2529_v55  ;;  %v5184_v62 = vpop.f32.mrf.mxu0  ;;  %v5312_v63 = vpop.f32.mrf.mxu1 }
 0x1d5   : > { %3946 = vst.msk [vmem:[%s5733_s29 + $0x1e4] sm:$0xf] %vm3824_vm1, %v4785_v57  ;;  %v4790_v0 = vpack.c.bf16 %v2670_v58, %v2670_v58  ;;  %v4918_v1 = vpack.c.bf16 %v2798_v59, %v2798_v59  ;;  %v2029_v2 = vadd.f32 %v6371_v32, %v5184_v62  ;;  %v2541_v3 = vadd.f32 %v6371_v32, %v5312_v63 }
 0x1d6   : > { %4074 = vst.msk [vmem:[%s5733_s29 + $0x3e4] sm:$0xf] %vm3824_vm1, %v4913_v41  ;;  %v2668_v4 = vmax.f32 %v2018_v60, 0.0  ;;  %v2796_v5 = vmax.f32 %v2530_v61, 0.0  ;;  %v2020_v6 = vpop.f32.mrf.mxu0  ;;  %v2532_v7 = vpop.f32.mrf.mxu1 }
 0x1d7   : > { %3951 = vst.msk [vmem:[%s5733_s29 + $0x1f8] sm:$0xf] %vm3824_vm1, %v4790_v0  ;;  %4079 = vst.msk [vmem:[%s5733_s29 + $0x3f8] sm:$0xf] %vm3824_vm1, %v4918_v1  ;;  %v2671_v8 = vmax.f32 %v2029_v2, 0.0  ;;  %v2799_v9 = vmax.f32 %v2541_v3, 0.0  ;;  %v2021_v10 = vadd.f32 %v6371_v32, %v2020_v6  ;;  %v2533_v11 = vadd.f32 %v6371_v32, %v2532_v7 }
 0x1d8   : > { %v4788_v12 = vpack.c.bf16 %v2668_v4, %v2668_v4  ;;  %v4916_v13 = vpack.c.bf16 %v2796_v5, %v2796_v5 }
 0x1d9   : > { %v4791_v14 = vpack.c.bf16 %v2671_v8, %v2671_v8  ;;  %v4919_v15 = vpack.c.bf16 %v2799_v9, %v2799_v9  ;;  %v2669_v16 = vmax.f32 %v2021_v10, 0.0  ;;  %v2797_v17 = vmax.f32 %v2533_v11, 0.0 }
 0x1da   : > { %3949 = vst.msk [vmem:[%s5733_s29 + $0x1f0] sm:$0xf] %vm3824_vm1, %v4788_v12  ;;  %4077 = vst.msk [vmem:[%s5733_s29 + $0x3f0] sm:$0xf] %vm3824_vm1, %v4916_v13 }
 0x1db   : > { %3952 = vst.msk [vmem:[%s5733_s29 + $0x1fc] sm:$0xf] %vm3824_vm1, %v4791_v14  ;;  %4080 = vst.msk [vmem:[%s5733_s29 + $0x3fc] sm:$0xf] %vm3824_vm1, %v4919_v15  ;;  %v4789_v18 = vpack.c.bf16 %v2669_v16, %v2669_v16  ;;  %v4917_v19 = vpack.c.bf16 %v2797_v17, %v2797_v17 }
 0x1dd   : > { %3950 = vst.msk [vmem:[%s5733_s29 + $0x1f4] sm:$0xf] %vm3824_vm1, %v4789_v18  ;;  %4078 = vst.msk [vmem:[%s5733_s29 + $0x3f4] sm:$0xf] %vm3824_vm1, %v4917_v19 }
 0x1de PF: > { %s13_s12 = sadd.s32 1, %s5466_s12  }
 0x1df   : > { %p10_p4 = scmp.ge.s32.totalorder %s13_s12, 18  }
 0x1e1   :  { %12 = sbr.rel (!%p10_p4) target bundleno = 1 (0x1), region = 62 }

// kernel: net_forward.5
= control target key start
LH: loop header
LB: loop body
LE: loop exit
PB: predicated region body
PF: predicated region fallthrough
CT: control target
= control target key end

     0   :  { %s5178_s12 = smov 0   ;;  %s6141_s0 = inlined_call_operand.vmem [shape: bf16[8192,128], index: 0, kind: input, shape index: {}]   ;;  %s6142_s1 = inlined_call_operand.vmem [shape: bf16[128,16], index: 1, kind: input, shape index: {}]   ;;  %s6143_s2 = inlined_call_operand.vmem [shape: f32[1,16], index: 2, kind: input, shape index: {}]   ;;  %s6144_s3 = inlined_call_operand.vmem [shape: bf16[8192,16], index: 3, kind: output, shape index: {}]  }
   0x1 LB: > { %s3920_s13 = sadd.s32 4294967295, %s5156_s12   ;;  %p3924_p0 = scmp.ge.s32.totalorder %s5156_s12, 1  ;;  %s5156_s12 = sphi %s5178_s12, %s13_s12  }
   0x2   : > { %p138_p1 = scmp.lt.s32.totalorder %s5156_s12, 5 }
   0x4   : > { %p139_p2 = pnand %p3924_p0, %p138_p1 }
   0x5   : > { %s3925_s16 = sshll.u32 (!%p139_p2), %s3920_s13, 8 }
   0x6   : > { %142 = sbr.rel (%p139_p2) target bundleno = 498 (0x1f2), region = 32  ;;  %p163_p3 = scmp.lt.s32.totalorder (!%p139_p2), %s3925_s16, 1023 }
   0xb   : > { %v5012_v0 = vld [vmem:[%s6142_s1 + $0x38] sm:$0xff]   ;;  %v5013_v1 = vld [vmem:[%s6142_s1 + $0x30] sm:$0xff]   ;;  %s6146_s16 = smov (!%p163_p3, %s3925_s16), 1023  ;;  %v5014_v2 = vld [vmem:[%s6142_s1 + $0x28] sm:$0xff]   ;;  %vm3607_vm0 = vcmask 125952  }
   0xc   : > { %4716 = vmatprep.subr.bf16.mxu0 %v5012_v0  ;;  %4988 = vmatprep.subr.bf16.mxu1 %v5012_v0  ;;  %s3926_s21 = sshll.u32 %s6146_s16, 2  ;;  %v5015_v3 = vld [vmem:[%s6142_s1 + $0x20] sm:$0xff]   ;;  %v5016_v6 = vld [vmem:[%s6142_s1 + $0x18] sm:$0xff]   ;;  %v5017_v7 = vld [vmem:[%s6142_s1 + $0x10] sm:$0xff]  }
   0xd   : > { %4717 = vmatpush3.bf16.msra.mxu0 %v5012_v0  ;;  %4996 = vmatpush3.bf16.msra.mxu1 %v5012_v0  ;;  %s5203_s24 = scalar_lea.vmem %s6141_s0, %s3926_s21  ;;  %v5018_v8 = vld [vmem:[%s6142_s1 + $0x8] sm:$0xff]   ;;  %v5019_v9 = vld [vmem:[%s6142_s1] sm:$0xff]   ;;  %s5336_s13 = scalar_lea.vmem %s6144_s3, %s3926_s21 }
   0xe   : > { %4718 = vmatprep.subr.bf16.mxu0 %v5013_v1  ;;  %4989 = vmatprep.subr.bf16.mxu1 %v5013_v1  ;;  %v5020_v4 = vld [vmem:[%s5203_s24] sm:$0xff]   ;;  %v5022_v10 = vld [vmem:[%s5203_s24 + $0x8] sm:$0xff]   ;;  %v5024_v12 = vld [vmem:[%s5203_s24 + $0x10] sm:$0xff]  }
   0xf   : > { %v5021_v5 = vld [vmem:[%s5203_s24 + $0x200] sm:$0xff]   ;;  %4732 = vmatprep.mubr.bf16.mxu0 %v5020_v4  ;;  %v5023_v11 = vld [vmem:[%s5203_s24 + $0x208] sm:$0xff]   ;;  %v5025_v13 = vld [vmem:[%s5203_s24 + $0x210] sm:$0xff]  }
  0x10   : > { %4860 = vmatprep.mubr.bf16.mxu1 %v5021_v5  ;;  %v5026_v14 = vld [vmem:[%s5203_s24 + $0x18] sm:$0xff]   ;;  %v5028_v16 = vld [vmem:[%s5203_s24 + $0x20] sm:$0xff]   ;;  %v5030_v18 = vld [vmem:[%s5203_s24 + $0x28] sm:$0xff]  }
  0x11   : > { %4719 = vmatpush3.bf16.msra.mxu0 %v5013_v1  ;;  %4997 = vmatpush3.bf16.msra.mxu1 %v5013_v1  ;;  %v5027_v15 = vld [vmem:[%s5203_s24 + $0x218] sm:$0xff]   ;;  %v5029_v17 = vld [vmem:[%s5203_s24 + $0x220] sm:$0xff]   ;;  %v5031_v19 = vld [vmem:[%s5203_s24 + $0x228] sm:$0xff]  }
  0x12   : > { %4720 = vmatprep.subr.bf16.mxu0 %v5014_v2  ;;  %4990 = vmatprep.subr.bf16.mxu1 %v5014_v2  ;;  %v5032_v20 = vld [vmem:[%s5203_s24 + $0x30] sm:$0xff]   ;;  %v5034_v22 = vld [vmem:[%s5203_s24 + $0x38] sm:$0xff]   ;;  %v5036_v24 = vld [vmem:[%s5203_s24 + $0x40] sm:$0xff]  }
  0x13   : > { %v5033_v21 = vld [vmem:[%s5203_s24 + $0x230] sm:$0xff]   ;;  %v5035_v23 = vld [vmem:[%s5203_s24 + $0x238] sm:$0xff]   ;;  %v5037_v25 = vld [vmem:[%s5203_s24 + $0x240] sm:$0xff]  }
  0x14   : > { %v5038_v26 = vld [vmem:[%s5203_s24 + $0x48] sm:$0xff]   ;;  %v5040_v28 = vld [vmem:[%s5203_s24 + $0x50] sm:$0xff]   ;;  %v5042_v30 = vld [vmem:[%s5203_s24 + $0x58] sm:$0xff]  }
  0x15   : > { %4721 = vmatpush3.bf16.msra.mxu0 %v5014_v2  ;;  %4998 = vmatpush3.bf16.msra.mxu1 %v5014_v2  ;;  %v5039_v27 = vld [vmem:[%s5203_s24 + $0x248] sm:$0xff]   ;;  %v5041_v29 = vld [vmem:[%s5203_s24 + $0x250] sm:$0xff]   ;;  %v5043_v31 = vld [vmem:[%s5203_s24 + $0x258] sm:$0xff]  }
  0x16   : > { %4722 = vmatprep.subr.bf16.mxu0 %v5015_v3  ;;  %4991 = vmatprep.subr.bf16.mxu1 %v5015_v3  ;;  %v5044_v32 = vld [vmem:[%s5203_s24 + $0x60] sm:$0xff]   ;;  %v5046_v34 = vld [vmem:[%s5203_s24 + $0x68] sm:$0xff]   ;;  %v5048_v36 = vld [vmem:[%s5203_s24 + $0x70] sm:$0xff]  }
  0x17   : > { %v5045_v33 = vld [vmem:[%s5203_s24 + $0x260] sm:$0xff]   ;;  %v5047_v35 = vld [vmem:[%s5203_s24 + $0x268] sm:$0xff]   ;;  %v5049_v37 = vld [vmem:[%s5203_s24 + $0x270] sm:$0xff]  }
  0x18   : > { %v5050_v38 = vld [vmem:[%s5203_s24 + $0x78] sm:$0xff]   ;;  %v5052_v40 = vld [vmem:[%s5203_s24 + $0x80] sm:$0xff]   ;;  %v5054_v42 = vld [vmem:[%s5203_s24 + $0x88] sm:$0xff]  }
  0x19   : > { %4723 = vmatpush3.bf16.msra.mxu0 %v5015_v3  ;;  %4999 = vmatpush3.bf16.msra.mxu1 %v5015_v3  ;;  %v5051_v39 = vld [vmem:[%s5203_s24 + $0x278] sm:$0xff]   ;;  %v5053_v41 = vld [vmem:[%s5203_s24 + $0x280] sm:$0xff]   ;;  %v5055_v43 = vld [vmem:[%s5203_s24 + $0x288] sm:$0xff]  }
  0x1a   : > { %4724 = vmatprep.subr.bf16.mxu0 %v5016_v6  ;;  %4992 = vmatprep.subr.bf16.mxu1 %v5016_v6  ;;  %v5056_v44 = vld [vmem:[%s5203_s24 + $0x90] sm:$0xff]   ;;  %v5058_v46 = vld [vmem:[%s5203_s24 + $0x98] sm:$0xff]   ;;  %v5060_v48 = vld [vmem:[%s5203_s24 + $0xa0] sm:$0xff]  }
  0x1b   : > { %v5057_v45 = vld [vmem:[%s5203_s24 + $0x290] sm:$0xff]   ;;  %v5059_v47 = vld [vmem:[%s5203_s24 + $0x298] sm:$0xff]   ;;  %v5061_v49 = vld [vmem:[%s5203_s24 + $0x2a0] sm:$0xff]  }
  0x1c   : > { %v5062_v50 = vld [vmem:[%s5203_s24 + $0xa8] sm:$0xff]   ;;  %v5064_v52 = vld [vmem:[%s5203_s24 + $0xb0] sm:$0xff]   ;;  %v5066_v54 = vld [vmem:[%s5203_s24 + $0xb8] sm:$0xff]  }
  0x1d   : > { %4725 = vmatpush3.bf16.msra.mxu0 %v5016_v6  ;;  %5000 = vmatpush3.bf16.msra.mxu1 %v5016_v6  ;;  %v5063_v51 = vld [vmem:[%s5203_s24 + $0x2a8] sm:$0xff]   ;;  %v5065_v53 = vld [vmem:[%s5203_s24 + $0x2b0] sm:$0xff]   ;;  %v5067_v55 = vld [vmem:[%s5203_s24 + $0x2b8] sm:$0xff]  }
  0x1e   : > { %4726 = vmatprep.subr.bf16.mxu0 %v5017_v7  ;;  %4993 = vmatprep.subr.bf16.mxu1 %v5017_v7  ;;  %v5068_v56 = vld [vmem:[%s5203_s24 + $0xc0] sm:$0xff]   ;;  %v5070_v58 = vld [vmem:[%s5203_s24 + $0xc8] sm:$0xff]   ;;  %v5072_v60 = vld [vmem:[%s5203_s24 + $0xd0] sm:$0xff]  }
  0x1f   : > { %v5069_v57 = vld [vmem:[%s5203_s24 + $0x2c0] sm:$0xff]   ;;  %v5071_v59 = vld [vmem:[%s5203_s24 + $0x2c8] sm:$0xff]   ;;  %v5073_v61 = vld [vmem:[%s5203_s24 + $0x2d0] sm:$0xff]  }
  0x20   : > { %v5074_v62 = vld [vmem:[%s5203_s24 + $0xd8] sm:$0xff]   ;;  %v5076_v0 = vld [vmem:[%s5203_s24 + $0xe0] sm:$0xff]   ;;  %v5078_v2 = vld [vmem:[%s5203_s24 + $0xe8] sm:$0xff]  }
  0x21   : > { %4727 = vmatpush3.bf16.msra.mxu0 %v5017_v7  ;;  %5001 = vmatpush3.bf16.msra.mxu1 %v5017_v7  ;;  %v5075_v63 = vld [vmem:[%s5203_s24 + $0x2d8] sm:$0xff]   ;;  %v5077_v1 = vld [vmem:[%s5203_s24 + $0x2e0] sm:$0xff]   ;;  %v5079_v3 = vld [vmem:[%s5203_s24 + $0x2e8] sm:$0xff]  }
  0x22   : > { %4728 = vmatprep.subr.bf16.mxu0 %v5018_v8  ;;  %4994 = vmatprep.subr.bf16.mxu1 %v5018_v8  ;;  %v5080_v4 = vld [vmem:[%s5203_s24 + $0xf0] sm:$0xff]   ;;  %v5082_v6 = vld [vmem:[%s5203_s24 + $0xf8] sm:$0xff]  }
  0x23   : > { %v5081_v5 = vld [vmem:[%s5203_s24 + $0x2f0] sm:$0xff]   ;;  %v5083_v7 = vld [vmem:[%s5203_s24 + $0x2f8] sm:$0xff]  }
  0x25   : > { %4729 = vmatpush3.bf16.msra.mxu0 %v5018_v8  ;;  %5002 = vmatpush3.bf16.msra.mxu1 %v5018_v8  ;;  %v5084_v8 = vld [vmem:[%s5203_s24 + $0x100] sm:$0xff]  }
  0x26   : > { %4730 = vmatprep.subr.bf16.mxu0 %v5019_v9  ;;  %4995 = vmatprep.subr.bf16.mxu1 %v5019_v9 }
  0x29   : > { %4731 = vmatpush3.bf16.msra.mxu0 %v5019_v9  ;;  %5003 = vmatpush3.bf16.msra.mxu1 %v5019_v9  ;;  %v5085_v9 = vld [vmem:[%s5203_s24 + $0x300] sm:$0xff]  }
  0x2c   : > { %4733 = vmatmul.mubr.bf16.vlgmr.msra.gmra.mxu0 %v5022_v10  ;;  %4861 = vmatmul.mubr.bf16.vlgmr.msra.gmra.mxu1 %v5023_v11  ;;  %v5086_v10 = vld [vmem:[%s5203_s24 + $0x108] sm:$0xff]  }
  0x2d   : > { %4736 = vmatprep.mubr.bf16.mxu0 %v5024_v12  ;;  %4864 = vmatprep.mubr.bf16.mxu1 %v5025_v13  ;;  %v5087_v11 = vld [vmem:[%s5203_s24 + $0x308] sm:$0xff]   ;;  %v5088_v12 = vld [vmem:[%s5203_s24 + $0x110] sm:$0xff]  }
  0x2e   : > { %v5089_v13 = vld [vmem:[%s5203_s24 + $0x310] sm:$0xff]  }
  0x34   : > { %4737 = vmatmul.mubr.bf16.gmra.mxu0 %v5026_v14  ;;  %4865 = vmatmul.mubr.bf16.gmra.mxu1 %v5027_v15  ;;  %v5090_v14 = vld [vmem:[%s5203_s24 + $0x118] sm:$0xff]  }
  0x35   : > { %4740 = vmatprep.mubr.bf16.mxu0 %v5028_v16  ;;  %4868 = vmatprep.mubr.bf16.mxu1 %v5029_v17  ;;  %v5091_v15 = vld [vmem:[%s5203_s24 + $0x318] sm:$0xff]   ;;  %v5092_v16 = vld [vmem:[%s5203_s24 + $0x120] sm:$0xff]  }
  0x36   : > { %v5093_v17 = vld [vmem:[%s5203_s24 + $0x320] sm:$0xff]  }
  0x3c   : > { %4741 = vmatmul.mubr.bf16.gmra.mxu0 %v5030_v18  ;;  %4869 = vmatmul.mubr.bf16.gmra.mxu1 %v5031_v19  ;;  %v5094_v18 = vld [vmem:[%s5203_s24 + $0x128] sm:$0xff]  }
  0x3d   : > { %4744 = vmatprep.mubr.bf16.mxu0 %v5032_v20  ;;  %4872 = vmatprep.mubr.bf16.mxu1 %v5033_v21  ;;  %v5095_v19 = vld [vmem:[%s5203_s24 + $0x328] sm:$0xff]   ;;  %v5096_v20 = vld [vmem:[%s5203_s24 + $0x130] sm:$0xff]  }
  0x3e   : > { %v5097_v21 = vld [vmem:[%s5203_s24 + $0x330] sm:$0xff]  }
  0x44   : > { %4745 = vmatmul.mubr.bf16.gmra.mxu0 %v5034_v22  ;;  %4873 = vmatmul.mubr.bf16.gmra.mxu1 %v5035_v23  ;;  %v5098_v22 = vld [vmem:[%s5203_s24 + $0x138] sm:$0xff]  }
  0x45   : > { %4748 = vmatprep.mubr.bf16.mxu0 %v5036_v24  ;;  %4876 = vmatprep.mubr.bf16.mxu1 %v5037_v25  ;;  %v5099_v23 = vld [vmem:[%s5203_s24 + $0x338] sm:$0xff]   ;;  %v5100_v24 = vld [vmem:[%s5203_s24 + $0x140] sm:$0xff]  }
  0x46   : > { %v5101_v25 = vld [vmem:[%s5203_s24 + $0x340] sm:$0xff]  }
  0x4c   : > { %4749 = vmatmul.mubr.bf16.gmra.mxu0 %v5038_v26  ;;  %4877 = vmatmul.mubr.bf16.gmra.mxu1 %v5039_v27  ;;  %v5102_v26 = vld [vmem:[%s5203_s24 + $0x148] sm:$0xff]  }
  0x4d   : > { %4752 = vmatprep.mubr.bf16.mxu0 %v5040_v28  ;;  %4880 = vmatprep.mubr.bf16.mxu1 %v5041_v29  ;;  %v5103_v27 = vld [vmem:[%s5203_s24 + $0x348] sm:$0xff]   ;;  %v5104_v28 = vld [vmem:[%s5203_s24 + $0x150] sm:$0xff]  }
  0x4e   : > { %v5105_v29 = vld [vmem:[%s5203_s24 + $0x350] sm:$0xff]  }
  0x54   : > { %4753 = vmatmul.mubr.bf16.gmra.mxu0 %v5042_v30  ;;  %4881 = vmatmul.mubr.bf16.gmra.mxu1 %v5043_v31  ;;  %v5106_v30 = vld [vmem:[%s5203_s24 + $0x158] sm:$0xff]  }
  0x55   : > { %4756 = vmatprep.mubr.bf16.mxu0 %v5044_v32  ;;  %4884 = vmatprep.mubr.bf16.mxu1 %v5045_v33  ;;  %v5107_v31 = vld [vmem:[%s5203_s24 + $0x358] sm:$0xff]   ;;  %v5108_v32 = vld [vmem:[%s5203_s24 + $0x160] sm:$0xff]  }
  0x56   : > { %v5109_v33 = vld [vmem:[%s5203_s24 + $0x360] sm:$0xff]  }
  0x5c   : > { %4757 = vmatmul.mubr.bf16.gmra.mxu0 %v5046_v34  ;;  %4885 = vmatmul.mubr.bf16.gmra.mxu1 %v5047_v35  ;;  %v5110_v34 = vld [vmem:[%s5203_s24 + $0x168] sm:$0xff]  }
  0x5d   : > { %4760 = vmatprep.mubr.bf16.mxu0 %v5048_v36  ;;  %4888 = vmatprep.mubr.bf16.mxu1 %v5049_v37  ;;  %v5111_v35 = vld [vmem:[%s5203_s24 + $0x368] sm:$0xff]   ;;  %v5112_v36 = vld [vmem:[%s5203_s24 + $0x170] sm:$0xff]  }
  0x5e   : > { %v5113_v37 = vld [vmem:[%s5203_s24 + $0x370] sm:$0xff]  }
  0x64   : > { %4761 = vmatmul.mubr.bf16.gmra.mxu0 %v5050_v38  ;;  %4889 = vmatmul.mubr.bf16.gmra.mxu1 %v5051_v39  ;;  %v5114_v38 = vld [vmem:[%s5203_s24 + $0x178] sm:$0xff]  }
  0x65   : > { %4764 = vmatprep.mubr.bf16.mxu0 %v5052_v40  ;;  %4892 = vmatprep.mubr.bf16.mxu1 %v5053_v41  ;;  %v5115_v39 = vld [vmem:[%s5203_s24 + $0x378] sm:$0xff]   ;;  %v5116_v40 = vld [vmem:[%s5203_s24 + $0x180] sm:$0xff]  }
  0x66   : > { %v5117_v41 = vld [vmem:[%s5203_s24 + $0x380] sm:$0xff]  }
  0x6c   : > { %4765 = vmatmul.mubr.bf16.gmra.mxu0 %v5054_v42  ;;  %4893 = vmatmul.mubr.bf16.gmra.mxu1 %v5055_v43  ;;  %v5118_v42 = vld [vmem:[%s5203_s24 + $0x188] sm:$0xff]  }
  0x6d   : > { %4768 = vmatprep.mubr.bf16.mxu0 %v5056_v44  ;;  %4896 = vmatprep.mubr.bf16.mxu1 %v5057_v45  ;;  %v5119_v43 = vld [vmem:[%s5203_s24 + $0x388] sm:$0xff]   ;;  %v5120_v44 = vld [vmem:[%s5203_s24 + $0x190] sm:$0xff]  }
  0x6e   : > { %v5121_v45 = vld [vmem:[%s5203_s24 + $0x390] sm:$0xff]  }
  0x74   : > { %4769 = vmatmul.mubr.bf16.gmra.mxu0 %v5058_v46  ;;  %4897 = vmatmul.mubr.bf16.gmra.mxu1 %v5059_v47  ;;  %v5325_v46 = vld [vmem:[%s6143_s2] ss:$0 sm:$0xff] }
  0x75   : > { %4772 = vmatprep.mubr.bf16.mxu0 %v5060_v48  ;;  %4900 = vmatprep.mubr.bf16.mxu1 %v5061_v49 }
  0x7c   : > { %4773 = vmatmul.mubr.bf16.gmra.mxu0 %v5062_v50  ;;  %4901 = vmatmul.mubr.bf16.gmra.mxu1 %v5063_v51 }
  0x7d   : > { %4776 = vmatprep.mubr.bf16.mxu0 %v5064_v52  ;;  %4904 = vmatprep.mubr.bf16.mxu1 %v5065_v53 }
  0x84   : > { %4777 = vmatmul.mubr.bf16.gmra.mxu0 %v5066_v54  ;;  %4905 = vmatmul.mubr.bf16.gmra.mxu1 %v5067_v55 }
  0x85   : > { %4780 = vmatprep.mubr.bf16.mxu0 %v5068_v56  ;;  %4908 = vmatprep.mubr.bf16.mxu1 %v5069_v57 }
  0x8c   : > { %4781 = vmatmul.mubr.bf16.gmra.mxu0 %v5070_v58  ;;  %4909 = vmatmul.mubr.bf16.gmra.mxu1 %v5071_v59  ;;  %v5122_v59 = vld [vmem:[%s5203_s24 + $0x198] sm:$0xff]  }
  0x8d   : > { %4784 = vmatprep.mubr.bf16.mxu0 %v5072_v60  ;;  %4912 = vmatprep.mubr.bf16.mxu1 %v5073_v61  ;;  %v5123_v60 = vld [vmem:[%s5203_s24 + $0x398] sm:$0xff]  }
  0x94   : > { %4785 = vmatmul.mubr.bf16.gmra.mxu0 %v5074_v62  ;;  %4913 = vmatmul.mubr.bf16.gmra.mxu1 %v5075_v63 }
  0x95   : > { %4788 = vmatprep.mubr.bf16.mxu0 %v5076_v0  ;;  %4916 = vmatprep.mubr.bf16.mxu1 %v5077_v1  ;;  %v5124_v1 = vld [vmem:[%s5203_s24 + $0x1a0] sm:$0xff]  }
  0x9c   : > { %4789 = vmatmul.mubr.bf16.gmra.mxu0 %v5078_v2  ;;  %4917 = vmatmul.mubr.bf16.gmra.mxu1 %v5079_v3  ;;  %v5125_v2 = vld [vmem:[%s5203_s24 + $0x3a0] sm:$0xff]  }
  0x9d   : > { %4792 = vmatprep.mubr.bf16.mxu0 %v5080_v4  ;;  %4920 = vmatprep.mubr.bf16.mxu1 %v5081_v5 }
  0xa4   : > { %4793 = vmatmul.mubr.bf16.gmra.mxu0 %v5082_v6  ;;  %4921 = vmatmul.mubr.bf16.gmra.mxu1 %v5083_v7 }
  0xa5   : > { %4796 = vmatprep.mubr.bf16.mxu0 %v5084_v8  ;;  %4924 = vmatprep.mubr.bf16.mxu1 %v5085_v9 }
  0xac   : > { %4797 = vmatmul.mubr.bf16.gmra.mxu0 %v5086_v10  ;;  %4925 = vmatmul.mubr.bf16.gmra.mxu1 %v5087_v11 }
  0xad   : > { %4800 = vmatprep.mubr.bf16.mxu0 %v5088_v12  ;;  %4928 = vmatprep.mubr.bf16.mxu1 %v5089_v13 }
  0xb4   : > { %4801 = vmatmul.mubr.bf16.gmra.mxu0 %v5090_v14  ;;  %4929 = vmatmul.mubr.bf16.gmra.mxu1 %v5091_v15 }
  0xb5   : > { %4804 = vmatprep.mubr.bf16.mxu0 %v5092_v16  ;;  %4932 = vmatprep.mubr.bf16.mxu1 %v5093_v17 }
  0xbc   : > { %4805 = vmatmul.mubr.bf16.gmra.mxu0 %v5094_v18  ;;  %4933 = vmatmul.mubr.bf16.gmra.mxu1 %v5095_v19 }
  0xbd   : > { %4808 = vmatprep.mubr.bf16.mxu0 %v5096_v20  ;;  %4936 = vmatprep.mubr.bf16.mxu1 %v5097_v21 }
  0xc4   : > { %4809 = vmatmul.mubr.bf16.gmra.mxu0 %v5098_v22  ;;  %4937 = vmatmul.mubr.bf16.gmra.mxu1 %v5099_v23 }
  0xc5   : > { %4812 = vmatprep.mubr.bf16.mxu0 %v5100_v24  ;;  %4940 = vmatprep.mubr.bf16.mxu1 %v5101_v25 }
  0xcc   : > { %4813 = vmatmul.mubr.bf16.gmra.mxu0 %v5102_v26  ;;  %4941 = vmatmul.mubr.bf16.gmra.mxu1 %v5103_v27 }
  0xcd   : > { %4816 = vmatprep.mubr.bf16.mxu0 %v5104_v28  ;;  %4944 = vmatprep.mubr.bf16.mxu1 %v5105_v29 }
  0xd4   : > { %4817 = vmatmul.mubr.bf16.gmra.mxu0 %v5106_v30  ;;  %4945 = vmatmul.mubr.bf16.gmra.mxu1 %v5107_v31  ;;  %v5126_v31 = vld [vmem:[%s5203_s24 + $0x1a8] sm:$0xff]  }
  0xd5   : > { %4820 = vmatprep.mubr.bf16.mxu0 %v5108_v32  ;;  %4948 = vmatprep.mubr.bf16.mxu1 %v5109_v33  ;;  %v5127_v32 = vld [vmem:[%s5203_s24 + $0x3a8] sm:$0xff]  }
  0xdc   : > { %4821 = vmatmul.mubr.bf16.gmra.mxu0 %v5110_v34  ;;  %4949 = vmatmul.mubr.bf16.gmra.mxu1 %v5111_v35 }
  0xdd   : > { %4824 = vmatprep.mubr.bf16.mxu0 %v5112_v36  ;;  %4952 = vmatprep.mubr.bf16.mxu1 %v5113_v37  ;;  %v5128_v37 = vld [vmem:[%s5203_s24 + $0x1b0] sm:$0xff]  }
  0xe4   : > { %4825 = vmatmul.mubr.bf16.gmra.mxu0 %v5114_v38  ;;  %4953 = vmatmul.mubr.bf16.gmra.mxu1 %v5115_v39  ;;  %v5129_v38 = vld [vmem:[%s5203_s24 + $0x3b0] sm:$0xff]  }
  0xe5   : > { %4828 = vmatprep.mubr.bf16.mxu0 %v5116_v40  ;;  %4956 = vmatprep.mubr.bf16.mxu1 %v5117_v41 }
  0xec   : > { %v4734_v47 = vpop.f32.mrf.mxu0  ;;  %4829 = vmatmul.mubr.bf16.gmra.mxu0 %v5118_v42  ;;  %v4862_v48 = vpop.f32.mrf.mxu1  ;;  %4957 = vmatmul.mubr.bf16.gmra.mxu1 %v5119_v43 }
  0xed   : > { %v1313_v49 = vadd.f32 %v4734_v47, %v5325_v46  ;;  %v1825_v50 = vadd.f32 %v4862_v48, %v5325_v46  ;;  %4832 = vmatprep.mubr.bf16.mxu0 %v5120_v44  ;;  %4960 = vmatprep.mubr.bf16.mxu1 %v5121_v45 }
  0xee   : > { %v1304_v51 = vpop.f32.mrf.mxu0  ;;  %v1816_v52 = vpop.f32.mrf.mxu1 }
  0xef   : > { %v2329_v53 = vmax.f32 %v1313_v49, 0.0  ;;  %v2457_v54 = vmax.f32 %v1825_v50, 0.0  ;;  %v1305_v55 = vadd.f32 %v5325_v46, %v1304_v51  ;;  %v1817_v56 = vadd.f32 %v5325_v46, %v1816_v52 }
  0xf0   : > { %v4735_v57 = vpop.f32.mrf.mxu0  ;;  %v4863_v58 = vpop.f32.mrf.mxu1 }
  0xf1   : > { %v4326_v61 = vpack.c.bf16 %v2329_v53, %v2329_v53  ;;  %v4454_v62 = vpack.c.bf16 %v2457_v54, %v2457_v54  ;;  %v2327_v63 = vmax.f32 %v1305_v55, 0.0  ;;  %v2455_v0 = vmax.f32 %v1817_v56, 0.0 }
  0xf2   : > { %v1316_v3 = vadd.f32 %v4735_v57, %v5325_v46  ;;  %v1828_v4 = vadd.f32 %v4863_v58, %v5325_v46  ;;  %v1307_v5 = vpop.f32.mrf.mxu0  ;;  %v1819_v6 = vpop.f32.mrf.mxu1 }
  0xf3   : > { %3610 = vst.msk [vmem:[%s5336_s13 + $0x8] sm:$0xf] %vm3607_vm0, %v4326_v61  ;;  %3738 = vst.msk [vmem:[%s5336_s13 + $0x208] sm:$0xf] %vm3607_vm0, %v4454_v62  ;;  %v4324_v7 = vpack.c.bf16 %v2327_v63, %v2327_v63  ;;  %v4452_v8 = vpack.c.bf16 %v2455_v0, %v2455_v0  ;;  %v1308_v9 = vadd.f32 %v5325_v46, %v1307_v5  ;;  %v5131_v5 = vld [vmem:[%s5203_s24 + $0x3b8] sm:$0xff]  }
  0xf4   : > { %v1820_v10 = vadd.f32 %v5325_v46, %v1819_v6  ;;  %v2330_v11 = vmax.f32 %v1316_v3, 0.0  ;;  %v2458_v12 = vmax.f32 %v1828_v4, 0.0  ;;  %v4738_v13 = vpop.f32.mrf.mxu0  ;;  %4833 = vmatmul.mubr.bf16.gmra.mxu0 %v5122_v59  ;;  %v4866_v14 = vpop.f32.mrf.mxu1  ;;  %4961 = vmatmul.mubr.bf16.gmra.mxu1 %v5123_v60  ;;  %v5130_v4 = vld [vmem:[%s5203_s24 + $0x1b8] sm:$0xff]  }
  0xf5   : > { %3608 = vst.msk [vmem:[%s5336_s13] sm:$0xf] %vm3607_vm0, %v4324_v7  ;;  %3736 = vst.msk [vmem:[%s5336_s13 + $0x200] sm:$0xf] %vm3607_vm0, %v4452_v8  ;;  %v2328_v15 = vmax.f32 %v1308_v9, 0.0  ;;  %v1329_v17 = vadd.f32 %v4738_v13, %v5325_v46  ;;  %v1841_v18 = vadd.f32 %v4866_v14, %v5325_v46  ;;  %4836 = vmatprep.mubr.bf16.mxu0 %v5124_v1  ;;  %4964 = vmatprep.mubr.bf16.mxu1 %v5125_v2 }
  0xf6   : > { %v2456_v16 = vmax.f32 %v1820_v10, 0.0  ;;  %v4327_v19 = vpack.c.bf16 %v2330_v11, %v2330_v11  ;;  %v4455_v20 = vpack.c.bf16 %v2458_v12, %v2458_v12  ;;  %v1320_v21 = vpop.f32.mrf.mxu0  ;;  %v1832_v22 = vpop.f32.mrf.mxu1  ;;  %v5132_v10 = vld [vmem:[%s5203_s24 + $0x1c0] sm:$0xff]  }
  0xf7   : > { %v4325_v23 = vpack.c.bf16 %v2328_v15, %v2328_v15  ;;  %v2333_v25 = vmax.f32 %v1329_v17, 0.0  ;;  %v2461_v26 = vmax.f32 %v1841_v18, 0.0  ;;  %v1321_v27 = vadd.f32 %v5325_v46, %v1320_v21  ;;  %v5133_v15 = vld [vmem:[%s5203_s24 + $0x3c0] sm:$0xff]  }
  0xf8   : > { %v4453_v24 = vpack.c.bf16 %v2456_v16, %v2456_v16  ;;  %3611 = vst.msk [vmem:[%s5336_s13 + $0xc] sm:$0xf] %vm3607_vm0, %v4327_v19  ;;  %3739 = vst.msk [vmem:[%s5336_s13 + $0x20c] sm:$0xf] %vm3607_vm0, %v4455_v20  ;;  %v1833_v28 = vadd.f32 %v5325_v46, %v1832_v22  ;;  %v4739_v29 = vpop.f32.mrf.mxu0  ;;  %v4867_v30 = vpop.f32.mrf.mxu1 }
  0xf9   : > { %3609 = vst.msk [vmem:[%s5336_s13 + $0x4] sm:$0xf] %vm3607_vm0, %v4325_v23  ;;  %v4330_v33 = vpack.c.bf16 %v2333_v25, %v2333_v25  ;;  %v4458_v34 = vpack.c.bf16 %v2461_v26, %v2461_v26  ;;  %v1332_v35 = vadd.f32 %v4739_v29, %v5325_v46  ;;  %v1844_v36 = vadd.f32 %v4867_v30, %v5325_v46 }
  0xfa   : > { %3737 = vst.msk [vmem:[%s5336_s13 + $0x204] sm:$0xf] %vm3607_vm0, %v4453_v24  ;;  %v2331_v39 = vmax.f32 %v1321_v27, 0.0  ;;  %v2459_v40 = vmax.f32 %v1833_v28, 0.0  ;;  %v1323_v41 = vpop.f32.mrf.mxu0  ;;  %v1835_v42 = vpop.f32.mrf.mxu1 }
  0xfb   : > { %3614 = vst.msk [vmem:[%s5336_s13 + $0x18] sm:$0xf] %vm3607_vm0, %v4330_v33  ;;  %3742 = vst.msk [vmem:[%s5336_s13 + $0x218] sm:$0xf] %vm3607_vm0, %v4458_v34  ;;  %v2334_v43 = vmax.f32 %v1332_v35, 0.0  ;;  %v2462_v44 = vmax.f32 %v1844_v36, 0.0  ;;  %v1324_v45 = vadd.f32 %v5325_v46, %v1323_v41  ;;  %v1836_v47 = vadd.f32 %v5325_v46, %v1835_v42 }
  0xfc   : > { %v4328_v48 = vpack.c.bf16 %v2331_v39, %v2331_v39  ;;  %v4456_v49 = vpack.c.bf16 %v2459_v40, %v2459_v40  ;;  %v4742_v50 = vpop.f32.mrf.mxu0  ;;  %4837 = vmatmul.mubr.bf16.gmra.mxu0 %v5126_v31  ;;  %v4870_v51 = vpop.f32.mrf.mxu1  ;;  %4965 = vmatmul.mubr.bf16.gmra.mxu1 %v5127_v32  ;;  %v5134_v40 = vld [vmem:[%s5203_s24 + $0x1c8] sm:$0xff]  }
  0xfd   : > { %v4331_v52 = vpack.c.bf16 %v2334_v43, %v2334_v43  ;;  %v4459_v53 = vpack.c.bf16 %v2462_v44, %v2462_v44  ;;  %v2332_v54 = vmax.f32 %v1324_v45, 0.0  ;;  %v2460_v55 = vmax.f32 %v1836_v47, 0.0  ;;  %4840 = vmatprep.mubr.bf16.mxu0 %v5128_v37  ;;  %4968 = vmatprep.mubr.bf16.mxu1 %v5129_v38  ;;  %v5135_v41 = vld [vmem:[%s5203_s24 + $0x3c8] sm:$0xff]   ;;  %v5136_v47 = vld [vmem:[%s5203_s24 + $0x1d0] sm:$0xff]  }
  0xfe   : > { %3612 = vst.msk [vmem:[%s5336_s13 + $0x10] sm:$0xf] %vm3607_vm0, %v4328_v48  ;;  %3740 = vst.msk [vmem:[%s5336_s13 + $0x210] sm:$0xf] %vm3607_vm0, %v4456_v49  ;;  %v1345_v56 = vadd.f32 %v4742_v50, %v5325_v46  ;;  %v1857_v57 = vadd.f32 %v4870_v51, %v5325_v46  ;;  %v1336_v58 = vpop.f32.mrf.mxu0  ;;  %v1848_v59 = vpop.f32.mrf.mxu1  ;;  %v5137_v48 = vld [vmem:[%s5203_s24 + $0x3d0] sm:$0xff]  }
  0xff   : > { %3615 = vst.msk [vmem:[%s5336_s13 + $0x1c] sm:$0xf] %vm3607_vm0, %v4331_v52  ;;  %3743 = vst.msk [vmem:[%s5336_s13 + $0x21c] sm:$0xf] %vm3607_vm0, %v4459_v53  ;;  %v4329_v60 = vpack.c.bf16 %v2332_v54, %v2332_v54  ;;  %v4457_v61 = vpack.c.bf16 %v2460_v55, %v2460_v55  ;;  %v1337_v62 = vadd.f32 %v5325_v46, %v1336_v58 }
 0x100   : > { %v1849_v63 = vadd.f32 %v5325_v46, %v1848_v59  ;;  %v2337_v0 = vmax.f32 %v1345_v56, 0.0  ;;  %v2465_v1 = vmax.f32 %v1857_v57, 0.0  ;;  %v4743_v2 = vpop.f32.mrf.mxu0  ;;  %v4871_v3 = vpop.f32.mrf.mxu1 }
 0x101   : > { %3613 = vst.msk [vmem:[%s5336_s13 + $0x14] sm:$0xf] %vm3607_vm0, %v4329_v60  ;;  %3741 = vst.msk [vmem:[%s5336_s13 + $0x214] sm:$0xf] %vm3607_vm0, %v4457_v61  ;;  %v2335_v6 = vmax.f32 %v1337_v62, 0.0  ;;  %v1348_v8 = vadd.f32 %v4743_v2, %v5325_v46  ;;  %v1860_v9 = vadd.f32 %v4871_v3, %v5325_v46 }
 0x102   : > { %v2463_v7 = vmax.f32 %v1849_v63, 0.0  ;;  %v4334_v11 = vpack.c.bf16 %v2337_v0, %v2337_v0  ;;  %v4462_v12 = vpack.c.bf16 %v2465_v1, %v2465_v1  ;;  %v1339_v13 = vpop.f32.mrf.mxu0  ;;  %v1851_v14 = vpop.f32.mrf.mxu1 }
 0x103   : > { %v4332_v16 = vpack.c.bf16 %v2335_v6, %v2335_v6  ;;  %v2338_v18 = vmax.f32 %v1348_v8, 0.0  ;;  %v2466_v19 = vmax.f32 %v1860_v9, 0.0  ;;  %v1340_v20 = vadd.f32 %v5325_v46, %v1339_v13  ;;  %v5138_v13 = vld [vmem:[%s5203_s24 + $0x1d8] sm:$0xff]  }
 0x104   : > { %v4460_v17 = vpack.c.bf16 %v2463_v7, %v2463_v7  ;;  %3618 = vst.msk [vmem:[%s5336_s13 + $0x28] sm:$0xf] %vm3607_vm0, %v4334_v11  ;;  %3746 = vst.msk [vmem:[%s5336_s13 + $0x228] sm:$0xf] %vm3607_vm0, %v4462_v12  ;;  %v1852_v21 = vadd.f32 %v5325_v46, %v1851_v14  ;;  %v4746_v22 = vpop.f32.mrf.mxu0  ;;  %4841 = vmatmul.mubr.bf16.gmra.mxu0 %v5130_v4  ;;  %v4874_v23 = vpop.f32.mrf.mxu1  ;;  %4969 = vmatmul.mubr.bf16.gmra.mxu1 %v5131_v5  ;;  %v5139_v14 = vld [vmem:[%s5203_s24 + $0x3d8] sm:$0xff]  }
 0x105   : > { %3616 = vst.msk [vmem:[%s5336_s13 + $0x20] sm:$0xf] %vm3607_vm0, %v4332_v16  ;;  %v4335_v24 = vpack.c.bf16 %v2338_v18, %v2338_v18  ;;  %v4463_v25 = vpack.c.bf16 %v2466_v19, %v2466_v19  ;;  %v1361_v26 = vadd.f32 %v4746_v22, %v5325_v46  ;;  %v1873_v27 = vadd.f32 %v4874_v23, %v5325_v46  ;;  %v5140_v19 = vld [vmem:[%s5203_s24 + $0x1e0] sm:$0xff]  }
 0x106   : > { %3744 = vst.msk [vmem:[%s5336_s13 + $0x220] sm:$0xf] %vm3607_vm0, %v4460_v17  ;;  %4844 = vmatprep.mubr.bf16.mxu0 %v5132_v10  ;;  %v2336_v28 = vmax.f32 %v1340_v20, 0.0  ;;  %v2464_v29 = vmax.f32 %v1852_v21, 0.0  ;;  %v1352_v30 = vpop.f32.mrf.mxu0  ;;  %v1864_v31 = vpop.f32.mrf.mxu1  ;;  %4972 = vmatprep.mubr.bf16.mxu1 %v5133_v15  ;;  %v5141_v20 = vld [vmem:[%s5203_s24 + $0x3e0] sm:$0xff]  }
 0x107   : > { %3619 = vst.msk [vmem:[%s5336_s13 + $0x2c] sm:$0xf] %vm3607_vm0, %v4335_v24  ;;  %3747 = vst.msk [vmem:[%s5336_s13 + $0x22c] sm:$0xf] %vm3607_vm0, %v4463_v25  ;;  %v2341_v32 = vmax.f32 %v1361_v26, 0.0  ;;  %v2469_v33 = vmax.f32 %v1873_v27, 0.0  ;;  %v1353_v34 = vadd.f32 %v5325_v46, %v1352_v30  ;;  %v1865_v35 = vadd.f32 %v5325_v46, %v1864_v31 }
 0x108   : > { %v4333_v36 = vpack.c.bf16 %v2336_v28, %v2336_v28  ;;  %v4461_v37 = vpack.c.bf16 %v2464_v29, %v2464_v29  ;;  %v4747_v38 = vpop.f32.mrf.mxu0  ;;  %v4875_v39 = vpop.f32.mrf.mxu1 }
 0x109   : > { %v4338_v42 = vpack.c.bf16 %v2341_v32, %v2341_v32  ;;  %v4466_v43 = vpack.c.bf16 %v2469_v33, %v2469_v33  ;;  %v2339_v44 = vmax.f32 %v1353_v34, 0.0  ;;  %v2467_v45 = vmax.f32 %v1865_v35, 0.0 }
 0x10a   : > { %3617 = vst.msk [vmem:[%s5336_s13 + $0x24] sm:$0xf] %vm3607_vm0, %v4333_v36  ;;  %3745 = vst.msk [vmem:[%s5336_s13 + $0x224] sm:$0xf] %vm3607_vm0, %v4461_v37  ;;  %v1364_v49 = vadd.f32 %v4747_v38, %v5325_v46  ;;  %v1876_v50 = vadd.f32 %v4875_v39, %v5325_v46  ;;  %v1355_v51 = vpop.f32.mrf.mxu0  ;;  %v1867_v52 = vpop.f32.mrf.mxu1 }
 0x10b   : > { %3622 = vst.msk [vmem:[%s5336_s13 + $0x38] sm:$0xf] %vm3607_vm0, %v4338_v42  ;;  %3750 = vst.msk [vmem:[%s5336_s13 + $0x238] sm:$0xf] %vm3607_vm0, %v4466_v43  ;;  %v4336_v53 = vpack.c.bf16 %v2339_v44, %v2339_v44  ;;  %v4464_v54 = vpack.c.bf16 %v2467_v45, %v2467_v45  ;;  %v1356_v55 = vadd.f32 %v5325_v46, %v1355_v51  ;;  %v5143_v51 = vld [vmem:[%s5203_s24 + $0x3e8] sm:$0xff]  }
 0x10c   : > { %v1868_v56 = vadd.f32 %v5325_v46, %v1867_v52  ;;  %v2342_v57 = vmax.f32 %v1364_v49, 0.0  ;;  %v2470_v58 = vmax.f32 %v1876_v50, 0.0  ;;  %v4750_v59 = vpop.f32.mrf.mxu0  ;;  %4845 = vmatmul.mubr.bf16.gmra.mxu0 %v5134_v40  ;;  %v4878_v60 = vpop.f32.mrf.mxu1  ;;  %4973 = vmatmul.mubr.bf16.gmra.mxu1 %v5135_v41  ;;  %v5142_v50 = vld [vmem:[%s5203_s24 + $0x1e8] sm:$0xff]  }
 0x10d   : > { %3620 = vst.msk [vmem:[%s5336_s13 + $0x30] sm:$0xf] %vm3607_vm0, %v4336_v53  ;;  %3748 = vst.msk [vmem:[%s5336_s13 + $0x230] sm:$0xf] %vm3607_vm0, %v4464_v54  ;;  %v2340_v61 = vmax.f32 %v1356_v55, 0.0  ;;  %v1377_v63 = vadd.f32 %v4750_v59, %v5325_v46  ;;  %v1889_v0 = vadd.f32 %v4878_v60, %v5325_v46  ;;  %4848 = vmatprep.mubr.bf16.mxu0 %v5136_v47  ;;  %4976 = vmatprep.mubr.bf16.mxu1 %v5137_v48 }
 0x10e   : > { %v2468_v62 = vmax.f32 %v1868_v56, 0.0  ;;  %v4339_v1 = vpack.c.bf16 %v2342_v57, %v2342_v57  ;;  %v4467_v2 = vpack.c.bf16 %v2470_v58, %v2470_v58  ;;  %v1368_v3 = vpop.f32.mrf.mxu0  ;;  %v1880_v4 = vpop.f32.mrf.mxu1  ;;  %v5144_v56 = vld [vmem:[%s5203_s24 + $0x1f0] sm:$0xff]  }
 0x10f   : > { %v4337_v5 = vpack.c.bf16 %v2340_v61, %v2340_v61  ;;  %v2345_v7 = vmax.f32 %v1377_v63, 0.0  ;;  %v2473_v8 = vmax.f32 %v1889_v0, 0.0  ;;  %v1369_v9 = vadd.f32 %v5325_v46, %v1368_v3  ;;  %v5145_v61 = vld [vmem:[%s5203_s24 + $0x3f0] sm:$0xff]  }
 0x110   : > { %v4465_v6 = vpack.c.bf16 %v2468_v62, %v2468_v62  ;;  %3623 = vst.msk [vmem:[%s5336_s13 + $0x3c] sm:$0xf] %vm3607_vm0, %v4339_v1  ;;  %3751 = vst.msk [vmem:[%s5336_s13 + $0x23c] sm:$0xf] %vm3607_vm0, %v4467_v2  ;;  %v1881_v10 = vadd.f32 %v5325_v46, %v1880_v4  ;;  %v4751_v11 = vpop.f32.mrf.mxu0  ;;  %v4879_v12 = vpop.f32.mrf.mxu1 }
 0x111   : > { %3621 = vst.msk [vmem:[%s5336_s13 + $0x34] sm:$0xf] %vm3607_vm0, %v4337_v5  ;;  %v4342_v15 = vpack.c.bf16 %v2345_v7, %v2345_v7  ;;  %v4470_v16 = vpack.c.bf16 %v2473_v8, %v2473_v8  ;;  %v1380_v17 = vadd.f32 %v4751_v11, %v5325_v46  ;;  %v1892_v18 = vadd.f32 %v4879_v12, %v5325_v46 }
 0x112   : > { %3749 = vst.msk [vmem:[%s5336_s13 + $0x234] sm:$0xf] %vm3607_vm0, %v4465_v6  ;;  %v2343_v21 = vmax.f32 %v1369_v9, 0.0  ;;  %v2471_v22 = vmax.f32 %v1881_v10, 0.0  ;;  %v1371_v23 = vpop.f32.mrf.mxu0  ;;  %v1883_v24 = vpop.f32.mrf.mxu1 }
 0x113   : > { %3626 = vst.msk [vmem:[%s5336_s13 + $0x48] sm:$0xf] %vm3607_vm0, %v4342_v15  ;;  %3754 = vst.msk [vmem:[%s5336_s13 + $0x248] sm:$0xf] %vm3607_vm0, %v4470_v16  ;;  %v2346_v25 = vmax.f32 %v1380_v17, 0.0  ;;  %v2474_v26 = vmax.f32 %v1892_v18, 0.0  ;;  %v1372_v27 = vadd.f32 %v5325_v46, %v1371_v23  ;;  %v1884_v28 = vadd.f32 %v5325_v46, %v1883_v24 }
 0x114   : > { %v4340_v29 = vpack.c.bf16 %v2343_v21, %v2343_v21  ;;  %v4468_v30 = vpack.c.bf16 %v2471_v22, %v2471_v22  ;;  %v4754_v31 = vpop.f32.mrf.mxu0  ;;  %4849 = vmatmul.mubr.bf16.gmra.mxu0 %v5138_v13  ;;  %v4882_v32 = vpop.f32.mrf.mxu1  ;;  %4977 = vmatmul.mubr.bf16.gmra.mxu1 %v5139_v14  ;;  %v5146_v22 = vld [vmem:[%s5203_s24 + $0x1f8] sm:$0xff]  }
 0x115   : > { %v4343_v33 = vpack.c.bf16 %v2346_v25, %v2346_v25  ;;  %v4471_v34 = vpack.c.bf16 %v2474_v26, %v2474_v26  ;;  %v2344_v35 = vmax.f32 %v1372_v27, 0.0  ;;  %v2472_v36 = vmax.f32 %v1884_v28, 0.0  ;;  %4852 = vmatprep.mubr.bf16.mxu0 %v5140_v19  ;;  %4980 = vmatprep.mubr.bf16.mxu1 %v5141_v20  ;;  %v5147_v23 = vld [vmem:[%s5203_s24 + $0x3f8] sm:$0xff]  }
 0x116   : > { %3624 = vst.msk [vmem:[%s5336_s13 + $0x40] sm:$0xf] %vm3607_vm0, %v4340_v29  ;;  %3752 = vst.msk [vmem:[%s5336_s13 + $0x240] sm:$0xf] %vm3607_vm0, %v4468_v30  ;;  %v1393_v37 = vadd.f32 %v4754_v31, %v5325_v46  ;;  %v1905_v38 = vadd.f32 %v4882_v32, %v5325_v46  ;;  %v1384_v39 = vpop.f32.mrf.mxu0  ;;  %v1896_v40 = vpop.f32.mrf.mxu1 }
 0x117   : > { %3627 = vst.msk [vmem:[%s5336_s13 + $0x4c] sm:$0xf] %vm3607_vm0, %v4343_v33  ;;  %3755 = vst.msk [vmem:[%s5336_s13 + $0x24c] sm:$0xf] %vm3607_vm0, %v4471_v34  ;;  %v4341_v41 = vpack.c.bf16 %v2344_v35, %v2344_v35  ;;  %v4469_v42 = vpack.c.bf16 %v2472_v36, %v2472_v36  ;;  %v1385_v43 = vadd.f32 %v5325_v46, %v1384_v39 }
 0x118   : > { %v1897_v44 = vadd.f32 %v5325_v46, %v1896_v40  ;;  %v2349_v45 = vmax.f32 %v1393_v37, 0.0  ;;  %v2477_v47 = vmax.f32 %v1905_v38, 0.0  ;;  %v4755_v48 = vpop.f32.mrf.mxu0  ;;  %v4883_v49 = vpop.f32.mrf.mxu1 }
 0x119   : > { %3625 = vst.msk [vmem:[%s5336_s13 + $0x44] sm:$0xf] %vm3607_vm0, %v4341_v41  ;;  %3753 = vst.msk [vmem:[%s5336_s13 + $0x244] sm:$0xf] %vm3607_vm0, %v4469_v42  ;;  %v2347_v52 = vmax.f32 %v1385_v43, 0.0  ;;  %v1396_v54 = vadd.f32 %v4755_v48, %v5325_v46  ;;  %v1908_v55 = vadd.f32 %v4883_v49, %v5325_v46 }
 0x11a   : > { %v2475_v53 = vmax.f32 %v1897_v44, 0.0  ;;  %v4346_v57 = vpack.c.bf16 %v2349_v45, %v2349_v45  ;;  %v4474_v58 = vpack.c.bf16 %v2477_v47, %v2477_v47  ;;  %v1387_v59 = vpop.f32.mrf.mxu0  ;;  %v1899_v60 = vpop.f32.mrf.mxu1 }
 0x11b   : > { %v4344_v62 = vpack.c.bf16 %v2347_v52, %v2347_v52  ;;  %v2350_v0 = vmax.f32 %v1396_v54, 0.0  ;;  %v2478_v1 = vmax.f32 %v1908_v55, 0.0  ;;  %v1388_v2 = vadd.f32 %v5325_v46, %v1387_v59 }
 0x11c   : > { %v4472_v63 = vpack.c.bf16 %v2475_v53, %v2475_v53  ;;  %3630 = vst.msk [vmem:[%s5336_s13 + $0x58] sm:$0xf] %vm3607_vm0, %v4346_v57  ;;  %3758 = vst.msk [vmem:[%s5336_s13 + $0x258] sm:$0xf] %vm3607_vm0, %v4474_v58  ;;  %v1900_v3 = vadd.f32 %v5325_v46, %v1899_v60  ;;  %v4758_v4 = vpop.f32.mrf.mxu0  ;;  %4853 = vmatmul.mubr.bf16.gmra.mxu0 %v5142_v50  ;;  %v4886_v5 = vpop.f32.mrf.mxu1  ;;  %4981 = vmatmul.mubr.bf16.gmra.mxu1 %v5143_v51 }
 0x11d   : > { %3628 = vst.msk [vmem:[%s5336_s13 + $0x50] sm:$0xf] %vm3607_vm0, %v4344_v62  ;;  %v4347_v6 = vpack.c.bf16 %v2350_v0, %v2350_v0  ;;  %v4475_v7 = vpack.c.bf16 %v2478_v1, %v2478_v1  ;;  %v1409_v8 = vadd.f32 %v4758_v4, %v5325_v46  ;;  %v1921_v9 = vadd.f32 %v4886_v5, %v5325_v46 }
 0x11e   : > { %3756 = vst.msk [vmem:[%s5336_s13 + $0x250] sm:$0xf] %vm3607_vm0, %v4472_v63  ;;  %4856 = vmatprep.mubr.bf16.mxu0 %v5144_v56  ;;  %v2348_v10 = vmax.f32 %v1388_v2, 0.0  ;;  %v2476_v11 = vmax.f32 %v1900_v3, 0.0  ;;  %v1400_v12 = vpop.f32.mrf.mxu0  ;;  %v1912_v13 = vpop.f32.mrf.mxu1  ;;  %4984 = vmatprep.mubr.bf16.mxu1 %v5145_v61 }
 0x11f   : > { %3631 = vst.msk [vmem:[%s5336_s13 + $0x5c] sm:$0xf] %vm3607_vm0, %v4347_v6  ;;  %3759 = vst.msk [vmem:[%s5336_s13 + $0x25c] sm:$0xf] %vm3607_vm0, %v4475_v7  ;;  %v2353_v14 = vmax.f32 %v1409_v8, 0.0  ;;  %v2481_v15 = vmax.f32 %v1921_v9, 0.0  ;;  %v1401_v16 = vadd.f32 %v5325_v46, %v1400_v12  ;;  %v1913_v17 = vadd.f32 %v5325_v46, %v1912_v13 }
 0x120   : > { %v4345_v18 = vpack.c.bf16 %v2348_v10, %v2348_v10  ;;  %v4473_v19 = vpack.c.bf16 %v2476_v11, %v2476_v11  ;;  %v4759_v20 = vpop.f32.mrf.mxu0  ;;  %v4887_v21 = vpop.f32.mrf.mxu1 }
 0x121   : > { %v4350_v24 = vpack.c.bf16 %v2353_v14, %v2353_v14  ;;  %v4478_v25 = vpack.c.bf16 %v2481_v15, %v2481_v15  ;;  %v2351_v26 = vmax.f32 %v1401_v16, 0.0  ;;  %v2479_v27 = vmax.f32 %v1913_v17, 0.0 }
 0x122   : > { %3629 = vst.msk [vmem:[%s5336_s13 + $0x54] sm:$0xf] %vm3607_vm0, %v4345_v18  ;;  %3757 = vst.msk [vmem:[%s5336_s13 + $0x254] sm:$0xf] %vm3607_vm0, %v4473_v19  ;;  %v1412_v28 = vadd.f32 %v4759_v20, %v5325_v46  ;;  %v1924_v29 = vadd.f32 %v4887_v21, %v5325_v46  ;;  %v1403_v30 = vpop.f32.mrf.mxu0  ;;  %v1915_v31 = vpop.f32.mrf.mxu1 }
 0x123   : > { %3634 = vst.msk [vmem:[%s5336_s13 + $0x68] sm:$0xf] %vm3607_vm0, %v4350_v24  ;;  %3762 = vst.msk [vmem:[%s5336_s13 + $0x268] sm:$0xf] %vm3607_vm0, %v4478_v25  ;;  %v4348_v32 = vpack.c.bf16 %v2351_v26, %v2351_v26  ;;  %v4476_v33 = vpack.c.bf16 %v2479_v27, %v2479_v27  ;;  %v1404_v34 = vadd.f32 %v5325_v46, %v1403_v30 }
 0x124   : > { %v1916_v35 = vadd.f32 %v5325_v46, %v1915_v31  ;;  %v2354_v36 = vmax.f32 %v1412_v28, 0.0  ;;  %v2482_v37 = vmax.f32 %v1924_v29, 0.0  ;;  %v4762_v38 = vpop.f32.mrf.mxu0  ;;  %4857 = vmatmul.mubr.bf16.gmra.mxu0 %v5146_v22  ;;  %v4890_v39 = vpop.f32.mrf.mxu1  ;;  %4985 = vmatmul.mubr.bf16.gmra.mxu1 %v5147_v23 }
 0x125   : > { %3632 = vst.msk [vmem:[%s5336_s13 + $0x60] sm:$0xf] %vm3607_vm0, %v4348_v32  ;;  %3760 = vst.msk [vmem:[%s5336_s13 + $0x260] sm:$0xf] %vm3607_vm0, %v4476_v33  ;;  %v2352_v40 = vmax.f32 %v1404_v34, 0.0  ;;  %v1425_v42 = vadd.f32 %v4762_v38, %v5325_v46  ;;  %v1937_v43 = vadd.f32 %v4890_v39, %v5325_v46 }
 0x126   : > { %v2480_v41 = vmax.f32 %v1916_v35, 0.0  ;;  %v4351_v44 = vpack.c.bf16 %v2354_v36, %v2354_v36  ;;  %v4479_v45 = vpack.c.bf16 %v2482_v37, %v2482_v37  ;;  %v1416_v47 = vpop.f32.mrf.mxu0  ;;  %v1928_v48 = vpop.f32.mrf.mxu1 }
 0x127   : > { %v4349_v49 = vpack.c.bf16 %v2352_v40, %v2352_v40  ;;  %v2357_v51 = vmax.f32 %v1425_v42, 0.0  ;;  %v2485_v52 = vmax.f32 %v1937_v43, 0.0  ;;  %v1417_v53 = vadd.f32 %v5325_v46, %v1416_v47 }
 0x128   : > { %v4477_v50 = vpack.c.bf16 %v2480_v41, %v2480_v41  ;;  %3635 = vst.msk [vmem:[%s5336_s13 + $0x6c] sm:$0xf] %vm3607_vm0, %v4351_v44  ;;  %3763 = vst.msk [vmem:[%s5336_s13 + $0x26c] sm:$0xf] %vm3607_vm0, %v4479_v45  ;;  %v1929_v54 = vadd.f32 %v5325_v46, %v1928_v48  ;;  %v4763_v55 = vpop.f32.mrf.mxu0  ;;  %v4891_v56 = vpop.f32.mrf.mxu1 }
 0x129   : > { %3633 = vst.msk [vmem:[%s5336_s13 + $0x64] sm:$0xf] %vm3607_vm0, %v4349_v49  ;;  %v4354_v57 = vpack.c.bf16 %v2357_v51, %v2357_v51  ;;  %v4482_v58 = vpack.c.bf16 %v2485_v52, %v2485_v52  ;;  %v1428_v59 = vadd.f32 %v4763_v55, %v5325_v46  ;;  %v1940_v60 = vadd.f32 %v4891_v56, %v5325_v46 }
 0x12a   : > { %3761 = vst.msk [vmem:[%s5336_s13 + $0x264] sm:$0xf] %vm3607_vm0, %v4477_v50  ;;  %v2355_v61 = vmax.f32 %v1417_v53, 0.0  ;;  %v2483_v62 = vmax.f32 %v1929_v54, 0.0  ;;  %v1419_v63 = vpop.f32.mrf.mxu0  ;;  %v1931_v0 = vpop.f32.mrf.mxu1 }
 0x12b   : > { %3638 = vst.msk [vmem:[%s5336_s13 + $0x78] sm:$0xf] %vm3607_vm0, %v4354_v57  ;;  %3766 = vst.msk [vmem:[%s5336_s13 + $0x278] sm:$0xf] %vm3607_vm0, %v4482_v58  ;;  %v2358_v1 = vmax.f32 %v1428_v59, 0.0  ;;  %v2486_v2 = vmax.f32 %v1940_v60, 0.0  ;;  %v1420_v3 = vadd.f32 %v5325_v46, %v1419_v63  ;;  %v1932_v4 = vadd.f32 %v5325_v46, %v1931_v0 }
 0x12c   : > { %v4352_v5 = vpack.c.bf16 %v2355_v61, %v2355_v61  ;;  %v4480_v6 = vpack.c.bf16 %v2483_v62, %v2483_v62  ;;  %v4766_v7 = vpop.f32.mrf.mxu0  ;;  %v4894_v8 = vpop.f32.mrf.mxu1 }
 0x12d   : > { %v4355_v9 = vpack.c.bf16 %v2358_v1, %v2358_v1  ;;  %v4483_v10 = vpack.c.bf16 %v2486_v2, %v2486_v2  ;;  %v2356_v11 = vmax.f32 %v1420_v3, 0.0  ;;  %v2484_v12 = vmax.f32 %v1932_v4, 0.0 }
 0x12e   : > { %3636 = vst.msk [vmem:[%s5336_s13 + $0x70] sm:$0xf] %vm3607_vm0, %v4352_v5  ;;  %3764 = vst.msk [vmem:[%s5336_s13 + $0x270] sm:$0xf] %vm3607_vm0, %v4480_v6  ;;  %v1441_v13 = vadd.f32 %v4766_v7, %v5325_v46  ;;  %v1953_v14 = vadd.f32 %v4894_v8, %v5325_v46  ;;  %v1432_v15 = vpop.f32.mrf.mxu0  ;;  %v1944_v16 = vpop.f32.mrf.mxu1 }
 0x12f   : > { %3639 = vst.msk [vmem:[%s5336_s13 + $0x7c] sm:$0xf] %vm3607_vm0, %v4355_v9  ;;  %3767 = vst.msk [vmem:[%s5336_s13 + $0x27c] sm:$0xf] %vm3607_vm0, %v4483_v10  ;;  %v4353_v17 = vpack.c.bf16 %v2356_v11, %v2356_v11  ;;  %v4481_v18 = vpack.c.bf16 %v2484_v12, %v2484_v12  ;;  %v1433_v19 = vadd.f32 %v5325_v46, %v1432_v15 }
 0x130   : > { %v1945_v20 = vadd.f32 %v5325_v46, %v1944_v16  ;;  %v2361_v21 = vmax.f32 %v1441_v13, 0.0  ;;  %v2489_v22 = vmax.f32 %v1953_v14, 0.0  ;;  %v4767_v23 = vpop.f32.mrf.mxu0  ;;  %v4895_v24 = vpop.f32.mrf.mxu1 }
 0x131   : > { %3637 = vst.msk [vmem:[%s5336_s13 + $0x74] sm:$0xf] %vm3607_vm0, %v4353_v17  ;;  %3765 = vst.msk [vmem:[%s5336_s13 + $0x274] sm:$0xf] %vm3607_vm0, %v4481_v18  ;;  %v2359_v25 = vmax.f32 %v1433_v19, 0.0  ;;  %v1444_v27 = vadd.f32 %v4767_v23, %v5325_v46  ;;  %v1956_v28 = vadd.f32 %v4895_v24, %v5325_v46 }
 0x132   : > { %v2487_v26 = vmax.f32 %v1945_v20, 0.0  ;;  %v4358_v29 = vpack.c.bf16 %v2361_v21, %v2361_v21  ;;  %v4486_v30 = vpack.c.bf16 %v2489_v22, %v2489_v22  ;;  %v1435_v31 = vpop.f32.mrf.mxu0  ;;  %v1947_v32 = vpop.f32.mrf.mxu1 }
 0x133   : > { %v4356_v33 = vpack.c.bf16 %v2359_v25, %v2359_v25  ;;  %v2362_v35 = vmax.f32 %v1444_v27, 0.0  ;;  %v2490_v36 = vmax.f32 %v1956_v28, 0.0  ;;  %v1436_v37 = vadd.f32 %v5325_v46, %v1435_v31 }
 0x134   : > { %v4484_v34 = vpack.c.bf16 %v2487_v26, %v2487_v26  ;;  %3642 = vst.msk [vmem:[%s5336_s13 + $0x88] sm:$0xf] %vm3607_vm0, %v4358_v29  ;;  %3770 = vst.msk [vmem:[%s5336_s13 + $0x288] sm:$0xf] %vm3607_vm0, %v4486_v30  ;;  %v1948_v38 = vadd.f32 %v5325_v46, %v1947_v32  ;;  %v4770_v39 = vpop.f32.mrf.mxu0  ;;  %v4898_v40 = vpop.f32.mrf.mxu1 }
 0x135   : > { %3640 = vst.msk [vmem:[%s5336_s13 + $0x80] sm:$0xf] %vm3607_vm0, %v4356_v33  ;;  %v4359_v41 = vpack.c.bf16 %v2362_v35, %v2362_v35  ;;  %v4487_v42 = vpack.c.bf16 %v2490_v36, %v2490_v36  ;;  %v1457_v43 = vadd.f32 %v4770_v39, %v5325_v46  ;;  %v1969_v44 = vadd.f32 %v4898_v40, %v5325_v46 }
 0x136   : > { %3768 = vst.msk [vmem:[%s5336_s13 + $0x280] sm:$0xf] %vm3607_vm0, %v4484_v34  ;;  %v2360_v45 = vmax.f32 %v1436_v37, 0.0  ;;  %v2488_v47 = vmax.f32 %v1948_v38, 0.0  ;;  %v1448_v48 = vpop.f32.mrf.mxu0  ;;  %v1960_v49 = vpop.f32.mrf.mxu1 }
 0x137   : > { %3643 = vst.msk [vmem:[%s5336_s13 + $0x8c] sm:$0xf] %vm3607_vm0, %v4359_v41  ;;  %3771 = vst.msk [vmem:[%s5336_s13 + $0x28c] sm:$0xf] %vm3607_vm0, %v4487_v42  ;;  %v2365_v50 = vmax.f32 %v1457_v43, 0.0  ;;  %v2493_v51 = vmax.f32 %v1969_v44, 0.0  ;;  %v1449_v52 = vadd.f32 %v5325_v46, %v1448_v48  ;;  %v1961_v53 = vadd.f32 %v5325_v46, %v1960_v49 }
 0x138   : > { %v4357_v54 = vpack.c.bf16 %v2360_v45, %v2360_v45  ;;  %v4485_v55 = vpack.c.bf16 %v2488_v47, %v2488_v47  ;;  %v4771_v56 = vpop.f32.mrf.mxu0  ;;  %v4899_v57 = vpop.f32.mrf.mxu1 }
 0x139   : > { %v4362_v58 = vpack.c.bf16 %v2365_v50, %v2365_v50  ;;  %v4490_v59 = vpack.c.bf16 %v2493_v51, %v2493_v51  ;;  %v2363_v60 = vmax.f32 %v1449_v52, 0.0  ;;  %v2491_v61 = vmax.f32 %v1961_v53, 0.0 }
 0x13a   : > { %3641 = vst.msk [vmem:[%s5336_s13 + $0x84] sm:$0xf] %vm3607_vm0, %v4357_v54  ;;  %3769 = vst.msk [vmem:[%s5336_s13 + $0x284] sm:$0xf] %vm3607_vm0, %v4485_v55  ;;  %v1460_v62 = vadd.f32 %v4771_v56, %v5325_v46  ;;  %v1972_v63 = vadd.f32 %v4899_v57, %v5325_v46  ;;  %v1451_v0 = vpop.f32.mrf.mxu0  ;;  %v1963_v1 = vpop.f32.mrf.mxu1 }
 0x13b   : > { %3646 = vst.msk [vmem:[%s5336_s13 + $0x98] sm:$0xf] %vm3607_vm0, %v4362_v58  ;;  %3774 = vst.msk [vmem:[%s5336_s13 + $0x298] sm:$0xf] %vm3607_vm0, %v4490_v59  ;;  %v4360_v2 = vpack.c.bf16 %v2363_v60, %v2363_v60  ;;  %v4488_v3 = vpack.c.bf16 %v2491_v61, %v2491_v61  ;;  %v1452_v4 = vadd.f32 %v5325_v46, %v1451_v0  ;;  %v5631_v61 = vld [vmem:[%s6143_s2] ss:$0 sm:$0xff] }
 0x13c   : > { %v1964_v5 = vadd.f32 %v5325_v46, %v1963_v1  ;;  %v2366_v6 = vmax.f32 %v1460_v62, 0.0  ;;  %v2494_v7 = vmax.f32 %v1972_v63, 0.0  ;;  %v4774_v8 = vpop.f32.mrf.mxu0  ;;  %v4902_v9 = vpop.f32.mrf.mxu1 }
 0x13d   : > { %3644 = vst.msk [vmem:[%s5336_s13 + $0x90] sm:$0xf] %vm3607_vm0, %v4360_v2  ;;  %3772 = vst.msk [vmem:[%s5336_s13 + $0x290] sm:$0xf] %vm3607_vm0, %v4488_v3  ;;  %v2364_v10 = vmax.f32 %v1452_v4, 0.0  ;;  %v1473_v12 = vadd.f32 %v4774_v8, %v5325_v46  ;;  %v1985_v13 = vadd.f32 %v4902_v9, %v5325_v46 }
 0x13e   : > { %v2492_v11 = vmax.f32 %v1964_v5, 0.0  ;;  %v4363_v14 = vpack.c.bf16 %v2366_v6, %v2366_v6  ;;  %v4491_v15 = vpack.c.bf16 %v2494_v7, %v2494_v7  ;;  %v1464_v16 = vpop.f32.mrf.mxu0  ;;  %v1976_v17 = vpop.f32.mrf.mxu1 }
 0x13f   : > { %v4361_v18 = vpack.c.bf16 %v2364_v10, %v2364_v10  ;;  %v2369_v20 = vmax.f32 %v1473_v12, 0.0  ;;  %v2497_v21 = vmax.f32 %v1985_v13, 0.0  ;;  %v1465_v22 = vadd.f32 %v5325_v46, %v1464_v16 }
 0x140   : > { %v4489_v19 = vpack.c.bf16 %v2492_v11, %v2492_v11  ;;  %3647 = vst.msk [vmem:[%s5336_s13 + $0x9c] sm:$0xf] %vm3607_vm0, %v4363_v14  ;;  %3775 = vst.msk [vmem:[%s5336_s13 + $0x29c] sm:$0xf] %vm3607_vm0, %v4491_v15  ;;  %v1977_v23 = vadd.f32 %v5325_v46, %v1976_v17  ;;  %v4775_v24 = vpop.f32.mrf.mxu0  ;;  %v4903_v25 = vpop.f32.mrf.mxu1 }
 0x141   : > { %3645 = vst.msk [vmem:[%s5336_s13 + $0x94] sm:$0xf] %vm3607_vm0, %v4361_v18  ;;  %v4366_v26 = vpack.c.bf16 %v2369_v20, %v2369_v20  ;;  %v4494_v27 = vpack.c.bf16 %v2497_v21, %v2497_v21  ;;  %v1476_v28 = vadd.f32 %v4775_v24, %v5325_v46  ;;  %v1988_v29 = vadd.f32 %v4903_v25, %v5325_v46 }
 0x142   : > { %3773 = vst.msk [vmem:[%s5336_s13 + $0x294] sm:$0xf] %vm3607_vm0, %v4489_v19  ;;  %v2367_v30 = vmax.f32 %v1465_v22, 0.0  ;;  %v2495_v31 = vmax.f32 %v1977_v23, 0.0  ;;  %v1467_v32 = vpop.f32.mrf.mxu0  ;;  %v1979_v33 = vpop.f32.mrf.mxu1 }
 0x143   : > { %3650 = vst.msk [vmem:[%s5336_s13 + $0xa8] sm:$0xf] %vm3607_vm0, %v4366_v26  ;;  %3778 = vst.msk [vmem:[%s5336_s13 + $0x2a8] sm:$0xf] %vm3607_vm0, %v4494_v27  ;;  %v2370_v34 = vmax.f32 %v1476_v28, 0.0  ;;  %v2498_v35 = vmax.f32 %v1988_v29, 0.0  ;;  %v1468_v36 = vadd.f32 %v5325_v46, %v1467_v32  ;;  %v1980_v37 = vadd.f32 %v5325_v46, %v1979_v33 }
 0x144   : > { %v4364_v38 = vpack.c.bf16 %v2367_v30, %v2367_v30  ;;  %v4492_v39 = vpack.c.bf16 %v2495_v31, %v2495_v31  ;;  %v4778_v40 = vpop.f32.mrf.mxu0  ;;  %v4906_v41 = vpop.f32.mrf.mxu1 }
 0x145   : > { %v4367_v42 = vpack.c.bf16 %v2370_v34, %v2370_v34  ;;  %v4495_v43 = vpack.c.bf16 %v2498_v35, %v2498_v35  ;;  %v2368_v44 = vmax.f32 %v1468_v36, 0.0  ;;  %v2496_v45 = vmax.f32 %v1980_v37, 0.0 }
 0x146   : > { %3648 = vst.msk [vmem:[%s5336_s13 + $0xa0] sm:$0xf] %vm3607_vm0, %v4364_v38  ;;  %3776 = vst.msk [vmem:[%s5336_s13 + $0x2a0] sm:$0xf] %vm3607_vm0, %v4492_v39  ;;  %v1489_v47 = vadd.f32 %v4778_v40, %v5325_v46  ;;  %v2001_v48 = vadd.f32 %v4906_v41, %v5325_v46  ;;  %v1480_v49 = vpop.f32.mrf.mxu0  ;;  %v1992_v50 = vpop.f32.mrf.mxu1 }
 0x147   : > { %3651 = vst.msk [vmem:[%s5336_s13 + $0xac] sm:$0xf] %vm3607_vm0, %v4367_v42  ;;  %3779 = vst.msk [vmem:[%s5336_s13 + $0x2ac] sm:$0xf] %vm3607_vm0, %v4495_v43  ;;  %v4365_v51 = vpack.c.bf16 %v2368_v44, %v2368_v44  ;;  %v4493_v52 = vpack.c.bf16 %v2496_v45, %v2496_v45  ;;  %v1481_v53 = vadd.f32 %v5325_v46, %v1480_v49 }
 0x148   : > { %v1993_v54 = vadd.f32 %v5325_v46, %v1992_v50  ;;  %v2373_v55 = vmax.f32 %v1489_v47, 0.0  ;;  %v2501_v56 = vmax.f32 %v2001_v48, 0.0  ;;  %v4779_v57 = vpop.f32.mrf.mxu0  ;;  %v4907_v58 = vpop.f32.mrf.mxu1 }
 0x149   : > { %3649 = vst.msk [vmem:[%s5336_s13 + $0xa4] sm:$0xf] %vm3607_vm0, %v4365_v51  ;;  %3777 = vst.msk [vmem:[%s5336_s13 + $0x2a4] sm:$0xf] %vm3607_vm0, %v4493_v52  ;;  %v2371_v59 = vmax.f32 %v1481_v53, 0.0  ;;  %v1492_v62 = vadd.f32 %v5631_v61, %v4779_v57  ;;  %v2004_v46 = vadd.f32 %v5631_v61, %v4907_v58 }
 0x14a   : > { %v2499_v60 = vmax.f32 %v1993_v54, 0.0  ;;  %v4370_v63 = vpack.c.bf16 %v2373_v55, %v2373_v55  ;;  %v4498_v0 = vpack.c.bf16 %v2501_v56, %v2501_v56  ;;  %v1483_v1 = vpop.f32.mrf.mxu0  ;;  %v1995_v2 = vpop.f32.mrf.mxu1 }
 0x14b   : > { %v4368_v3 = vpack.c.bf16 %v2371_v59, %v2371_v59  ;;  %v2374_v5 = vmax.f32 %v1492_v62, 0.0  ;;  %v2502_v6 = vmax.f32 %v2004_v46, 0.0  ;;  %v1484_v7 = vadd.f32 %v5631_v61, %v1483_v1 }
 0x14c   : > { %v4496_v4 = vpack.c.bf16 %v2499_v60, %v2499_v60  ;;  %3654 = vst.msk [vmem:[%s5336_s13 + $0xb8] sm:$0xf] %vm3607_vm0, %v4370_v63  ;;  %3782 = vst.msk [vmem:[%s5336_s13 + $0x2b8] sm:$0xf] %vm3607_vm0, %v4498_v0  ;;  %v1996_v8 = vadd.f32 %v5631_v61, %v1995_v2  ;;  %v4782_v9 = vpop.f32.mrf.mxu0  ;;  %v4910_v10 = vpop.f32.mrf.mxu1 }
 0x14d   : > { %3652 = vst.msk [vmem:[%s5336_s13 + $0xb0] sm:$0xf] %vm3607_vm0, %v4368_v3  ;;  %v4371_v11 = vpack.c.bf16 %v2374_v5, %v2374_v5  ;;  %v4499_v12 = vpack.c.bf16 %v2502_v6, %v2502_v6  ;;  %v1505_v13 = vadd.f32 %v5631_v61, %v4782_v9  ;;  %v2017_v14 = vadd.f32 %v5631_v61, %v4910_v10 }
 0x14e   : > { %3780 = vst.msk [vmem:[%s5336_s13 + $0x2b0] sm:$0xf] %vm3607_vm0, %v4496_v4  ;;  %v2372_v15 = vmax.f32 %v1484_v7, 0.0  ;;  %v2500_v16 = vmax.f32 %v1996_v8, 0.0  ;;  %v1496_v17 = vpop.f32.mrf.mxu0  ;;  %v2008_v18 = vpop.f32.mrf.mxu1 }
 0x14f   : > { %3655 = vst.msk [vmem:[%s5336_s13 + $0xbc] sm:$0xf] %vm3607_vm0, %v4371_v11  ;;  %3783 = vst.msk [vmem:[%s5336_s13 + $0x2bc] sm:$0xf] %vm3607_vm0, %v4499_v12  ;;  %v2377_v19 = vmax.f32 %v1505_v13, 0.0  ;;  %v2505_v20 = vmax.f32 %v2017_v14, 0.0  ;;  %v1497_v21 = vadd.f32 %v5631_v61, %v1496_v17  ;;  %v2009_v22 = vadd.f32 %v5631_v61, %v2008_v18 }
 0x150   : > { %v4369_v23 = vpack.c.bf16 %v2372_v15, %v2372_v15  ;;  %v4497_v24 = vpack.c.bf16 %v2500_v16, %v2500_v16  ;;  %v4783_v25 = vpop.f32.mrf.mxu0  ;;  %v4911_v26 = vpop.f32.mrf.mxu1 }
 0x151   : > { %v4374_v27 = vpack.c.bf16 %v2377_v19, %v2377_v19  ;;  %v4502_v28 = vpack.c.bf16 %v2505_v20, %v2505_v20  ;;  %v2375_v29 = vmax.f32 %v1497_v21, 0.0  ;;  %v2503_v30 = vmax.f32 %v2009_v22, 0.0 }
 0x152   : > { %3653 = vst.msk [vmem:[%s5336_s13 + $0xb4] sm:$0xf] %vm3607_vm0, %v4369_v23  ;;  %3781 = vst.msk [vmem:[%s5336_s13 + $0x2b4] sm:$0xf] %vm3607_vm0, %v4497_v24  ;;  %v1508_v31 = vadd.f32 %v5631_v61, %v4783_v25  ;;  %v2020_v32 = vadd.f32 %v5631_v61, %v4911_v26  ;;  %v1499_v33 = vpop.f32.mrf.mxu0  ;;  %v2011_v34 = vpop.f32.mrf.mxu1 }
 0x153   : > { %3658 = vst.msk [vmem:[%s5336_s13 + $0xc8] sm:$0xf] %vm3607_vm0, %v4374_v27  ;;  %3786 = vst.msk [vmem:[%s5336_s13 + $0x2c8] sm:$0xf] %vm3607_vm0, %v4502_v28  ;;  %v4372_v35 = vpack.c.bf16 %v2375_v29, %v2375_v29  ;;  %v4500_v36 = vpack.c.bf16 %v2503_v30, %v2503_v30  ;;  %v1500_v37 = vadd.f32 %v5631_v61, %v1499_v33 }
 0x154   : > { %v2012_v38 = vadd.f32 %v5631_v61, %v2011_v34  ;;  %v2378_v39 = vmax.f32 %v1508_v31, 0.0  ;;  %v2506_v40 = vmax.f32 %v2020_v32, 0.0  ;;  %v4786_v41 = vpop.f32.mrf.mxu0  ;;  %v4914_v42 = vpop.f32.mrf.mxu1 }
 0x155   : > { %3656 = vst.msk [vmem:[%s5336_s13 + $0xc0] sm:$0xf] %vm3607_vm0, %v4372_v35  ;;  %3784 = vst.msk [vmem:[%s5336_s13 + $0x2c0] sm:$0xf] %vm3607_vm0, %v4500_v36  ;;  %v2376_v43 = vmax.f32 %v1500_v37, 0.0  ;;  %v1521_v45 = vadd.f32 %v5631_v61, %v4786_v41  ;;  %v2033_v47 = vadd.f32 %v5631_v61, %v4914_v42 }
 0x156   : > { %v2504_v44 = vmax.f32 %v2012_v38, 0.0  ;;  %v4375_v48 = vpack.c.bf16 %v2378_v39, %v2378_v39  ;;  %v4503_v49 = vpack.c.bf16 %v2506_v40, %v2506_v40  ;;  %v1512_v50 = vpop.f32.mrf.mxu0  ;;  %v2024_v51 = vpop.f32.mrf.mxu1 }
 0x157   : > { %v4373_v52 = vpack.c.bf16 %v2376_v43, %v2376_v43  ;;  %v2381_v54 = vmax.f32 %v1521_v45, 0.0  ;;  %v2509_v55 = vmax.f32 %v2033_v47, 0.0  ;;  %v1513_v56 = vadd.f32 %v5631_v61, %v1512_v50 }
 0x158   : > { %v4501_v53 = vpack.c.bf16 %v2504_v44, %v2504_v44  ;;  %3659 = vst.msk [vmem:[%s5336_s13 + $0xcc] sm:$0xf] %vm3607_vm0, %v4375_v48  ;;  %3787 = vst.msk [vmem:[%s5336_s13 + $0x2cc] sm:$0xf] %vm3607_vm0, %v4503_v49  ;;  %v2025_v57 = vadd.f32 %v5631_v61, %v2024_v51  ;;  %v4787_v58 = vpop.f32.mrf.mxu0  ;;  %v4915_v59 = vpop.f32.mrf.mxu1 }
 0x159   : > { %3657 = vst.msk [vmem:[%s5336_s13 + $0xc4] sm:$0xf] %vm3607_vm0, %v4373_v52  ;;  %v4378_v60 = vpack.c.bf16 %v2381_v54, %v2381_v54  ;;  %v4506_v62 = vpack.c.bf16 %v2509_v55, %v2509_v55  ;;  %v1524_v46 = vadd.f32 %v5631_v61, %v4787_v58  ;;  %v2036_v63 = vadd.f32 %v5631_v61, %v4915_v59 }
 0x15a   : > { %3785 = vst.msk [vmem:[%s5336_s13 + $0x2c4] sm:$0xf] %vm3607_vm0, %v4501_v53  ;;  %v2379_v0 = vmax.f32 %v1513_v56, 0.0  ;;  %v2507_v1 = vmax.f32 %v2025_v57, 0.0  ;;  %v1515_v2 = vpop.f32.mrf.mxu0  ;;  %v2027_v3 = vpop.f32.mrf.mxu1 }
 0x15b   : > { %3662 = vst.msk [vmem:[%s5336_s13 + $0xd8] sm:$0xf] %vm3607_vm0, %v4378_v60  ;;  %3790 = vst.msk [vmem:[%s5336_s13 + $0x2d8] sm:$0xf] %vm3607_vm0, %v4506_v62  ;;  %v2382_v4 = vmax.f32 %v1524_v46, 0.0  ;;  %v2510_v5 = vmax.f32 %v2036_v63, 0.0  ;;  %v1516_v6 = vadd.f32 %v5631_v61, %v1515_v2  ;;  %v2028_v7 = vadd.f32 %v5631_v61, %v2027_v3 }
 0x15c   : > { %v4376_v8 = vpack.c.bf16 %v2379_v0, %v2379_v0  ;;  %v4504_v9 = vpack.c.bf16 %v2507_v1, %v2507_v1  ;;  %v4790_v10 = vpop.f32.mrf.mxu0  ;;  %v4918_v11 = vpop.f32.mrf.mxu1 }
 0x15d   : > { %v4379_v12 = vpack.c.bf16 %v2382_v4, %v2382_v4  ;;  %v4507_v13 = vpack.c.bf16 %v2510_v5, %v2510_v5  ;;  %v2380_v14 = vmax.f32 %v1516_v6, 0.0  ;;  %v2508_v15 = vmax.f32 %v2028_v7, 0.0 }
 0x15e   : > { %3660 = vst.msk [vmem:[%s5336_s13 + $0xd0] sm:$0xf] %vm3607_vm0, %v4376_v8  ;;  %3788 = vst.msk [vmem:[%s5336_s13 + $0x2d0] sm:$0xf] %vm3607_vm0, %v4504_v9  ;;  %v1537_v16 = vadd.f32 %v5631_v61, %v4790_v10  ;;  %v2049_v17 = vadd.f32 %v5631_v61, %v4918_v11  ;;  %v1528_v18 = vpop.f32.mrf.mxu0  ;;  %v2040_v19 = vpop.f32.mrf.mxu1 }
 0x15f   : > { %3663 = vst.msk [vmem:[%s5336_s13 + $0xdc] sm:$0xf] %vm3607_vm0, %v4379_v12  ;;  %3791 = vst.msk [vmem:[%s5336_s13 + $0x2dc] sm:$0xf] %vm3607_vm0, %v4507_v13  ;;  %v4377_v20 = vpack.c.bf16 %v2380_v14, %v2380_v14  ;;  %v4505_v21 = vpack.c.bf16 %v2508_v15, %v2508_v15  ;;  %v1529_v22 = vadd.f32 %v5631_v61, %v1528_v18 }
 0x160   : > { %v2041_v23 = vadd.f32 %v5631_v61, %v2040_v19  ;;  %v2385_v24 = vmax.f32 %v1537_v16, 0.0  ;;  %v2513_v25 = vmax.f32 %v2049_v17, 0.0  ;;  %v4791_v26 = vpop.f32.mrf.mxu0  ;;  %v4919_v27 = vpop.f32.mrf.mxu1 }
 0x161   : > { %3661 = vst.msk [vmem:[%s5336_s13 + $0xd4] sm:$0xf] %vm3607_vm0, %v4377_v20  ;;  %3789 = vst.msk [vmem:[%s5336_s13 + $0x2d4] sm:$0xf] %vm3607_vm0, %v4505_v21  ;;  %v2383_v28 = vmax.f32 %v1529_v22, 0.0  ;;  %v1540_v30 = vadd.f32 %v5631_v61, %v4791_v26  ;;  %v2052_v31 = vadd.f32 %v5631_v61, %v4919_v27 }
 0x162   : > { %v2511_v29 = vmax.f32 %v2041_v23, 0.0  ;;  %v4382_v32 = vpack.c.bf16 %v2385_v24, %v2385_v24  ;;  %v4510_v33 = vpack.c.bf16 %v2513_v25, %v2513_v25  ;;  %v1531_v34 = vpop.f32.mrf.mxu0  ;;  %v2043_v35 = vpop.f32.mrf.mxu1 }
 0x163   : > { %v4380_v36 = vpack.c.bf16 %v2383_v28, %v2383_v28  ;;  %v2386_v38 = vmax.f32 %v1540_v30, 0.0  ;;  %v2514_v39 = vmax.f32 %v2052_v31, 0.0  ;;  %v1532_v40 = vadd.f32 %v5631_v61, %v1531_v34 }
 0x164   : > { %v4508_v37 = vpack.c.bf16 %v2511_v29, %v2511_v29  ;;  %3666 = vst.msk [vmem:[%s5336_s13 + $0xe8] sm:$0xf] %vm3607_vm0, %v4382_v32  ;;  %3794 = vst.msk [vmem:[%s5336_s13 + $0x2e8] sm:$0xf] %vm3607_vm0, %v4510_v33  ;;  %v2044_v41 = vadd.f32 %v5631_v61, %v2043_v35  ;;  %v4794_v42 = vpop.f32.mrf.mxu0  ;;  %v4922_v43 = vpop.f32.mrf.mxu1 }
 0x165   : > { %3664 = vst.msk [vmem:[%s5336_s13 + $0xe0] sm:$0xf] %vm3607_vm0, %v4380_v36  ;;  %v4383_v44 = vpack.c.bf16 %v2386_v38, %v2386_v38  ;;  %v4511_v45 = vpack.c.bf16 %v2514_v39, %v2514_v39  ;;  %v1553_v47 = vadd.f32 %v5631_v61, %v4794_v42  ;;  %v2065_v48 = vadd.f32 %v5631_v61, %v4922_v43 }
 0x166   : > { %3792 = vst.msk [vmem:[%s5336_s13 + $0x2e0] sm:$0xf] %vm3607_vm0, %v4508_v37  ;;  %v2384_v49 = vmax.f32 %v1532_v40, 0.0  ;;  %v2512_v50 = vmax.f32 %v2044_v41, 0.0  ;;  %v1544_v51 = vpop.f32.mrf.mxu0  ;;  %v2056_v52 = vpop.f32.mrf.mxu1 }
 0x167   : > { %3667 = vst.msk [vmem:[%s5336_s13 + $0xec] sm:$0xf] %vm3607_vm0, %v4383_v44  ;;  %3795 = vst.msk [vmem:[%s5336_s13 + $0x2ec] sm:$0xf] %vm3607_vm0, %v4511_v45  ;;  %v2389_v53 = vmax.f32 %v1553_v47, 0.0  ;;  %v2517_v54 = vmax.f32 %v2065_v48, 0.0  ;;  %v1545_v55 = vadd.f32 %v5631_v61, %v1544_v51  ;;  %v2057_v56 = vadd.f32 %v5631_v61, %v2056_v52 }
 0x168   : > { %v4381_v57 = vpack.c.bf16 %v2384_v49, %v2384_v49  ;;  %v4509_v58 = vpack.c.bf16 %v2512_v50, %v2512_v50  ;;  %v4795_v59 = vpop.f32.mrf.mxu0  ;;  %v4923_v60 = vpop.f32.mrf.mxu1 }
 0x169   : > { %v4386_v62 = vpack.c.bf16 %v2389_v53, %v2389_v53  ;;  %v4514_v46 = vpack.c.bf16 %v2517_v54, %v2517_v54  ;;  %v2387_v63 = vmax.f32 %v1545_v55, 0.0  ;;  %v2515_v0 = vmax.f32 %v2057_v56, 0.0 }
 0x16a   : > { %3665 = vst.msk [vmem:[%s5336_s13 + $0xe4] sm:$0xf] %vm3607_vm0, %v4381_v57  ;;  %3793 = vst.msk [vmem:[%s5336_s13 + $0x2e4] sm:$0xf] %vm3607_vm0, %v4509_v58  ;;  %v1556_v1 = vadd.f32 %v5631_v61, %v4795_v59  ;;  %v2068_v2 = vadd.f32 %v5631_v61, %v4923_v60  ;;  %v1547_v3 = vpop.f32.mrf.mxu0  ;;  %v2059_v4 = vpop.f32.mrf.mxu1 }
 0x16b   : > { %3670 = vst.msk [vmem:[%s5336_s13 + $0xf8] sm:$0xf] %vm3607_vm0, %v4386_v62  ;;  %3798 = vst.msk [vmem:[%s5336_s13 + $0x2f8] sm:$0xf] %vm3607_vm0, %v4514_v46  ;;  %v4384_v5 = vpack.c.bf16 %v2387_v63, %v2387_v63  ;;  %v4512_v6 = vpack.c.bf16 %v2515_v0, %v2515_v0  ;;  %v1548_v7 = vadd.f32 %v5631_v61, %v1547_v3 }
 0x16c   : > { %v2060_v8 = vadd.f32 %v5631_v61, %v2059_v4  ;;  %v2390_v9 = vmax.f32 %v1556_v1, 0.0  ;;  %v2518_v10 = vmax.f32 %v2068_v2, 0.0  ;;  %v4798_v11 = vpop.f32.mrf.mxu0  ;;  %v4926_v12 = vpop.f32.mrf.mxu1 }
 0x16d   : > { %3668 = vst.msk [vmem:[%s5336_s13 + $0xf0] sm:$0xf] %vm3607_vm0, %v4384_v5  ;;  %3796 = vst.msk [vmem:[%s5336_s13 + $0x2f0] sm:$0xf] %vm3607_vm0, %v4512_v6  ;;  %v2388_v13 = vmax.f32 %v1548_v7, 0.0  ;;  %v1569_v15 = vadd.f32 %v5631_v61, %v4798_v11  ;;  %v2081_v16 = vadd.f32 %v5631_v61, %v4926_v12 }
 0x16e   : > { %v2516_v14 = vmax.f32 %v2060_v8, 0.0  ;;  %v4387_v17 = vpack.c.bf16 %v2390_v9, %v2390_v9  ;;  %v4515_v18 = vpack.c.bf16 %v2518_v10, %v2518_v10  ;;  %v1560_v19 = vpop.f32.mrf.mxu0  ;;  %v2072_v20 = vpop.f32.mrf.mxu1 }
 0x16f   : > { %v4385_v21 = vpack.c.bf16 %v2388_v13, %v2388_v13  ;;  %v2393_v23 = vmax.f32 %v1569_v15, 0.0  ;;  %v2521_v24 = vmax.f32 %v2081_v16, 0.0  ;;  %v1561_v25 = vadd.f32 %v5631_v61, %v1560_v19 }
 0x170   : > { %v4513_v22 = vpack.c.bf16 %v2516_v14, %v2516_v14  ;;  %3671 = vst.msk [vmem:[%s5336_s13 + $0xfc] sm:$0xf] %vm3607_vm0, %v4387_v17  ;;  %3799 = vst.msk [vmem:[%s5336_s13 + $0x2fc] sm:$0xf] %vm3607_vm0, %v4515_v18  ;;  %v2073_v26 = vadd.f32 %v5631_v61, %v2072_v20  ;;  %v4799_v27 = vpop.f32.mrf.mxu0  ;;  %v4927_v28 = vpop.f32.mrf.mxu1 }
 0x171   : > { %3669 = vst.msk [vmem:[%s5336_s13 + $0xf4] sm:$0xf] %vm3607_vm0, %v4385_v21  ;;  %v4390_v29 = vpack.c.bf16 %v2393_v23, %v2393_v23  ;;  %v4518_v30 = vpack.c.bf16 %v2521_v24, %v2521_v24  ;;  %v1572_v31 = vadd.f32 %v5631_v61, %v4799_v27  ;;  %v2084_v32 = vadd.f32 %v5631_v61, %v4927_v28 }
 0x172   : > { %3797 = vst.msk [vmem:[%s5336_s13 + $0x2f4] sm:$0xf] %vm3607_vm0, %v4513_v22  ;;  %v2391_v33 = vmax.f32 %v1561_v25, 0.0  ;;  %v2519_v34 = vmax.f32 %v2073_v26, 0.0  ;;  %v1563_v35 = vpop.f32.mrf.mxu0  ;;  %v2075_v36 = vpop.f32.mrf.mxu1 }
 0x173   : > { %3674 = vst.msk [vmem:[%s5336_s13 + $0x108] sm:$0xf] %vm3607_vm0, %v4390_v29  ;;  %3802 = vst.msk [vmem:[%s5336_s13 + $0x308] sm:$0xf] %vm3607_vm0, %v4518_v30  ;;  %v2394_v37 = vmax.f32 %v1572_v31, 0.0  ;;  %v2522_v38 = vmax.f32 %v2084_v32, 0.0  ;;  %v1564_v39 = vadd.f32 %v5631_v61, %v1563_v35  ;;  %v2076_v40 = vadd.f32 %v5631_v61, %v2075_v36 }
 0x174   : > { %v4388_v41 = vpack.c.bf16 %v2391_v33, %v2391_v33  ;;  %v4516_v42 = vpack.c.bf16 %v2519_v34, %v2519_v34  ;;  %v4802_v43 = vpop.f32.mrf.mxu0  ;;  %v4930_v44 = vpop.f32.mrf.mxu1 }
 0x175   : > { %v4391_v45 = vpack.c.bf16 %v2394_v37, %v2394_v37  ;;  %v4519_v47 = vpack.c.bf16 %v2522_v38, %v2522_v38  ;;  %v2392_v48 = vmax.f32 %v1564_v39, 0.0  ;;  %v2520_v49 = vmax.f32 %v2076_v40, 0.0 }
 0x176   : > { %3672 = vst.msk [vmem:[%s5336_s13 + $0x100] sm:$0xf] %vm3607_vm0, %v4388_v41  ;;  %3800 = vst.msk [vmem:[%s5336_s13 + $0x300] sm:$0xf] %vm3607_vm0, %v4516_v42  ;;  %v1585_v50 = vadd.f32 %v5631_v61, %v4802_v43  ;;  %v2097_v51 = vadd.f32 %v5631_v61, %v4930_v44  ;;  %v1576_v52 = vpop.f32.mrf.mxu0  ;;  %v2088_v53 = vpop.f32.mrf.mxu1 }
 0x177   : > { %3675 = vst.msk [vmem:[%s5336_s13 + $0x10c] sm:$0xf] %vm3607_vm0, %v4391_v45  ;;  %3803 = vst.msk [vmem:[%s5336_s13 + $0x30c] sm:$0xf] %vm3607_vm0, %v4519_v47  ;;  %v4389_v54 = vpack.c.bf16 %v2392_v48, %v2392_v48  ;;  %v4517_v55 = vpack.c.bf16 %v2520_v49, %v2520_v49  ;;  %v1577_v56 = vadd.f32 %v5631_v61, %v1576_v52 }
 0x178   : > { %v2089_v57 = vadd.f32 %v5631_v61, %v2088_v53  ;;  %v2397_v58 = vmax.f32 %v1585_v50, 0.0  ;;  %v2525_v59 = vmax.f32 %v2097_v51, 0.0  ;;  %v4803_v60 = vpop.f32.mrf.mxu0  ;;  %v4931_v62 = vpop.f32.mrf.mxu1 }
 0x179   : > { %3673 = vst.msk [vmem:[%s5336_s13 + $0x104] sm:$0xf] %vm3607_vm0, %v4389_v54  ;;  %3801 = vst.msk [vmem:[%s5336_s13 + $0x304] sm:$0xf] %vm3607_vm0, %v4517_v55  ;;  %v2395_v46 = vmax.f32 %v1577_v56, 0.0  ;;  %v1588_v0 = vadd.f32 %v5631_v61, %v4803_v60  ;;  %v2100_v1 = vadd.f32 %v5631_v61, %v4931_v62 }
 0x17a   : > { %v2523_v63 = vmax.f32 %v2089_v57, 0.0  ;;  %v4394_v2 = vpack.c.bf16 %v2397_v58, %v2397_v58  ;;  %v4522_v3 = vpack.c.bf16 %v2525_v59, %v2525_v59  ;;  %v1579_v4 = vpop.f32.mrf.mxu0  ;;  %v2091_v5 = vpop.f32.mrf.mxu1 }
 0x17b   : > { %v4392_v6 = vpack.c.bf16 %v2395_v46, %v2395_v46  ;;  %v2398_v8 = vmax.f32 %v1588_v0, 0.0  ;;  %v2526_v9 = vmax.f32 %v2100_v1, 0.0  ;;  %v1580_v10 = vadd.f32 %v5631_v61, %v1579_v4 }
 0x17c   : > { %v4520_v7 = vpack.c.bf16 %v2523_v63, %v2523_v63  ;;  %3678 = vst.msk [vmem:[%s5336_s13 + $0x118] sm:$0xf] %vm3607_vm0, %v4394_v2  ;;  %3806 = vst.msk [vmem:[%s5336_s13 + $0x318] sm:$0xf] %vm3607_vm0, %v4522_v3  ;;  %v2092_v11 = vadd.f32 %v5631_v61, %v2091_v5  ;;  %v4806_v12 = vpop.f32.mrf.mxu0  ;;  %v4934_v13 = vpop.f32.mrf.mxu1 }
 0x17d   : > { %3676 = vst.msk [vmem:[%s5336_s13 + $0x110] sm:$0xf] %vm3607_vm0, %v4392_v6  ;;  %v4395_v14 = vpack.c.bf16 %v2398_v8, %v2398_v8  ;;  %v4523_v15 = vpack.c.bf16 %v2526_v9, %v2526_v9  ;;  %v1601_v16 = vadd.f32 %v5631_v61, %v4806_v12  ;;  %v2113_v17 = vadd.f32 %v5631_v61, %v4934_v13 }
 0x17e   : > { %3804 = vst.msk [vmem:[%s5336_s13 + $0x310] sm:$0xf] %vm3607_vm0, %v4520_v7  ;;  %v2396_v18 = vmax.f32 %v1580_v10, 0.0  ;;  %v2524_v19 = vmax.f32 %v2092_v11, 0.0  ;;  %v1592_v20 = vpop.f32.mrf.mxu0  ;;  %v2104_v21 = vpop.f32.mrf.mxu1 }
 0x17f   : > { %3679 = vst.msk [vmem:[%s5336_s13 + $0x11c] sm:$0xf] %vm3607_vm0, %v4395_v14  ;;  %3807 = vst.msk [vmem:[%s5336_s13 + $0x31c] sm:$0xf] %vm3607_vm0, %v4523_v15  ;;  %v2401_v22 = vmax.f32 %v1601_v16, 0.0  ;;  %v2529_v23 = vmax.f32 %v2113_v17, 0.0  ;;  %v1593_v24 = vadd.f32 %v5631_v61, %v1592_v20  ;;  %v2105_v25 = vadd.f32 %v5631_v61, %v2104_v21 }
 0x180   : > { %v4393_v26 = vpack.c.bf16 %v2396_v18, %v2396_v18  ;;  %v4521_v27 = vpack.c.bf16 %v2524_v19, %v2524_v19  ;;  %v4807_v28 = vpop.f32.mrf.mxu0  ;;  %v4935_v29 = vpop.f32.mrf.mxu1 }
 0x181   : > { %v4398_v30 = vpack.c.bf16 %v2401_v22, %v2401_v22  ;;  %v4526_v31 = vpack.c.bf16 %v2529_v23, %v2529_v23  ;;  %v2399_v32 = vmax.f32 %v1593_v24, 0.0  ;;  %v2527_v33 = vmax.f32 %v2105_v25, 0.0 }
 0x182   : > { %3677 = vst.msk [vmem:[%s5336_s13 + $0x114] sm:$0xf] %vm3607_vm0, %v4393_v26  ;;  %3805 = vst.msk [vmem:[%s5336_s13 + $0x314] sm:$0xf] %vm3607_vm0, %v4521_v27  ;;  %v1604_v34 = vadd.f32 %v5631_v61, %v4807_v28  ;;  %v2116_v35 = vadd.f32 %v5631_v61, %v4935_v29  ;;  %v1595_v36 = vpop.f32.mrf.mxu0  ;;  %v2107_v37 = vpop.f32.mrf.mxu1 }
 0x183   : > { %3682 = vst.msk [vmem:[%s5336_s13 + $0x128] sm:$0xf] %vm3607_vm0, %v4398_v30  ;;  %3810 = vst.msk [vmem:[%s5336_s13 + $0x328] sm:$0xf] %vm3607_vm0, %v4526_v31  ;;  %v4396_v38 = vpack.c.bf16 %v2399_v32, %v2399_v32  ;;  %v4524_v39 = vpack.c.bf16 %v2527_v33, %v2527_v33  ;;  %v1596_v40 = vadd.f32 %v5631_v61, %v1595_v36 }
 0x184   : > { %v2108_v41 = vadd.f32 %v5631_v61, %v2107_v37  ;;  %v2402_v42 = vmax.f32 %v1604_v34, 0.0  ;;  %v2530_v43 = vmax.f32 %v2116_v35, 0.0  ;;  %v4810_v44 = vpop.f32.mrf.mxu0  ;;  %v4938_v45 = vpop.f32.mrf.mxu1 }
 0x185   : > { %3680 = vst.msk [vmem:[%s5336_s13 + $0x120] sm:$0xf] %vm3607_vm0, %v4396_v38  ;;  %3808 = vst.msk [vmem:[%s5336_s13 + $0x320] sm:$0xf] %vm3607_vm0, %v4524_v39  ;;  %v2400_v47 = vmax.f32 %v1596_v40, 0.0  ;;  %v1617_v49 = vadd.f32 %v5631_v61, %v4810_v44  ;;  %v2129_v50 = vadd.f32 %v5631_v61, %v4938_v45 }
 0x186   : > { %v2528_v48 = vmax.f32 %v2108_v41, 0.0  ;;  %v4399_v51 = vpack.c.bf16 %v2402_v42, %v2402_v42  ;;  %v4527_v52 = vpack.c.bf16 %v2530_v43, %v2530_v43  ;;  %v1608_v53 = vpop.f32.mrf.mxu0  ;;  %v2120_v54 = vpop.f32.mrf.mxu1 }
 0x187   : > { %v4397_v55 = vpack.c.bf16 %v2400_v47, %v2400_v47  ;;  %v2405_v57 = vmax.f32 %v1617_v49, 0.0  ;;  %v2533_v58 = vmax.f32 %v2129_v50, 0.0  ;;  %v1609_v59 = vadd.f32 %v5631_v61, %v1608_v53 }
 0x188   : > { %v4525_v56 = vpack.c.bf16 %v2528_v48, %v2528_v48  ;;  %3683 = vst.msk [vmem:[%s5336_s13 + $0x12c] sm:$0xf] %vm3607_vm0, %v4399_v51  ;;  %3811 = vst.msk [vmem:[%s5336_s13 + $0x32c] sm:$0xf] %vm3607_vm0, %v4527_v52  ;;  %v2121_v60 = vadd.f32 %v5631_v61, %v2120_v54  ;;  %v4811_v62 = vpop.f32.mrf.mxu0  ;;  %v4939_v46 = vpop.f32.mrf.mxu1 }
 0x189   : > { %3681 = vst.msk [vmem:[%s5336_s13 + $0x124] sm:$0xf] %vm3607_vm0, %v4397_v55  ;;  %v4402_v63 = vpack.c.bf16 %v2405_v57, %v2405_v57  ;;  %v4530_v0 = vpack.c.bf16 %v2533_v58, %v2533_v58  ;;  %v1620_v1 = vadd.f32 %v5631_v61, %v4811_v62  ;;  %v2132_v2 = vadd.f32 %v5631_v61, %v4939_v46 }
 0x18a   : > { %3809 = vst.msk [vmem:[%s5336_s13 + $0x324] sm:$0xf] %vm3607_vm0, %v4525_v56  ;;  %v2403_v3 = vmax.f32 %v1609_v59, 0.0  ;;  %v2531_v4 = vmax.f32 %v2121_v60, 0.0  ;;  %v1611_v5 = vpop.f32.mrf.mxu0  ;;  %v2123_v6 = vpop.f32.mrf.mxu1 }
 0x18b   : > { %3686 = vst.msk [vmem:[%s5336_s13 + $0x138] sm:$0xf] %vm3607_vm0, %v4402_v63  ;;  %3814 = vst.msk [vmem:[%s5336_s13 + $0x338] sm:$0xf] %vm3607_vm0, %v4530_v0  ;;  %v2406_v7 = vmax.f32 %v1620_v1, 0.0  ;;  %v2534_v8 = vmax.f32 %v2132_v2, 0.0  ;;  %v1612_v9 = vadd.f32 %v5631_v61, %v1611_v5  ;;  %v2124_v10 = vadd.f32 %v5631_v61, %v2123_v6 }
 0x18c   : > { %v4400_v11 = vpack.c.bf16 %v2403_v3, %v2403_v3  ;;  %v4528_v12 = vpack.c.bf16 %v2531_v4, %v2531_v4  ;;  %v4814_v13 = vpop.f32.mrf.mxu0  ;;  %v4942_v14 = vpop.f32.mrf.mxu1 }
 0x18d   : > { %v4403_v15 = vpack.c.bf16 %v2406_v7, %v2406_v7  ;;  %v4531_v16 = vpack.c.bf16 %v2534_v8, %v2534_v8  ;;  %v2404_v17 = vmax.f32 %v1612_v9, 0.0  ;;  %v2532_v18 = vmax.f32 %v2124_v10, 0.0 }
 0x18e   : > { %3684 = vst.msk [vmem:[%s5336_s13 + $0x130] sm:$0xf] %vm3607_vm0, %v4400_v11  ;;  %3812 = vst.msk [vmem:[%s5336_s13 + $0x330] sm:$0xf] %vm3607_vm0, %v4528_v12  ;;  %v1633_v19 = vadd.f32 %v5631_v61, %v4814_v13  ;;  %v2145_v20 = vadd.f32 %v5631_v61, %v4942_v14  ;;  %v1624_v21 = vpop.f32.mrf.mxu0  ;;  %v2136_v22 = vpop.f32.mrf.mxu1 }
 0x18f   : > { %3687 = vst.msk [vmem:[%s5336_s13 + $0x13c] sm:$0xf] %vm3607_vm0, %v4403_v15  ;;  %3815 = vst.msk [vmem:[%s5336_s13 + $0x33c] sm:$0xf] %vm3607_vm0, %v4531_v16  ;;  %v4401_v23 = vpack.c.bf16 %v2404_v17, %v2404_v17  ;;  %v4529_v24 = vpack.c.bf16 %v2532_v18, %v2532_v18  ;;  %v1625_v25 = vadd.f32 %v5631_v61, %v1624_v21 }
 0x190   : > { %v2137_v26 = vadd.f32 %v5631_v61, %v2136_v22  ;;  %v2409_v27 = vmax.f32 %v1633_v19, 0.0  ;;  %v2537_v28 = vmax.f32 %v2145_v20, 0.0  ;;  %v4815_v29 = vpop.f32.mrf.mxu0  ;;  %v4943_v30 = vpop.f32.mrf.mxu1 }
 0x191   : > { %3685 = vst.msk [vmem:[%s5336_s13 + $0x134] sm:$0xf] %vm3607_vm0, %v4401_v23  ;;  %3813 = vst.msk [vmem:[%s5336_s13 + $0x334] sm:$0xf] %vm3607_vm0, %v4529_v24  ;;  %v2407_v31 = vmax.f32 %v1625_v25, 0.0  ;;  %v1636_v33 = vadd.f32 %v5631_v61, %v4815_v29  ;;  %v2148_v34 = vadd.f32 %v5631_v61, %v4943_v30 }
 0x192   : > { %v2535_v32 = vmax.f32 %v2137_v26, 0.0  ;;  %v4406_v35 = vpack.c.bf16 %v2409_v27, %v2409_v27  ;;  %v4534_v36 = vpack.c.bf16 %v2537_v28, %v2537_v28  ;;  %v1627_v37 = vpop.f32.mrf.mxu0  ;;  %v2139_v38 = vpop.f32.mrf.mxu1 }
 0x193   : > { %v4404_v39 = vpack.c.bf16 %v2407_v31, %v2407_v31  ;;  %v2410_v41 = vmax.f32 %v1636_v33, 0.0  ;;  %v2538_v42 = vmax.f32 %v2148_v34, 0.0  ;;  %v1628_v43 = vadd.f32 %v5631_v61, %v1627_v37 }
 0x194   : > { %v4532_v40 = vpack.c.bf16 %v2535_v32, %v2535_v32  ;;  %3690 = vst.msk [vmem:[%s5336_s13 + $0x148] sm:$0xf] %vm3607_vm0, %v4406_v35  ;;  %3818 = vst.msk [vmem:[%s5336_s13 + $0x348] sm:$0xf] %vm3607_vm0, %v4534_v36  ;;  %v2140_v44 = vadd.f32 %v5631_v61, %v2139_v38  ;;  %v4818_v45 = vpop.f32.mrf.mxu0  ;;  %v4946_v47 = vpop.f32.mrf.mxu1 }
 0x195   : > { %3688 = vst.msk [vmem:[%s5336_s13 + $0x140] sm:$0xf] %vm3607_vm0, %v4404_v39  ;;  %v4407_v48 = vpack.c.bf16 %v2410_v41, %v2410_v41  ;;  %v4535_v49 = vpack.c.bf16 %v2538_v42, %v2538_v42  ;;  %v1649_v50 = vadd.f32 %v5631_v61, %v4818_v45  ;;  %v2161_v51 = vadd.f32 %v5631_v61, %v4946_v47 }
 0x196   : > { %3816 = vst.msk [vmem:[%s5336_s13 + $0x340] sm:$0xf] %vm3607_vm0, %v4532_v40  ;;  %v2408_v52 = vmax.f32 %v1628_v43, 0.0  ;;  %v2536_v53 = vmax.f32 %v2140_v44, 0.0  ;;  %v1640_v54 = vpop.f32.mrf.mxu0  ;;  %v2152_v55 = vpop.f32.mrf.mxu1 }
 0x197   : > { %3691 = vst.msk [vmem:[%s5336_s13 + $0x14c] sm:$0xf] %vm3607_vm0, %v4407_v48  ;;  %3819 = vst.msk [vmem:[%s5336_s13 + $0x34c] sm:$0xf] %vm3607_vm0, %v4535_v49  ;;  %v2413_v56 = vmax.f32 %v1649_v50, 0.0  ;;  %v2541_v57 = vmax.f32 %v2161_v51, 0.0  ;;  %v1641_v58 = vadd.f32 %v5631_v61, %v1640_v54  ;;  %v2153_v59 = vadd.f32 %v5631_v61, %v2152_v55 }
 0x198   : > { %v4405_v60 = vpack.c.bf16 %v2408_v52, %v2408_v52  ;;  %v4533_v62 = vpack.c.bf16 %v2536_v53, %v2536_v53  ;;  %v4819_v46 = vpop.f32.mrf.mxu0  ;;  %v4947_v63 = vpop.f32.mrf.mxu1 }
 0x199   : > { %v4410_v0 = vpack.c.bf16 %v2413_v56, %v2413_v56  ;;  %v4538_v1 = vpack.c.bf16 %v2541_v57, %v2541_v57  ;;  %v2411_v2 = vmax.f32 %v1641_v58, 0.0  ;;  %v2539_v3 = vmax.f32 %v2153_v59, 0.0 }
 0x19a   : > { %3689 = vst.msk [vmem:[%s5336_s13 + $0x144] sm:$0xf] %vm3607_vm0, %v4405_v60  ;;  %3817 = vst.msk [vmem:[%s5336_s13 + $0x344] sm:$0xf] %vm3607_vm0, %v4533_v62  ;;  %v1652_v4 = vadd.f32 %v5631_v61, %v4819_v46  ;;  %v2164_v5 = vadd.f32 %v5631_v61, %v4947_v63  ;;  %v1643_v6 = vpop.f32.mrf.mxu0  ;;  %v2155_v7 = vpop.f32.mrf.mxu1 }
 0x19b   : > { %3694 = vst.msk [vmem:[%s5336_s13 + $0x158] sm:$0xf] %vm3607_vm0, %v4410_v0  ;;  %3822 = vst.msk [vmem:[%s5336_s13 + $0x358] sm:$0xf] %vm3607_vm0, %v4538_v1  ;;  %v4408_v8 = vpack.c.bf16 %v2411_v2, %v2411_v2  ;;  %v4536_v9 = vpack.c.bf16 %v2539_v3, %v2539_v3  ;;  %v1644_v10 = vadd.f32 %v5631_v61, %v1643_v6 }
 0x19c   : > { %v2156_v11 = vadd.f32 %v5631_v61, %v2155_v7  ;;  %v2414_v12 = vmax.f32 %v1652_v4, 0.0  ;;  %v2542_v13 = vmax.f32 %v2164_v5, 0.0  ;;  %v4822_v14 = vpop.f32.mrf.mxu0  ;;  %v4950_v15 = vpop.f32.mrf.mxu1 }
 0x19d   : > { %3692 = vst.msk [vmem:[%s5336_s13 + $0x150] sm:$0xf] %vm3607_vm0, %v4408_v8  ;;  %3820 = vst.msk [vmem:[%s5336_s13 + $0x350] sm:$0xf] %vm3607_vm0, %v4536_v9  ;;  %v2412_v16 = vmax.f32 %v1644_v10, 0.0  ;;  %v1665_v18 = vadd.f32 %v5631_v61, %v4822_v14  ;;  %v2177_v19 = vadd.f32 %v5631_v61, %v4950_v15 }
 0x19e   : > { %v2540_v17 = vmax.f32 %v2156_v11, 0.0  ;;  %v4411_v20 = vpack.c.bf16 %v2414_v12, %v2414_v12  ;;  %v4539_v21 = vpack.c.bf16 %v2542_v13, %v2542_v13  ;;  %v1656_v22 = vpop.f32.mrf.mxu0  ;;  %v2168_v23 = vpop.f32.mrf.mxu1 }
 0x19f   : > { %v4409_v24 = vpack.c.bf16 %v2412_v16, %v2412_v16  ;;  %v2417_v26 = vmax.f32 %v1665_v18, 0.0  ;;  %v2545_v27 = vmax.f32 %v2177_v19, 0.0  ;;  %v1657_v28 = vadd.f32 %v5631_v61, %v1656_v22 }
 0x1a0   : > { %v4537_v25 = vpack.c.bf16 %v2540_v17, %v2540_v17  ;;  %3695 = vst.msk [vmem:[%s5336_s13 + $0x15c] sm:$0xf] %vm3607_vm0, %v4411_v20  ;;  %3823 = vst.msk [vmem:[%s5336_s13 + $0x35c] sm:$0xf] %vm3607_vm0, %v4539_v21  ;;  %v2169_v29 = vadd.f32 %v5631_v61, %v2168_v23  ;;  %v4823_v30 = vpop.f32.mrf.mxu0  ;;  %v4951_v31 = vpop.f32.mrf.mxu1 }
 0x1a1   : > { %3693 = vst.msk [vmem:[%s5336_s13 + $0x154] sm:$0xf] %vm3607_vm0, %v4409_v24  ;;  %v4414_v32 = vpack.c.bf16 %v2417_v26, %v2417_v26  ;;  %v4542_v33 = vpack.c.bf16 %v2545_v27, %v2545_v27  ;;  %v1668_v34 = vadd.f32 %v5631_v61, %v4823_v30  ;;  %v2180_v35 = vadd.f32 %v5631_v61, %v4951_v31 }
 0x1a2   : > { %3821 = vst.msk [vmem:[%s5336_s13 + $0x354] sm:$0xf] %vm3607_vm0, %v4537_v25  ;;  %v2415_v36 = vmax.f32 %v1657_v28, 0.0  ;;  %v2543_v37 = vmax.f32 %v2169_v29, 0.0  ;;  %v1659_v38 = vpop.f32.mrf.mxu0  ;;  %v2171_v39 = vpop.f32.mrf.mxu1 }
 0x1a3   : > { %3698 = vst.msk [vmem:[%s5336_s13 + $0x168] sm:$0xf] %vm3607_vm0, %v4414_v32  ;;  %3826 = vst.msk [vmem:[%s5336_s13 + $0x368] sm:$0xf] %vm3607_vm0, %v4542_v33  ;;  %v2418_v40 = vmax.f32 %v1668_v34, 0.0  ;;  %v2546_v41 = vmax.f32 %v2180_v35, 0.0  ;;  %v1660_v42 = vadd.f32 %v5631_v61, %v1659_v38  ;;  %v2172_v43 = vadd.f32 %v5631_v61, %v2171_v39 }
 0x1a4   : > { %v4412_v44 = vpack.c.bf16 %v2415_v36, %v2415_v36  ;;  %v4540_v45 = vpack.c.bf16 %v2543_v37, %v2543_v37  ;;  %v4826_v47 = vpop.f32.mrf.mxu0  ;;  %v4954_v48 = vpop.f32.mrf.mxu1  ;;  %v5948_v37 = vld [vmem:[%s6143_s2] ss:$0 sm:$0xff] }
 0x1a5   : > { %v4415_v49 = vpack.c.bf16 %v2418_v40, %v2418_v40  ;;  %v4543_v50 = vpack.c.bf16 %v2546_v41, %v2546_v41  ;;  %v2416_v51 = vmax.f32 %v1660_v42, 0.0  ;;  %v2544_v52 = vmax.f32 %v2172_v43, 0.0 }
 0x1a6   : > { %3696 = vst.msk [vmem:[%s5336_s13 + $0x160] sm:$0xf] %vm3607_vm0, %v4412_v44  ;;  %3824 = vst.msk [vmem:[%s5336_s13 + $0x360] sm:$0xf] %vm3607_vm0, %v4540_v45  ;;  %v1681_v53 = vadd.f32 %v5631_v61, %v4826_v47  ;;  %v2193_v54 = vadd.f32 %v5631_v61, %v4954_v48  ;;  %v1672_v55 = vpop.f32.mrf.mxu0  ;;  %v2184_v56 = vpop.f32.mrf.mxu1 }
 0x1a7   : > { %3699 = vst.msk [vmem:[%s5336_s13 + $0x16c] sm:$0xf] %vm3607_vm0, %v4415_v49  ;;  %3827 = vst.msk [vmem:[%s5336_s13 + $0x36c] sm:$0xf] %vm3607_vm0, %v4543_v50  ;;  %v4413_v57 = vpack.c.bf16 %v2416_v51, %v2416_v51  ;;  %v4541_v58 = vpack.c.bf16 %v2544_v52, %v2544_v52  ;;  %v1673_v59 = vadd.f32 %v5631_v61, %v1672_v55 }
 0x1a8   : > { %v2185_v60 = vadd.f32 %v5631_v61, %v2184_v56  ;;  %v2421_v62 = vmax.f32 %v1681_v53, 0.0  ;;  %v2549_v46 = vmax.f32 %v2193_v54, 0.0  ;;  %v4827_v63 = vpop.f32.mrf.mxu0  ;;  %v4955_v0 = vpop.f32.mrf.mxu1 }
 0x1a9   : > { %3697 = vst.msk [vmem:[%s5336_s13 + $0x164] sm:$0xf] %vm3607_vm0, %v4413_v57  ;;  %3825 = vst.msk [vmem:[%s5336_s13 + $0x364] sm:$0xf] %vm3607_vm0, %v4541_v58  ;;  %v2419_v1 = vmax.f32 %v1673_v59, 0.0  ;;  %v1684_v3 = vadd.f32 %v5631_v61, %v4827_v63  ;;  %v2196_v4 = vadd.f32 %v5631_v61, %v4955_v0 }
 0x1aa   : > { %v2547_v2 = vmax.f32 %v2185_v60, 0.0  ;;  %v4418_v5 = vpack.c.bf16 %v2421_v62, %v2421_v62  ;;  %v4546_v6 = vpack.c.bf16 %v2549_v46, %v2549_v46  ;;  %v1675_v7 = vpop.f32.mrf.mxu0  ;;  %v2187_v8 = vpop.f32.mrf.mxu1 }
 0x1ab   : > { %v4416_v9 = vpack.c.bf16 %v2419_v1, %v2419_v1  ;;  %v2422_v11 = vmax.f32 %v1684_v3, 0.0  ;;  %v2550_v12 = vmax.f32 %v2196_v4, 0.0  ;;  %v1676_v13 = vadd.f32 %v5631_v61, %v1675_v7 }
 0x1ac   : > { %v4544_v10 = vpack.c.bf16 %v2547_v2, %v2547_v2  ;;  %3702 = vst.msk [vmem:[%s5336_s13 + $0x178] sm:$0xf] %vm3607_vm0, %v4418_v5  ;;  %3830 = vst.msk [vmem:[%s5336_s13 + $0x378] sm:$0xf] %vm3607_vm0, %v4546_v6  ;;  %v2188_v14 = vadd.f32 %v5631_v61, %v2187_v8  ;;  %v4830_v15 = vpop.f32.mrf.mxu0  ;;  %v4958_v16 = vpop.f32.mrf.mxu1 }
 0x1ad   : > { %3700 = vst.msk [vmem:[%s5336_s13 + $0x170] sm:$0xf] %vm3607_vm0, %v4416_v9  ;;  %v4419_v17 = vpack.c.bf16 %v2422_v11, %v2422_v11  ;;  %v4547_v18 = vpack.c.bf16 %v2550_v12, %v2550_v12  ;;  %v1697_v19 = vadd.f32 %v5631_v61, %v4830_v15  ;;  %v2209_v20 = vadd.f32 %v5631_v61, %v4958_v16 }
 0x1ae   : > { %3828 = vst.msk [vmem:[%s5336_s13 + $0x370] sm:$0xf] %vm3607_vm0, %v4544_v10  ;;  %v2420_v21 = vmax.f32 %v1676_v13, 0.0  ;;  %v2548_v22 = vmax.f32 %v2188_v14, 0.0  ;;  %v1688_v23 = vpop.f32.mrf.mxu0  ;;  %v2200_v24 = vpop.f32.mrf.mxu1 }
 0x1af   : > { %3703 = vst.msk [vmem:[%s5336_s13 + $0x17c] sm:$0xf] %vm3607_vm0, %v4419_v17  ;;  %3831 = vst.msk [vmem:[%s5336_s13 + $0x37c] sm:$0xf] %vm3607_vm0, %v4547_v18  ;;  %v2425_v25 = vmax.f32 %v1697_v19, 0.0  ;;  %v2553_v26 = vmax.f32 %v2209_v20, 0.0  ;;  %v1689_v27 = vadd.f32 %v5631_v61, %v1688_v23  ;;  %v2201_v28 = vadd.f32 %v5631_v61, %v2200_v24 }
 0x1b0   : > { %v4417_v29 = vpack.c.bf16 %v2420_v21, %v2420_v21  ;;  %v4545_v30 = vpack.c.bf16 %v2548_v22, %v2548_v22  ;;  %v4831_v31 = vpop.f32.mrf.mxu0  ;;  %v4959_v32 = vpop.f32.mrf.mxu1 }
 0x1b1   : > { %v4422_v33 = vpack.c.bf16 %v2425_v25, %v2425_v25  ;;  %v4550_v34 = vpack.c.bf16 %v2553_v26, %v2553_v26  ;;  %v2423_v35 = vmax.f32 %v1689_v27, 0.0  ;;  %v2551_v36 = vmax.f32 %v2201_v28, 0.0 }
 0x1b2   : > { %3701 = vst.msk [vmem:[%s5336_s13 + $0x174] sm:$0xf] %vm3607_vm0, %v4417_v29  ;;  %3829 = vst.msk [vmem:[%s5336_s13 + $0x374] sm:$0xf] %vm3607_vm0, %v4545_v30  ;;  %v1700_v61 = vadd.f32 %v5948_v37, %v4831_v31  ;;  %v2212_v38 = vadd.f32 %v5948_v37, %v4959_v32  ;;  %v1691_v39 = vpop.f32.mrf.mxu0  ;;  %v2203_v40 = vpop.f32.mrf.mxu1 }
 0x1b3   : > { %3706 = vst.msk [vmem:[%s5336_s13 + $0x188] sm:$0xf] %vm3607_vm0, %v4422_v33  ;;  %3834 = vst.msk [vmem:[%s5336_s13 + $0x388] sm:$0xf] %vm3607_vm0, %v4550_v34  ;;  %v4420_v41 = vpack.c.bf16 %v2423_v35, %v2423_v35  ;;  %v4548_v42 = vpack.c.bf16 %v2551_v36, %v2551_v36  ;;  %v1692_v43 = vadd.f32 %v5948_v37, %v1691_v39 }
 0x1b4   : > { %v2204_v44 = vadd.f32 %v5948_v37, %v2203_v40  ;;  %v2426_v45 = vmax.f32 %v1700_v61, 0.0  ;;  %v2554_v47 = vmax.f32 %v2212_v38, 0.0  ;;  %v4834_v48 = vpop.f32.mrf.mxu0  ;;  %v4962_v49 = vpop.f32.mrf.mxu1 }
 0x1b5   : > { %3704 = vst.msk [vmem:[%s5336_s13 + $0x180] sm:$0xf] %vm3607_vm0, %v4420_v41  ;;  %3832 = vst.msk [vmem:[%s5336_s13 + $0x380] sm:$0xf] %vm3607_vm0, %v4548_v42  ;;  %v2424_v50 = vmax.f32 %v1692_v43, 0.0  ;;  %v1713_v52 = vadd.f32 %v5948_v37, %v4834_v48  ;;  %v2225_v53 = vadd.f32 %v5948_v37, %v4962_v49 }
 0x1b6   : > { %v2552_v51 = vmax.f32 %v2204_v44, 0.0  ;;  %v4423_v54 = vpack.c.bf16 %v2426_v45, %v2426_v45  ;;  %v4551_v55 = vpack.c.bf16 %v2554_v47, %v2554_v47  ;;  %v1704_v56 = vpop.f32.mrf.mxu0  ;;  %v2216_v57 = vpop.f32.mrf.mxu1 }
 0x1b7   : > { %v4421_v58 = vpack.c.bf16 %v2424_v50, %v2424_v50  ;;  %v2429_v60 = vmax.f32 %v1713_v52, 0.0  ;;  %v2557_v62 = vmax.f32 %v2225_v53, 0.0  ;;  %v1705_v46 = vadd.f32 %v5948_v37, %v1704_v56 }
 0x1b8   : > { %v4549_v59 = vpack.c.bf16 %v2552_v51, %v2552_v51  ;;  %3707 = vst.msk [vmem:[%s5336_s13 + $0x18c] sm:$0xf] %vm3607_vm0, %v4423_v54  ;;  %3835 = vst.msk [vmem:[%s5336_s13 + $0x38c] sm:$0xf] %vm3607_vm0, %v4551_v55  ;;  %v2217_v63 = vadd.f32 %v5948_v37, %v2216_v57  ;;  %v4835_v0 = vpop.f32.mrf.mxu0  ;;  %v4963_v1 = vpop.f32.mrf.mxu1 }
 0x1b9   : > { %3705 = vst.msk [vmem:[%s5336_s13 + $0x184] sm:$0xf] %vm3607_vm0, %v4421_v58  ;;  %v4426_v2 = vpack.c.bf16 %v2429_v60, %v2429_v60  ;;  %v4554_v3 = vpack.c.bf16 %v2557_v62, %v2557_v62  ;;  %v1716_v4 = vadd.f32 %v5948_v37, %v4835_v0  ;;  %v2228_v5 = vadd.f32 %v5948_v37, %v4963_v1 }
 0x1ba   : > { %3833 = vst.msk [vmem:[%s5336_s13 + $0x384] sm:$0xf] %vm3607_vm0, %v4549_v59  ;;  %v2427_v6 = vmax.f32 %v1705_v46, 0.0  ;;  %v2555_v7 = vmax.f32 %v2217_v63, 0.0  ;;  %v1707_v8 = vpop.f32.mrf.mxu0  ;;  %v2219_v9 = vpop.f32.mrf.mxu1 }
 0x1bb   : > { %3710 = vst.msk [vmem:[%s5336_s13 + $0x198] sm:$0xf] %vm3607_vm0, %v4426_v2  ;;  %3838 = vst.msk [vmem:[%s5336_s13 + $0x398] sm:$0xf] %vm3607_vm0, %v4554_v3  ;;  %v2430_v10 = vmax.f32 %v1716_v4, 0.0  ;;  %v2558_v11 = vmax.f32 %v2228_v5, 0.0  ;;  %v1708_v12 = vadd.f32 %v5948_v37, %v1707_v8  ;;  %v2220_v13 = vadd.f32 %v5948_v37, %v2219_v9 }
 0x1bc   : > { %v4424_v14 = vpack.c.bf16 %v2427_v6, %v2427_v6  ;;  %v4552_v15 = vpack.c.bf16 %v2555_v7, %v2555_v7  ;;  %v4838_v16 = vpop.f32.mrf.mxu0  ;;  %v4966_v17 = vpop.f32.mrf.mxu1 }
 0x1bd   : > { %v4427_v18 = vpack.c.bf16 %v2430_v10, %v2430_v10  ;;  %v4555_v19 = vpack.c.bf16 %v2558_v11, %v2558_v11  ;;  %v2428_v20 = vmax.f32 %v1708_v12, 0.0  ;;  %v2556_v21 = vmax.f32 %v2220_v13, 0.0 }
 0x1be   : > { %3708 = vst.msk [vmem:[%s5336_s13 + $0x190] sm:$0xf] %vm3607_vm0, %v4424_v14  ;;  %3836 = vst.msk [vmem:[%s5336_s13 + $0x390] sm:$0xf] %vm3607_vm0, %v4552_v15  ;;  %v1729_v22 = vadd.f32 %v5948_v37, %v4838_v16  ;;  %v2241_v23 = vadd.f32 %v5948_v37, %v4966_v17  ;;  %v1720_v24 = vpop.f32.mrf.mxu0  ;;  %v2232_v25 = vpop.f32.mrf.mxu1 }
 0x1bf   : > { %3711 = vst.msk [vmem:[%s5336_s13 + $0x19c] sm:$0xf] %vm3607_vm0, %v4427_v18  ;;  %3839 = vst.msk [vmem:[%s5336_s13 + $0x39c] sm:$0xf] %vm3607_vm0, %v4555_v19  ;;  %v4425_v26 = vpack.c.bf16 %v2428_v20, %v2428_v20  ;;  %v4553_v27 = vpack.c.bf16 %v2556_v21, %v2556_v21  ;;  %v1721_v28 = vadd.f32 %v5948_v37, %v1720_v24 }
 0x1c0   : > { %v2233_v29 = vadd.f32 %v5948_v37, %v2232_v25  ;;  %v2433_v30 = vmax.f32 %v1729_v22, 0.0  ;;  %v2561_v31 = vmax.f32 %v2241_v23, 0.0  ;;  %v4839_v32 = vpop.f32.mrf.mxu0  ;;  %v4967_v33 = vpop.f32.mrf.mxu1 }
 0x1c1   : > { %3709 = vst.msk [vmem:[%s5336_s13 + $0x194] sm:$0xf] %vm3607_vm0, %v4425_v26  ;;  %3837 = vst.msk [vmem:[%s5336_s13 + $0x394] sm:$0xf] %vm3607_vm0, %v4553_v27  ;;  %v2431_v34 = vmax.f32 %v1721_v28, 0.0  ;;  %v1732_v36 = vadd.f32 %v5948_v37, %v4839_v32  ;;  %v2244_v61 = vadd.f32 %v5948_v37, %v4967_v33 }
 0x1c2   : > { %v2559_v35 = vmax.f32 %v2233_v29, 0.0  ;;  %v4430_v38 = vpack.c.bf16 %v2433_v30, %v2433_v30  ;;  %v4558_v39 = vpack.c.bf16 %v2561_v31, %v2561_v31  ;;  %v1723_v40 = vpop.f32.mrf.mxu0  ;;  %v2235_v41 = vpop.f32.mrf.mxu1 }
 0x1c3   : > { %v4428_v42 = vpack.c.bf16 %v2431_v34, %v2431_v34  ;;  %v2434_v44 = vmax.f32 %v1732_v36, 0.0  ;;  %v2562_v45 = vmax.f32 %v2244_v61, 0.0  ;;  %v1724_v47 = vadd.f32 %v5948_v37, %v1723_v40 }
 0x1c4   : > { %v4556_v43 = vpack.c.bf16 %v2559_v35, %v2559_v35  ;;  %3714 = vst.msk [vmem:[%s5336_s13 + $0x1a8] sm:$0xf] %vm3607_vm0, %v4430_v38  ;;  %3842 = vst.msk [vmem:[%s5336_s13 + $0x3a8] sm:$0xf] %vm3607_vm0, %v4558_v39  ;;  %v2236_v48 = vadd.f32 %v5948_v37, %v2235_v41  ;;  %v4842_v49 = vpop.f32.mrf.mxu0  ;;  %v4970_v50 = vpop.f32.mrf.mxu1 }
 0x1c5   : > { %3712 = vst.msk [vmem:[%s5336_s13 + $0x1a0] sm:$0xf] %vm3607_vm0, %v4428_v42  ;;  %v4431_v51 = vpack.c.bf16 %v2434_v44, %v2434_v44  ;;  %v4559_v52 = vpack.c.bf16 %v2562_v45, %v2562_v45  ;;  %v1745_v53 = vadd.f32 %v5948_v37, %v4842_v49  ;;  %v2257_v54 = vadd.f32 %v5948_v37, %v4970_v50 }
 0x1c6   : > { %3840 = vst.msk [vmem:[%s5336_s13 + $0x3a0] sm:$0xf] %vm3607_vm0, %v4556_v43  ;;  %v2432_v55 = vmax.f32 %v1724_v47, 0.0  ;;  %v2560_v56 = vmax.f32 %v2236_v48, 0.0  ;;  %v1736_v57 = vpop.f32.mrf.mxu0  ;;  %v2248_v58 = vpop.f32.mrf.mxu1 }
 0x1c7   : > { %3715 = vst.msk [vmem:[%s5336_s13 + $0x1ac] sm:$0xf] %vm3607_vm0, %v4431_v51  ;;  %3843 = vst.msk [vmem:[%s5336_s13 + $0x3ac] sm:$0xf] %vm3607_vm0, %v4559_v52  ;;  %v2437_v59 = vmax.f32 %v1745_v53, 0.0  ;;  %v2565_v60 = vmax.f32 %v2257_v54, 0.0  ;;  %v1737_v62 = vadd.f32 %v5948_v37, %v1736_v57  ;;  %v2249_v46 = vadd.f32 %v5948_v37, %v2248_v58 }
 0x1c8   : > { %v4429_v63 = vpack.c.bf16 %v2432_v55, %v2432_v55  ;;  %v4557_v0 = vpack.c.bf16 %v2560_v56, %v2560_v56  ;;  %v4843_v1 = vpop.f32.mrf.mxu0  ;;  %v4971_v2 = vpop.f32.mrf.mxu1 }
 0x1c9   : > { %v4434_v3 = vpack.c.bf16 %v2437_v59, %v2437_v59  ;;  %v4562_v4 = vpack.c.bf16 %v2565_v60, %v2565_v60  ;;  %v2435_v5 = vmax.f32 %v1737_v62, 0.0  ;;  %v2563_v6 = vmax.f32 %v2249_v46, 0.0 }
 0x1ca   : > { %3713 = vst.msk [vmem:[%s5336_s13 + $0x1a4] sm:$0xf] %vm3607_vm0, %v4429_v63  ;;  %3841 = vst.msk [vmem:[%s5336_s13 + $0x3a4] sm:$0xf] %vm3607_vm0, %v4557_v0  ;;  %v1748_v7 = vadd.f32 %v5948_v37, %v4843_v1  ;;  %v2260_v8 = vadd.f32 %v5948_v37, %v4971_v2  ;;  %v1739_v9 = vpop.f32.mrf.mxu0  ;;  %v2251_v10 = vpop.f32.mrf.mxu1 }
 0x1cb   : > { %3718 = vst.msk [vmem:[%s5336_s13 + $0x1b8] sm:$0xf] %vm3607_vm0, %v4434_v3  ;;  %3846 = vst.msk [vmem:[%s5336_s13 + $0x3b8] sm:$0xf] %vm3607_vm0, %v4562_v4  ;;  %v4432_v11 = vpack.c.bf16 %v2435_v5, %v2435_v5  ;;  %v4560_v12 = vpack.c.bf16 %v2563_v6, %v2563_v6  ;;  %v1740_v13 = vadd.f32 %v5948_v37, %v1739_v9 }
 0x1cc   : > { %v2252_v14 = vadd.f32 %v5948_v37, %v2251_v10  ;;  %v2438_v15 = vmax.f32 %v1748_v7, 0.0  ;;  %v2566_v16 = vmax.f32 %v2260_v8, 0.0  ;;  %v4846_v17 = vpop.f32.mrf.mxu0  ;;  %v4974_v18 = vpop.f32.mrf.mxu1 }
 0x1cd   : > { %3716 = vst.msk [vmem:[%s5336_s13 + $0x1b0] sm:$0xf] %vm3607_vm0, %v4432_v11  ;;  %3844 = vst.msk [vmem:[%s5336_s13 + $0x3b0] sm:$0xf] %vm3607_vm0, %v4560_v12  ;;  %v2436_v19 = vmax.f32 %v1740_v13, 0.0  ;;  %v1761_v21 = vadd.f32 %v5948_v37, %v4846_v17  ;;  %v2273_v22 = vadd.f32 %v5948_v37, %v4974_v18 }
 0x1ce   : > { %v2564_v20 = vmax.f32 %v2252_v14, 0.0  ;;  %v4435_v23 = vpack.c.bf16 %v2438_v15, %v2438_v15  ;;  %v4563_v24 = vpack.c.bf16 %v2566_v16, %v2566_v16  ;;  %v1752_v25 = vpop.f32.mrf.mxu0  ;;  %v2264_v26 = vpop.f32.mrf.mxu1 }
 0x1cf   : > { %v4433_v27 = vpack.c.bf16 %v2436_v19, %v2436_v19  ;;  %v2441_v29 = vmax.f32 %v1761_v21, 0.0  ;;  %v2569_v30 = vmax.f32 %v2273_v22, 0.0  ;;  %v1753_v31 = vadd.f32 %v5948_v37, %v1752_v25 }
 0x1d0   : > { %v4561_v28 = vpack.c.bf16 %v2564_v20, %v2564_v20  ;;  %3719 = vst.msk [vmem:[%s5336_s13 + $0x1bc] sm:$0xf] %vm3607_vm0, %v4435_v23  ;;  %3847 = vst.msk [vmem:[%s5336_s13 + $0x3bc] sm:$0xf] %vm3607_vm0, %v4563_v24  ;;  %v2265_v32 = vadd.f32 %v5948_v37, %v2264_v26  ;;  %v4847_v33 = vpop.f32.mrf.mxu0  ;;  %v4975_v34 = vpop.f32.mrf.mxu1 }
 0x1d1   : > { %3717 = vst.msk [vmem:[%s5336_s13 + $0x1b4] sm:$0xf] %vm3607_vm0, %v4433_v27  ;;  %v4438_v35 = vpack.c.bf16 %v2441_v29, %v2441_v29  ;;  %v4566_v36 = vpack.c.bf16 %v2569_v30, %v2569_v30  ;;  %v1764_v61 = vadd.f32 %v5948_v37, %v4847_v33  ;;  %v2276_v38 = vadd.f32 %v5948_v37, %v4975_v34 }
 0x1d2   : > { %3845 = vst.msk [vmem:[%s5336_s13 + $0x3b4] sm:$0xf] %vm3607_vm0, %v4561_v28  ;;  %v2439_v39 = vmax.f32 %v1753_v31, 0.0  ;;  %v2567_v40 = vmax.f32 %v2265_v32, 0.0  ;;  %v1755_v41 = vpop.f32.mrf.mxu0  ;;  %v2267_v42 = vpop.f32.mrf.mxu1 }
 0x1d3   : > { %3722 = vst.msk [vmem:[%s5336_s13 + $0x1c8] sm:$0xf] %vm3607_vm0, %v4438_v35  ;;  %3850 = vst.msk [vmem:[%s5336_s13 + $0x3c8] sm:$0xf] %vm3607_vm0, %v4566_v36  ;;  %v2442_v43 = vmax.f32 %v1764_v61, 0.0  ;;  %v2570_v44 = vmax.f32 %v2276_v38, 0.0  ;;  %v1756_v45 = vadd.f32 %v5948_v37, %v1755_v41  ;;  %v2268_v47 = vadd.f32 %v5948_v37, %v2267_v42 }
 0x1d4   : > { %v4436_v48 = vpack.c.bf16 %v2439_v39, %v2439_v39  ;;  %v4564_v49 = vpack.c.bf16 %v2567_v40, %v2567_v40  ;;  %v4850_v50 = vpop.f32.mrf.mxu0  ;;  %v4978_v51 = vpop.f32.mrf.mxu1 }
 0x1d5   : > { %v4439_v52 = vpack.c.bf16 %v2442_v43, %v2442_v43  ;;  %v4567_v53 = vpack.c.bf16 %v2570_v44, %v2570_v44  ;;  %v2440_v54 = vmax.f32 %v1756_v45, 0.0  ;;  %v2568_v55 = vmax.f32 %v2268_v47, 0.0 }
 0x1d6   : > { %3720 = vst.msk [vmem:[%s5336_s13 + $0x1c0] sm:$0xf] %vm3607_vm0, %v4436_v48  ;;  %3848 = vst.msk [vmem:[%s5336_s13 + $0x3c0] sm:$0xf] %vm3607_vm0, %v4564_v49  ;;  %v1777_v56 = vadd.f32 %v5948_v37, %v4850_v50  ;;  %v2289_v57 = vadd.f32 %v5948_v37, %v4978_v51  ;;  %v1768_v58 = vpop.f32.mrf.mxu0  ;;  %v2280_v59 = vpop.f32.mrf.mxu1 }
 0x1d7   : > { %3723 = vst.msk [vmem:[%s5336_s13 + $0x1cc] sm:$0xf] %vm3607_vm0, %v4439_v52  ;;  %3851 = vst.msk [vmem:[%s5336_s13 + $0x3cc] sm:$0xf] %vm3607_vm0, %v4567_v53  ;;  %v4437_v60 = vpack.c.bf16 %v2440_v54, %v2440_v54  ;;  %v4565_v62 = vpack.c.bf16 %v2568_v55, %v2568_v55  ;;  %v1769_v46 = vadd.f32 %v5948_v37, %v1768_v58 }
 0x1d8   : > { %v2281_v63 = vadd.f32 %v5948_v37, %v2280_v59  ;;  %v2445_v0 = vmax.f32 %v1777_v56, 0.0  ;;  %v2573_v1 = vmax.f32 %v2289_v57, 0.0  ;;  %v4851_v2 = vpop.f32.mrf.mxu0  ;;  %v4979_v3 = vpop.f32.mrf.mxu1 }
 0x1d9   : > { %3721 = vst.msk [vmem:[%s5336_s13 + $0x1c4] sm:$0xf] %vm3607_vm0, %v4437_v60  ;;  %3849 = vst.msk [vmem:[%s5336_s13 + $0x3c4] sm:$0xf] %vm3607_vm0, %v4565_v62  ;;  %v2443_v4 = vmax.f32 %v1769_v46, 0.0  ;;  %v1780_v6 = vadd.f32 %v5948_v37, %v4851_v2  ;;  %v2292_v7 = vadd.f32 %v5948_v37, %v4979_v3 }
 0x1da   : > { %v2571_v5 = vmax.f32 %v2281_v63, 0.0  ;;  %v4442_v8 = vpack.c.bf16 %v2445_v0, %v2445_v0  ;;  %v4570_v9 = vpack.c.bf16 %v2573_v1, %v2573_v1  ;;  %v1771_v10 = vpop.f32.mrf.mxu0  ;;  %v2283_v11 = vpop.f32.mrf.mxu1 }
 0x1db   : > { %v4440_v12 = vpack.c.bf16 %v2443_v4, %v2443_v4  ;;  %v2446_v14 = vmax.f32 %v1780_v6, 0.0  ;;  %v2574_v15 = vmax.f32 %v2292_v7, 0.0  ;;  %v1772_v16 = vadd.f32 %v5948_v37, %v1771_v10 }
 0x1dc   : > { %v4568_v13 = vpack.c.bf16 %v2571_v5, %v2571_v5  ;;  %3726 = vst.msk [vmem:[%s5336_s13 + $0x1d8] sm:$0xf] %vm3607_vm0, %v4442_v8  ;;  %3854 = vst.msk [vmem:[%s5336_s13 + $0x3d8] sm:$0xf] %vm3607_vm0, %v4570_v9  ;;  %v2284_v17 = vadd.f32 %v5948_v37, %v2283_v11  ;;  %v4854_v18 = vpop.f32.mrf.mxu0  ;;  %v4982_v19 = vpop.f32.mrf.mxu1 }
 0x1dd   : > { %3724 = vst.msk [vmem:[%s5336_s13 + $0x1d0] sm:$0xf] %vm3607_vm0, %v4440_v12  ;;  %v4443_v20 = vpack.c.bf16 %v2446_v14, %v2446_v14  ;;  %v4571_v21 = vpack.c.bf16 %v2574_v15, %v2574_v15  ;;  %v1793_v22 = vadd.f32 %v5948_v37, %v4854_v18  ;;  %v2305_v23 = vadd.f32 %v5948_v37, %v4982_v19 }
 0x1de   : > { %3852 = vst.msk [vmem:[%s5336_s13 + $0x3d0] sm:$0xf] %vm3607_vm0, %v4568_v13  ;;  %v2444_v24 = vmax.f32 %v1772_v16, 0.0  ;;  %v2572_v25 = vmax.f32 %v2284_v17, 0.0  ;;  %v1784_v26 = vpop.f32.mrf.mxu0  ;;  %v2296_v27 = vpop.f32.mrf.mxu1 }
 0x1df   : > { %3727 = vst.msk [vmem:[%s5336_s13 + $0x1dc] sm:$0xf] %vm3607_vm0, %v4443_v20  ;;  %3855 = vst.msk [vmem:[%s5336_s13 + $0x3dc] sm:$0xf] %vm3607_vm0, %v4571_v21  ;;  %v2449_v28 = vmax.f32 %v1793_v22, 0.0  ;;  %v2577_v29 = vmax.f32 %v2305_v23, 0.0  ;;  %v1785_v30 = vadd.f32 %v5948_v37, %v1784_v26  ;;  %v2297_v31 = vadd.f32 %v5948_v37, %v2296_v27 }
 0x1e0   : > { %v4441_v32 = vpack.c.bf16 %v2444_v24, %v2444_v24  ;;  %v4569_v33 = vpack.c.bf16 %v2572_v25, %v2572_v25  ;;  %v4855_v34 = vpop.f32.mrf.mxu0  ;;  %v4983_v35 = vpop.f32.mrf.mxu1 }
 0x1e1   : > { %v4446_v36 = vpack.c.bf16 %v2449_v28, %v2449_v28  ;;  %v4574_v61 = vpack.c.bf16 %v2577_v29, %v2577_v29  ;;  %v2447_v38 = vmax.f32 %v1785_v30, 0.0  ;;  %v2575_v39 = vmax.f32 %v2297_v31, 0.0 }
 0x1e2   : > { %3725 = vst.msk [vmem:[%s5336_s13 + $0x1d4] sm:$0xf] %vm3607_vm0, %v4441_v32  ;;  %3853 = vst.msk [vmem:[%s5336_s13 + $0x3d4] sm:$0xf] %vm3607_vm0, %v4569_v33  ;;  %v1796_v40 = vadd.f32 %v5948_v37, %v4855_v34  ;;  %v2308_v41 = vadd.f32 %v5948_v37, %v4983_v35  ;;  %v1787_v42 = vpop.f32.mrf.mxu0  ;;  %v2299_v43 = vpop.f32.mrf.mxu1 }
 0x1e3   : > { %3730 = vst.msk [vmem:[%s5336_s13 + $0x1e8] sm:$0xf] %vm3607_vm0, %v4446_v36  ;;  %3858 = vst.msk [vmem:[%s5336_s13 + $0x3e8] sm:$0xf] %vm3607_vm0, %v4574_v61  ;;  %v4444_v44 = vpack.c.bf16 %v2447_v38, %v2447_v38  ;;  %v4572_v45 = vpack.c.bf16 %v2575_v39, %v2575_v39  ;;  %v1788_v47 = vadd.f32 %v5948_v37, %v1787_v42 }
 0x1e4   : > { %v2300_v48 = vadd.f32 %v5948_v37, %v2299_v43  ;;  %v2450_v49 = vmax.f32 %v1796_v40, 0.0  ;;  %v2578_v50 = vmax.f32 %v2308_v41, 0.0  ;;  %v4858_v51 = vpop.f32.mrf.mxu0  ;;  %v4986_v52 = vpop.f32.mrf.mxu1 }
 0x1e5   : > { %3728 = vst.msk [vmem:[%s5336_s13 + $0x1e0] sm:$0xf] %vm3607_vm0, %v4444_v44  ;;  %3856 = vst.msk [vmem:[%s5336_s13 + $0x3e0] sm:$0xf] %vm3607_vm0, %v4572_v45  ;;  %v2448_v53 = vmax.f32 %v1788_v47, 0.0  ;;  %v1809_v55 = vadd.f32 %v5948_v37, %v4858_v51  ;;  %v2321_v56 = vadd.f32 %v5948_v37, %v4986_v52 }
 0x1e6   : > { %v2576_v54 = vmax.f32 %v2300_v48, 0.0  ;;  %v4447_v57 = vpack.c.bf16 %v2450_v49, %v2450_v49  ;;  %v4575_v58 = vpack.c.bf16 %v2578_v50, %v2578_v50  ;;  %v1800_v59 = vpop.f32.mrf.mxu0  ;;  %v2312_v60 = vpop.f32.mrf.mxu1 }
 0x1e7   : > { %v4445_v62 = vpack.c.bf16 %v2448_v53, %v2448_v53  ;;  %v2453_v63 = vmax.f32 %v1809_v55, 0.0  ;;  %v2581_v0 = vmax.f32 %v2321_v56, 0.0  ;;  %v1801_v1 = vadd.f32 %v5948_v37, %v1800_v59 }
 0x1e8   : > { %v4573_v46 = vpack.c.bf16 %v2576_v54, %v2576_v54  ;;  %3731 = vst.msk [vmem:[%s5336_s13 + $0x1ec] sm:$0xf] %vm3607_vm0, %v4447_v57  ;;  %3859 = vst.msk [vmem:[%s5336_s13 + $0x3ec] sm:$0xf] %vm3607_vm0, %v4575_v58  ;;  %v2313_v2 = vadd.f32 %v5948_v37, %v2312_v60  ;;  %v4859_v3 = vpop.f32.mrf.mxu0  ;;  %v4987_v4 = vpop.f32.mrf.mxu1 }
 0x1e9   : > { %3729 = vst.msk [vmem:[%s5336_s13 + $0x1e4] sm:$0xf] %vm3607_vm0, %v4445_v62  ;;  %v4450_v5 = vpack.c.bf16 %v2453_v63, %v2453_v63  ;;  %v4578_v6 = vpack.c.bf16 %v2581_v0, %v2581_v0  ;;  %v1812_v7 = vadd.f32 %v5948_v37, %v4859_v3  ;;  %v2324_v8 = vadd.f32 %v5948_v37, %v4987_v4 }
 0x1ea   : > { %3857 = vst.msk [vmem:[%s5336_s13 + $0x3e4] sm:$0xf] %vm3607_vm0, %v4573_v46  ;;  %v2451_v9 = vmax.f32 %v1801_v1, 0.0  ;;  %v2579_v10 = vmax.f32 %v2313_v2, 0.0  ;;  %v1803_v11 = vpop.f32.mrf.mxu0  ;;  %v2315_v12 = vpop.f32.mrf.mxu1 }
 0x1eb   : > { %3734 = vst.msk [vmem:[%s5336_s13 + $0x1f8] sm:$0xf] %vm3607_vm0, %v4450_v5  ;;  %3862 = vst.msk [vmem:[%s5336_s13 + $0x3f8] sm:$0xf] %vm3607_vm0, %v4578_v6  ;;  %v2454_v13 = vmax.f32 %v1812_v7, 0.0  ;;  %v2582_v14 = vmax.f32 %v2324_v8, 0.0  ;;  %v1804_v15 = vadd.f32 %v5948_v37, %v1803_v11  ;;  %v2316_v16 = vadd.f32 %v5948_v37, %v2315_v12 }
 0x1ec   : > { %v4448_v17 = vpack.c.bf16 %v2451_v9, %v2451_v9  ;;  %v4576_v18 = vpack.c.bf16 %v2579_v10, %v2579_v10 }
 0x1ed   : > { %v4451_v19 = vpack.c.bf16 %v2454_v13, %v2454_v13  ;;  %v4579_v20 = vpack.c.bf16 %v2582_v14, %v2582_v14  ;;  %v2452_v21 = vmax.f32 %v1804_v15, 0.0  ;;  %v2580_v22 = vmax.f32 %v2316_v16, 0.0 }
 0x1ee   : > { %3732 = vst.msk [vmem:[%s5336_s13 + $0x1f0] sm:$0xf] %vm3607_vm0, %v4448_v17  ;;  %3860 = vst.msk [vmem:[%s5336_s13 + $0x3f0] sm:$0xf] %vm3607_vm0, %v4576_v18 }
 0x1ef   : > { %3735 = vst.msk [vmem:[%s5336_s13 + $0x1fc] sm:$0xf] %vm3607_vm0, %v4451_v19  ;;  %3863 = vst.msk [vmem:[%s5336_s13 + $0x3fc] sm:$0xf] %vm3607_vm0, %v4579_v20  ;;  %v4449_v23 = vpack.c.bf16 %v2452_v21, %v2452_v21  ;;  %v4577_v24 = vpack.c.bf16 %v2580_v22, %v2580_v22 }
 0x1f1   : > { %3733 = vst.msk [vmem:[%s5336_s13 + $0x1f4] sm:$0xf] %vm3607_vm0, %v4449_v23  ;;  %3861 = vst.msk [vmem:[%s5336_s13 + $0x3f4] sm:$0xf] %vm3607_vm0, %v4577_v24 }
 0x1f2 PF: > { %s13_s12 = sadd.s32 1, %s5156_s12  }
 0x1f3   : > { %p10_p4 = scmp.ge.s32.totalorder %s13_s12, 6  }
 0x1f5   :  { %12 = sbr.rel (!%p10_p4) target bundleno = 1 (0x1), region = 62 }

// kernel: net_forward.6
= control target key start
LH: loop header
LB: loop body
LE: loop exit
PB: predicated region body
PF: predicated region fallthrough
CT: control target
= control target key end

     0   :  { %s3136_s12 = smov 0   ;;  %s3771_s0 = inlined_call_operand.vmem [shape: bf16[2048,256], index: 0, kind: input, shape index: {}]   ;;  %s3772_s1 = inlined_call_operand.vmem [shape: bf16[256,32], index: 1, kind: input, shape index: {}]   ;;  %s3773_s2 = inlined_call_operand.vmem [shape: f32[1,32], index: 2, kind: input, shape index: {}]   ;;  %s3774_s3 = inlined_call_operand.vmem [shape: bf16[2048,32], index: 3, kind: output, shape index: {}]  }
   0x1 LB: > { %s2451_s13 = sadd.s32 4294967295, %s3113_s12   ;;  %p2455_p0 = scmp.ge.s32.totalorder %s3113_s12, 1  ;;  %s3113_s12 = sphi %s3136_s12, %s13_s12  }
   0x2   : > { %p139_p1 = scmp.lt.s32.totalorder %s3113_s12, 3 }
   0x4   : > { %p140_p2 = pnand %p2455_p0, %p139_p1 }
   0x5   : > { %s2456_s16 = sshll.u32 (!%p140_p2), %s2451_s13, 7 }
   0x6   : > { %143 = sbr.rel (%p140_p2) target bundleno = 528 (0x210), region = 32  ;;  %p165_p3 = scmp.lt.s32.totalorder (!%p140_p2), %s2456_s16, 255 }
   0xb   : > { %v2906_v0 = vld [vmem:[%s3772_s1 + $0x38] sm:$0xff]   ;;  %v3115_v1 = vmov 0   ;;  %v2907_v2 = vld [vmem:[%s3772_s1 + $0x30] sm:$0xff]   ;;  %v2908_v3 = vld [vmem:[%s3772_s1 + $0x28] sm:$0xff]   ;;  %s3776_s16 = smov (!%p165_p3, %s2456_s16), 255  ;;  %vm2266_vm0 = vcmask 257024  }
   0xc   : > { %1081 = vmatprep.subr.bf16.mxu0 %v3115_v1  ;;  %2865 = vmatprep.subr.bf16.mxu1 %v3115_v1  ;;  %v2909_v4 = vld [vmem:[%s3772_s1 + $0x20] sm:$0xff]   ;;  %s2736_s23 = sshll.u32 %s3776_s16, 3  ;;  %v2910_v5 = vld [vmem:[%s3772_s1 + $0x18] sm:$0xff]   ;;  %v2911_v7 = vld [vmem:[%s3772_s1 + $0x10] sm:$0xff]   ;;  %s2460_s29 = sshll.u32 %s3776_s16, 2 }
   0xd   : > { %1082 = vmatpush1.bf16.msra.mxu0 %v2906_v0  ;;  %2881 = vmatpush1.bf16.msra.mxu1 %v2906_v0  ;;  %s3173_s28 = scalar_lea.vmem %s3771_s0, %s2736_s23  ;;  %v2912_v9 = vld [vmem:[%s3772_s1 + $0x8] sm:$0xff]   ;;  %v2913_v10 = vld [vmem:[%s3772_s1] sm:$0xff]   ;;  %v2914_v11 = vld [vmem:[%s3772_s1 + $0x78] sm:$0xff]   ;;  %s3351_s5 = scalar_lea.vmem %s3774_s3, %s2460_s29 }
   0xe   : > { %1083 = vmatprep.subr.bf16.mxu0 %v3115_v1  ;;  %2866 = vmatprep.subr.bf16.mxu1 %v3115_v1  ;;  %v2924_v6 = vld [vmem:[%s3173_s28 + $0x4] ss:$8 sps:$4 sm:$0xff]   ;;  %v2915_v12 = vld [vmem:[%s3772_s1 + $0x70] sm:$0xff]   ;;  %v2918_v15 = vld [vmem:[%s3772_s1 + $0x58] sm:$0xff]  }
   0xf   : > { %v2927_v8 = vld [vmem:[%s3173_s28 + $0x204] ss:$8 sps:$4 sm:$0xff]   ;;  %1113 = vmatprep.mubr.bf16.mxu0 %v2924_v6  ;;  %v2919_v16 = vld [vmem:[%s3772_s1 + $0x50] sm:$0xff]   ;;  %v2922_v19 = vld [vmem:[%s3173_s28] ss:$8 sps:$4 sm:$0xff]  }
  0x10   : > { %1369 = vmatprep.mubr.bf16.mxu1 %v2927_v8  ;;  %v2916_v13 = vld [vmem:[%s3772_s1 + $0x68] sm:$0xff]   ;;  %v2917_v14 = vld [vmem:[%s3772_s1 + $0x60] sm:$0xff]   ;;  %v2928_v21 = vld [vmem:[%s3173_s28 + $0x14] ss:$8 sps:$4 sm:$0xff]  }
  0x11   : > { %1084 = vmatpush1.bf16.msra.mxu0 %v2907_v2  ;;  %2882 = vmatpush1.bf16.msra.mxu1 %v2907_v2  ;;  %v2920_v17 = vld [vmem:[%s3772_s1 + $0x48] sm:$0xff]   ;;  %v2921_v18 = vld [vmem:[%s3772_s1 + $0x40] sm:$0xff]   ;;  %v2930_v22 = vld [vmem:[%s3173_s28 + $0x214] ss:$8 sps:$4 sm:$0xff]  }
  0x12   : > { %1085 = vmatprep.subr.bf16.mxu0 %v3115_v1  ;;  %2867 = vmatprep.subr.bf16.mxu1 %v3115_v1  ;;  %v2925_v20 = vld [vmem:[%s3173_s28 + $0x200] ss:$8 sps:$4 sm:$0xff]   ;;  %v2932_v23 = vld [vmem:[%s3173_s28 + $0x10] ss:$8 sps:$4 sm:$0xff]   ;;  %v2934_v25 = vld [vmem:[%s3173_s28 + $0x24] ss:$8 sps:$4 sm:$0xff]  }
  0x13   : > { %v2933_v24 = vld [vmem:[%s3173_s28 + $0x210] ss:$8 sps:$4 sm:$0xff]   ;;  %v2936_v26 = vld [vmem:[%s3173_s28 + $0x224] ss:$8 sps:$4 sm:$0xff]   ;;  %v2938_v27 = vld [vmem:[%s3173_s28 + $0x20] ss:$8 sps:$4 sm:$0xff]  }
  0x14   : > { %v2939_v28 = vld [vmem:[%s3173_s28 + $0x220] ss:$8 sps:$4 sm:$0xff]   ;;  %v2940_v29 = vld [vmem:[%s3173_s28 + $0x34] ss:$8 sps:$4 sm:$0xff]   ;;  %v2944_v31 = vld [vmem:[%s3173_s28 + $0x30] ss:$8 sps:$4 sm:$0xff]  }
  0x15   : > { %1086 = vmatpush1.bf16.msra.mxu0 %v2908_v3  ;;  %2883 = vmatpush1.bf16.msra.mxu1 %v2908_v3  ;;  %v2942_v30 = vld [vmem:[%s3173_s28 + $0x234] ss:$8 sps:$4 sm:$0xff]   ;;  %v2945_v32 = vld [vmem:[%s3173_s28 + $0x230] ss:$8 sps:$4 sm:$0xff]   ;;  %v2946_v33 = vld [vmem:[%s3173_s28 + $0x44] ss:$8 sps:$4 sm:$0xff]  }
  0x16   : > { %1087 = vmatprep.subr.bf16.mxu0 %v3115_v1  ;;  %2868 = vmatprep.subr.bf16.mxu1 %v3115_v1  ;;  %v2948_v34 = vld [vmem:[%s3173_s28 + $0x244] ss:$8 sps:$4 sm:$0xff]   ;;  %v2950_v35 = vld [vmem:[%s3173_s28 + $0x40] ss:$8 sps:$4 sm:$0xff]   ;;  %v2952_v37 = vld [vmem:[%s3173_s28 + $0x54] ss:$8 sps:$4 sm:$0xff]  }
  0x17   : > { %v2951_v36 = vld [vmem:[%s3173_s28 + $0x240] ss:$8 sps:$4 sm:$0xff]   ;;  %v2954_v38 = vld [vmem:[%s3173_s28 + $0x254] ss:$8 sps:$4 sm:$0xff]   ;;  %v2956_v39 = vld [vmem:[%s3173_s28 + $0x50] ss:$8 sps:$4 sm:$0xff]  }
  0x18   : > { %v2957_v40 = vld [vmem:[%s3173_s28 + $0x250] ss:$8 sps:$4 sm:$0xff]   ;;  %v2958_v41 = vld [vmem:[%s3173_s28 + $0x64] ss:$8 sps:$4 sm:$0xff]   ;;  %v2962_v43 = vld [vmem:[%s3173_s28 + $0x60] ss:$8 sps:$4 sm:$0xff]  }
  0x19   : > { %1088 = vmatpush1.bf16.msra.mxu0 %v2909_v4  ;;  %2884 = vmatpush1.bf16.msra.mxu1 %v2909_v4  ;;  %v2960_v42 = vld [vmem:[%s3173_s28 + $0x264] ss:$8 sps:$4 sm:$0xff]   ;;  %v2963_v44 = vld [vmem:[%s3173_s28 + $0x260] ss:$8 sps:$4 sm:$0xff]   ;;  %v2964_v45 = vld [vmem:[%s3173_s28 + $0x74] ss:$8 sps:$4 sm:$0xff]  }
  0x1a   : > { %1089 = vmatprep.subr.bf16.mxu0 %v3115_v1  ;;  %2869 = vmatprep.subr.bf16.mxu1 %v3115_v1  ;;  %v2966_v46 = vld [vmem:[%s3173_s28 + $0x274] ss:$8 sps:$4 sm:$0xff]   ;;  %v2968_v47 = vld [vmem:[%s3173_s28 + $0x70] ss:$8 sps:$4 sm:$0xff]   ;;  %v2970_v49 = vld [vmem:[%s3173_s28 + $0x84] ss:$8 sps:$4 sm:$0xff]  }
  0x1b   : > { %v2969_v48 = vld [vmem:[%s3173_s28 + $0x270] ss:$8 sps:$4 sm:$0xff]   ;;  %v2972_v50 = vld [vmem:[%s3173_s28 + $0x284] ss:$8 sps:$4 sm:$0xff]   ;;  %v2974_v51 = vld [vmem:[%s3173_s28 + $0x80] ss:$8 sps:$4 sm:$0xff]  }
  0x1c   : > { %v2975_v52 = vld [vmem:[%s3173_s28 + $0x280] ss:$8 sps:$4 sm:$0xff]   ;;  %v2976_v53 = vld [vmem:[%s3173_s28 + $0x94] ss:$8 sps:$4 sm:$0xff]   ;;  %v2980_v55 = vld [vmem:[%s3173_s28 + $0x90] ss:$8 sps:$4 sm:$0xff]  }
  0x1d   : > { %1090 = vmatpush1.bf16.msra.mxu0 %v2910_v5  ;;  %2885 = vmatpush1.bf16.msra.mxu1 %v2910_v5  ;;  %v2978_v54 = vld [vmem:[%s3173_s28 + $0x294] ss:$8 sps:$4 sm:$0xff]   ;;  %v2981_v56 = vld [vmem:[%s3173_s28 + $0x290] ss:$8 sps:$4 sm:$0xff]   ;;  %v2982_v57 = vld [vmem:[%s3173_s28 + $0xa4] ss:$8 sps:$4 sm:$0xff]  }
  0x1e   : > { %1091 = vmatprep.subr.bf16.mxu0 %v3115_v1  ;;  %2870 = vmatprep.subr.bf16.mxu1 %v3115_v1  ;;  %v2984_v58 = vld [vmem:[%s3173_s28 + $0x2a4] ss:$8 sps:$4 sm:$0xff]   ;;  %v2986_v59 = vld [vmem:[%s3173_s28 + $0xa0] ss:$8 sps:$4 sm:$0xff]   ;;  %v2988_v61 = vld [vmem:[%s3173_s28 + $0xb4] ss:$8 sps:$4 sm:$0xff]  }
  0x1f   : > { %v2987_v60 = vld [vmem:[%s3173_s28 + $0x2a0] ss:$8 sps:$4 sm:$0xff]   ;;  %v2990_v62 = vld [vmem:[%s3173_s28 + $0x2b4] ss:$8 sps:$4 sm:$0xff]   ;;  %v2992_v63 = vld [vmem:[%s3173_s28 + $0xb0] ss:$8 sps:$4 sm:$0xff]  }
  0x20   : > { %v2993_v0 = vld [vmem:[%s3173_s28 + $0x2b0] ss:$8 sps:$4 sm:$0xff]   ;;  %v2996_v2 = vld [vmem:[%s3173_s28 + $0x2c4] ss:$8 sps:$4 sm:$0xff]   ;;  %v2998_v3 = vld [vmem:[%s3173_s28 + $0xc0] ss:$8 sps:$4 sm:$0xff]  }
  0x21   : > { %1092 = vmatpush1.bf16.msra.mxu0 %v2911_v7  ;;  %2886 = vmatpush1.bf16.msra.mxu1 %v2911_v7  ;;  %v2999_v4 = vld [vmem:[%s3173_s28 + $0x2c0] ss:$8 sps:$4 sm:$0xff]   ;;  %v3000_v5 = vld [vmem:[%s3173_s28 + $0xd4] ss:$8 sps:$4 sm:$0xff]   ;;  %v3004_v7 = vld [vmem:[%s3173_s28 + $0xd0] ss:$8 sps:$4 sm:$0xff]  }
  0x22   : > { %1093 = vmatprep.subr.bf16.mxu0 %v3115_v1  ;;  %2871 = vmatprep.subr.bf16.mxu1 %v3115_v1  ;;  %v3002_v6 = vld [vmem:[%s3173_s28 + $0x2d4] ss:$8 sps:$4 sm:$0xff]   ;;  %v3005_v8 = vld [vmem:[%s3173_s28 + $0x2d0] ss:$8 sps:$4 sm:$0xff]  }
  0x25   : > { %1094 = vmatpush1.bf16.msra.mxu0 %v2912_v9  ;;  %2887 = vmatpush1.bf16.msra.mxu1 %v2912_v9  ;;  %v3006_v9 = vld [vmem:[%s3173_s28 + $0xe4] ss:$8 sps:$4 sm:$0xff]  }
  0x26   : > { %1095 = vmatprep.subr.bf16.mxu0 %v3115_v1  ;;  %2872 = vmatprep.subr.bf16.mxu1 %v3115_v1 }
  0x29   : > { %1096 = vmatpush1.bf16.msra.mxu0 %v2913_v10  ;;  %2888 = vmatpush1.bf16.msra.mxu1 %v2913_v10  ;;  %v3008_v10 = vld [vmem:[%s3173_s28 + $0x2e4] ss:$8 sps:$4 sm:$0xff]  }
  0x2a   : > { %1097 = vmatprep.subr.bf16.mxu0 %v3115_v1  ;;  %2873 = vmatprep.subr.bf16.mxu1 %v3115_v1 }
  0x2d   : > { %1098 = vmatpush2.bf16.msra.mxu0 %v2914_v11  ;;  %2889 = vmatpush2.bf16.msra.mxu1 %v2914_v11  ;;  %v3010_v11 = vld [vmem:[%s3173_s28 + $0xe0] ss:$8 sps:$4 sm:$0xff]  }
  0x2e   : > { %1099 = vmatprep.subr.bf16.mxu0 %v3115_v1  ;;  %2874 = vmatprep.subr.bf16.mxu1 %v3115_v1 }
  0x31   : > { %1100 = vmatpush2.bf16.msra.mxu0 %v2915_v12  ;;  %2890 = vmatpush2.bf16.msra.mxu1 %v2915_v12  ;;  %v3011_v12 = vld [vmem:[%s3173_s28 + $0x2e0] ss:$8 sps:$4 sm:$0xff]  }
  0x32   : > { %1101 = vmatprep.subr.bf16.mxu0 %v3115_v1  ;;  %2875 = vmatprep.subr.bf16.mxu1 %v3115_v1 }
  0x35   : > { %1102 = vmatpush2.bf16.msra.mxu0 %v2916_v13  ;;  %2891 = vmatpush2.bf16.msra.mxu1 %v2916_v13  ;;  %v3012_v13 = vld [vmem:[%s3173_s28 + $0xf4] ss:$8 sps:$4 sm:$0xff]  }
  0x36   : > { %1103 = vmatprep.subr.bf16.mxu0 %v3115_v1  ;;  %2876 = vmatprep.subr.bf16.mxu1 %v3115_v1 }
  0x39   : > { %1104 = vmatpush2.bf16.msra.mxu0 %v2917_v14  ;;  %2892 = vmatpush2.bf16.msra.mxu1 %v2917_v14  ;;  %v3014_v14 = vld [vmem:[%s3173_s28 + $0x2f4] ss:$8 sps:$4 sm:$0xff]  }
  0x3a   : > { %1105 = vmatprep.subr.bf16.mxu0 %v3115_v1  ;;  %2877 = vmatprep.subr.bf16.mxu1 %v3115_v1 }
  0x3d   : > { %1106 = vmatpush2.bf16.msra.mxu0 %v2918_v15  ;;  %2893 = vmatpush2.bf16.msra.mxu1 %v2918_v15  ;;  %v3016_v15 = vld [vmem:[%s3173_s28 + $0xf0] ss:$8 sps:$4 sm:$0xff]  }
  0x3e   : > { %1107 = vmatprep.subr.bf16.mxu0 %v3115_v1  ;;  %2878 = vmatprep.subr.bf16.mxu1 %v3115_v1 }
  0x41   : > { %1108 = vmatpush2.bf16.msra.mxu0 %v2919_v16  ;;  %2894 = vmatpush2.bf16.msra.mxu1 %v2919_v16  ;;  %v3017_v16 = vld [vmem:[%s3173_s28 + $0x2f0] ss:$8 sps:$4 sm:$0xff]  }
  0x42   : > { %1109 = vmatprep.subr.bf16.mxu0 %v3115_v1  ;;  %2879 = vmatprep.subr.bf16.mxu1 %v3115_v1 }
  0x45   : > { %1110 = vmatpush2.bf16.msra.mxu0 %v2920_v17  ;;  %2895 = vmatpush2.bf16.msra.mxu1 %v2920_v17  ;;  %v3018_v17 = vld [vmem:[%s3173_s28 + $0x104] ss:$8 sps:$4 sm:$0xff]  }
  0x46   : > { %1111 = vmatprep.subr.bf16.mxu0 %v3115_v1  ;;  %2880 = vmatprep.subr.bf16.mxu1 %v3115_v1  ;;  %v2994_v1 = vld [vmem:[%s3173_s28 + $0xc4] ss:$8 sps:$4 sm:$0xff]  }
  0x49   : > { %1112 = vmatpush2.bf16.msra.mxu0 %v2921_v18  ;;  %2896 = vmatpush2.bf16.msra.mxu1 %v2921_v18  ;;  %v3020_v18 = vld [vmem:[%s3173_s28 + $0x304] ss:$8 sps:$4 sm:$0xff]  }
  0x4c   : > { %1114 = vmatmul.mubr.bf16.vlgmr.msra.gmra.mxu0 %v2922_v19  ;;  %1370 = vmatmul.mubr.bf16.vlgmr.msra.gmra.mxu1 %v2925_v20  ;;  %v3022_v19 = vld [vmem:[%s3173_s28 + $0x100] ss:$8 sps:$4 sm:$0xff]  }
  0x4d   : > { %1121 = vmatprep.mubr.bf16.mxu0 %v2928_v21  ;;  %1377 = vmatprep.mubr.bf16.mxu1 %v2930_v22  ;;  %v3023_v20 = vld [vmem:[%s3173_s28 + $0x300] ss:$8 sps:$4 sm:$0xff]   ;;  %v3024_v21 = vld [vmem:[%s3173_s28 + $0x114] ss:$8 sps:$4 sm:$0xff]  }
  0x4e   : > { %v3026_v22 = vld [vmem:[%s3173_s28 + $0x314] ss:$8 sps:$4 sm:$0xff]  }
  0x54   : > { %1122 = vmatmul.mubr.bf16.gmra.mxu0 %v2932_v23  ;;  %1378 = vmatmul.mubr.bf16.gmra.mxu1 %v2933_v24  ;;  %v3028_v23 = vld [vmem:[%s3173_s28 + $0x110] ss:$8 sps:$4 sm:$0xff]  }
  0x55   : > { %1129 = vmatprep.mubr.bf16.mxu0 %v2934_v25  ;;  %1385 = vmatprep.mubr.bf16.mxu1 %v2936_v26  ;;  %v3029_v24 = vld [vmem:[%s3173_s28 + $0x310] ss:$8 sps:$4 sm:$0xff]   ;;  %v3030_v25 = vld [vmem:[%s3173_s28 + $0x124] ss:$8 sps:$4 sm:$0xff]  }
  0x56   : > { %v3032_v26 = vld [vmem:[%s3173_s28 + $0x324] ss:$8 sps:$4 sm:$0xff]  }
  0x5c   : > { %1130 = vmatmul.mubr.bf16.gmra.mxu0 %v2938_v27  ;;  %1386 = vmatmul.mubr.bf16.gmra.mxu1 %v2939_v28  ;;  %v3034_v27 = vld [vmem:[%s3173_s28 + $0x120] ss:$8 sps:$4 sm:$0xff]  }
  0x5d   : > { %1137 = vmatprep.mubr.bf16.mxu0 %v2940_v29  ;;  %1393 = vmatprep.mubr.bf16.mxu1 %v2942_v30  ;;  %v3035_v28 = vld [vmem:[%s3173_s28 + $0x320] ss:$8 sps:$4 sm:$0xff]   ;;  %v3036_v29 = vld [vmem:[%s3173_s28 + $0x134] ss:$8 sps:$4 sm:$0xff]  }
  0x5e   : > { %v3038_v30 = vld [vmem:[%s3173_s28 + $0x334] ss:$8 sps:$4 sm:$0xff]  }
  0x64   : > { %1138 = vmatmul.mubr.bf16.gmra.mxu0 %v2944_v31  ;;  %1394 = vmatmul.mubr.bf16.gmra.mxu1 %v2945_v32  ;;  %v3040_v31 = vld [vmem:[%s3173_s28 + $0x130] ss:$8 sps:$4 sm:$0xff]  }
  0x65   : > { %1145 = vmatprep.mubr.bf16.mxu0 %v2946_v33  ;;  %1401 = vmatprep.mubr.bf16.mxu1 %v2948_v34  ;;  %v3041_v32 = vld [vmem:[%s3173_s28 + $0x330] ss:$8 sps:$4 sm:$0xff]   ;;  %v3042_v33 = vld [vmem:[%s3173_s28 + $0x144] ss:$8 sps:$4 sm:$0xff]  }
  0x66   : > { %v3044_v34 = vld [vmem:[%s3173_s28 + $0x344] ss:$8 sps:$4 sm:$0xff]  }
  0x6c   : > { %1146 = vmatmul.mubr.bf16.gmra.mxu0 %v2950_v35  ;;  %1402 = vmatmul.mubr.bf16.gmra.mxu1 %v2951_v36  ;;  %v3046_v35 = vld [vmem:[%s3173_s28 + $0x140] ss:$8 sps:$4 sm:$0xff]  }
  0x6d   : > { %1153 = vmatprep.mubr.bf16.mxu0 %v2952_v37  ;;  %1409 = vmatprep.mubr.bf16.mxu1 %v2954_v38  ;;  %v3047_v36 = vld [vmem:[%s3173_s28 + $0x340] ss:$8 sps:$4 sm:$0xff]   ;;  %v3048_v37 = vld [vmem:[%s3173_s28 + $0x154] ss:$8 sps:$4 sm:$0xff]  }
  0x6e   : > { %v3050_v38 = vld [vmem:[%s3173_s28 + $0x354] ss:$8 sps:$4 sm:$0xff]  }
  0x74   : > { %1154 = vmatmul.mubr.bf16.gmra.mxu0 %v2956_v39  ;;  %1410 = vmatmul.mubr.bf16.gmra.mxu1 %v2957_v40  ;;  %v3052_v39 = vld [vmem:[%s3173_s28 + $0x150] ss:$8 sps:$4 sm:$0xff]  }
  0x75   : > { %1161 = vmatprep.mubr.bf16.mxu0 %v2958_v41  ;;  %1417 = vmatprep.mubr.bf16.mxu1 %v2960_v42  ;;  %v3053_v40 = vld [vmem:[%s3173_s28 + $0x350] ss:$8 sps:$4 sm:$0xff]   ;;  %v3054_v41 = vld [vmem:[%s3173_s28 + $0x164] ss:$8 sps:$4 sm:$0xff]  }
  0x76   : > { %v3056_v42 = vld [vmem:[%s3173_s28 + $0x364] ss:$8 sps:$4 sm:$0xff]  }
  0x7c   : > { %1162 = vmatmul.mubr.bf16.gmra.mxu0 %v2962_v43  ;;  %1418 = vmatmul.mubr.bf16.gmra.mxu1 %v2963_v44  ;;  %v3058_v43 = vld [vmem:[%s3173_s28 + $0x160] ss:$8 sps:$4 sm:$0xff]  }
  0x7d   : > { %1169 = vmatprep.mubr.bf16.mxu0 %v2964_v45  ;;  %1425 = vmatprep.mubr.bf16.mxu1 %v2966_v46  ;;  %v3059_v44 = vld [vmem:[%s3173_s28 + $0x360] ss:$8 sps:$4 sm:$0xff]   ;;  %v3060_v45 = vld [vmem:[%s3173_s28 + $0x174] ss:$8 sps:$4 sm:$0xff]  }
  0x7e   : > { %v3062_v46 = vld [vmem:[%s3173_s28 + $0x374] ss:$8 sps:$4 sm:$0xff]  }
  0x84   : > { %1170 = vmatmul.mubr.bf16.gmra.mxu0 %v2968_v47  ;;  %1426 = vmatmul.mubr.bf16.gmra.mxu1 %v2969_v48  ;;  %v3064_v47 = vld [vmem:[%s3173_s28 + $0x170] ss:$8 sps:$4 sm:$0xff]  }
  0x85   : > { %1177 = vmatprep.mubr.bf16.mxu0 %v2970_v49  ;;  %1433 = vmatprep.mubr.bf16.mxu1 %v2972_v50  ;;  %v3065_v48 = vld [vmem:[%s3173_s28 + $0x370] ss:$8 sps:$4 sm:$0xff]   ;;  %v3066_v49 = vld [vmem:[%s3173_s28 + $0x184] ss:$8 sps:$4 sm:$0xff]  }
  0x86   : > { %v3068_v50 = vld [vmem:[%s3173_s28 + $0x384] ss:$8 sps:$4 sm:$0xff]  }
  0x8c   : > { %1178 = vmatmul.mubr.bf16.gmra.mxu0 %v2974_v51  ;;  %1434 = vmatmul.mubr.bf16.gmra.mxu1 %v2975_v52  ;;  %v226_v51 = vld [vmem:[%s3173_s28 + $0x180] sm:$0xff]  ;;  %v227_v52 = vld [vmem:[%s3173_s28 + $0x188] sm:$0xff] }
  0x8d   : > { %1185 = vmatprep.mubr.bf16.mxu0 %v2976_v53  ;;  %1441 = vmatprep.mubr.bf16.mxu1 %v2978_v54  ;;  %v290_v53 = vld [vmem:[%s3173_s28 + $0x380] sm:$0xff]  ;;  %v291_v54 = vld [vmem:[%s3173_s28 + $0x388] sm:$0xff] }
  0x94   : > { %1186 = vmatmul.mubr.bf16.gmra.mxu0 %v2980_v55  ;;  %1442 = vmatmul.mubr.bf16.gmra.mxu1 %v2981_v56  ;;  %v2510_v55 = vcombine.low %v226_v51, %v227_v52  ;;  %v2574_v56 = vcombine.low %v290_v53, %v291_v54  ;;  %v232_v52 = vld [vmem:[%s3173_s28 + $0x1b0] sm:$0xff] }
  0x95   : > { %1193 = vmatprep.mubr.bf16.mxu0 %v2982_v57  ;;  %1449 = vmatprep.mubr.bf16.mxu1 %v2984_v58  ;;  %v3070_v57 = vld [vmem:[%s3173_s28 + $0x194] ss:$8 sps:$4 sm:$0xff]  }
  0x96   : > { %v3072_v58 = vld [vmem:[%s3173_s28 + $0x394] ss:$8 sps:$4 sm:$0xff]  }
  0x9c   : > { %1194 = vmatmul.mubr.bf16.gmra.mxu0 %v2986_v59  ;;  %1450 = vmatmul.mubr.bf16.gmra.mxu1 %v2987_v60  ;;  %v3339_v59 = vld [vmem:[%s3773_s2] ss:$0 sm:$0xff] }
  0x9d   : > { %1201 = vmatprep.mubr.bf16.mxu0 %v2988_v61  ;;  %1457 = vmatprep.mubr.bf16.mxu1 %v2990_v62  ;;  %v228_v62 = vld [vmem:[%s3173_s28 + $0x190] sm:$0xff] }
  0xa4   : > { %1202 = vmatmul.mubr.bf16.gmra.mxu0 %v2992_v63  ;;  %1458 = vmatmul.mubr.bf16.gmra.mxu1 %v2993_v0 }
  0xa5   : > { %1209 = vmatprep.mubr.bf16.mxu0 %v2994_v1  ;;  %1465 = vmatprep.mubr.bf16.mxu1 %v2996_v2  ;;  %v229_v1 = vld [vmem:[%s3173_s28 + $0x198] sm:$0xff]  ;;  %v292_v2 = vld [vmem:[%s3173_s28 + $0x390] sm:$0xff] }
  0xac   : > { %1210 = vmatmul.mubr.bf16.gmra.mxu0 %v2998_v3  ;;  %1466 = vmatmul.mubr.bf16.gmra.mxu1 %v2999_v4  ;;  %v293_v3 = vld [vmem:[%s3173_s28 + $0x398] sm:$0xff] }
  0xad   : > { %1217 = vmatprep.mubr.bf16.mxu0 %v3000_v5  ;;  %1473 = vmatprep.mubr.bf16.mxu1 %v3002_v6 }
  0xb4   : > { %1218 = vmatmul.mubr.bf16.gmra.mxu0 %v3004_v7  ;;  %1474 = vmatmul.mubr.bf16.gmra.mxu1 %v3005_v8 }
  0xb5   : > { %1225 = vmatprep.mubr.bf16.mxu0 %v3006_v9  ;;  %1481 = vmatprep.mubr.bf16.mxu1 %v3008_v10  ;;  %v2512_v10 = vcombine.low %v228_v62, %v229_v1 }
  0xbc   : > { %1226 = vmatmul.mubr.bf16.gmra.mxu0 %v3010_v11  ;;  %1482 = vmatmul.mubr.bf16.gmra.mxu1 %v3011_v12  ;;  %v2576_v11 = vcombine.low %v292_v2, %v293_v3 }
  0xbd   : > { %1233 = vmatprep.mubr.bf16.mxu0 %v3012_v13  ;;  %1489 = vmatprep.mubr.bf16.mxu1 %v3014_v14 }
  0xc4   : > { %1234 = vmatmul.mubr.bf16.gmra.mxu0 %v3016_v15  ;;  %1490 = vmatmul.mubr.bf16.gmra.mxu1 %v3017_v16  ;;  %v3074_v16 = vld [vmem:[%s3173_s28 + $0x1a4] ss:$8 sps:$4 sm:$0xff]  }
  0xc5   : > { %1241 = vmatprep.mubr.bf16.mxu0 %v3018_v17  ;;  %1497 = vmatprep.mubr.bf16.mxu1 %v3020_v18 }
  0xcc   : > { %1242 = vmatmul.mubr.bf16.gmra.mxu0 %v3022_v19  ;;  %1498 = vmatmul.mubr.bf16.gmra.mxu1 %v3023_v20  ;;  %v3076_v19 = vld [vmem:[%s3173_s28 + $0x3a4] ss:$8 sps:$4 sm:$0xff]  }
  0xcd   : > { %1249 = vmatprep.mubr.bf16.mxu0 %v3024_v21  ;;  %1505 = vmatprep.mubr.bf16.mxu1 %v3026_v22 }
  0xd4   : > { %1250 = vmatmul.mubr.bf16.gmra.mxu0 %v3028_v23  ;;  %1506 = vmatmul.mubr.bf16.gmra.mxu1 %v3029_v24  ;;  %v230_v24 = vld [vmem:[%s3173_s28 + $0x1a0] sm:$0xff] }
  0xd5   : > { %1257 = vmatprep.mubr.bf16.mxu0 %v3030_v25  ;;  %1513 = vmatprep.mubr.bf16.mxu1 %v3032_v26 }
  0xdc   : > { %1258 = vmatmul.mubr.bf16.gmra.mxu0 %v3034_v27  ;;  %1514 = vmatmul.mubr.bf16.gmra.mxu1 %v3035_v28 }
  0xdd   : > { %1265 = vmatprep.mubr.bf16.mxu0 %v3036_v29  ;;  %1521 = vmatprep.mubr.bf16.mxu1 %v3038_v30  ;;  %v231_v29 = vld [vmem:[%s3173_s28 + $0x1a8] sm:$0xff]  ;;  %v294_v30 = vld [vmem:[%s3173_s28 + $0x3a0] sm:$0xff] }
  0xe4   : > { %1266 = vmatmul.mubr.bf16.gmra.mxu0 %v3040_v31  ;;  %1522 = vmatmul.mubr.bf16.gmra.mxu1 %v3041_v32  ;;  %v295_v31 = vld [vmem:[%s3173_s28 + $0x3a8] sm:$0xff] }
  0xe5   : > { %1273 = vmatprep.mubr.bf16.mxu0 %v3042_v33  ;;  %1529 = vmatprep.mubr.bf16.mxu1 %v3044_v34 }
  0xec   : > { %1274 = vmatmul.mubr.bf16.gmra.mxu0 %v3046_v35  ;;  %1530 = vmatmul.mubr.bf16.gmra.mxu1 %v3047_v36 }
  0xed   : > { %1281 = vmatprep.mubr.bf16.mxu0 %v3048_v37  ;;  %1537 = vmatprep.mubr.bf16.mxu1 %v3050_v38  ;;  %v2514_v38 = vcombine.low %v230_v24, %v231_v29 }
  0xf4   : > { %1282 = vmatmul.mubr.bf16.gmra.mxu0 %v3052_v39  ;;  %1538 = vmatmul.mubr.bf16.gmra.mxu1 %v3053_v40  ;;  %v2578_v39 = vcombine.low %v294_v30, %v295_v31 }
  0xf5   : > { %1289 = vmatprep.mubr.bf16.mxu0 %v3054_v41  ;;  %1545 = vmatprep.mubr.bf16.mxu1 %v3056_v42 }
  0xfc   : > { %1290 = vmatmul.mubr.bf16.gmra.mxu0 %v3058_v43  ;;  %1546 = vmatmul.mubr.bf16.gmra.mxu1 %v3059_v44  ;;  %v3078_v44 = vld [vmem:[%s3173_s28 + $0x1b4] ss:$8 sps:$4 sm:$0xff]  }
  0xfd   : > { %1297 = vmatprep.mubr.bf16.mxu0 %v3060_v45  ;;  %1553 = vmatprep.mubr.bf16.mxu1 %v3062_v46 }
 0x104   : > { %1298 = vmatmul.mubr.bf16.gmra.mxu0 %v3064_v47  ;;  %1554 = vmatmul.mubr.bf16.gmra.mxu1 %v3065_v48  ;;  %v3080_v47 = vld [vmem:[%s3173_s28 + $0x3b4] ss:$8 sps:$4 sm:$0xff]  }
 0x105   : > { %1305 = vmatprep.mubr.bf16.mxu0 %v3066_v49  ;;  %1561 = vmatprep.mubr.bf16.mxu1 %v3068_v50 }
 0x10c   : > { %v1115_v60 = vpop.f32.mrf.mxu0  ;;  %1306 = vmatmul.mubr.bf16.gmra.mxu0 %v2510_v55  ;;  %v1371_v61 = vpop.f32.mrf.mxu1  ;;  %1562 = vmatmul.mubr.bf16.gmra.mxu1 %v2574_v56 }
 0x10d   : > { %v1116_v63 = vadd.f32 %v3339_v59, %v1115_v60  ;;  %v1372_v0 = vadd.f32 %v3339_v59, %v1371_v61  ;;  %1313 = vmatprep.mubr.bf16.mxu0 %v3070_v57  ;;  %1569 = vmatprep.mubr.bf16.mxu1 %v3072_v58  ;;  %v233_v57 = vld [vmem:[%s3173_s28 + $0x1b8] sm:$0xff]  ;;  %v296_v58 = vld [vmem:[%s3173_s28 + $0x3b0] sm:$0xff] }
 0x10e   : > { %v1117_v4 = vpop.f32.mrf.mxu0  ;;  %v1373_v5 = vpop.f32.mrf.mxu1  ;;  %v297_v60 = vld [vmem:[%s3173_s28 + $0x3b8] sm:$0xff]  ;;  %v2516_v3 = vcombine.low %v232_v52, %v233_v57  ;;  %v3096_v57 = vld [vmem:[%s3173_s28 + $0x1e4] ss:$8 sps:$4 sm:$0xff]  }
 0x10f   : > { %v1626_v6 = vmax.f32 %v1116_v63, 0.0  ;;  %v1690_v7 = vmax.f32 %v1372_v0, 0.0  ;;  %v2580_v4 = vcombine.low %v296_v58, %v297_v60  ;;  %v3091_v52 = vld [vmem:[%s3173_s28 + $0x3d0] ss:$8 sps:$4 sm:$0xff]  }
 0x110   : > { %v1118_v8 = vpop.f32.mrf.mxu0  ;;  %v1374_v9 = vpop.f32.mrf.mxu1 }
 0x111   : > { %v2737_v12 = vpack.c.bf16 %v1626_v6, %v1626_v6  ;;  %v2801_v13 = vpack.c.bf16 %v1690_v7, %v1690_v7  ;;  %v1119_v14 = vadd.f32 %v3339_v59, %v1118_v8  ;;  %v1375_v15 = vadd.f32 %v3339_v59, %v1374_v9  ;;  %v3084_v9 = vld [vmem:[%s3173_s28 + $0x1c4] ss:$8 sps:$4 sm:$0xff]  }
 0x112   : > { %v1120_v17 = vpop.f32.mrf.mxu0  ;;  %v1376_v18 = vpop.f32.mrf.mxu1 }
 0x113   : > { %2267 = vst.msk [vmem:[%s3351_s5] sm:$0xf] %vm2266_vm0, %v2737_v12  ;;  %2331 = vst.msk [vmem:[%s3351_s5 + $0x100] sm:$0xf] %vm2266_vm0, %v2801_v13  ;;  %v1627_v20 = vmax.f32 %v1119_v14, 0.0  ;;  %v1691_v21 = vmax.f32 %v1375_v15, 0.0 }
 0x114   : > { %v1123_v22 = vpop.f32.mrf.mxu0  ;;  %1314 = vmatmul.mubr.bf16.gmra.mxu0 %v2512_v10  ;;  %v1379_v23 = vpop.f32.mrf.mxu1  ;;  %1570 = vmatmul.mubr.bf16.gmra.mxu1 %v2576_v11  ;;  %v3087_v12 = vld [vmem:[%s3173_s28 + $0x3c4] ss:$8 sps:$4 sm:$0xff]  }
 0x115   : > { %v2738_v25 = vpack.c.bf16 %v1627_v20, %v1627_v20  ;;  %v2802_v26 = vpack.c.bf16 %v1691_v21, %v1691_v21  ;;  %v1124_v27 = vadd.f32 %v3339_v59, %v1123_v22  ;;  %v1380_v28 = vadd.f32 %v3339_v59, %v1379_v23  ;;  %1321 = vmatprep.mubr.bf16.mxu0 %v3074_v16 }
 0x116   : > { %v1125_v32 = vpop.f32.mrf.mxu0  ;;  %v1381_v33 = vpop.f32.mrf.mxu1  ;;  %1577 = vmatprep.mubr.bf16.mxu1 %v3076_v19 }
 0x117   : > { %2268 = vst.msk [vmem:[%s3351_s5 + $0x4] sm:$0xf] %vm2266_vm0, %v2738_v25  ;;  %2332 = vst.msk [vmem:[%s3351_s5 + $0x104] sm:$0xf] %vm2266_vm0, %v2802_v26  ;;  %v1628_v34 = vmax.f32 %v1124_v27, 0.0  ;;  %v1692_v35 = vmax.f32 %v1380_v28, 0.0 }
 0x118   : > { %v1126_v36 = vpop.f32.mrf.mxu0  ;;  %v1382_v37 = vpop.f32.mrf.mxu1  ;;  %v3082_v27 = vld [vmem:[%s3173_s28 + $0x1c0] ss:$8 sps:$4 sm:$0xff]   ;;  %v3090_v33 = vld [vmem:[%s3173_s28 + $0x1d4] ss:$8 sps:$4 sm:$0xff]  }
 0x119   : > { %v2739_v40 = vpack.c.bf16 %v1628_v34, %v1628_v34  ;;  %v2803_v41 = vpack.c.bf16 %v1692_v35, %v1692_v35  ;;  %v1127_v42 = vadd.f32 %v3339_v59, %v1126_v36  ;;  %v1383_v43 = vadd.f32 %v3339_v59, %v1382_v37  ;;  %v3085_v28 = vld [vmem:[%s3173_s28 + $0x3c0] ss:$8 sps:$4 sm:$0xff]   ;;  %v3093_v36 = vld [vmem:[%s3173_s28 + $0x3d4] ss:$8 sps:$4 sm:$0xff]  }
 0x11a   : > { %v1128_v45 = vpop.f32.mrf.mxu0  ;;  %v1384_v46 = vpop.f32.mrf.mxu1 }
 0x11b   : > { %2269 = vst.msk [vmem:[%s3351_s5 + $0x8] sm:$0xf] %vm2266_vm0, %v2739_v40  ;;  %2333 = vst.msk [vmem:[%s3351_s5 + $0x108] sm:$0xf] %vm2266_vm0, %v2803_v41  ;;  %v1629_v48 = vmax.f32 %v1127_v42, 0.0  ;;  %v1693_v49 = vmax.f32 %v1383_v43, 0.0 }
 0x11c   : > { %v1131_v50 = vpop.f32.mrf.mxu0  ;;  %1322 = vmatmul.mubr.bf16.gmra.mxu0 %v2514_v38  ;;  %v1387_v51 = vpop.f32.mrf.mxu1  ;;  %1578 = vmatmul.mubr.bf16.gmra.mxu1 %v2578_v39 }
 0x11d   : > { %v2740_v53 = vpack.c.bf16 %v1629_v48, %v1629_v48  ;;  %v2804_v54 = vpack.c.bf16 %v1693_v49, %v1693_v49  ;;  %v1132_v55 = vadd.f32 %v3339_v59, %v1131_v50  ;;  %v1388_v56 = vadd.f32 %v3339_v59, %v1387_v51  ;;  %1329 = vmatprep.mubr.bf16.mxu0 %v3078_v44  ;;  %v3088_v51 = vld [vmem:[%s3173_s28 + $0x1d0] ss:$8 sps:$4 sm:$0xff]  }
 0x11e   : > { %v1133_v61 = vpop.f32.mrf.mxu0  ;;  %v1389_v62 = vpop.f32.mrf.mxu1  ;;  %1585 = vmatprep.mubr.bf16.mxu1 %v3080_v47 }
 0x11f   : > { %2270 = vst.msk [vmem:[%s3351_s5 + $0xc] sm:$0xf] %vm2266_vm0, %v2740_v53  ;;  %2334 = vst.msk [vmem:[%s3351_s5 + $0x10c] sm:$0xf] %vm2266_vm0, %v2804_v54  ;;  %v1630_v63 = vmax.f32 %v1132_v55, 0.0  ;;  %v1694_v0 = vmax.f32 %v1388_v56, 0.0 }
 0x120   : > { %v1134_v1 = vpop.f32.mrf.mxu0  ;;  %v1390_v2 = vpop.f32.mrf.mxu1  ;;  %v3099_v61 = vld [vmem:[%s3173_s28 + $0x3e4] ss:$8 sps:$4 sm:$0xff]  }
 0x121   : > { %v2741_v5 = vpack.c.bf16 %v1630_v63, %v1630_v63  ;;  %v2805_v6 = vpack.c.bf16 %v1694_v0, %v1694_v0  ;;  %v1135_v7 = vadd.f32 %v3339_v59, %v1134_v1  ;;  %v1391_v8 = vadd.f32 %v3339_v59, %v1390_v2 }
 0x122   : > { %v1136_v10 = vpop.f32.mrf.mxu0  ;;  %v1392_v11 = vpop.f32.mrf.mxu1 }
 0x123   : > { %2271 = vst.msk [vmem:[%s3351_s5 + $0x10] sm:$0xf] %vm2266_vm0, %v2741_v5  ;;  %2335 = vst.msk [vmem:[%s3351_s5 + $0x110] sm:$0xf] %vm2266_vm0, %v2805_v6  ;;  %v1631_v13 = vmax.f32 %v1135_v7, 0.0  ;;  %v1695_v14 = vmax.f32 %v1391_v8, 0.0 }
 0x124   : > { %v1139_v15 = vpop.f32.mrf.mxu0  ;;  %1330 = vmatmul.mubr.bf16.gmra.mxu0 %v2516_v3  ;;  %v1395_v16 = vpop.f32.mrf.mxu1  ;;  %1586 = vmatmul.mubr.bf16.gmra.mxu1 %v2580_v4 }
 0x125   : > { %v2742_v17 = vpack.c.bf16 %v1631_v13, %v1631_v13  ;;  %v2806_v18 = vpack.c.bf16 %v1695_v14, %v1695_v14  ;;  %v1140_v19 = vadd.f32 %v3339_v59, %v1139_v15  ;;  %v1396_v20 = vadd.f32 %v3339_v59, %v1395_v16  ;;  %1337 = vmatprep.mubr.bf16.mxu0 %v3084_v9  ;;  %v3097_v13 = vld [vmem:[%s3173_s28 + $0x3e0] ss:$8 sps:$4 sm:$0xff]  }
 0x126   : > { %v1141_v21 = vpop.f32.mrf.mxu0  ;;  %v1397_v22 = vpop.f32.mrf.mxu1  ;;  %1593 = vmatprep.mubr.bf16.mxu1 %v3087_v12  ;;  %v3094_v12 = vld [vmem:[%s3173_s28 + $0x1e0] ss:$8 sps:$4 sm:$0xff]  }
 0x127   : > { %2272 = vst.msk [vmem:[%s3351_s5 + $0x14] sm:$0xf] %vm2266_vm0, %v2742_v17  ;;  %2336 = vst.msk [vmem:[%s3351_s5 + $0x114] sm:$0xf] %vm2266_vm0, %v2806_v18  ;;  %v1632_v23 = vmax.f32 %v1140_v19, 0.0  ;;  %v1696_v24 = vmax.f32 %v1396_v20, 0.0 }
 0x128   : > { %v1142_v25 = vpop.f32.mrf.mxu0  ;;  %v1398_v26 = vpop.f32.mrf.mxu1  ;;  %v3102_v18 = vld [vmem:[%s3173_s28 + $0x1f4] ss:$8 sps:$4 sm:$0xff]  }
 0x129   : > { %v2743_v29 = vpack.c.bf16 %v1632_v23, %v1632_v23  ;;  %v2807_v30 = vpack.c.bf16 %v1696_v24, %v1696_v24  ;;  %v1143_v31 = vadd.f32 %v3339_v59, %v1142_v25  ;;  %v1399_v32 = vadd.f32 %v3339_v59, %v1398_v26  ;;  %v3105_v21 = vld [vmem:[%s3173_s28 + $0x3f4] ss:$8 sps:$4 sm:$0xff]  }
 0x12a   : > { %v1144_v34 = vpop.f32.mrf.mxu0  ;;  %v1400_v35 = vpop.f32.mrf.mxu1 }
 0x12b   : > { %2273 = vst.msk [vmem:[%s3351_s5 + $0x18] sm:$0xf] %vm2266_vm0, %v2743_v29  ;;  %2337 = vst.msk [vmem:[%s3351_s5 + $0x118] sm:$0xf] %vm2266_vm0, %v2807_v30  ;;  %v1633_v37 = vmax.f32 %v1143_v31, 0.0  ;;  %v1697_v38 = vmax.f32 %v1399_v32, 0.0 }
 0x12c   : > { %v1147_v39 = vpop.f32.mrf.mxu0  ;;  %1338 = vmatmul.mubr.bf16.gmra.mxu0 %v3082_v27  ;;  %v1403_v40 = vpop.f32.mrf.mxu1  ;;  %1594 = vmatmul.mubr.bf16.gmra.mxu1 %v3085_v28 }
 0x12d   : > { %v2744_v41 = vpack.c.bf16 %v1633_v37, %v1633_v37  ;;  %v2808_v42 = vpack.c.bf16 %v1697_v38, %v1697_v38  ;;  %v1148_v43 = vadd.f32 %v3339_v59, %v1147_v39  ;;  %v1404_v44 = vadd.f32 %v3339_v59, %v1403_v40  ;;  %1345 = vmatprep.mubr.bf16.mxu0 %v3090_v33  ;;  %v3103_v37 = vld [vmem:[%s3173_s28 + $0x3f0] ss:$8 sps:$4 sm:$0xff]  }
 0x12e   : > { %v1149_v45 = vpop.f32.mrf.mxu0  ;;  %v1405_v46 = vpop.f32.mrf.mxu1  ;;  %1601 = vmatprep.mubr.bf16.mxu1 %v3093_v36  ;;  %v3100_v36 = vld [vmem:[%s3173_s28 + $0x1f0] ss:$8 sps:$4 sm:$0xff]  }
 0x12f   : > { %2274 = vst.msk [vmem:[%s3351_s5 + $0x1c] sm:$0xf] %vm2266_vm0, %v2744_v41  ;;  %2338 = vst.msk [vmem:[%s3351_s5 + $0x11c] sm:$0xf] %vm2266_vm0, %v2808_v42  ;;  %v1634_v47 = vmax.f32 %v1148_v43, 0.0  ;;  %v1698_v48 = vmax.f32 %v1404_v44, 0.0 }
 0x130   : > { %v1150_v49 = vpop.f32.mrf.mxu0  ;;  %v1406_v50 = vpop.f32.mrf.mxu1 }
 0x131   : > { %v2745_v53 = vpack.c.bf16 %v1634_v47, %v1634_v47  ;;  %v2809_v54 = vpack.c.bf16 %v1698_v48, %v1698_v48  ;;  %v1151_v55 = vadd.f32 %v3339_v59, %v1150_v49  ;;  %v1407_v56 = vadd.f32 %v3339_v59, %v1406_v50 }
 0x132   : > { %v1152_v58 = vpop.f32.mrf.mxu0  ;;  %v1408_v60 = vpop.f32.mrf.mxu1 }
 0x133   : > { %2275 = vst.msk [vmem:[%s3351_s5 + $0x20] sm:$0xf] %vm2266_vm0, %v2745_v53  ;;  %2339 = vst.msk [vmem:[%s3351_s5 + $0x120] sm:$0xf] %vm2266_vm0, %v2809_v54  ;;  %v1635_v62 = vmax.f32 %v1151_v55, 0.0  ;;  %v1699_v63 = vmax.f32 %v1407_v56, 0.0 }
 0x134   : > { %v1155_v0 = vpop.f32.mrf.mxu0  ;;  %1346 = vmatmul.mubr.bf16.gmra.mxu0 %v3088_v51  ;;  %v1411_v1 = vpop.f32.mrf.mxu1  ;;  %1602 = vmatmul.mubr.bf16.gmra.mxu1 %v3091_v52 }
 0x135   : > { %v2746_v2 = vpack.c.bf16 %v1635_v62, %v1635_v62  ;;  %v2810_v3 = vpack.c.bf16 %v1699_v63, %v1699_v63  ;;  %v1156_v4 = vadd.f32 %v3339_v59, %v1155_v0  ;;  %v1412_v5 = vadd.f32 %v3339_v59, %v1411_v1  ;;  %1353 = vmatprep.mubr.bf16.mxu0 %v3096_v57 }
 0x136   : > { %v1157_v6 = vpop.f32.mrf.mxu0  ;;  %v1413_v7 = vpop.f32.mrf.mxu1  ;;  %1609 = vmatprep.mubr.bf16.mxu1 %v3099_v61 }
 0x137   : > { %2276 = vst.msk [vmem:[%s3351_s5 + $0x24] sm:$0xf] %vm2266_vm0, %v2746_v2  ;;  %2340 = vst.msk [vmem:[%s3351_s5 + $0x124] sm:$0xf] %vm2266_vm0, %v2810_v3  ;;  %v1636_v8 = vmax.f32 %v1156_v4, 0.0  ;;  %v1700_v9 = vmax.f32 %v1412_v5, 0.0 }
 0x138   : > { %v1158_v10 = vpop.f32.mrf.mxu0  ;;  %v1414_v11 = vpop.f32.mrf.mxu1 }
 0x139   : > { %v2747_v14 = vpack.c.bf16 %v1636_v8, %v1636_v8  ;;  %v2811_v15 = vpack.c.bf16 %v1700_v9, %v1700_v9  ;;  %v1159_v16 = vadd.f32 %v3339_v59, %v1158_v10  ;;  %v1415_v17 = vadd.f32 %v3339_v59, %v1414_v11 }
 0x13a   : > { %v1160_v19 = vpop.f32.mrf.mxu0  ;;  %v1416_v20 = vpop.f32.mrf.mxu1 }
 0x13b   : > { %2277 = vst.msk [vmem:[%s3351_s5 + $0x28] sm:$0xf] %vm2266_vm0, %v2747_v14  ;;  %2341 = vst.msk [vmem:[%s3351_s5 + $0x128] sm:$0xf] %vm2266_vm0, %v2811_v15  ;;  %v1637_v22 = vmax.f32 %v1159_v16, 0.0  ;;  %v1701_v23 = vmax.f32 %v1415_v17, 0.0 }
 0x13c   : > { %v1163_v24 = vpop.f32.mrf.mxu0  ;;  %1354 = vmatmul.mubr.bf16.gmra.mxu0 %v3094_v12  ;;  %v1419_v25 = vpop.f32.mrf.mxu1  ;;  %1610 = vmatmul.mubr.bf16.gmra.mxu1 %v3097_v13 }
 0x13d   : > { %v2748_v26 = vpack.c.bf16 %v1637_v22, %v1637_v22  ;;  %v2812_v27 = vpack.c.bf16 %v1701_v23, %v1701_v23  ;;  %v1164_v28 = vadd.f32 %v3339_v59, %v1163_v24  ;;  %v1420_v29 = vadd.f32 %v3339_v59, %v1419_v25  ;;  %1361 = vmatprep.mubr.bf16.mxu0 %v3102_v18 }
 0x13e   : > { %v1165_v30 = vpop.f32.mrf.mxu0  ;;  %v1421_v31 = vpop.f32.mrf.mxu1  ;;  %1617 = vmatprep.mubr.bf16.mxu1 %v3105_v21 }
 0x13f   : > { %2278 = vst.msk [vmem:[%s3351_s5 + $0x2c] sm:$0xf] %vm2266_vm0, %v2748_v26  ;;  %2342 = vst.msk [vmem:[%s3351_s5 + $0x12c] sm:$0xf] %vm2266_vm0, %v2812_v27  ;;  %v1638_v32 = vmax.f32 %v1164_v28, 0.0  ;;  %v1702_v33 = vmax.f32 %v1420_v29, 0.0 }
 0x140   : > { %v1166_v34 = vpop.f32.mrf.mxu0  ;;  %v1422_v35 = vpop.f32.mrf.mxu1 }
 0x141   : > { %v2749_v38 = vpack.c.bf16 %v1638_v32, %v1638_v32  ;;  %v2813_v39 = vpack.c.bf16 %v1702_v33, %v1702_v33  ;;  %v1167_v40 = vadd.f32 %v3339_v59, %v1166_v34  ;;  %v1423_v41 = vadd.f32 %v3339_v59, %v1422_v35 }
 0x142   : > { %v1168_v42 = vpop.f32.mrf.mxu0  ;;  %v1424_v43 = vpop.f32.mrf.mxu1 }
 0x143   : > { %2279 = vst.msk [vmem:[%s3351_s5 + $0x30] sm:$0xf] %vm2266_vm0, %v2749_v38  ;;  %2343 = vst.msk [vmem:[%s3351_s5 + $0x130] sm:$0xf] %vm2266_vm0, %v2813_v39  ;;  %v1639_v44 = vmax.f32 %v1167_v40, 0.0  ;;  %v1703_v45 = vmax.f32 %v1423_v41, 0.0 }
 0x144   : > { %v1171_v46 = vpop.f32.mrf.mxu0  ;;  %1362 = vmatmul.mubr.bf16.gmra.mxu0 %v3100_v36  ;;  %v1427_v47 = vpop.f32.mrf.mxu1  ;;  %1618 = vmatmul.mubr.bf16.gmra.mxu1 %v3103_v37 }
 0x145   : > { %v2750_v48 = vpack.c.bf16 %v1639_v44, %v1639_v44  ;;  %v2814_v49 = vpack.c.bf16 %v1703_v45, %v1703_v45  ;;  %v1172_v50 = vadd.f32 %v3339_v59, %v1171_v46  ;;  %v1428_v51 = vadd.f32 %v3339_v59, %v1427_v47 }
 0x146   : > { %v1173_v52 = vpop.f32.mrf.mxu0  ;;  %v1429_v53 = vpop.f32.mrf.mxu1 }
 0x147   : > { %2280 = vst.msk [vmem:[%s3351_s5 + $0x34] sm:$0xf] %vm2266_vm0, %v2750_v48  ;;  %2344 = vst.msk [vmem:[%s3351_s5 + $0x134] sm:$0xf] %vm2266_vm0, %v2814_v49  ;;  %v1640_v54 = vmax.f32 %v1172_v50, 0.0  ;;  %v1704_v55 = vmax.f32 %v1428_v51, 0.0 }
 0x148   : > { %v1174_v56 = vpop.f32.mrf.mxu0  ;;  %v1430_v57 = vpop.f32.mrf.mxu1 }
 0x149   : > { %v2751_v58 = vpack.c.bf16 %v1640_v54, %v1640_v54  ;;  %v2815_v60 = vpack.c.bf16 %v1704_v55, %v1704_v55  ;;  %v1175_v61 = vadd.f32 %v3339_v59, %v1174_v56  ;;  %v1431_v62 = vadd.f32 %v3339_v59, %v1430_v57 }
 0x14a   : > { %v1176_v63 = vpop.f32.mrf.mxu0  ;;  %v1432_v0 = vpop.f32.mrf.mxu1 }
 0x14b   : > { %2281 = vst.msk [vmem:[%s3351_s5 + $0x38] sm:$0xf] %vm2266_vm0, %v2751_v58  ;;  %2345 = vst.msk [vmem:[%s3351_s5 + $0x138] sm:$0xf] %vm2266_vm0, %v2815_v60  ;;  %v1641_v1 = vmax.f32 %v1175_v61, 0.0  ;;  %v1705_v2 = vmax.f32 %v1431_v62, 0.0 }
 0x14c   : > { %v1179_v3 = vpop.f32.mrf.mxu0  ;;  %v1435_v4 = vpop.f32.mrf.mxu1 }
 0x14d   : > { %v2752_v5 = vpack.c.bf16 %v1641_v1, %v1641_v1  ;;  %v2816_v6 = vpack.c.bf16 %v1705_v2, %v1705_v2  ;;  %v1180_v7 = vadd.f32 %v3339_v59, %v1179_v3  ;;  %v1436_v8 = vadd.f32 %v3339_v59, %v1435_v4 }
 0x14e   : > { %v1181_v9 = vpop.f32.mrf.mxu0  ;;  %v1437_v10 = vpop.f32.mrf.mxu1 }
 0x14f   : > { %2282 = vst.msk [vmem:[%s3351_s5 + $0x3c] sm:$0xf] %vm2266_vm0, %v2752_v5  ;;  %2346 = vst.msk [vmem:[%s3351_s5 + $0x13c] sm:$0xf] %vm2266_vm0, %v2816_v6  ;;  %v1642_v11 = vmax.f32 %v1180_v7, 0.0  ;;  %v1706_v12 = vmax.f32 %v1436_v8, 0.0 }
 0x150   : > { %v1182_v13 = vpop.f32.mrf.mxu0  ;;  %v1438_v14 = vpop.f32.mrf.mxu1 }
 0x151   : > { %v2753_v15 = vpack.c.bf16 %v1642_v11, %v1642_v11  ;;  %v2817_v16 = vpack.c.bf16 %v1706_v12, %v1706_v12  ;;  %v1183_v17 = vadd.f32 %v3339_v59, %v1182_v13  ;;  %v1439_v18 = vadd.f32 %v3339_v59, %v1438_v14 }
 0x152   : > { %v1184_v19 = vpop.f32.mrf.mxu0  ;;  %v1440_v20 = vpop.f32.mrf.mxu1 }
 0x153   : > { %2283 = vst.msk [vmem:[%s3351_s5 + $0x40] sm:$0xf] %vm2266_vm0, %v2753_v15  ;;  %2347 = vst.msk [vmem:[%s3351_s5 + $0x140] sm:$0xf] %vm2266_vm0, %v2817_v16  ;;  %v1643_v21 = vmax.f32 %v1183_v17, 0.0  ;;  %v1707_v22 = vmax.f32 %v1439_v18, 0.0 }
 0x154   : > { %v1187_v23 = vpop.f32.mrf.mxu0  ;;  %v1443_v24 = vpop.f32.mrf.mxu1 }
 0x155   : > { %v2754_v25 = vpack.c.bf16 %v1643_v21, %v1643_v21  ;;  %v2818_v26 = vpack.c.bf16 %v1707_v22, %v1707_v22  ;;  %v1188_v27 = vadd.f32 %v3339_v59, %v1187_v23  ;;  %v1444_v28 = vadd.f32 %v3339_v59, %v1443_v24 }
 0x156   : > { %v1189_v29 = vpop.f32.mrf.mxu0  ;;  %v1445_v30 = vpop.f32.mrf.mxu1 }
 0x157   : > { %2284 = vst.msk [vmem:[%s3351_s5 + $0x44] sm:$0xf] %vm2266_vm0, %v2754_v25  ;;  %2348 = vst.msk [vmem:[%s3351_s5 + $0x144] sm:$0xf] %vm2266_vm0, %v2818_v26  ;;  %v1644_v31 = vmax.f32 %v1188_v27, 0.0  ;;  %v1708_v32 = vmax.f32 %v1444_v28, 0.0 }
 0x158   : > { %v1190_v33 = vpop.f32.mrf.mxu0  ;;  %v1446_v34 = vpop.f32.mrf.mxu1 }
 0x159   : > { %v2755_v35 = vpack.c.bf16 %v1644_v31, %v1644_v31  ;;  %v2819_v36 = vpack.c.bf16 %v1708_v32, %v1708_v32  ;;  %v1191_v37 = vadd.f32 %v3339_v59, %v1190_v33  ;;  %v1447_v38 = vadd.f32 %v3339_v59, %v1446_v34 }
 0x15a   : > { %v1192_v39 = vpop.f32.mrf.mxu0  ;;  %v1448_v40 = vpop.f32.mrf.mxu1 }
 0x15b   : > { %2285 = vst.msk [vmem:[%s3351_s5 + $0x48] sm:$0xf] %vm2266_vm0, %v2755_v35  ;;  %2349 = vst.msk [vmem:[%s3351_s5 + $0x148] sm:$0xf] %vm2266_vm0, %v2819_v36  ;;  %v1645_v41 = vmax.f32 %v1191_v37, 0.0  ;;  %v1709_v42 = vmax.f32 %v1447_v38, 0.0 }
 0x15c   : > { %v1195_v43 = vpop.f32.mrf.mxu0  ;;  %v1451_v44 = vpop.f32.mrf.mxu1 }
 0x15d   : > { %v2756_v45 = vpack.c.bf16 %v1645_v41, %v1645_v41  ;;  %v2820_v46 = vpack.c.bf16 %v1709_v42, %v1709_v42  ;;  %v1196_v47 = vadd.f32 %v3339_v59, %v1195_v43  ;;  %v1452_v48 = vadd.f32 %v3339_v59, %v1451_v44 }
 0x15e   : > { %v1197_v49 = vpop.f32.mrf.mxu0  ;;  %v1453_v50 = vpop.f32.mrf.mxu1 }
 0x15f   : > { %2286 = vst.msk [vmem:[%s3351_s5 + $0x4c] sm:$0xf] %vm2266_vm0, %v2756_v45  ;;  %2350 = vst.msk [vmem:[%s3351_s5 + $0x14c] sm:$0xf] %vm2266_vm0, %v2820_v46  ;;  %v1646_v51 = vmax.f32 %v1196_v47, 0.0  ;;  %v1710_v52 = vmax.f32 %v1452_v48, 0.0 }
 0x160   : > { %v1198_v53 = vpop.f32.mrf.mxu0  ;;  %v1454_v54 = vpop.f32.mrf.mxu1 }
 0x161   : > { %v2757_v55 = vpack.c.bf16 %v1646_v51, %v1646_v51  ;;  %v2821_v56 = vpack.c.bf16 %v1710_v52, %v1710_v52  ;;  %v1199_v57 = vadd.f32 %v3339_v59, %v1198_v53  ;;  %v1455_v58 = vadd.f32 %v3339_v59, %v1454_v54 }
 0x162   : > { %v1200_v60 = vpop.f32.mrf.mxu0  ;;  %v1456_v61 = vpop.f32.mrf.mxu1 }
 0x163   : > { %2287 = vst.msk [vmem:[%s3351_s5 + $0x50] sm:$0xf] %vm2266_vm0, %v2757_v55  ;;  %2351 = vst.msk [vmem:[%s3351_s5 + $0x150] sm:$0xf] %vm2266_vm0, %v2821_v56  ;;  %v1647_v62 = vmax.f32 %v1199_v57, 0.0  ;;  %v1711_v63 = vmax.f32 %v1455_v58, 0.0 }
 0x164   : > { %v1203_v0 = vpop.f32.mrf.mxu0  ;;  %v1459_v1 = vpop.f32.mrf.mxu1 }
 0x165   : > { %v2758_v2 = vpack.c.bf16 %v1647_v62, %v1647_v62  ;;  %v2822_v3 = vpack.c.bf16 %v1711_v63, %v1711_v63  ;;  %v1204_v4 = vadd.f32 %v3339_v59, %v1203_v0  ;;  %v1460_v5 = vadd.f32 %v3339_v59, %v1459_v1 }
 0x166   : > { %v1205_v6 = vpop.f32.mrf.mxu0  ;;  %v1461_v7 = vpop.f32.mrf.mxu1 }
 0x167   : > { %2288 = vst.msk [vmem:[%s3351_s5 + $0x54] sm:$0xf] %vm2266_vm0, %v2758_v2  ;;  %2352 = vst.msk [vmem:[%s3351_s5 + $0x154] sm:$0xf] %vm2266_vm0, %v2822_v3  ;;  %v1648_v8 = vmax.f32 %v1204_v4, 0.0  ;;  %v1712_v9 = vmax.f32 %v1460_v5, 0.0 }
 0x168   : > { %v1206_v10 = vpop.f32.mrf.mxu0  ;;  %v1462_v11 = vpop.f32.mrf.mxu1 }
 0x169   : > { %v2759_v12 = vpack.c.bf16 %v1648_v8, %v1648_v8  ;;  %v2823_v13 = vpack.c.bf16 %v1712_v9, %v1712_v9  ;;  %v1207_v14 = vadd.f32 %v3339_v59, %v1206_v10  ;;  %v1463_v15 = vadd.f32 %v3339_v59, %v1462_v11 }
 0x16a   : > { %v1208_v16 = vpop.f32.mrf.mxu0  ;;  %v1464_v17 = vpop.f32.mrf.mxu1 }
 0x16b   : > { %2289 = vst.msk [vmem:[%s3351_s5 + $0x58] sm:$0xf] %vm2266_vm0, %v2759_v12  ;;  %2353 = vst.msk [vmem:[%s3351_s5 + $0x158] sm:$0xf] %vm2266_vm0, %v2823_v13  ;;  %v1649_v18 = vmax.f32 %v1207_v14, 0.0  ;;  %v1713_v19 = vmax.f32 %v1463_v15, 0.0 }
 0x16c   : > { %v1211_v20 = vpop.f32.mrf.mxu0  ;;  %v1467_v21 = vpop.f32.mrf.mxu1 }
 0x16d   : > { %v2760_v22 = vpack.c.bf16 %v1649_v18, %v1649_v18  ;;  %v2824_v23 = vpack.c.bf16 %v1713_v19, %v1713_v19  ;;  %v1212_v24 = vadd.f32 %v3339_v59, %v1211_v20  ;;  %v1468_v25 = vadd.f32 %v3339_v59, %v1467_v21 }
 0x16e   : > { %v1213_v26 = vpop.f32.mrf.mxu0  ;;  %v1469_v27 = vpop.f32.mrf.mxu1 }
 0x16f   : > { %2290 = vst.msk [vmem:[%s3351_s5 + $0x5c] sm:$0xf] %vm2266_vm0, %v2760_v22  ;;  %2354 = vst.msk [vmem:[%s3351_s5 + $0x15c] sm:$0xf] %vm2266_vm0, %v2824_v23  ;;  %v1650_v28 = vmax.f32 %v1212_v24, 0.0  ;;  %v1714_v29 = vmax.f32 %v1468_v25, 0.0 }
 0x170   : > { %v1214_v30 = vpop.f32.mrf.mxu0  ;;  %v1470_v31 = vpop.f32.mrf.mxu1 }
 0x171   : > { %v2761_v32 = vpack.c.bf16 %v1650_v28, %v1650_v28  ;;  %v2825_v33 = vpack.c.bf16 %v1714_v29, %v1714_v29  ;;  %v1215_v34 = vadd.f32 %v3339_v59, %v1214_v30  ;;  %v1471_v35 = vadd.f32 %v3339_v59, %v1470_v31 }
 0x172   : > { %v1216_v36 = vpop.f32.mrf.mxu0  ;;  %v1472_v37 = vpop.f32.mrf.mxu1 }
 0x173   : > { %2291 = vst.msk [vmem:[%s3351_s5 + $0x60] sm:$0xf] %vm2266_vm0, %v2761_v32  ;;  %2355 = vst.msk [vmem:[%s3351_s5 + $0x160] sm:$0xf] %vm2266_vm0, %v2825_v33  ;;  %v1651_v38 = vmax.f32 %v1215_v34, 0.0  ;;  %v1715_v39 = vmax.f32 %v1471_v35, 0.0 }
 0x174   : > { %v1219_v40 = vpop.f32.mrf.mxu0  ;;  %v1475_v41 = vpop.f32.mrf.mxu1 }
 0x175   : > { %v2762_v42 = vpack.c.bf16 %v1651_v38, %v1651_v38  ;;  %v2826_v43 = vpack.c.bf16 %v1715_v39, %v1715_v39  ;;  %v1220_v44 = vadd.f32 %v3339_v59, %v1219_v40  ;;  %v1476_v45 = vadd.f32 %v3339_v59, %v1475_v41 }
 0x176   : > { %v1221_v46 = vpop.f32.mrf.mxu0  ;;  %v1477_v47 = vpop.f32.mrf.mxu1 }
 0x177   : > { %2292 = vst.msk [vmem:[%s3351_s5 + $0x64] sm:$0xf] %vm2266_vm0, %v2762_v42  ;;  %2356 = vst.msk [vmem:[%s3351_s5 + $0x164] sm:$0xf] %vm2266_vm0, %v2826_v43  ;;  %v1652_v48 = vmax.f32 %v1220_v44, 0.0  ;;  %v1716_v49 = vmax.f32 %v1476_v45, 0.0 }
 0x178   : > { %v1222_v50 = vpop.f32.mrf.mxu0  ;;  %v1478_v51 = vpop.f32.mrf.mxu1 }
 0x179   : > { %v2763_v52 = vpack.c.bf16 %v1652_v48, %v1652_v48  ;;  %v2827_v53 = vpack.c.bf16 %v1716_v49, %v1716_v49  ;;  %v1223_v54 = vadd.f32 %v3339_v59, %v1222_v50  ;;  %v1479_v55 = vadd.f32 %v3339_v59, %v1478_v51 }
 0x17a   : > { %v1224_v56 = vpop.f32.mrf.mxu0  ;;  %v1480_v57 = vpop.f32.mrf.mxu1 }
 0x17b   : > { %2293 = vst.msk [vmem:[%s3351_s5 + $0x68] sm:$0xf] %vm2266_vm0, %v2763_v52  ;;  %2357 = vst.msk [vmem:[%s3351_s5 + $0x168] sm:$0xf] %vm2266_vm0, %v2827_v53  ;;  %v1653_v58 = vmax.f32 %v1223_v54, 0.0  ;;  %v1717_v60 = vmax.f32 %v1479_v55, 0.0 }
 0x17c   : > { %v1227_v61 = vpop.f32.mrf.mxu0  ;;  %v1483_v62 = vpop.f32.mrf.mxu1 }
 0x17d   : > { %v2764_v63 = vpack.c.bf16 %v1653_v58, %v1653_v58  ;;  %v2828_v0 = vpack.c.bf16 %v1717_v60, %v1717_v60  ;;  %v1228_v1 = vadd.f32 %v3339_v59, %v1227_v61  ;;  %v1484_v2 = vadd.f32 %v3339_v59, %v1483_v62 }
 0x17e   : > { %v1229_v3 = vpop.f32.mrf.mxu0  ;;  %v1485_v4 = vpop.f32.mrf.mxu1 }
 0x17f   : > { %2294 = vst.msk [vmem:[%s3351_s5 + $0x6c] sm:$0xf] %vm2266_vm0, %v2764_v63  ;;  %2358 = vst.msk [vmem:[%s3351_s5 + $0x16c] sm:$0xf] %vm2266_vm0, %v2828_v0  ;;  %v1654_v5 = vmax.f32 %v1228_v1, 0.0  ;;  %v1718_v6 = vmax.f32 %v1484_v2, 0.0 }
 0x180   : > { %v1230_v7 = vpop.f32.mrf.mxu0  ;;  %v1486_v8 = vpop.f32.mrf.mxu1 }
 0x181   : > { %v2765_v9 = vpack.c.bf16 %v1654_v5, %v1654_v5  ;;  %v2829_v10 = vpack.c.bf16 %v1718_v6, %v1718_v6  ;;  %v1231_v11 = vadd.f32 %v3339_v59, %v1230_v7  ;;  %v1487_v12 = vadd.f32 %v3339_v59, %v1486_v8 }
 0x182   : > { %v1232_v13 = vpop.f32.mrf.mxu0  ;;  %v1488_v14 = vpop.f32.mrf.mxu1 }
 0x183   : > { %2295 = vst.msk [vmem:[%s3351_s5 + $0x70] sm:$0xf] %vm2266_vm0, %v2765_v9  ;;  %2359 = vst.msk [vmem:[%s3351_s5 + $0x170] sm:$0xf] %vm2266_vm0, %v2829_v10  ;;  %v1655_v15 = vmax.f32 %v1231_v11, 0.0  ;;  %v1719_v16 = vmax.f32 %v1487_v12, 0.0 }
 0x184   : > { %v1235_v17 = vpop.f32.mrf.mxu0  ;;  %v1491_v18 = vpop.f32.mrf.mxu1 }
 0x185   : > { %v2766_v19 = vpack.c.bf16 %v1655_v15, %v1655_v15  ;;  %v2830_v20 = vpack.c.bf16 %v1719_v16, %v1719_v16  ;;  %v1236_v21 = vadd.f32 %v3339_v59, %v1235_v17  ;;  %v1492_v22 = vadd.f32 %v3339_v59, %v1491_v18 }
 0x186   : > { %v1237_v23 = vpop.f32.mrf.mxu0  ;;  %v1493_v24 = vpop.f32.mrf.mxu1 }
 0x187   : > { %2296 = vst.msk [vmem:[%s3351_s5 + $0x74] sm:$0xf] %vm2266_vm0, %v2766_v19  ;;  %2360 = vst.msk [vmem:[%s3351_s5 + $0x174] sm:$0xf] %vm2266_vm0, %v2830_v20  ;;  %v1656_v25 = vmax.f32 %v1236_v21, 0.0  ;;  %v1720_v26 = vmax.f32 %v1492_v22, 0.0 }
 0x188   : > { %v1238_v27 = vpop.f32.mrf.mxu0  ;;  %v1494_v28 = vpop.f32.mrf.mxu1 }
 0x189   : > { %v2767_v29 = vpack.c.bf16 %v1656_v25, %v1656_v25  ;;  %v2831_v30 = vpack.c.bf16 %v1720_v26, %v1720_v26  ;;  %v1239_v31 = vadd.f32 %v3339_v59, %v1238_v27  ;;  %v1495_v32 = vadd.f32 %v3339_v59, %v1494_v28  ;;  %v3600_v28 = vld [vmem:[%s3773_s2] ss:$0 sm:$0xff] }
 0x18a   : > { %v1240_v33 = vpop.f32.mrf.mxu0  ;;  %v1496_v34 = vpop.f32.mrf.mxu1 }
 0x18b   : > { %2297 = vst.msk [vmem:[%s3351_s5 + $0x78] sm:$0xf] %vm2266_vm0, %v2767_v29  ;;  %2361 = vst.msk [vmem:[%s3351_s5 + $0x178] sm:$0xf] %vm2266_vm0, %v2831_v30  ;;  %v1657_v35 = vmax.f32 %v1239_v31, 0.0  ;;  %v1721_v36 = vmax.f32 %v1495_v32, 0.0 }
 0x18c   : > { %v1243_v37 = vpop.f32.mrf.mxu0  ;;  %v1499_v38 = vpop.f32.mrf.mxu1 }
 0x18d   : > { %v2768_v39 = vpack.c.bf16 %v1657_v35, %v1657_v35  ;;  %v2832_v40 = vpack.c.bf16 %v1721_v36, %v1721_v36  ;;  %v1244_v41 = vadd.f32 %v3339_v59, %v1243_v37  ;;  %v1500_v42 = vadd.f32 %v3339_v59, %v1499_v38 }
 0x18e   : > { %v1245_v43 = vpop.f32.mrf.mxu0  ;;  %v1501_v44 = vpop.f32.mrf.mxu1 }
 0x18f   : > { %2298 = vst.msk [vmem:[%s3351_s5 + $0x7c] sm:$0xf] %vm2266_vm0, %v2768_v39  ;;  %2362 = vst.msk [vmem:[%s3351_s5 + $0x17c] sm:$0xf] %vm2266_vm0, %v2832_v40  ;;  %v1658_v45 = vmax.f32 %v1244_v41, 0.0  ;;  %v1722_v46 = vmax.f32 %v1500_v42, 0.0 }
 0x190   : > { %v1246_v47 = vpop.f32.mrf.mxu0  ;;  %v1502_v48 = vpop.f32.mrf.mxu1 }
 0x191   : > { %v2769_v49 = vpack.c.bf16 %v1658_v45, %v1658_v45  ;;  %v2833_v50 = vpack.c.bf16 %v1722_v46, %v1722_v46  ;;  %v1247_v51 = vadd.f32 %v3339_v59, %v1246_v47  ;;  %v1503_v52 = vadd.f32 %v3339_v59, %v1502_v48 }
 0x192   : > { %v1248_v53 = vpop.f32.mrf.mxu0  ;;  %v1504_v54 = vpop.f32.mrf.mxu1 }
 0x193   : > { %2299 = vst.msk [vmem:[%s3351_s5 + $0x80] sm:$0xf] %vm2266_vm0, %v2769_v49  ;;  %2363 = vst.msk [vmem:[%s3351_s5 + $0x180] sm:$0xf] %vm2266_vm0, %v2833_v50  ;;  %v1659_v55 = vmax.f32 %v1247_v51, 0.0  ;;  %v1723_v56 = vmax.f32 %v1503_v52, 0.0 }
 0x194   : > { %v1251_v57 = vpop.f32.mrf.mxu0  ;;  %v1507_v58 = vpop.f32.mrf.mxu1 }
 0x195   : > { %v2770_v60 = vpack.c.bf16 %v1659_v55, %v1659_v55  ;;  %v2834_v61 = vpack.c.bf16 %v1723_v56, %v1723_v56  ;;  %v1252_v62 = vadd.f32 %v3339_v59, %v1251_v57  ;;  %v1508_v63 = vadd.f32 %v3339_v59, %v1507_v58 }
 0x196   : > { %v1253_v0 = vpop.f32.mrf.mxu0  ;;  %v1509_v1 = vpop.f32.mrf.mxu1 }
 0x197   : > { %2300 = vst.msk [vmem:[%s3351_s5 + $0x84] sm:$0xf] %vm2266_vm0, %v2770_v60  ;;  %2364 = vst.msk [vmem:[%s3351_s5 + $0x184] sm:$0xf] %vm2266_vm0, %v2834_v61  ;;  %v1660_v2 = vmax.f32 %v1252_v62, 0.0  ;;  %v1724_v3 = vmax.f32 %v1508_v63, 0.0 }
 0x198   : > { %v1254_v4 = vpop.f32.mrf.mxu0  ;;  %v1510_v5 = vpop.f32.mrf.mxu1 }
 0x199   : > { %v2771_v6 = vpack.c.bf16 %v1660_v2, %v1660_v2  ;;  %v2835_v7 = vpack.c.bf16 %v1724_v3, %v1724_v3  ;;  %v1255_v8 = vadd.f32 %v3339_v59, %v1254_v4  ;;  %v1511_v9 = vadd.f32 %v3339_v59, %v1510_v5 }
 0x19a   : > { %v1256_v10 = vpop.f32.mrf.mxu0  ;;  %v1512_v11 = vpop.f32.mrf.mxu1 }
 0x19b   : > { %2301 = vst.msk [vmem:[%s3351_s5 + $0x88] sm:$0xf] %vm2266_vm0, %v2771_v6  ;;  %2365 = vst.msk [vmem:[%s3351_s5 + $0x188] sm:$0xf] %vm2266_vm0, %v2835_v7  ;;  %v1661_v12 = vmax.f32 %v1255_v8, 0.0  ;;  %v1725_v13 = vmax.f32 %v1511_v9, 0.0 }
 0x19c   : > { %v1259_v14 = vpop.f32.mrf.mxu0  ;;  %v1515_v15 = vpop.f32.mrf.mxu1 }
 0x19d   : > { %v2772_v16 = vpack.c.bf16 %v1661_v12, %v1661_v12  ;;  %v2836_v17 = vpack.c.bf16 %v1725_v13, %v1725_v13  ;;  %v1260_v18 = vadd.f32 %v3339_v59, %v1259_v14  ;;  %v1516_v19 = vadd.f32 %v3339_v59, %v1515_v15 }
 0x19e   : > { %v1261_v20 = vpop.f32.mrf.mxu0  ;;  %v1517_v21 = vpop.f32.mrf.mxu1 }
 0x19f   : > { %2302 = vst.msk [vmem:[%s3351_s5 + $0x8c] sm:$0xf] %vm2266_vm0, %v2772_v16  ;;  %2366 = vst.msk [vmem:[%s3351_s5 + $0x18c] sm:$0xf] %vm2266_vm0, %v2836_v17  ;;  %v1662_v22 = vmax.f32 %v1260_v18, 0.0  ;;  %v1726_v23 = vmax.f32 %v1516_v19, 0.0 }
 0x1a0   : > { %v1262_v24 = vpop.f32.mrf.mxu0  ;;  %v1518_v25 = vpop.f32.mrf.mxu1 }
 0x1a1   : > { %v2773_v26 = vpack.c.bf16 %v1662_v22, %v1662_v22  ;;  %v2837_v27 = vpack.c.bf16 %v1726_v23, %v1726_v23  ;;  %v1263_v59 = vadd.f32 %v3600_v28, %v1262_v24  ;;  %v1519_v29 = vadd.f32 %v3600_v28, %v1518_v25 }
 0x1a2   : > { %v1264_v30 = vpop.f32.mrf.mxu0  ;;  %v1520_v31 = vpop.f32.mrf.mxu1 }
 0x1a3   : > { %2303 = vst.msk [vmem:[%s3351_s5 + $0x90] sm:$0xf] %vm2266_vm0, %v2773_v26  ;;  %2367 = vst.msk [vmem:[%s3351_s5 + $0x190] sm:$0xf] %vm2266_vm0, %v2837_v27  ;;  %v1663_v32 = vmax.f32 %v1263_v59, 0.0  ;;  %v1727_v33 = vmax.f32 %v1519_v29, 0.0 }
 0x1a4   : > { %v1267_v34 = vpop.f32.mrf.mxu0  ;;  %v1523_v35 = vpop.f32.mrf.mxu1 }
 0x1a5   : > { %v2774_v36 = vpack.c.bf16 %v1663_v32, %v1663_v32  ;;  %v2838_v37 = vpack.c.bf16 %v1727_v33, %v1727_v33  ;;  %v1268_v38 = vadd.f32 %v3600_v28, %v1267_v34  ;;  %v1524_v39 = vadd.f32 %v3600_v28, %v1523_v35 }
 0x1a6   : > { %v1269_v40 = vpop.f32.mrf.mxu0  ;;  %v1525_v41 = vpop.f32.mrf.mxu1 }
 0x1a7   : > { %2304 = vst.msk [vmem:[%s3351_s5 + $0x94] sm:$0xf] %vm2266_vm0, %v2774_v36  ;;  %2368 = vst.msk [vmem:[%s3351_s5 + $0x194] sm:$0xf] %vm2266_vm0, %v2838_v37  ;;  %v1664_v42 = vmax.f32 %v1268_v38, 0.0  ;;  %v1728_v43 = vmax.f32 %v1524_v39, 0.0 }
 0x1a8   : > { %v1270_v44 = vpop.f32.mrf.mxu0  ;;  %v1526_v45 = vpop.f32.mrf.mxu1 }
 0x1a9   : > { %v2775_v46 = vpack.c.bf16 %v1664_v42, %v1664_v42  ;;  %v2839_v47 = vpack.c.bf16 %v1728_v43, %v1728_v43  ;;  %v1271_v48 = vadd.f32 %v3600_v28, %v1270_v44  ;;  %v1527_v49 = vadd.f32 %v3600_v28, %v1526_v45 }
 0x1aa   : > { %v1272_v50 = vpop.f32.mrf.mxu0  ;;  %v1528_v51 = vpop.f32.mrf.mxu1 }
 0x1ab   : > { %2305 = vst.msk [vmem:[%s3351_s5 + $0x98] sm:$0xf] %vm2266_vm0, %v2775_v46  ;;  %2369 = vst.msk [vmem:[%s3351_s5 + $0x198] sm:$0xf] %vm2266_vm0, %v2839_v47  ;;  %v1665_v52 = vmax.f32 %v1271_v48, 0.0  ;;  %v1729_v53 = vmax.f32 %v1527_v49, 0.0 }
 0x1ac   : > { %v1275_v54 = vpop.f32.mrf.mxu0  ;;  %v1531_v55 = vpop.f32.mrf.mxu1 }
 0x1ad   : > { %v2776_v56 = vpack.c.bf16 %v1665_v52, %v1665_v52  ;;  %v2840_v57 = vpack.c.bf16 %v1729_v53, %v1729_v53  ;;  %v1276_v58 = vadd.f32 %v3600_v28, %v1275_v54  ;;  %v1532_v60 = vadd.f32 %v3600_v28, %v1531_v55 }
 0x1ae   : > { %v1277_v61 = vpop.f32.mrf.mxu0  ;;  %v1533_v62 = vpop.f32.mrf.mxu1 }
 0x1af   : > { %2306 = vst.msk [vmem:[%s3351_s5 + $0x9c] sm:$0xf] %vm2266_vm0, %v2776_v56  ;;  %2370 = vst.msk [vmem:[%s3351_s5 + $0x19c] sm:$0xf] %vm2266_vm0, %v2840_v57  ;;  %v1666_v63 = vmax.f32 %v1276_v58, 0.0  ;;  %v1730_v0 = vmax.f32 %v1532_v60, 0.0 }
 0x1b0   : > { %v1278_v1 = vpop.f32.mrf.mxu0  ;;  %v1534_v2 = vpop.f32.mrf.mxu1 }
 0x1b1   : > { %v2777_v3 = vpack.c.bf16 %v1666_v63, %v1666_v63  ;;  %v2841_v4 = vpack.c.bf16 %v1730_v0, %v1730_v0  ;;  %v1279_v5 = vadd.f32 %v3600_v28, %v1278_v1  ;;  %v1535_v6 = vadd.f32 %v3600_v28, %v1534_v2 }
 0x1b2   : > { %v1280_v7 = vpop.f32.mrf.mxu0  ;;  %v1536_v8 = vpop.f32.mrf.mxu1 }
 0x1b3   : > { %2307 = vst.msk [vmem:[%s3351_s5 + $0xa0] sm:$0xf] %vm2266_vm0, %v2777_v3  ;;  %2371 = vst.msk [vmem:[%s3351_s5 + $0x1a0] sm:$0xf] %vm2266_vm0, %v2841_v4  ;;  %v1667_v9 = vmax.f32 %v1279_v5, 0.0  ;;  %v1731_v10 = vmax.f32 %v1535_v6, 0.0 }
 0x1b4   : > { %v1283_v11 = vpop.f32.mrf.mxu0  ;;  %v1539_v12 = vpop.f32.mrf.mxu1 }
 0x1b5   : > { %v2778_v13 = vpack.c.bf16 %v1667_v9, %v1667_v9  ;;  %v2842_v14 = vpack.c.bf16 %v1731_v10, %v1731_v10  ;;  %v1284_v15 = vadd.f32 %v3600_v28, %v1283_v11  ;;  %v1540_v16 = vadd.f32 %v3600_v28, %v1539_v12 }
 0x1b6   : > { %v1285_v17 = vpop.f32.mrf.mxu0  ;;  %v1541_v18 = vpop.f32.mrf.mxu1 }
 0x1b7   : > { %2308 = vst.msk [vmem:[%s3351_s5 + $0xa4] sm:$0xf] %vm2266_vm0, %v2778_v13  ;;  %2372 = vst.msk [vmem:[%s3351_s5 + $0x1a4] sm:$0xf] %vm2266_vm0, %v2842_v14  ;;  %v1668_v19 = vmax.f32 %v1284_v15, 0.0  ;;  %v1732_v20 = vmax.f32 %v1540_v16, 0.0 }
 0x1b8   : > { %v1286_v21 = vpop.f32.mrf.mxu0  ;;  %v1542_v22 = vpop.f32.mrf.mxu1 }
 0x1b9   : > { %v2779_v23 = vpack.c.bf16 %v1668_v19, %v1668_v19  ;;  %v2843_v24 = vpack.c.bf16 %v1732_v20, %v1732_v20  ;;  %v1287_v25 = vadd.f32 %v3600_v28, %v1286_v21  ;;  %v1543_v26 = vadd.f32 %v3600_v28, %v1542_v22 }
 0x1ba   : > { %v1288_v27 = vpop.f32.mrf.mxu0  ;;  %v1544_v59 = vpop.f32.mrf.mxu1 }
 0x1bb   : > { %2309 = vst.msk [vmem:[%s3351_s5 + $0xa8] sm:$0xf] %vm2266_vm0, %v2779_v23  ;;  %2373 = vst.msk [vmem:[%s3351_s5 + $0x1a8] sm:$0xf] %vm2266_vm0, %v2843_v24  ;;  %v1669_v29 = vmax.f32 %v1287_v25, 0.0  ;;  %v1733_v30 = vmax.f32 %v1543_v26, 0.0 }
 0x1bc   : > { %v1291_v31 = vpop.f32.mrf.mxu0  ;;  %v1547_v32 = vpop.f32.mrf.mxu1 }
 0x1bd   : > { %v2780_v33 = vpack.c.bf16 %v1669_v29, %v1669_v29  ;;  %v2844_v34 = vpack.c.bf16 %v1733_v30, %v1733_v30  ;;  %v1292_v35 = vadd.f32 %v3600_v28, %v1291_v31  ;;  %v1548_v36 = vadd.f32 %v3600_v28, %v1547_v32 }
 0x1be   : > { %v1293_v37 = vpop.f32.mrf.mxu0  ;;  %v1549_v38 = vpop.f32.mrf.mxu1 }
 0x1bf   : > { %2310 = vst.msk [vmem:[%s3351_s5 + $0xac] sm:$0xf] %vm2266_vm0, %v2780_v33  ;;  %2374 = vst.msk [vmem:[%s3351_s5 + $0x1ac] sm:$0xf] %vm2266_vm0, %v2844_v34  ;;  %v1670_v39 = vmax.f32 %v1292_v35, 0.0  ;;  %v1734_v40 = vmax.f32 %v1548_v36, 0.0 }
 0x1c0   : > { %v1294_v41 = vpop.f32.mrf.mxu0  ;;  %v1550_v42 = vpop.f32.mrf.mxu1 }
 0x1c1   : > { %v2781_v43 = vpack.c.bf16 %v1670_v39, %v1670_v39  ;;  %v2845_v44 = vpack.c.bf16 %v1734_v40, %v1734_v40  ;;  %v1295_v45 = vadd.f32 %v3600_v28, %v1294_v41  ;;  %v1551_v46 = vadd.f32 %v3600_v28, %v1550_v42 }
 0x1c2   : > { %v1296_v47 = vpop.f32.mrf.mxu0  ;;  %v1552_v48 = vpop.f32.mrf.mxu1 }
 0x1c3   : > { %2311 = vst.msk [vmem:[%s3351_s5 + $0xb0] sm:$0xf] %vm2266_vm0, %v2781_v43  ;;  %2375 = vst.msk [vmem:[%s3351_s5 + $0x1b0] sm:$0xf] %vm2266_vm0, %v2845_v44  ;;  %v1671_v49 = vmax.f32 %v1295_v45, 0.0  ;;  %v1735_v50 = vmax.f32 %v1551_v46, 0.0 }
 0x1c4   : > { %v1299_v51 = vpop.f32.mrf.mxu0  ;;  %v1555_v52 = vpop.f32.mrf.mxu1 }
 0x1c5   : > { %v2782_v53 = vpack.c.bf16 %v1671_v49, %v1671_v49  ;;  %v2846_v54 = vpack.c.bf16 %v1735_v50, %v1735_v50  ;;  %v1300_v55 = vadd.f32 %v3600_v28, %v1299_v51  ;;  %v1556_v56 = vadd.f32 %v3600_v28, %v1555_v52 }
 0x1c6   : > { %v1301_v57 = vpop.f32.mrf.mxu0  ;;  %v1557_v58 = vpop.f32.mrf.mxu1 }
 0x1c7   : > { %2312 = vst.msk [vmem:[%s3351_s5 + $0xb4] sm:$0xf] %vm2266_vm0, %v2782_v53  ;;  %2376 = vst.msk [vmem:[%s3351_s5 + $0x1b4] sm:$0xf] %vm2266_vm0, %v2846_v54  ;;  %v1672_v60 = vmax.f32 %v1300_v55, 0.0  ;;  %v1736_v61 = vmax.f32 %v1556_v56, 0.0 }
 0x1c8   : > { %v1302_v62 = vpop.f32.mrf.mxu0  ;;  %v1558_v63 = vpop.f32.mrf.mxu1 }
 0x1c9   : > { %v2783_v0 = vpack.c.bf16 %v1672_v60, %v1672_v60  ;;  %v2847_v1 = vpack.c.bf16 %v1736_v61, %v1736_v61  ;;  %v1303_v2 = vadd.f32 %v3600_v28, %v1302_v62  ;;  %v1559_v3 = vadd.f32 %v3600_v28, %v1558_v63 }
 0x1ca   : > { %v1304_v4 = vpop.f32.mrf.mxu0  ;;  %v1560_v5 = vpop.f32.mrf.mxu1 }
 0x1cb   : > { %2313 = vst.msk [vmem:[%s3351_s5 + $0xb8] sm:$0xf] %vm2266_vm0, %v2783_v0  ;;  %2377 = vst.msk [vmem:[%s3351_s5 + $0x1b8] sm:$0xf] %vm2266_vm0, %v2847_v1  ;;  %v1673_v6 = vmax.f32 %v1303_v2, 0.0  ;;  %v1737_v7 = vmax.f32 %v1559_v3, 0.0 }
 0x1cc   : > { %v1307_v8 = vpop.f32.mrf.mxu0  ;;  %v1563_v9 = vpop.f32.mrf.mxu1 }
 0x1cd   : > { %v2784_v10 = vpack.c.bf16 %v1673_v6, %v1673_v6  ;;  %v2848_v11 = vpack.c.bf16 %v1737_v7, %v1737_v7  ;;  %v1308_v12 = vadd.f32 %v3600_v28, %v1307_v8  ;;  %v1564_v13 = vadd.f32 %v3600_v28, %v1563_v9 }
 0x1ce   : > { %v1309_v14 = vpop.f32.mrf.mxu0  ;;  %v1565_v15 = vpop.f32.mrf.mxu1 }
 0x1cf   : > { %2314 = vst.msk [vmem:[%s3351_s5 + $0xbc] sm:$0xf] %vm2266_vm0, %v2784_v10  ;;  %2378 = vst.msk [vmem:[%s3351_s5 + $0x1bc] sm:$0xf] %vm2266_vm0, %v2848_v11  ;;  %v1674_v16 = vmax.f32 %v1308_v12, 0.0  ;;  %v1738_v17 = vmax.f32 %v1564_v13, 0.0 }
 0x1d0   : > { %v1310_v18 = vpop.f32.mrf.mxu0  ;;  %v1566_v19 = vpop.f32.mrf.mxu1 }
 0x1d1   : > { %v2785_v20 = vpack.c.bf16 %v1674_v16, %v1674_v16  ;;  %v2849_v21 = vpack.c.bf16 %v1738_v17, %v1738_v17  ;;  %v1311_v22 = vadd.f32 %v3600_v28, %v1310_v18  ;;  %v1567_v23 = vadd.f32 %v3600_v28, %v1566_v19 }
 0x1d2   : > { %v1312_v24 = vpop.f32.mrf.mxu0  ;;  %v1568_v25 = vpop.f32.mrf.mxu1 }
 0x1d3   : > { %2315 = vst.msk [vmem:[%s3351_s5 + $0xc0] sm:$0xf] %vm2266_vm0, %v2785_v20  ;;  %2379 = vst.msk [vmem:[%s3351_s5 + $0x1c0] sm:$0xf] %vm2266_vm0, %v2849_v21  ;;  %v1675_v26 = vmax.f32 %v1311_v22, 0.0  ;;  %v1739_v27 = vmax.f32 %v1567_v23, 0.0 }
 0x1d4   : > { %v1315_v59 = vpop.f32.mrf.mxu0  ;;  %v1571_v29 = vpop.f32.mrf.mxu1 }
 0x1d5   : > { %v2786_v30 = vpack.c.bf16 %v1675_v26, %v1675_v26  ;;  %v2850_v31 = vpack.c.bf16 %v1739_v27, %v1739_v27  ;;  %v1316_v32 = vadd.f32 %v3600_v28, %v1315_v59  ;;  %v1572_v33 = vadd.f32 %v3600_v28, %v1571_v29 }
 0x1d6   : > { %v1317_v34 = vpop.f32.mrf.mxu0  ;;  %v1573_v35 = vpop.f32.mrf.mxu1 }
 0x1d7   : > { %2316 = vst.msk [vmem:[%s3351_s5 + $0xc4] sm:$0xf] %vm2266_vm0, %v2786_v30  ;;  %2380 = vst.msk [vmem:[%s3351_s5 + $0x1c4] sm:$0xf] %vm2266_vm0, %v2850_v31  ;;  %v1676_v36 = vmax.f32 %v1316_v32, 0.0  ;;  %v1740_v37 = vmax.f32 %v1572_v33, 0.0 }
 0x1d8   : > { %v1318_v38 = vpop.f32.mrf.mxu0  ;;  %v1574_v39 = vpop.f32.mrf.mxu1 }
 0x1d9   : > { %v2787_v40 = vpack.c.bf16 %v1676_v36, %v1676_v36  ;;  %v2851_v41 = vpack.c.bf16 %v1740_v37, %v1740_v37  ;;  %v1319_v42 = vadd.f32 %v3600_v28, %v1318_v38  ;;  %v1575_v43 = vadd.f32 %v3600_v28, %v1574_v39 }
 0x1da   : > { %v1320_v44 = vpop.f32.mrf.mxu0  ;;  %v1576_v45 = vpop.f32.mrf.mxu1 }
 0x1db   : > { %2317 = vst.msk [vmem:[%s3351_s5 + $0xc8] sm:$0xf] %vm2266_vm0, %v2787_v40  ;;  %2381 = vst.msk [vmem:[%s3351_s5 + $0x1c8] sm:$0xf] %vm2266_vm0, %v2851_v41  ;;  %v1677_v46 = vmax.f32 %v1319_v42, 0.0  ;;  %v1741_v47 = vmax.f32 %v1575_v43, 0.0 }
 0x1dc   : > { %v1323_v48 = vpop.f32.mrf.mxu0  ;;  %v1579_v49 = vpop.f32.mrf.mxu1 }
 0x1dd   : > { %v2788_v50 = vpack.c.bf16 %v1677_v46, %v1677_v46  ;;  %v2852_v51 = vpack.c.bf16 %v1741_v47, %v1741_v47  ;;  %v1324_v52 = vadd.f32 %v3600_v28, %v1323_v48  ;;  %v1580_v53 = vadd.f32 %v3600_v28, %v1579_v49 }
 0x1de   : > { %v1325_v54 = vpop.f32.mrf.mxu0  ;;  %v1581_v55 = vpop.f32.mrf.mxu1 }
 0x1df   : > { %2318 = vst.msk [vmem:[%s3351_s5 + $0xcc] sm:$0xf] %vm2266_vm0, %v2788_v50  ;;  %2382 = vst.msk [vmem:[%s3351_s5 + $0x1cc] sm:$0xf] %vm2266_vm0, %v2852_v51  ;;  %v1678_v56 = vmax.f32 %v1324_v52, 0.0  ;;  %v1742_v57 = vmax.f32 %v1580_v53, 0.0 }
 0x1e0   : > { %v1326_v58 = vpop.f32.mrf.mxu0  ;;  %v1582_v60 = vpop.f32.mrf.mxu1 }
 0x1e1   : > { %v2789_v61 = vpack.c.bf16 %v1678_v56, %v1678_v56  ;;  %v2853_v62 = vpack.c.bf16 %v1742_v57, %v1742_v57  ;;  %v1327_v63 = vadd.f32 %v3600_v28, %v1326_v58  ;;  %v1583_v0 = vadd.f32 %v3600_v28, %v1582_v60 }
 0x1e2   : > { %v1328_v1 = vpop.f32.mrf.mxu0  ;;  %v1584_v2 = vpop.f32.mrf.mxu1 }
 0x1e3   : > { %2319 = vst.msk [vmem:[%s3351_s5 + $0xd0] sm:$0xf] %vm2266_vm0, %v2789_v61  ;;  %2383 = vst.msk [vmem:[%s3351_s5 + $0x1d0] sm:$0xf] %vm2266_vm0, %v2853_v62  ;;  %v1679_v3 = vmax.f32 %v1327_v63, 0.0  ;;  %v1743_v4 = vmax.f32 %v1583_v0, 0.0 }
 0x1e4   : > { %v1331_v5 = vpop.f32.mrf.mxu0  ;;  %v1587_v6 = vpop.f32.mrf.mxu1 }
 0x1e5   : > { %v2790_v7 = vpack.c.bf16 %v1679_v3, %v1679_v3  ;;  %v2854_v8 = vpack.c.bf16 %v1743_v4, %v1743_v4  ;;  %v1332_v9 = vadd.f32 %v3600_v28, %v1331_v5  ;;  %v1588_v10 = vadd.f32 %v3600_v28, %v1587_v6 }
 0x1e6   : > { %v1333_v11 = vpop.f32.mrf.mxu0  ;;  %v1589_v12 = vpop.f32.mrf.mxu1 }
 0x1e7   : > { %2320 = vst.msk [vmem:[%s3351_s5 + $0xd4] sm:$0xf] %vm2266_vm0, %v2790_v7  ;;  %2384 = vst.msk [vmem:[%s3351_s5 + $0x1d4] sm:$0xf] %vm2266_vm0, %v2854_v8  ;;  %v1680_v13 = vmax.f32 %v1332_v9, 0.0  ;;  %v1744_v14 = vmax.f32 %v1588_v10, 0.0 }
 0x1e8   : > { %v1334_v15 = vpop.f32.mrf.mxu0  ;;  %v1590_v16 = vpop.f32.mrf.mxu1 }
 0x1e9   : > { %v2791_v17 = vpack.c.bf16 %v1680_v13, %v1680_v13  ;;  %v2855_v18 = vpack.c.bf16 %v1744_v14, %v1744_v14  ;;  %v1335_v19 = vadd.f32 %v3600_v28, %v1334_v15  ;;  %v1591_v20 = vadd.f32 %v3600_v28, %v1590_v16 }
 0x1ea   : > { %v1336_v21 = vpop.f32.mrf.mxu0  ;;  %v1592_v22 = vpop.f32.mrf.mxu1 }
 0x1eb   : > { %2321 = vst.msk [vmem:[%s3351_s5 + $0xd8] sm:$0xf] %vm2266_vm0, %v2791_v17  ;;  %2385 = vst.msk [vmem:[%s3351_s5 + $0x1d8] sm:$0xf] %vm2266_vm0, %v2855_v18  ;;  %v1681_v23 = vmax.f32 %v1335_v19, 0.0  ;;  %v1745_v24 = vmax.f32 %v1591_v20, 0.0 }
 0x1ec   : > { %v1339_v25 = vpop.f32.mrf.mxu0  ;;  %v1595_v26 = vpop.f32.mrf.mxu1 }
 0x1ed   : > { %v2792_v27 = vpack.c.bf16 %v1681_v23, %v1681_v23  ;;  %v2856_v59 = vpack.c.bf16 %v1745_v24, %v1745_v24  ;;  %v1340_v29 = vadd.f32 %v3600_v28, %v1339_v25  ;;  %v1596_v30 = vadd.f32 %v3600_v28, %v1595_v26 }
 0x1ee   : > { %v1341_v31 = vpop.f32.mrf.mxu0  ;;  %v1597_v32 = vpop.f32.mrf.mxu1 }
 0x1ef   : > { %2322 = vst.msk [vmem:[%s3351_s5 + $0xdc] sm:$0xf] %vm2266_vm0, %v2792_v27  ;;  %2386 = vst.msk [vmem:[%s3351_s5 + $0x1dc] sm:$0xf] %vm2266_vm0, %v2856_v59  ;;  %v1682_v33 = vmax.f32 %v1340_v29, 0.0  ;;  %v1746_v34 = vmax.f32 %v1596_v30, 0.0 }
 0x1f0   : > { %v1342_v35 = vpop.f32.mrf.mxu0  ;;  %v1598_v36 = vpop.f32.mrf.mxu1 }
 0x1f1   : > { %v2793_v37 = vpack.c.bf16 %v1682_v33, %v1682_v33  ;;  %v2857_v38 = vpack.c.bf16 %v1746_v34, %v1746_v34  ;;  %v1343_v39 = vadd.f32 %v3600_v28, %v1342_v35  ;;  %v1599_v40 = vadd.f32 %v3600_v28, %v1598_v36 }
 0x1f2   : > { %v1344_v41 = vpop.f32.mrf.mxu0  ;;  %v1600_v42 = vpop.f32.mrf.mxu1 }
 0x1f3   : > { %2323 = vst.msk [vmem:[%s3351_s5 + $0xe0] sm:$0xf] %vm2266_vm0, %v2793_v37  ;;  %2387 = vst.msk [vmem:[%s3351_s5 + $0x1e0] sm:$0xf] %vm2266_vm0, %v2857_v38  ;;  %v1683_v43 = vmax.f32 %v1343_v39, 0.0  ;;  %v1747_v44 = vmax.f32 %v1599_v40, 0.0 }
 0x1f4   : > { %v1347_v45 = vpop.f32.mrf.mxu0  ;;  %v1603_v46 = vpop.f32.mrf.mxu1 }
 0x1f5   : > { %v2794_v47 = vpack.c.bf16 %v1683_v43, %v1683_v43  ;;  %v2858_v48 = vpack.c.bf16 %v1747_v44, %v1747_v44  ;;  %v1348_v49 = vadd.f32 %v3600_v28, %v1347_v45  ;;  %v1604_v50 = vadd.f32 %v3600_v28, %v1603_v46 }
 0x1f6   : > { %v1349_v51 = vpop.f32.mrf.mxu0  ;;  %v1605_v52 = vpop.f32.mrf.mxu1 }
 0x1f7   : > { %2324 = vst.msk [vmem:[%s3351_s5 + $0xe4] sm:$0xf] %vm2266_vm0, %v2794_v47  ;;  %2388 = vst.msk [vmem:[%s3351_s5 + $0x1e4] sm:$0xf] %vm2266_vm0, %v2858_v48  ;;  %v1684_v53 = vmax.f32 %v1348_v49, 0.0  ;;  %v1748_v54 = vmax.f32 %v1604_v50, 0.0 }
 0x1f8   : > { %v1350_v55 = vpop.f32.mrf.mxu0  ;;  %v1606_v56 = vpop.f32.mrf.mxu1 }
 0x1f9   : > { %v2795_v57 = vpack.c.bf16 %v1684_v53, %v1684_v53  ;;  %v2859_v58 = vpack.c.bf16 %v1748_v54, %v1748_v54  ;;  %v1351_v60 = vadd.f32 %v3600_v28, %v1350_v55  ;;  %v1607_v61 = vadd.f32 %v3600_v28, %v1606_v56 }
 0x1fa   : > { %v1352_v62 = vpop.f32.mrf.mxu0  ;;  %v1608_v63 = vpop.f32.mrf.mxu1 }
 0x1fb   : > { %2325 = vst.msk [vmem:[%s3351_s5 + $0xe8] sm:$0xf] %vm2266_vm0, %v2795_v57  ;;  %2389 = vst.msk [vmem:[%s3351_s5 + $0x1e8] sm:$0xf] %vm2266_vm0, %v2859_v58  ;;  %v1685_v0 = vmax.f32 %v1351_v60, 0.0  ;;  %v1749_v1 = vmax.f32 %v1607_v61, 0.0 }
 0x1fc   : > { %v1355_v2 = vpop.f32.mrf.mxu0  ;;  %v1611_v3 = vpop.f32.mrf.mxu1 }
 0x1fd   : > { %v2796_v4 = vpack.c.bf16 %v1685_v0, %v1685_v0  ;;  %v2860_v5 = vpack.c.bf16 %v1749_v1, %v1749_v1  ;;  %v1356_v6 = vadd.f32 %v3600_v28, %v1355_v2  ;;  %v1612_v7 = vadd.f32 %v3600_v28, %v1611_v3 }
 0x1fe   : > { %v1357_v8 = vpop.f32.mrf.mxu0  ;;  %v1613_v9 = vpop.f32.mrf.mxu1 }
 0x1ff   : > { %2326 = vst.msk [vmem:[%s3351_s5 + $0xec] sm:$0xf] %vm2266_vm0, %v2796_v4  ;;  %2390 = vst.msk [vmem:[%s3351_s5 + $0x1ec] sm:$0xf] %vm2266_vm0, %v2860_v5  ;;  %v1686_v10 = vmax.f32 %v1356_v6, 0.0  ;;  %v1750_v11 = vmax.f32 %v1612_v7, 0.0 }
 0x200   : > { %v1358_v12 = vpop.f32.mrf.mxu0  ;;  %v1614_v13 = vpop.f32.mrf.mxu1 }
 0x201   : > { %v2797_v14 = vpack.c.bf16 %v1686_v10, %v1686_v10  ;;  %v2861_v15 = vpack.c.bf16 %v1750_v11, %v1750_v11  ;;  %v1359_v16 = vadd.f32 %v3600_v28, %v1358_v12  ;;  %v1615_v17 = vadd.f32 %v3600_v28, %v1614_v13 }
 0x202   : > { %v1360_v18 = vpop.f32.mrf.mxu0  ;;  %v1616_v19 = vpop.f32.mrf.mxu1 }
 0x203   : > { %2327 = vst.msk [vmem:[%s3351_s5 + $0xf0] sm:$0xf] %vm2266_vm0, %v2797_v14  ;;  %2391 = vst.msk [vmem:[%s3351_s5 + $0x1f0] sm:$0xf] %vm2266_vm0, %v2861_v15  ;;  %v1687_v20 = vmax.f32 %v1359_v16, 0.0  ;;  %v1751_v21 = vmax.f32 %v1615_v17, 0.0 }
 0x204   : > { %v1363_v22 = vpop.f32.mrf.mxu0  ;;  %v1619_v23 = vpop.f32.mrf.mxu1 }
 0x205   : > { %v2798_v24 = vpack.c.bf16 %v1687_v20, %v1687_v20  ;;  %v2862_v25 = vpack.c.bf16 %v1751_v21, %v1751_v21  ;;  %v1364_v26 = vadd.f32 %v3600_v28, %v1363_v22  ;;  %v1620_v27 = vadd.f32 %v3600_v28, %v1619_v23 }
 0x206   : > { %v1365_v59 = vpop.f32.mrf.mxu0  ;;  %v1621_v29 = vpop.f32.mrf.mxu1 }
 0x207   : > { %2328 = vst.msk [vmem:[%s3351_s5 + $0xf4] sm:$0xf] %vm2266_vm0, %v2798_v24  ;;  %2392 = vst.msk [vmem:[%s3351_s5 + $0x1f4] sm:$0xf] %vm2266_vm0, %v2862_v25  ;;  %v1688_v30 = vmax.f32 %v1364_v26, 0.0  ;;  %v1752_v31 = vmax.f32 %v1620_v27, 0.0 }
 0x208   : > { %v1366_v32 = vpop.f32.mrf.mxu0  ;;  %v1622_v33 = vpop.f32.mrf.mxu1 }
 0x209   : > { %v2799_v34 = vpack.c.bf16 %v1688_v30, %v1688_v30  ;;  %v2863_v35 = vpack.c.bf16 %v1752_v31, %v1752_v31  ;;  %v1367_v36 = vadd.f32 %v3600_v28, %v1366_v32  ;;  %v1623_v37 = vadd.f32 %v3600_v28, %v1622_v33 }
 0x20a   : > { %v1368_v38 = vpop.f32.mrf.mxu0  ;;  %v1624_v39 = vpop.f32.mrf.mxu1 }
 0x20b   : > { %2329 = vst.msk [vmem:[%s3351_s5 + $0xf8] sm:$0xf] %vm2266_vm0, %v2799_v34  ;;  %2393 = vst.msk [vmem:[%s3351_s5 + $0x1f8] sm:$0xf] %vm2266_vm0, %v2863_v35  ;;  %v1689_v40 = vmax.f32 %v1367_v36, 0.0  ;;  %v1753_v41 = vmax.f32 %v1623_v37, 0.0 }
 0x20d   : > { %v2800_v42 = vpack.c.bf16 %v1689_v40, %v1689_v40  ;;  %v2864_v43 = vpack.c.bf16 %v1753_v41, %v1753_v41 }
 0x20f   : > { %2330 = vst.msk [vmem:[%s3351_s5 + $0xfc] sm:$0xf] %vm2266_vm0, %v2800_v42  ;;  %2394 = vst.msk [vmem:[%s3351_s5 + $0x1fc] sm:$0xf] %vm2266_vm0, %v2864_v43 }
 0x210 PF: > { %s13_s12 = sadd.s32 1, %s3113_s12  }
 0x211   : > { %p10_p4 = scmp.ge.s32.totalorder %s13_s12, 4  }
 0x213   :  { %12 = sbr.rel (!%p10_p4) target bundleno = 1 (0x1), region = 62 }

// kernel: net_forward.7
= control target key start
LH: loop header
LB: loop body
LE: loop exit
PB: predicated region body
PF: predicated region fallthrough
CT: control target
= control target key end

     0   :  { %s2012_s20 = smov 0   ;;  %s2403_s0 = inlined_call_operand.vmem [shape: bf16[512,512], index: 0, kind: input, shape index: {}]   ;;  %s2404_s1 = inlined_call_operand.vmem [shape: bf16[512,64], index: 1, kind: input, shape index: {}]   ;;  %s2405_s2 = inlined_call_operand.vmem [shape: f32[1,64], index: 2, kind: input, shape index: {}]   ;;  %s2406_s3 = inlined_call_operand.vmem [shape: f32[1,64], index: 3, kind: input, shape index: {}]   ;;  %s2407_s4 = inlined_call_operand.<no memory space> [shape: f32[1,1], index: 4, kind: input, shape index: {}]   ;;  %s2408_s5 = inlined_call_operand.vmem [shape: f32[512,1], index: 5, kind: output, shape index: {}]  }
   0x1   :  { %v10_v0 = vstv %s2407_s4 }
   0x2   :  { %11 = vst [vmem:[#allocation2] sm:$0x1] %v10_v0 }
   0x3 LB: > { %s1499_s21 = sadd.s32 4294967295, %s1977_s20   ;;  %p1503_p0 = scmp.ge.s32.totalorder %s1977_s20, 1  ;;  %s1977_s20 = sphi %s2012_s20, %s17_s20  }
   0x4   : > { %p191_p1 = scmp.lt.s32.totalorder %s1977_s20, 3 }
   0x6   : > { %p192_p2 = pnand %p1503_p0, %p191_p1 }
   0x7   : > { %s1504_s29 = sshll.u32 (!%p192_p2), %s1499_s21, 5 }
   0x8   : > { %195 = sbr.rel (%p192_p2) target bundleno = 518 (0x206), region = 40  ;;  %p221_p3 = scmp.lt.s32.totalorder (!%p192_p2), %s1504_s29, 63 }
   0xd   : > { %v1843_v1 = vld [vmem:[%s2404_s1 + $0x78] sm:$0xff]   ;;  %v1847_v5 = vld [vmem:[%s2404_s1 + $0x70] sm:$0xff]   ;;  %v1851_v9 = vld [vmem:[%s2404_s1 + $0x68] sm:$0xff]   ;;  %s2410_s29 = smov (!%p221_p3, %s1504_s29), 63  ;;  %vm1274_vm0 = vcmask 523264   ;;  %vm1410_vm1 = vcmask 7168  }
   0xe   : > { %v1844_v2 = vld [vmem:[%s2404_s1 + $0xf8] sm:$0xff]   ;;  %1611 = vmatprep.subr.bf16.mxu0 %v1843_v1  ;;  %v1848_v6 = vld [vmem:[%s2404_s1 + $0xf0] sm:$0xff]   ;;  %v1852_v10 = vld [vmem:[%s2404_s1 + $0xe8] sm:$0xff]   ;;  %s1610_s27 = sshll.u32 %s2410_s29, 4  ;;  %s1508_s22 = sshll.u32 %s2410_s29, 3 }
   0xf   : > { %v1845_v3 = vld [vmem:[%s2404_s1 + $0x38] sm:$0xff]   ;;  %1723 = vmatprep.subr.bf16.mxu1 %v1844_v2  ;;  %v1849_v7 = vld [vmem:[%s2404_s1 + $0x30] sm:$0xff]   ;;  %v1853_v11 = vld [vmem:[%s2404_s1 + $0x28] sm:$0xff]   ;;  %s2118_s12 = scalar_lea.vmem %s2403_s0, %s1610_s27  ;;  %s2302_s24 = scalar_lea.vmem %s2408_s5, %s1508_s22 }
  0x10   : > { %v1846_v4 = vld [vmem:[%s2404_s1 + $0xb8] sm:$0xff]   ;;  %1612 = vmatpush3.bf16.msra.mxu0 %v1845_v3  ;;  %v1850_v8 = vld [vmem:[%s2404_s1 + $0xb0] sm:$0xff]   ;;  %v1854_v12 = vld [vmem:[%s2404_s1 + $0xa8] sm:$0xff]  }
  0x11   : > { %1724 = vmatpush3.bf16.msra.mxu1 %v1846_v4  ;;  %1613 = vmatprep.subr.bf16.mxu0 %v1847_v5  ;;  %v1855_v13 = vld [vmem:[%s2404_s1 + $0x60] sm:$0xff]   ;;  %v1859_v17 = vld [vmem:[%s2404_s1 + $0x58] sm:$0xff]   ;;  %v1863_v21 = vld [vmem:[%s2404_s1 + $0x50] sm:$0xff]  }
  0x12   : > { %1725 = vmatprep.subr.bf16.mxu1 %v1848_v6  ;;  %v1856_v14 = vld [vmem:[%s2404_s1 + $0xe0] sm:$0xff]   ;;  %v1860_v18 = vld [vmem:[%s2404_s1 + $0xd8] sm:$0xff]   ;;  %v1864_v22 = vld [vmem:[%s2404_s1 + $0xd0] sm:$0xff]  }
  0x13   : > { %v1857_v15 = vld [vmem:[%s2404_s1 + $0x20] sm:$0xff]   ;;  %v1861_v19 = vld [vmem:[%s2404_s1 + $0x18] sm:$0xff]   ;;  %v1865_v23 = vld [vmem:[%s2404_s1 + $0x10] sm:$0xff]  }
  0x14   : > { %1614 = vmatpush3.bf16.msra.mxu0 %v1849_v7  ;;  %v1858_v16 = vld [vmem:[%s2404_s1 + $0xa0] sm:$0xff]   ;;  %v1862_v20 = vld [vmem:[%s2404_s1 + $0x98] sm:$0xff]   ;;  %v1866_v24 = vld [vmem:[%s2404_s1 + $0x90] sm:$0xff]  }
  0x15   : > { %1726 = vmatpush3.bf16.msra.mxu1 %v1850_v8  ;;  %1615 = vmatprep.subr.bf16.mxu0 %v1851_v9  ;;  %v1867_v25 = vld [vmem:[%s2404_s1 + $0x48] sm:$0xff]   ;;  %v1871_v29 = vld [vmem:[%s2404_s1 + $0x40] sm:$0xff]  }
  0x16   : > { %1727 = vmatprep.subr.bf16.mxu1 %v1852_v10  ;;  %v1868_v26 = vld [vmem:[%s2404_s1 + $0xc8] sm:$0xff]   ;;  %v1872_v30 = vld [vmem:[%s2404_s1 + $0xc0] sm:$0xff]  }
  0x17   : > { %v1869_v27 = vld [vmem:[%s2404_s1 + $0x8] sm:$0xff]   ;;  %v1873_v31 = vld [vmem:[%s2404_s1] sm:$0xff]  }
  0x18   : > { %1616 = vmatpush3.bf16.msra.mxu0 %v1853_v11  ;;  %v1870_v28 = vld [vmem:[%s2404_s1 + $0x88] sm:$0xff]   ;;  %v1874_v32 = vld [vmem:[%s2404_s1 + $0x80] sm:$0xff]  }
  0x19   : > { %1728 = vmatpush3.bf16.msra.mxu1 %v1854_v12  ;;  %1617 = vmatprep.subr.bf16.mxu0 %v1855_v13  ;;  %v1875_v33 = vld [vmem:[%s2118_s12] ss:$16 sps:$4 sm:$0xff]   ;;  %v1877_v34 = vld [vmem:[%s2118_s12 + $0x4] ss:$16 sps:$4 sm:$0xff]   ;;  %v1878_v35 = vld [vmem:[%s2118_s12 + $0x8] ss:$16 sps:$4 sm:$0xff]  }
  0x1a   : > { %1729 = vmatprep.subr.bf16.mxu1 %v1856_v14  ;;  %v1880_v36 = vld [vmem:[%s2118_s12 + $0xc] ss:$16 sps:$4 sm:$0xff]   ;;  %913 = vmatprep.mubr.bf16.mxu0 %v1877_v34  ;;  %v1881_v37 = vld [vmem:[%s2118_s12 + $0x24] ss:$16 sps:$4 sm:$0xff]   ;;  %v1885_v39 = vld [vmem:[%s2118_s12 + $0x20] ss:$16 sps:$4 sm:$0xff]  }
  0x1b   : > { %1074 = vmatprep.mubr.bf16.mxu1 %v1880_v36  ;;  %v1883_v38 = vld [vmem:[%s2118_s12 + $0x2c] ss:$16 sps:$4 sm:$0xff]   ;;  %v1886_v40 = vld [vmem:[%s2118_s12 + $0x28] ss:$16 sps:$4 sm:$0xff]   ;;  %v1887_v41 = vld [vmem:[%s2118_s12 + $0x44] ss:$16 sps:$4 sm:$0xff]  }
  0x1c   : > { %1618 = vmatpush3.bf16.msra.mxu0 %v1857_v15  ;;  %v1889_v42 = vld [vmem:[%s2118_s12 + $0x4c] ss:$16 sps:$4 sm:$0xff]   ;;  %v1891_v43 = vld [vmem:[%s2118_s12 + $0x40] ss:$16 sps:$4 sm:$0xff]   ;;  %v1892_v44 = vld [vmem:[%s2118_s12 + $0x48] ss:$16 sps:$4 sm:$0xff]  }
  0x1d   : > { %1730 = vmatpush3.bf16.msra.mxu1 %v1858_v16  ;;  %1619 = vmatprep.subr.bf16.mxu0 %v1859_v17  ;;  %v1893_v45 = vld [vmem:[%s2118_s12 + $0x64] ss:$16 sps:$4 sm:$0xff]   ;;  %v1895_v46 = vld [vmem:[%s2118_s12 + $0x6c] ss:$16 sps:$4 sm:$0xff]   ;;  %v1897_v47 = vld [vmem:[%s2118_s12 + $0x60] ss:$16 sps:$4 sm:$0xff]  }
  0x1e   : > { %1731 = vmatprep.subr.bf16.mxu1 %v1860_v18  ;;  %v1898_v48 = vld [vmem:[%s2118_s12 + $0x68] ss:$16 sps:$4 sm:$0xff]   ;;  %v1899_v49 = vld [vmem:[%s2118_s12 + $0x84] ss:$16 sps:$4 sm:$0xff]   ;;  %v1901_v50 = vld [vmem:[%s2118_s12 + $0x8c] ss:$16 sps:$4 sm:$0xff]  }
  0x1f   : > { %v1903_v51 = vld [vmem:[%s2118_s12 + $0x80] ss:$16 sps:$4 sm:$0xff]   ;;  %v1904_v52 = vld [vmem:[%s2118_s12 + $0x88] ss:$16 sps:$4 sm:$0xff]   ;;  %v1905_v53 = vld [vmem:[%s2118_s12 + $0xa4] ss:$16 sps:$4 sm:$0xff]  }
  0x20   : > { %1620 = vmatpush3.bf16.msra.mxu0 %v1861_v19  ;;  %v1907_v54 = vld [vmem:[%s2118_s12 + $0xac] ss:$16 sps:$4 sm:$0xff]   ;;  %v1909_v55 = vld [vmem:[%s2118_s12 + $0xa0] ss:$16 sps:$4 sm:$0xff]   ;;  %v1910_v56 = vld [vmem:[%s2118_s12 + $0xa8] ss:$16 sps:$4 sm:$0xff]  }
  0x21   : > { %1732 = vmatpush3.bf16.msra.mxu1 %v1862_v20  ;;  %1621 = vmatprep.subr.bf16.mxu0 %v1863_v21  ;;  %v1911_v57 = vld [vmem:[%s2118_s12 + $0xc4] ss:$16 sps:$4 sm:$0xff]   ;;  %v1913_v58 = vld [vmem:[%s2118_s12 + $0xcc] ss:$16 sps:$4 sm:$0xff]   ;;  %v1915_v59 = vld [vmem:[%s2118_s12 + $0xc0] ss:$16 sps:$4 sm:$0xff]  }
  0x22   : > { %1733 = vmatprep.subr.bf16.mxu1 %v1864_v22  ;;  %v1916_v60 = vld [vmem:[%s2118_s12 + $0xc8] ss:$16 sps:$4 sm:$0xff]   ;;  %v1917_v61 = vld [vmem:[%s2118_s12 + $0xe4] ss:$16 sps:$4 sm:$0xff]   ;;  %v1919_v62 = vld [vmem:[%s2118_s12 + $0xec] ss:$16 sps:$4 sm:$0xff]  }
  0x23   : > { %v1921_v63 = vld [vmem:[%s2118_s12 + $0xe0] ss:$16 sps:$4 sm:$0xff]   ;;  %v1922_v0 = vld [vmem:[%s2118_s12 + $0xe8] ss:$16 sps:$4 sm:$0xff]   ;;  %v1923_v1 = vld [vmem:[%s2118_s12 + $0x104] ss:$16 sps:$4 sm:$0xff]  }
  0x24   : > { %1622 = vmatpush3.bf16.msra.mxu0 %v1865_v23  ;;  %v1925_v2 = vld [vmem:[%s2118_s12 + $0x10c] ss:$16 sps:$4 sm:$0xff]   ;;  %v1927_v3 = vld [vmem:[%s2118_s12 + $0x100] ss:$16 sps:$4 sm:$0xff]   ;;  %v1928_v4 = vld [vmem:[%s2118_s12 + $0x108] ss:$16 sps:$4 sm:$0xff]  }
  0x25   : > { %1734 = vmatpush3.bf16.msra.mxu1 %v1866_v24  ;;  %1623 = vmatprep.subr.bf16.mxu0 %v1867_v25  ;;  %v1929_v5 = vld [vmem:[%s2118_s12 + $0x124] ss:$16 sps:$4 sm:$0xff]   ;;  %v1931_v6 = vld [vmem:[%s2118_s12 + $0x12c] ss:$16 sps:$4 sm:$0xff]   ;;  %v1933_v7 = vld [vmem:[%s2118_s12 + $0x120] ss:$16 sps:$4 sm:$0xff]  }
  0x26   : > { %1735 = vmatprep.subr.bf16.mxu1 %v1868_v26  ;;  %v1934_v8 = vld [vmem:[%s2118_s12 + $0x128] ss:$16 sps:$4 sm:$0xff]   ;;  %v1935_v9 = vld [vmem:[%s2118_s12 + $0x144] ss:$16 sps:$4 sm:$0xff]   ;;  %v1937_v10 = vld [vmem:[%s2118_s12 + $0x14c] ss:$16 sps:$4 sm:$0xff]  }
  0x27   : > { %v1939_v11 = vld [vmem:[%s2118_s12 + $0x140] ss:$16 sps:$4 sm:$0xff]   ;;  %v1940_v12 = vld [vmem:[%s2118_s12 + $0x148] ss:$16 sps:$4 sm:$0xff]   ;;  %v1941_v13 = vld [vmem:[%s2118_s12 + $0x164] ss:$16 sps:$4 sm:$0xff]  }
  0x28   : > { %1624 = vmatpush3.bf16.msra.mxu0 %v1869_v27  ;;  %v1943_v14 = vld [vmem:[%s2118_s12 + $0x16c] ss:$16 sps:$4 sm:$0xff]   ;;  %v1945_v15 = vld [vmem:[%s2118_s12 + $0x160] ss:$16 sps:$4 sm:$0xff]   ;;  %v1946_v16 = vld [vmem:[%s2118_s12 + $0x168] ss:$16 sps:$4 sm:$0xff]  }
  0x29   : > { %1736 = vmatpush3.bf16.msra.mxu1 %v1870_v28  ;;  %1625 = vmatprep.subr.bf16.mxu0 %v1871_v29  ;;  %v1947_v17 = vld [vmem:[%s2118_s12 + $0x184] ss:$16 sps:$4 sm:$0xff]   ;;  %v1949_v18 = vld [vmem:[%s2118_s12 + $0x18c] ss:$16 sps:$4 sm:$0xff]   ;;  %v1951_v19 = vld [vmem:[%s2118_s12 + $0x180] ss:$16 sps:$4 sm:$0xff]  }
  0x2a   : > { %1737 = vmatprep.subr.bf16.mxu1 %v1872_v30  ;;  %v1952_v20 = vld [vmem:[%s2118_s12 + $0x188] ss:$16 sps:$4 sm:$0xff]   ;;  %v1953_v21 = vld [vmem:[%s2118_s12 + $0x1a4] ss:$16 sps:$4 sm:$0xff]   ;;  %v1955_v22 = vld [vmem:[%s2118_s12 + $0x1ac] ss:$16 sps:$4 sm:$0xff]  }
  0x2b   : > { %v1957_v23 = vld [vmem:[%s2118_s12 + $0x1a0] ss:$16 sps:$4 sm:$0xff]   ;;  %v1958_v24 = vld [vmem:[%s2118_s12 + $0x1a8] ss:$16 sps:$4 sm:$0xff]   ;;  %v1959_v25 = vld [vmem:[%s2118_s12 + $0x1c4] ss:$16 sps:$4 sm:$0xff]  }
  0x2c   : > { %1626 = vmatpush3.bf16.msra.mxu0 %v1873_v31  ;;  %v1961_v26 = vld [vmem:[%s2118_s12 + $0x1cc] ss:$16 sps:$4 sm:$0xff]   ;;  %v1963_v27 = vld [vmem:[%s2118_s12 + $0x1c0] ss:$16 sps:$4 sm:$0xff]   ;;  %v1964_v28 = vld [vmem:[%s2118_s12 + $0x1c8] ss:$16 sps:$4 sm:$0xff]  }
  0x2d   : > { %1738 = vmatpush3.bf16.msra.mxu1 %v1874_v32  ;;  %v1965_v29 = vld [vmem:[%s2118_s12 + $0x1e4] ss:$16 sps:$4 sm:$0xff]   ;;  %v1967_v30 = vld [vmem:[%s2118_s12 + $0x1ec] ss:$16 sps:$4 sm:$0xff]   ;;  %v1969_v31 = vld [vmem:[%s2118_s12 + $0x1e0] ss:$16 sps:$4 sm:$0xff]  }
  0x2e   : > { %v1970_v32 = vld [vmem:[%s2118_s12 + $0x1e8] ss:$16 sps:$4 sm:$0xff]  }
  0x2f   : > { %914 = vmatmul.mubr.bf16.vlgmr.msra.gmra.mxu0 %v1875_v33 }
  0x30   : > { %1075 = vmatmul.mubr.bf16.vlgmr.msra.gmra.mxu1 %v1878_v35  ;;  %921 = vmatprep.mubr.bf16.mxu0 %v1881_v37  ;;  %v2193_v35 = vld [vmem:[%s2405_s2] ss:$0 sm:$0xff] }
  0x31   : > { %1082 = vmatprep.mubr.bf16.mxu1 %v1883_v38 }
  0x37   : > { %922 = vmatmul.mubr.bf16.gmra.mxu0 %v1885_v39 }
  0x38   : > { %1083 = vmatmul.mubr.bf16.gmra.mxu1 %v1886_v40  ;;  %929 = vmatprep.mubr.bf16.mxu0 %v1887_v41 }
  0x39   : > { %1090 = vmatprep.mubr.bf16.mxu1 %v1889_v42 }
  0x3f   : > { %930 = vmatmul.mubr.bf16.gmra.mxu0 %v1891_v43 }
  0x40   : > { %1091 = vmatmul.mubr.bf16.gmra.mxu1 %v1892_v44  ;;  %937 = vmatprep.mubr.bf16.mxu0 %v1893_v45 }
  0x41   : > { %1098 = vmatprep.mubr.bf16.mxu1 %v1895_v46 }
  0x47   : > { %938 = vmatmul.mubr.bf16.gmra.mxu0 %v1897_v47 }
  0x48   : > { %1099 = vmatmul.mubr.bf16.gmra.mxu1 %v1898_v48  ;;  %945 = vmatprep.mubr.bf16.mxu0 %v1899_v49  ;;  %v2199_v48 = vld [vmem:[%s2406_s3] ss:$0 sm:$0xff] }
  0x49   : > { %1106 = vmatprep.mubr.bf16.mxu1 %v1901_v50 }
  0x4f   : > { %946 = vmatmul.mubr.bf16.gmra.mxu0 %v1903_v51 }
  0x50   : > { %1107 = vmatmul.mubr.bf16.gmra.mxu1 %v1904_v52  ;;  %953 = vmatprep.mubr.bf16.mxu0 %v1905_v53 }
  0x51   : > { %1114 = vmatprep.mubr.bf16.mxu1 %v1907_v54 }
  0x57   : > { %954 = vmatmul.mubr.bf16.gmra.mxu0 %v1909_v55 }
  0x58   : > { %1115 = vmatmul.mubr.bf16.gmra.mxu1 %v1910_v56  ;;  %961 = vmatprep.mubr.bf16.mxu0 %v1911_v57 }
  0x59   : > { %1122 = vmatprep.mubr.bf16.mxu1 %v1913_v58 }
  0x5f   : > { %962 = vmatmul.mubr.bf16.gmra.mxu0 %v1915_v59 }
  0x60   : > { %1123 = vmatmul.mubr.bf16.gmra.mxu1 %v1916_v60  ;;  %969 = vmatprep.mubr.bf16.mxu0 %v1917_v61 }
  0x61   : > { %1130 = vmatprep.mubr.bf16.mxu1 %v1919_v62 }
  0x67   : > { %970 = vmatmul.mubr.bf16.gmra.mxu0 %v1921_v63 }
  0x68   : > { %1131 = vmatmul.mubr.bf16.gmra.mxu1 %v1922_v0  ;;  %977 = vmatprep.mubr.bf16.mxu0 %v1923_v1 }
  0x69   : > { %1138 = vmatprep.mubr.bf16.mxu1 %v1925_v2 }
  0x6f   : > { %978 = vmatmul.mubr.bf16.gmra.mxu0 %v1927_v3 }
  0x70   : > { %1139 = vmatmul.mubr.bf16.gmra.mxu1 %v1928_v4  ;;  %985 = vmatprep.mubr.bf16.mxu0 %v1929_v5 }
  0x71   : > { %1146 = vmatprep.mubr.bf16.mxu1 %v1931_v6 }
  0x77   : > { %986 = vmatmul.mubr.bf16.gmra.mxu0 %v1933_v7 }
  0x78   : > { %1147 = vmatmul.mubr.bf16.gmra.mxu1 %v1934_v8  ;;  %993 = vmatprep.mubr.bf16.mxu0 %v1935_v9 }
  0x79   : > { %1154 = vmatprep.mubr.bf16.mxu1 %v1937_v10 }
  0x7f   : > { %994 = vmatmul.mubr.bf16.gmra.mxu0 %v1939_v11 }
  0x80   : > { %1155 = vmatmul.mubr.bf16.gmra.mxu1 %v1940_v12  ;;  %1001 = vmatprep.mubr.bf16.mxu0 %v1941_v13 }
  0x81   : > { %1162 = vmatprep.mubr.bf16.mxu1 %v1943_v14 }
  0x87   : > { %1002 = vmatmul.mubr.bf16.gmra.mxu0 %v1945_v15 }
  0x88   : > { %1163 = vmatmul.mubr.bf16.gmra.mxu1 %v1946_v16  ;;  %1009 = vmatprep.mubr.bf16.mxu0 %v1947_v17 }
  0x89   : > { %1170 = vmatprep.mubr.bf16.mxu1 %v1949_v18 }
  0x8f   : > { %1010 = vmatmul.mubr.bf16.gmra.mxu0 %v1951_v19 }
  0x90   : > { %1171 = vmatmul.mubr.bf16.gmra.mxu1 %v1952_v20  ;;  %1017 = vmatprep.mubr.bf16.mxu0 %v1953_v21 }
  0x91   : > { %1178 = vmatprep.mubr.bf16.mxu1 %v1955_v22 }
  0x97   : > { %1018 = vmatmul.mubr.bf16.gmra.mxu0 %v1957_v23 }
  0x98   : > { %1179 = vmatmul.mubr.bf16.gmra.mxu1 %v1958_v24  ;;  %1025 = vmatprep.mubr.bf16.mxu0 %v1959_v25 }
  0x99   : > { %1186 = vmatprep.mubr.bf16.mxu1 %v1961_v26 }
  0x9f   : > { %1026 = vmatmul.mubr.bf16.gmra.mxu0 %v1963_v27 }
  0xa0   : > { %1187 = vmatmul.mubr.bf16.gmra.mxu1 %v1964_v28  ;;  %1033 = vmatprep.mubr.bf16.mxu0 %v1965_v29 }
  0xa1   : > { %1194 = vmatprep.mubr.bf16.mxu1 %v1967_v30 }
  0xa7   : > { %1034 = vmatmul.mubr.bf16.gmra.mxu0 %v1969_v31 }
  0xa8   : > { %1195 = vmatmul.mubr.bf16.gmra.mxu1 %v1970_v32 }
  0xef   : > { %v1627_v33 = vpop.f32.mrf.mxu0 }
  0xf0   : > { %v1739_v34 = vpop.f32.mrf.mxu1 }
  0xf1   : > { %v1628_v36 = vpop.f32.mrf.mxu0 }
  0xf2   : > { %v1629_v37 = vadd.f32 %v1628_v36, %v1627_v33  ;;  %v1740_v38 = vpop.f32.mrf.mxu1 }
  0xf3   : > { %v1630_v39 = vpop.f32.mrf.mxu0  ;;  %v1741_v41 = vadd.f32 %v1740_v38, %v1739_v34 }
  0xf4   : > { %v916_v40 = vadd.f32 %v1629_v37, %v2193_v35  ;;  %v1742_v42 = vpop.f32.mrf.mxu1 }
  0xf5   : > { %v1631_v43 = vpop.f32.mrf.mxu0 }
  0xf6   : > { %v1077_v44 = vadd.f32 %v1741_v41, %v916_v40  ;;  %v1632_v45 = vadd.f32 %v1631_v43, %v1630_v39  ;;  %v1743_v46 = vpop.f32.mrf.mxu1 }
  0xf7   : > { %v1633_v47 = vpop.f32.mrf.mxu0  ;;  %v1744_v51 = vadd.f32 %v1743_v46, %v1742_v42 }
  0xf8   : > { %v1203_v49 = vmax.f32 %v1077_v44, 0.0  ;;  %v919_v50 = vadd.f32 %v1632_v45, %v2193_v35  ;;  %v1745_v52 = vpop.f32.mrf.mxu1 }
  0xf9   : > { %v1634_v53 = vpop.f32.mrf.mxu0 }
  0xfa   : > { %v1080_v54 = vadd.f32 %v1744_v51, %v919_v50  ;;  %v1635_v55 = vadd.f32 %v1634_v53, %v1633_v47  ;;  %v1746_v56 = vpop.f32.mrf.mxu1  ;;  %v1242_v57 = vmul.f32 %v2199_v48, %v1203_v49 }
  0xfb   : > { %v1636_v58 = vpop.f32.mrf.mxu0  ;;  %v1747_v61 = vadd.f32 %v1746_v56, %v1745_v52 }
  0xfc   : > { %v1204_v59 = vmax.f32 %v1080_v54, 0.0  ;;  %v924_v60 = vadd.f32 %v1635_v55, %v2193_v35  ;;  %v1748_v62 = vpop.f32.mrf.mxu1  ;;  %v1275_v63 = vsel %vm1274_vm0, %v1242_v57, 0.0 }
  0xfd   : > { %v1637_v0 = vpop.f32.mrf.mxu0  ;;  %1276 = vadd.xlane.f32.xlu0 %v1275_v63 }
  0xfe   : > { %v1085_v1 = vadd.f32 %v1747_v61, %v924_v60  ;;  %v1638_v2 = vadd.f32 %v1637_v0, %v1636_v58  ;;  %v1749_v3 = vpop.f32.mrf.mxu1  ;;  %v1243_v4 = vmul.f32 %v2199_v48, %v1204_v59 }
  0xff   : > { %v1639_v5 = vpop.f32.mrf.mxu0  ;;  %v1750_v8 = vadd.f32 %v1749_v3, %v1748_v62 }
 0x100   : > { %v1205_v6 = vmax.f32 %v1085_v1, 0.0  ;;  %v927_v7 = vadd.f32 %v1638_v2, %v2193_v35  ;;  %v1751_v9 = vpop.f32.mrf.mxu1  ;;  %v1278_v10 = vsel %vm1274_vm0, %v1243_v4, 0.0 }
 0x101   : > { %v1640_v11 = vpop.f32.mrf.mxu0  ;;  %1279 = vadd.xlane.f32.xlu0 %v1278_v10 }
 0x102   : > { %v1088_v12 = vadd.f32 %v1750_v8, %v927_v7  ;;  %v1641_v13 = vadd.f32 %v1640_v11, %v1639_v5  ;;  %v1752_v14 = vpop.f32.mrf.mxu1  ;;  %v1244_v15 = vmul.f32 %v2199_v48, %v1205_v6 }
 0x103   : > { %v1642_v16 = vpop.f32.mrf.mxu0  ;;  %v1753_v19 = vadd.f32 %v1752_v14, %v1751_v9 }
 0x104   : > { %v1206_v17 = vmax.f32 %v1088_v12, 0.0  ;;  %v932_v18 = vadd.f32 %v1641_v13, %v2193_v35  ;;  %v1754_v20 = vpop.f32.mrf.mxu1  ;;  %v1281_v21 = vsel %vm1274_vm0, %v1244_v15, 0.0 }
 0x105   : > { %v1643_v22 = vpop.f32.mrf.mxu0  ;;  %1282 = vadd.xlane.f32.xlu1 %v1281_v21 }
 0x106   : > { %v1093_v23 = vadd.f32 %v1753_v19, %v932_v18  ;;  %v1644_v24 = vadd.f32 %v1643_v22, %v1642_v16  ;;  %v1755_v25 = vpop.f32.mrf.mxu1  ;;  %v1245_v26 = vmul.f32 %v2199_v48, %v1206_v17 }
 0x107   : > { %v1645_v27 = vpop.f32.mrf.mxu0  ;;  %v1756_v30 = vadd.f32 %v1755_v25, %v1754_v20 }
 0x108   : > { %v1207_v28 = vmax.f32 %v1093_v23, 0.0  ;;  %v935_v29 = vadd.f32 %v1644_v24, %v2193_v35  ;;  %v1757_v31 = vpop.f32.mrf.mxu1  ;;  %v1284_v32 = vsel %vm1274_vm0, %v1245_v26, 0.0 }
 0x109   : > { %v1646_v33 = vpop.f32.mrf.mxu0  ;;  %1285 = vadd.xlane.f32.xlu1 %v1284_v32 }
 0x10a   : > { %v1096_v34 = vadd.f32 %v1756_v30, %v935_v29  ;;  %v1647_v36 = vadd.f32 %v1646_v33, %v1645_v27  ;;  %v1758_v37 = vpop.f32.mrf.mxu1  ;;  %v1246_v38 = vmul.f32 %v2199_v48, %v1207_v28 }
 0x10b   : > { %v1648_v39 = vpop.f32.mrf.mxu0  ;;  %v1759_v42 = vadd.f32 %v1758_v37, %v1757_v31 }
 0x10c   : > { %v1208_v40 = vmax.f32 %v1096_v34, 0.0  ;;  %v940_v41 = vadd.f32 %v1647_v36, %v2193_v35  ;;  %v1760_v43 = vpop.f32.mrf.mxu1  ;;  %v1287_v44 = vsel %vm1274_vm0, %v1246_v38, 0.0 }
 0x10d   : > { %v1649_v45 = vpop.f32.mrf.mxu0  ;;  %1288 = vadd.xlane.f32.xlu0 %v1287_v44 }
 0x10e   : > { %v1101_v46 = vadd.f32 %v1759_v42, %v940_v41  ;;  %v1650_v47 = vadd.f32 %v1649_v45, %v1648_v39  ;;  %v1761_v49 = vpop.f32.mrf.mxu1  ;;  %v1247_v50 = vmul.f32 %v2199_v48, %v1208_v40 }
 0x10f   : > { %v1651_v51 = vpop.f32.mrf.mxu0  ;;  %v1762_v54 = vadd.f32 %v1761_v49, %v1760_v43 }
 0x110   : > { %v1209_v52 = vmax.f32 %v1101_v46, 0.0  ;;  %v943_v53 = vadd.f32 %v1650_v47, %v2193_v35  ;;  %v1763_v55 = vpop.f32.mrf.mxu1  ;;  %v1290_v56 = vsel %vm1274_vm0, %v1247_v50, 0.0 }
 0x111   : > { %v1652_v57 = vpop.f32.mrf.mxu0  ;;  %1291 = vadd.xlane.f32.xlu1 %v1290_v56 }
 0x112   : > { %v1104_v58 = vadd.f32 %v1762_v54, %v943_v53  ;;  %v1653_v59 = vadd.f32 %v1652_v57, %v1651_v51  ;;  %v1764_v60 = vpop.f32.mrf.mxu1  ;;  %v1248_v61 = vmul.f32 %v2199_v48, %v1209_v52 }
 0x113   : > { %v1654_v62 = vpop.f32.mrf.mxu0  ;;  %v1765_v1 = vadd.f32 %v1764_v60, %v1763_v55 }
 0x114   : > { %v1210_v63 = vmax.f32 %v1104_v58, 0.0  ;;  %v948_v0 = vadd.f32 %v1653_v59, %v2193_v35  ;;  %v1766_v2 = vpop.f32.mrf.mxu1  ;;  %v1293_v3 = vsel %vm1274_vm0, %v1248_v61, 0.0 }
 0x115   : > { %v1655_v4 = vpop.f32.mrf.mxu0  ;;  %1294 = vadd.xlane.f32.xlu0 %v1293_v3 }
 0x116   : > { %v1109_v5 = vadd.f32 %v1765_v1, %v948_v0  ;;  %v1656_v6 = vadd.f32 %v1655_v4, %v1654_v62  ;;  %v1767_v7 = vpop.f32.mrf.mxu1  ;;  %v1249_v8 = vmul.f32 %v2199_v48, %v1210_v63 }
 0x117   : > { %v1657_v9 = vpop.f32.mrf.mxu0  ;;  %v1768_v12 = vadd.f32 %v1767_v7, %v1766_v2 }
 0x118   : > { %v1211_v10 = vmax.f32 %v1109_v5, 0.0  ;;  %v951_v11 = vadd.f32 %v1656_v6, %v2193_v35  ;;  %v1769_v13 = vpop.f32.mrf.mxu1  ;;  %v1296_v14 = vsel %vm1274_vm0, %v1249_v8, 0.0 }
 0x119   : > { %v1658_v15 = vpop.f32.mrf.mxu0  ;;  %1297 = vadd.xlane.f32.xlu1 %v1296_v14 }
 0x11a   : > { %v1112_v16 = vadd.f32 %v1768_v12, %v951_v11  ;;  %v1659_v17 = vadd.f32 %v1658_v15, %v1657_v9  ;;  %v1770_v18 = vpop.f32.mrf.mxu1  ;;  %v1250_v19 = vmul.f32 %v2199_v48, %v1211_v10 }
 0x11b   : > { %v1660_v20 = vpop.f32.mrf.mxu0  ;;  %v1771_v23 = vadd.f32 %v1770_v18, %v1769_v13 }
 0x11c   : > { %v1212_v21 = vmax.f32 %v1112_v16, 0.0  ;;  %v956_v22 = vadd.f32 %v1659_v17, %v2193_v35  ;;  %v1772_v24 = vpop.f32.mrf.mxu1  ;;  %v1299_v25 = vsel %vm1274_vm0, %v1250_v19, 0.0 }
 0x11d   : > { %v1661_v26 = vpop.f32.mrf.mxu0  ;;  %1300 = vadd.xlane.f32.xlu0 %v1299_v25 }
 0x11e   : > { %v1117_v27 = vadd.f32 %v1771_v23, %v956_v22  ;;  %v1662_v28 = vadd.f32 %v1661_v26, %v1660_v20  ;;  %v1773_v29 = vpop.f32.mrf.mxu1  ;;  %v1251_v30 = vmul.f32 %v2199_v48, %v1212_v21 }
 0x11f   : > { %v1663_v31 = vpop.f32.mrf.mxu0  ;;  %v1774_v34 = vadd.f32 %v1773_v29, %v1772_v24 }
 0x120   : > { %v1213_v32 = vmax.f32 %v1117_v27, 0.0  ;;  %v959_v33 = vadd.f32 %v1662_v28, %v2193_v35  ;;  %v1775_v36 = vpop.f32.mrf.mxu1  ;;  %v1302_v37 = vsel %vm1274_vm0, %v1251_v30, 0.0 }
 0x121   : > { %v1664_v38 = vpop.f32.mrf.mxu0  ;;  %1303 = vadd.xlane.f32.xlu1 %v1302_v37 }
 0x122   : > { %v1120_v39 = vadd.f32 %v1774_v34, %v959_v33  ;;  %v1665_v40 = vadd.f32 %v1664_v38, %v1663_v31  ;;  %v1776_v41 = vpop.f32.mrf.mxu1  ;;  %v1252_v42 = vmul.f32 %v2199_v48, %v1213_v32 }
 0x123   : > { %v1666_v43 = vpop.f32.mrf.mxu0  ;;  %v1777_v46 = vadd.f32 %v1776_v41, %v1775_v36 }
 0x124   : > { %v1214_v44 = vmax.f32 %v1120_v39, 0.0  ;;  %v964_v45 = vadd.f32 %v1665_v40, %v2193_v35  ;;  %v1778_v47 = vpop.f32.mrf.mxu1  ;;  %v1305_v49 = vsel %vm1274_vm0, %v1252_v42, 0.0 }
 0x125   : > { %v1667_v50 = vpop.f32.mrf.mxu0  ;;  %1306 = vadd.xlane.f32.xlu0 %v1305_v49 }
 0x126   : > { %v1125_v51 = vadd.f32 %v1777_v46, %v964_v45  ;;  %v1668_v52 = vadd.f32 %v1667_v50, %v1666_v43  ;;  %v1779_v53 = vpop.f32.mrf.mxu1  ;;  %v1253_v54 = vmul.f32 %v2199_v48, %v1214_v44 }
 0x127   : > { %v1669_v55 = vpop.f32.mrf.mxu0  ;;  %v1780_v58 = vadd.f32 %v1779_v53, %v1778_v47 }
 0x128   : > { %v1215_v56 = vmax.f32 %v1125_v51, 0.0  ;;  %v967_v57 = vadd.f32 %v1668_v52, %v2193_v35  ;;  %v1781_v59 = vpop.f32.mrf.mxu1  ;;  %v1308_v60 = vsel %vm1274_vm0, %v1253_v54, 0.0 }
 0x129   : > { %v1670_v61 = vpop.f32.mrf.mxu0  ;;  %1309 = vadd.xlane.f32.xlu1 %v1308_v60 }
 0x12a   : > { %v1128_v62 = vadd.f32 %v1780_v58, %v967_v57  ;;  %v1671_v63 = vadd.f32 %v1670_v61, %v1669_v55  ;;  %v1782_v0 = vpop.f32.mrf.mxu1  ;;  %v1254_v1 = vmul.f32 %v2199_v48, %v1215_v56 }
 0x12b   : > { %v1672_v2 = vpop.f32.mrf.mxu0  ;;  %v1783_v5 = vadd.f32 %v1782_v0, %v1781_v59 }
 0x12c   : > { %v1216_v3 = vmax.f32 %v1128_v62, 0.0  ;;  %v972_v4 = vadd.f32 %v1671_v63, %v2193_v35  ;;  %v1784_v6 = vpop.f32.mrf.mxu1  ;;  %v1311_v7 = vsel %vm1274_vm0, %v1254_v1, 0.0 }
 0x12d   : > { %v1673_v8 = vpop.f32.mrf.mxu0  ;;  %1312 = vadd.xlane.f32.xlu0 %v1311_v7 }
 0x12e   : > { %v1133_v9 = vadd.f32 %v1783_v5, %v972_v4  ;;  %v1674_v10 = vadd.f32 %v1673_v8, %v1672_v2  ;;  %v1785_v11 = vpop.f32.mrf.mxu1  ;;  %v1255_v12 = vmul.f32 %v2199_v48, %v1216_v3 }
 0x12f   : > { %v1675_v13 = vpop.f32.mrf.mxu0  ;;  %v1786_v16 = vadd.f32 %v1785_v11, %v1784_v6 }
 0x130   : > { %v1217_v14 = vmax.f32 %v1133_v9, 0.0  ;;  %v975_v15 = vadd.f32 %v1674_v10, %v2193_v35  ;;  %v1787_v17 = vpop.f32.mrf.mxu1  ;;  %v1314_v18 = vsel %vm1274_vm0, %v1255_v12, 0.0 }
 0x131   : > { %v1676_v19 = vpop.f32.mrf.mxu0  ;;  %1315 = vadd.xlane.f32.xlu1 %v1314_v18 }
 0x132   : > { %v1136_v20 = vadd.f32 %v1786_v16, %v975_v15  ;;  %v1677_v21 = vadd.f32 %v1676_v19, %v1675_v13  ;;  %v1788_v22 = vpop.f32.mrf.mxu1  ;;  %v1256_v23 = vmul.f32 %v2199_v48, %v1217_v14 }
 0x133   : > { %v1678_v24 = vpop.f32.mrf.mxu0  ;;  %v1789_v27 = vadd.f32 %v1788_v22, %v1787_v17 }
 0x134   : > { %v1218_v25 = vmax.f32 %v1136_v20, 0.0  ;;  %v980_v26 = vadd.f32 %v1677_v21, %v2193_v35  ;;  %v1790_v28 = vpop.f32.mrf.mxu1  ;;  %v1317_v29 = vsel %vm1274_vm0, %v1256_v23, 0.0 }
 0x135   : > { %v1679_v30 = vpop.f32.mrf.mxu0  ;;  %1318 = vadd.xlane.f32.xlu0 %v1317_v29 }
 0x136   : > { %v1141_v31 = vadd.f32 %v1789_v27, %v980_v26  ;;  %v1680_v32 = vadd.f32 %v1679_v30, %v1678_v24  ;;  %v1791_v33 = vpop.f32.mrf.mxu1  ;;  %v1257_v34 = vmul.f32 %v2199_v48, %v1218_v25 }
 0x137   : > { %v1681_v36 = vpop.f32.mrf.mxu0  ;;  %v1792_v39 = vadd.f32 %v1791_v33, %v1790_v28 }
 0x138   : > { %v1219_v37 = vmax.f32 %v1141_v31, 0.0  ;;  %v983_v38 = vadd.f32 %v1680_v32, %v2193_v35  ;;  %v1793_v40 = vpop.f32.mrf.mxu1  ;;  %v1320_v41 = vsel %vm1274_vm0, %v1257_v34, 0.0 }
 0x139   : > { %v1682_v42 = vpop.f32.mrf.mxu0  ;;  %1321 = vadd.xlane.f32.xlu1 %v1320_v41 }
 0x13a   : > { %v1144_v43 = vadd.f32 %v1792_v39, %v983_v38  ;;  %v1683_v44 = vadd.f32 %v1682_v42, %v1681_v36  ;;  %v1794_v45 = vpop.f32.mrf.mxu1  ;;  %v1258_v46 = vmul.f32 %v2199_v48, %v1219_v37 }
 0x13b   : > { %v1684_v47 = vpop.f32.mrf.mxu0  ;;  %v1795_v51 = vadd.f32 %v1794_v45, %v1793_v40 }
 0x13c   : > { %v1220_v49 = vmax.f32 %v1144_v43, 0.0  ;;  %v988_v50 = vadd.f32 %v1683_v44, %v2193_v35  ;;  %v1796_v52 = vpop.f32.mrf.mxu1  ;;  %v1323_v53 = vsel %vm1274_vm0, %v1258_v46, 0.0 }
 0x13d   : > { %v1685_v54 = vpop.f32.mrf.mxu0  ;;  %1324 = vadd.xlane.f32.xlu0 %v1323_v53 }
 0x13e   : > { %v1149_v55 = vadd.f32 %v1795_v51, %v988_v50  ;;  %v1686_v56 = vadd.f32 %v1685_v54, %v1684_v47  ;;  %v1797_v57 = vpop.f32.mrf.mxu1  ;;  %v1259_v58 = vmul.f32 %v2199_v48, %v1220_v49 }
 0x13f   : > { %v1687_v59 = vpop.f32.mrf.mxu0  ;;  %v1798_v62 = vadd.f32 %v1797_v57, %v1796_v52 }
 0x140   : > { %v1221_v60 = vmax.f32 %v1149_v55, 0.0  ;;  %v991_v61 = vadd.f32 %v1686_v56, %v2193_v35  ;;  %v1799_v63 = vpop.f32.mrf.mxu1  ;;  %v1326_v0 = vsel %vm1274_vm0, %v1259_v58, 0.0 }
 0x141   : > { %v1688_v1 = vpop.f32.mrf.mxu0  ;;  %1327 = vadd.xlane.f32.xlu1 %v1326_v0 }
 0x142   : > { %v1152_v2 = vadd.f32 %v1798_v62, %v991_v61  ;;  %v1689_v3 = vadd.f32 %v1688_v1, %v1687_v59  ;;  %v1800_v4 = vpop.f32.mrf.mxu1  ;;  %v1260_v5 = vmul.f32 %v2199_v48, %v1221_v60 }
 0x143   : > { %v1690_v6 = vpop.f32.mrf.mxu0  ;;  %v1801_v9 = vadd.f32 %v1800_v4, %v1799_v63 }
 0x144   : > { %v1222_v7 = vmax.f32 %v1152_v2, 0.0  ;;  %v996_v8 = vadd.f32 %v1689_v3, %v2193_v35  ;;  %v1802_v10 = vpop.f32.mrf.mxu1  ;;  %v1329_v11 = vsel %vm1274_vm0, %v1260_v5, 0.0 }
 0x145   : > { %v1691_v12 = vpop.f32.mrf.mxu0  ;;  %1330 = vadd.xlane.f32.xlu0 %v1329_v11 }
 0x146   : > { %v1157_v13 = vadd.f32 %v1801_v9, %v996_v8  ;;  %v1692_v14 = vadd.f32 %v1691_v12, %v1690_v6  ;;  %v1803_v15 = vpop.f32.mrf.mxu1  ;;  %v1261_v16 = vmul.f32 %v2199_v48, %v1222_v7 }
 0x147   : > { %v1693_v17 = vpop.f32.mrf.mxu0  ;;  %v1804_v20 = vadd.f32 %v1803_v15, %v1802_v10 }
 0x148   : > { %v1223_v18 = vmax.f32 %v1157_v13, 0.0  ;;  %v999_v19 = vadd.f32 %v1692_v14, %v2193_v35  ;;  %v1805_v21 = vpop.f32.mrf.mxu1  ;;  %v1332_v22 = vsel %vm1274_vm0, %v1261_v16, 0.0 }
 0x149   : > { %v1694_v23 = vpop.f32.mrf.mxu0  ;;  %1333 = vadd.xlane.f32.xlu1 %v1332_v22 }
 0x14a   : > { %v1160_v24 = vadd.f32 %v1804_v20, %v999_v19  ;;  %v1695_v25 = vadd.f32 %v1694_v23, %v1693_v17  ;;  %v1806_v26 = vpop.f32.mrf.mxu1  ;;  %v1262_v27 = vmul.f32 %v2199_v48, %v1223_v18 }
 0x14b   : > { %v1696_v28 = vpop.f32.mrf.mxu0  ;;  %v1807_v31 = vadd.f32 %v1806_v26, %v1805_v21 }
 0x14c   : > { %v1224_v29 = vmax.f32 %v1160_v24, 0.0  ;;  %v1004_v30 = vadd.f32 %v1695_v25, %v2193_v35  ;;  %v1808_v32 = vpop.f32.mrf.mxu1  ;;  %v1335_v33 = vsel %vm1274_vm0, %v1262_v27, 0.0 }
 0x14d   : > { %v1697_v34 = vpop.f32.mrf.mxu0  ;;  %1336 = vadd.xlane.f32.xlu0 %v1335_v33 }
 0x14e   : > { %v1165_v36 = vadd.f32 %v1807_v31, %v1004_v30  ;;  %v1698_v37 = vadd.f32 %v1697_v34, %v1696_v28  ;;  %v1809_v38 = vpop.f32.mrf.mxu1  ;;  %v1263_v39 = vmul.f32 %v2199_v48, %v1224_v29 }
 0x14f   : > { %v1699_v40 = vpop.f32.mrf.mxu0  ;;  %v1810_v43 = vadd.f32 %v1809_v38, %v1808_v32 }
 0x150   : > { %v1225_v41 = vmax.f32 %v1165_v36, 0.0  ;;  %v1007_v42 = vadd.f32 %v1698_v37, %v2193_v35  ;;  %v1811_v44 = vpop.f32.mrf.mxu1  ;;  %v1338_v45 = vsel %vm1274_vm0, %v1263_v39, 0.0 }
 0x151   : > { %v1700_v46 = vpop.f32.mrf.mxu0  ;;  %1339 = vadd.xlane.f32.xlu1 %v1338_v45 }
 0x152   : > { %v1168_v47 = vadd.f32 %v1810_v43, %v1007_v42  ;;  %v1701_v49 = vadd.f32 %v1700_v46, %v1699_v40  ;;  %v1812_v50 = vpop.f32.mrf.mxu1  ;;  %v1264_v51 = vmul.f32 %v2199_v48, %v1225_v41 }
 0x153   : > { %v1702_v52 = vpop.f32.mrf.mxu0  ;;  %v1813_v55 = vadd.f32 %v1812_v50, %v1811_v44 }
 0x154   : > { %v1226_v53 = vmax.f32 %v1168_v47, 0.0  ;;  %v1012_v54 = vadd.f32 %v1701_v49, %v2193_v35  ;;  %v1814_v56 = vpop.f32.mrf.mxu1  ;;  %v1341_v57 = vsel %vm1274_vm0, %v1264_v51, 0.0 }
 0x155   : > { %v1703_v58 = vpop.f32.mrf.mxu0  ;;  %1342 = vadd.xlane.f32.xlu0 %v1341_v57 }
 0x156   : > { %v1173_v59 = vadd.f32 %v1813_v55, %v1012_v54  ;;  %v1704_v60 = vadd.f32 %v1703_v58, %v1702_v52  ;;  %v1815_v61 = vpop.f32.mrf.mxu1  ;;  %v1265_v62 = vmul.f32 %v2199_v48, %v1226_v53 }
 0x157   : > { %v1705_v63 = vpop.f32.mrf.mxu0  ;;  %v1816_v2 = vadd.f32 %v1815_v61, %v1814_v56 }
 0x158   : > { %v1227_v0 = vmax.f32 %v1173_v59, 0.0  ;;  %v1015_v1 = vadd.f32 %v1704_v60, %v2193_v35  ;;  %v1817_v3 = vpop.f32.mrf.mxu1  ;;  %v1344_v4 = vsel %vm1274_vm0, %v1265_v62, 0.0 }
 0x159   : > { %v1706_v5 = vpop.f32.mrf.mxu0  ;;  %1345 = vadd.xlane.f32.xlu1 %v1344_v4 }
 0x15a   : > { %v1176_v6 = vadd.f32 %v1816_v2, %v1015_v1  ;;  %v1707_v7 = vadd.f32 %v1706_v5, %v1705_v63  ;;  %v1818_v8 = vpop.f32.mrf.mxu1  ;;  %v1266_v9 = vmul.f32 %v2199_v48, %v1227_v0 }
 0x15b   : > { %v1708_v10 = vpop.f32.mrf.mxu0  ;;  %v1819_v13 = vadd.f32 %v1818_v8, %v1817_v3 }
 0x15c   : > { %v1228_v11 = vmax.f32 %v1176_v6, 0.0  ;;  %v1020_v12 = vadd.f32 %v1707_v7, %v2193_v35  ;;  %v1820_v14 = vpop.f32.mrf.mxu1  ;;  %v1347_v15 = vsel %vm1274_vm0, %v1266_v9, 0.0 }
 0x15d   : > { %v1709_v16 = vpop.f32.mrf.mxu0  ;;  %1348 = vadd.xlane.f32.xlu0 %v1347_v15 }
 0x15e   : > { %v1181_v17 = vadd.f32 %v1819_v13, %v1020_v12  ;;  %v1710_v18 = vadd.f32 %v1709_v16, %v1708_v10  ;;  %v1821_v19 = vpop.f32.mrf.mxu1  ;;  %v1267_v20 = vmul.f32 %v2199_v48, %v1228_v11  ;;  %v2297_v13 = vld [vmem:[#allocation2] ss:$0 sm:$0xff] }
 0x15f   : > { %v1711_v21 = vpop.f32.mrf.mxu0  ;;  %v1822_v24 = vadd.f32 %v1821_v19, %v1820_v14 }
 0x160   : > { %v1229_v22 = vmax.f32 %v1181_v17, 0.0  ;;  %v1023_v23 = vadd.f32 %v1710_v18, %v2193_v35  ;;  %v1823_v25 = vpop.f32.mrf.mxu1  ;;  %v1350_v26 = vsel %vm1274_vm0, %v1267_v20, 0.0 }
 0x161   : > { %v1712_v27 = vpop.f32.mrf.mxu0  ;;  %1351 = vadd.xlane.f32.xlu1 %v1350_v26 }
 0x162   : > { %v1184_v28 = vadd.f32 %v1822_v24, %v1023_v23  ;;  %v1713_v29 = vadd.f32 %v1712_v27, %v1711_v21  ;;  %v1824_v30 = vpop.f32.mrf.mxu1  ;;  %v1268_v31 = vmul.f32 %v2199_v48, %v1229_v22 }
 0x163   : > { %v1714_v32 = vpop.f32.mrf.mxu0  ;;  %v1825_v36 = vadd.f32 %v1824_v30, %v1823_v25 }
 0x164   : > { %v1230_v33 = vmax.f32 %v1184_v28, 0.0  ;;  %v1028_v34 = vadd.f32 %v1713_v29, %v2193_v35  ;;  %v1826_v37 = vpop.f32.mrf.mxu1  ;;  %v1353_v38 = vsel %vm1274_vm0, %v1268_v31, 0.0 }
 0x165   : > { %v1715_v39 = vpop.f32.mrf.mxu0  ;;  %1354 = vadd.xlane.f32.xlu0 %v1353_v38 }
 0x166   : > { %v1189_v40 = vadd.f32 %v1825_v36, %v1028_v34  ;;  %v1716_v41 = vadd.f32 %v1715_v39, %v1714_v32  ;;  %v1827_v42 = vpop.f32.mrf.mxu1  ;;  %v1269_v43 = vmul.f32 %v2199_v48, %v1230_v33 }
 0x167   : > { %v1717_v44 = vpop.f32.mrf.mxu0  ;;  %v1828_v47 = vadd.f32 %v1827_v42, %v1826_v37 }
 0x168   : > { %v1231_v45 = vmax.f32 %v1189_v40, 0.0  ;;  %v1031_v46 = vadd.f32 %v1716_v41, %v2193_v35  ;;  %v1829_v49 = vpop.f32.mrf.mxu1  ;;  %v1356_v50 = vsel %vm1274_vm0, %v1269_v43, 0.0 }
 0x169   : > { %v1718_v51 = vpop.f32.mrf.mxu0  ;;  %1357 = vadd.xlane.f32.xlu1 %v1356_v50 }
 0x16a   : > { %v1192_v52 = vadd.f32 %v1828_v47, %v1031_v46  ;;  %v1719_v53 = vadd.f32 %v1718_v51, %v1717_v44  ;;  %v1830_v54 = vpop.f32.mrf.mxu1  ;;  %v1270_v55 = vmul.f32 %v2199_v48, %v1231_v45 }
 0x16b   : > { %v1720_v56 = vpop.f32.mrf.mxu0  ;;  %v1831_v59 = vadd.f32 %v1830_v54, %v1829_v49 }
 0x16c   : > { %v1232_v57 = vmax.f32 %v1192_v52, 0.0  ;;  %v1036_v58 = vadd.f32 %v1719_v53, %v2193_v35  ;;  %v1832_v60 = vpop.f32.mrf.mxu1  ;;  %v1359_v61 = vsel %vm1274_vm0, %v1270_v55, 0.0 }
 0x16d   : > { %v1721_v62 = vpop.f32.mrf.mxu0  ;;  %1360 = vadd.xlane.f32.xlu0 %v1359_v61 }
 0x16e   : > { %v1197_v63 = vadd.f32 %v1831_v59, %v1036_v58  ;;  %v1722_v0 = vadd.f32 %v1721_v62, %v1720_v56  ;;  %v1833_v1 = vpop.f32.mrf.mxu1  ;;  %v1271_v2 = vmul.f32 %v2199_v48, %v1232_v57 }
 0x16f   : > { %v1834_v5 = vadd.f32 %v1833_v1, %v1832_v60 }
 0x170   : > { %v1233_v3 = vmax.f32 %v1197_v63, 0.0  ;;  %v1039_v4 = vadd.f32 %v1722_v0, %v2193_v35  ;;  %v1362_v6 = vsel %vm1274_vm0, %v1271_v2, 0.0 }
 0x171   : > { %1363 = vadd.xlane.f32.xlu1 %v1362_v6 }
 0x172   : > { %v1200_v7 = vadd.f32 %v1834_v5, %v1039_v4  ;;  %v1272_v8 = vmul.f32 %v2199_v48, %v1233_v3 }
 0x174   : > { %v1234_v9 = vmax.f32 %v1200_v7, 0.0  ;;  %v1365_v10 = vsel %vm1274_vm0, %v1272_v8, 0.0 }
 0x175   : > { %1366 = vadd.xlane.f32.xlu0 %v1365_v10 }
 0x176   : > { %v1273_v11 = vmul.f32 %v2199_v48, %v1234_v9 }
 0x178   : > { %v1368_v12 = vsel %vm1274_vm0, %v1273_v11, 0.0 }
 0x179   : > { %1369 = vadd.xlane.f32.xlu1 %v1368_v12 }
 0x186   : > { %v1277_v35 = vpop.xlane.xlu0 %1276 }
 0x187   : > { %v1378_v48 = vadd.f32 %v2297_v13, %v1277_v35 }
 0x189   : > { %1411 = vst.msk [vmem:[%s2302_s24] sm:$0xff] %vm1410_vm1, %v1378_v48 }
 0x18a   : > { %v1280_v14 = vpop.xlane.xlu0 %1279 }
 0x18b   : > { %v1379_v15 = vadd.f32 %v2297_v13, %v1280_v14 }
 0x18d   : > { %1412 = vst.msk [vmem:[%s2302_s24 + $0x8] sm:$0xff] %vm1410_vm1, %v1379_v15 }
 0x18e   : > { %v1283_v16 = vpop.xlane.xlu1 %1282 }
 0x18f   : > { %v1380_v17 = vadd.f32 %v2297_v13, %v1283_v16 }
 0x191   : > { %1413 = vst.msk [vmem:[%s2302_s24 + $0x10] sm:$0xff] %vm1410_vm1, %v1380_v17 }
 0x192   : > { %v1286_v18 = vpop.xlane.xlu1 %1285 }
 0x193   : > { %v1381_v19 = vadd.f32 %v2297_v13, %v1286_v18 }
 0x195   : > { %1414 = vst.msk [vmem:[%s2302_s24 + $0x18] sm:$0xff] %vm1410_vm1, %v1381_v19 }
 0x196   : > { %v1289_v20 = vpop.xlane.xlu0 %1288 }
 0x197   : > { %v1382_v21 = vadd.f32 %v2297_v13, %v1289_v20 }
 0x199   : > { %1415 = vst.msk [vmem:[%s2302_s24 + $0x20] sm:$0xff] %vm1410_vm1, %v1382_v21 }
 0x19a   : > { %v1292_v22 = vpop.xlane.xlu1 %1291 }
 0x19b   : > { %v1383_v23 = vadd.f32 %v2297_v13, %v1292_v22 }
 0x19d   : > { %1416 = vst.msk [vmem:[%s2302_s24 + $0x28] sm:$0xff] %vm1410_vm1, %v1383_v23 }
 0x19e   : > { %v1295_v24 = vpop.xlane.xlu0 %1294 }
 0x19f   : > { %v1384_v25 = vadd.f32 %v2297_v13, %v1295_v24 }
 0x1a1   : > { %1417 = vst.msk [vmem:[%s2302_s24 + $0x30] sm:$0xff] %vm1410_vm1, %v1384_v25 }
 0x1a2   : > { %v1298_v26 = vpop.xlane.xlu1 %1297 }
 0x1a3   : > { %v1385_v27 = vadd.f32 %v2297_v13, %v1298_v26 }
 0x1a5   : > { %1418 = vst.msk [vmem:[%s2302_s24 + $0x38] sm:$0xff] %vm1410_vm1, %v1385_v27 }
 0x1a6   : > { %v1301_v28 = vpop.xlane.xlu0 %1300 }
 0x1a7   : > { %v1386_v29 = vadd.f32 %v2297_v13, %v1301_v28 }
 0x1a9   : > { %1419 = vst.msk [vmem:[%s2302_s24 + $0x40] sm:$0xff] %vm1410_vm1, %v1386_v29 }
 0x1aa   : > { %v1304_v30 = vpop.xlane.xlu1 %1303 }
 0x1ab   : > { %v1387_v31 = vadd.f32 %v2297_v13, %v1304_v30 }
 0x1ad   : > { %1420 = vst.msk [vmem:[%s2302_s24 + $0x48] sm:$0xff] %vm1410_vm1, %v1387_v31 }
 0x1ae   : > { %v1307_v32 = vpop.xlane.xlu0 %1306 }
 0x1af   : > { %v1388_v33 = vadd.f32 %v2297_v13, %v1307_v32 }
 0x1b1   : > { %1421 = vst.msk [vmem:[%s2302_s24 + $0x50] sm:$0xff] %vm1410_vm1, %v1388_v33 }
 0x1b2   : > { %v1310_v34 = vpop.xlane.xlu1 %1309 }
 0x1b3   : > { %v1389_v36 = vadd.f32 %v2297_v13, %v1310_v34 }
 0x1b5   : > { %1422 = vst.msk [vmem:[%s2302_s24 + $0x58] sm:$0xff] %vm1410_vm1, %v1389_v36 }
 0x1b6   : > { %v1313_v37 = vpop.xlane.xlu0 %1312 }
 0x1b7   : > { %v1390_v38 = vadd.f32 %v2297_v13, %v1313_v37 }
 0x1b9   : > { %1423 = vst.msk [vmem:[%s2302_s24 + $0x60] sm:$0xff] %vm1410_vm1, %v1390_v38 }
 0x1ba   : > { %v1316_v39 = vpop.xlane.xlu1 %1315 }
 0x1bb   : > { %v1391_v40 = vadd.f32 %v2297_v13, %v1316_v39 }
 0x1bd   : > { %1424 = vst.msk [vmem:[%s2302_s24 + $0x68] sm:$0xff] %vm1410_vm1, %v1391_v40 }
 0x1be   : > { %v1319_v41 = vpop.xlane.xlu0 %1318 }
 0x1bf   : > { %v1392_v42 = vadd.f32 %v2297_v13, %v1319_v41 }
 0x1c1   : > { %1425 = vst.msk [vmem:[%s2302_s24 + $0x70] sm:$0xff] %vm1410_vm1, %v1392_v42 }
 0x1c2   : > { %v1322_v43 = vpop.xlane.xlu1 %1321 }
 0x1c3   : > { %v1393_v44 = vadd.f32 %v2297_v13, %v1322_v43 }
 0x1c5   : > { %1426 = vst.msk [vmem:[%s2302_s24 + $0x78] sm:$0xff] %vm1410_vm1, %v1393_v44 }
 0x1c6   : > { %v1325_v45 = vpop.xlane.xlu0 %1324 }
 0x1c7   : > { %v1394_v46 = vadd.f32 %v2297_v13, %v1325_v45 }
 0x1c9   : > { %1427 = vst.msk [vmem:[%s2302_s24 + $0x80] sm:$0xff] %vm1410_vm1, %v1394_v46 }
 0x1ca   : > { %v1328_v47 = vpop.xlane.xlu1 %1327 }
 0x1cb   : > { %v1395_v49 = vadd.f32 %v2297_v13, %v1328_v47 }
 0x1cd   : > { %1428 = vst.msk [vmem:[%s2302_s24 + $0x88] sm:$0xff] %vm1410_vm1, %v1395_v49 }
 0x1ce   : > { %v1331_v50 = vpop.xlane.xlu0 %1330 }
 0x1cf   : > { %v1396_v51 = vadd.f32 %v2297_v13, %v1331_v50 }
 0x1d1   : > { %1429 = vst.msk [vmem:[%s2302_s24 + $0x90] sm:$0xff] %vm1410_vm1, %v1396_v51 }
 0x1d2   : > { %v1334_v52 = vpop.xlane.xlu1 %1333 }
 0x1d3   : > { %v1397_v53 = vadd.f32 %v2297_v13, %v1334_v52 }
 0x1d5   : > { %1430 = vst.msk [vmem:[%s2302_s24 + $0x98] sm:$0xff] %vm1410_vm1, %v1397_v53 }
 0x1d6   : > { %v1337_v54 = vpop.xlane.xlu0 %1336 }
 0x1d7   : > { %v1398_v55 = vadd.f32 %v2297_v13, %v1337_v54 }
 0x1d9   : > { %1431 = vst.msk [vmem:[%s2302_s24 + $0xa0] sm:$0xff] %vm1410_vm1, %v1398_v55 }
 0x1da   : > { %v1340_v56 = vpop.xlane.xlu1 %1339 }
 0x1db   : > { %v1399_v57 = vadd.f32 %v2297_v13, %v1340_v56 }
 0x1dd   : > { %1432 = vst.msk [vmem:[%s2302_s24 + $0xa8] sm:$0xff] %vm1410_vm1, %v1399_v57 }
 0x1de   : > { %v1343_v58 = vpop.xlane.xlu0 %1342 }
 0x1df   : > { %v1400_v59 = vadd.f32 %v2297_v13, %v1343_v58 }
 0x1e1   : > { %1433 = vst.msk [vmem:[%s2302_s24 + $0xb0] sm:$0xff] %vm1410_vm1, %v1400_v59 }
 0x1e2   : > { %v1346_v60 = vpop.xlane.xlu1 %1345 }
 0x1e3   : > { %v1401_v61 = vadd.f32 %v2297_v13, %v1346_v60 }
 0x1e5   : > { %1434 = vst.msk [vmem:[%s2302_s24 + $0xb8] sm:$0xff] %vm1410_vm1, %v1401_v61 }
 0x1e6   : > { %v1349_v62 = vpop.xlane.xlu0 %1348 }
 0x1e7   : > { %v1402_v63 = vadd.f32 %v2297_v13, %v1349_v62 }
 0x1e9   : > { %1435 = vst.msk [vmem:[%s2302_s24 + $0xc0] sm:$0xff] %vm1410_vm1, %v1402_v63 }
 0x1ea   : > { %v1352_v0 = vpop.xlane.xlu1 %1351 }
 0x1eb   : > { %v1403_v1 = vadd.f32 %v2297_v13, %v1352_v0 }
 0x1ed   : > { %1436 = vst.msk [vmem:[%s2302_s24 + $0xc8] sm:$0xff] %vm1410_vm1, %v1403_v1 }
 0x1ee   : > { %v1355_v2 = vpop.xlane.xlu0 %1354 }
 0x1ef   : > { %v1404_v3 = vadd.f32 %v2297_v13, %v1355_v2 }
 0x1f1   : > { %1437 = vst.msk [vmem:[%s2302_s24 + $0xd0] sm:$0xff] %vm1410_vm1, %v1404_v3 }
 0x1f2   : > { %v1358_v4 = vpop.xlane.xlu1 %1357 }
 0x1f3   : > { %v1405_v5 = vadd.f32 %v2297_v13, %v1358_v4 }
 0x1f5   : > { %1438 = vst.msk [vmem:[%s2302_s24 + $0xd8] sm:$0xff] %vm1410_vm1, %v1405_v5 }
 0x1f6   : > { %v1361_v6 = vpop.xlane.xlu0 %1360 }
 0x1f7   : > { %v1406_v7 = vadd.f32 %v2297_v13, %v1361_v6 }
 0x1f9   : > { %1439 = vst.msk [vmem:[%s2302_s24 + $0xe0] sm:$0xff] %vm1410_vm1, %v1406_v7 }
 0x1fa   : > { %v1364_v8 = vpop.xlane.xlu1 %1363 }
 0x1fb   : > { %v1407_v9 = vadd.f32 %v2297_v13, %v1364_v8 }
 0x1fd   : > { %1440 = vst.msk [vmem:[%s2302_s24 + $0xe8] sm:$0xff] %vm1410_vm1, %v1407_v9 }
 0x1fe   : > { %v1367_v10 = vpop.xlane.xlu0 %1366 }
 0x1ff   : > { %v1408_v11 = vadd.f32 %v2297_v13, %v1367_v10 }
 0x201   : > { %1441 = vst.msk [vmem:[%s2302_s24 + $0xf0] sm:$0xff] %vm1410_vm1, %v1408_v11 }
 0x202   : > { %v1370_v12 = vpop.xlane.xlu1 %1369 }
 0x203   : > { %v1409_v35 = vadd.f32 %v2297_v13, %v1370_v12 }
 0x205   : > { %1442 = vst.msk [vmem:[%s2302_s24 + $0xf8] sm:$0xff] %vm1410_vm1, %v1409_v35 }
 0x206 PF: > { %s17_s20 = sadd.s32 1, %s1977_s20  }
 0x207   : > { %p14_p4 = scmp.ge.s32.totalorder %s17_s20, 4  }
 0x209   :  { %16 = sbr.rel (!%p14_p4) target bundleno = 3 (0x3), region = 70 }

</bundles_post_ra>
